<compile_context>
chip_gen: v7x
topology: tpu7x:2x2x1
jax: 0.10.0
libtpu: 0.0.40
codegen_flags: <defaults>
</compile_context>

<pallas_src>
import jax
import jax.numpy as jnp
from jax.experimental import pallas as pl
from jax.experimental.pallas import tpu as pltpu

# ---------------- tiny T5-style config (lane-dense) ----------------
VOCAB = 256
D_MODEL = 128
N_HEADS = 4
D_KV = 32
HD = N_HEADS * D_KV          # 128
D_FF = 256
N_LAYERS = 2
EPS = 1e-6
REL_BUCKETS = 32
REL_MAX_DIST = 128
PAD_ID = 0
DECODER_START = 0
IGNORE = -100
NEG = -1e9


# ---------------- in-kernel helpers ----------------
def _rms(x, w):
    # T5 LayerNorm: RMS norm, no mean subtraction, no bias.
    var = jnp.mean(x * x, axis=-1, keepdims=True)
    return x * jax.lax.rsqrt(var + EPS) * w


def _mha_proj(q, k, v, wo, bias_fn):
    """All heads of T5 attention (+ output projection) on 2-D tiles.

    q: (Sq, H*dkv), k/v: (Sk, H*dkv), wo: (H*dkv, D).
    Per-head context is folded into the output projection as a running sum,
    so no concat / transposes and the result is a lane-dense (Sq, D) slab.
    T5 attention has NO 1/sqrt(d) scaling.
    """
    acc = None
    for h in range(N_HEADS):
        sl = slice(h * D_KV, (h + 1) * D_KV)
        # q @ k^T without an explicit transpose: contract last dims.
        s = jax.lax.dot_general(q[:, sl], k[:, sl], (((1,), (1,)), ((), ())),
                                preferred_element_type=jnp.float32)
        s = s + bias_fn(h)
        m = jnp.max(s, axis=-1, keepdims=True)
        p = jnp.exp(s - m)
        p = p / jnp.sum(p, axis=-1, keepdims=True)
        ctx = jnp.dot(p, v[:, sl], preferred_element_type=jnp.float32)
        part = jnp.dot(ctx, wo[sl, :], preferred_element_type=jnp.float32)
        acc = part if acc is None else acc + part
    return acc


# ---------------- fused encoder stack kernel (all layers) ----------------
def _encoder_stack_kernel(x_ref, mask_ref, bias_ref,
                          ln0_ref, wqkv_ref, wo_ref, ln1_ref, wi_ref, wo2_ref,
                          lnf_ref, o_ref):
    x = x_ref[0]                                # (Ss, D)
    ext = (1.0 - mask_ref[0]) * NEG             # (1, Ss) padding mask bias

    for l in range(wqkv_ref.shape[0]):
        # self-attention block (rel-pos bias shared across layers, as in T5)
        xn = _rms(x, ln0_ref[l])
        qkv = jnp.dot(xn, wqkv_ref[l], preferred_element_type=jnp.float32)
        q, k, v = qkv[:, :HD], qkv[:, HD:2 * HD], qkv[:, 2 * HD:]
        x = x + _mha_proj(q, k, v, wo_ref[l], lambda h: bias_ref[h] + ext)

        # FFN block (ReLU)
        xn = _rms(x, ln1_ref[l])
        hdn = jnp.maximum(
            jnp.dot(xn, wi_ref[l], preferred_element_type=jnp.float32), 0.0)
        x = x + jnp.dot(hdn, wo2_ref[l], preferred_element_type=jnp.float32)

    o_ref[0] = _rms(x, lnf_ref[...])            # encoder final layer norm


def encoder_stack(x, mask, bias, p, lnf):
    B, Ss, D = x.shape
    L = p["wqkv"].shape[0]
    return pl.pallas_call(
        _encoder_stack_kernel,
        grid=(B,),
        in_specs=[
            pl.BlockSpec((1, Ss, D), lambda b: (b, 0, 0)),           # x
            pl.BlockSpec((1, 1, Ss), lambda b: (b, 0, 0)),           # padding mask
            pl.BlockSpec((N_HEADS, Ss, Ss), lambda b: (0, 0, 0)),    # rel-pos bias
            pl.BlockSpec((L, 1, D), lambda b: (0, 0, 0)),            # ln0 (stacked)
            pl.BlockSpec((L, D, 3 * HD), lambda b: (0, 0, 0)),       # packed qkv
            pl.BlockSpec((L, HD, D), lambda b: (0, 0, 0)),           # out proj
            pl.BlockSpec((L, 1, D), lambda b: (0, 0, 0)),            # ln1
            pl.BlockSpec((L, D, D_FF), lambda b: (0, 0, 0)),         # wi
            pl.BlockSpec((L, D_FF, D), lambda b: (0, 0, 0)),         # wo
            pl.BlockSpec((1, D), lambda b: (0, 0)),                  # final ln
        ],
        out_specs=pl.BlockSpec((1, Ss, D), lambda b: (b, 0, 0)),
        out_shape=jax.ShapeDtypeStruct((B, Ss, D), jnp.float32),
        compiler_params=pltpu.CompilerParams(dimension_semantics=("parallel",)),
    )(x, mask, bias, p["ln0"], p["wqkv"], p["wo"], p["ln1"], p["wi"], p["wo2"],
      lnf)


# -------- fused decoder stack + tied LM head + cross-entropy kernel --------
def _decoder_stack_kernel(x_ref, enc_ref, encmask_ref, sbias_ref, labels_ref,
                          ln0_ref, wqkv_ref, wosa_ref,
                          ln1_ref, wq_ref, wkv_ref, woca_ref,
                          ln2_ref, wi_ref, wo2_ref, lnf_ref, emb_ref,
                          logits_ref, loss_ref, cnt_ref):
    x = x_ref[0]                                # (St, D)
    enc = enc_ref[0]                            # (Ss, D)
    cext = (1.0 - encmask_ref[0]) * NEG         # (1, Ss) encoder padding bias

    for l in range(wqkv_ref.shape[0]):
        # causal self-attention (rel-pos bias + causal mask folded in sbias)
        xn = _rms(x, ln0_ref[l])
        qkv = jnp.dot(xn, wqkv_ref[l], preferred_element_type=jnp.float32)
        q, k, v = qkv[:, :HD], qkv[:, HD:2 * HD], qkv[:, 2 * HD:]
        x = x + _mha_proj(q, k, v, wosa_ref[l], lambda h: sbias_ref[h])

        # cross-attention (no position bias in T5 cross-attn, only padding mask)
        xn = _rms(x, ln1_ref[l])
        q = jnp.dot(xn, wq_ref[l], preferred_element_type=jnp.float32)
        kv = jnp.dot(enc, wkv_ref[l], preferred_element_type=jnp.float32)
        k, v = kv[:, :HD], kv[:, HD:]
        x = x + _mha_proj(q, k, v, woca_ref[l], lambda h: cext)

        # FFN block (ReLU)
        xn = _rms(x, ln2_ref[l])
        hdn = jnp.maximum(
            jnp.dot(xn, wi_ref[l], preferred_element_type=jnp.float32), 0.0)
        x = x + jnp.dot(hdn, wo2_ref[l], preferred_element_type=jnp.float32)

    x = _rms(x, lnf_ref[...])                   # decoder final layer norm

    # tied word embeddings: rescale by d_model**-0.5, contract with emb
    # un-transposed (dot_general over last dims).
    xs = x * (D_MODEL ** -0.5)
    logits = jax.lax.dot_general(xs, emb_ref[...], (((1,), (1,)), ((), ())),
                                 preferred_element_type=jnp.float32)  # (St, V)
    logits_ref[0] = logits

    # token cross-entropy with ignore_index=-100, per-batch partial sums
    labels = labels_ref[0]                      # (St, 1) int32
    m = jnp.max(logits, axis=-1, keepdims=True)
    lse = m + jnp.log(jnp.sum(jnp.exp(logits - m), axis=-1, keepdims=True))
    col = jax.lax.broadcasted_iota(jnp.int32, logits.shape, 1)
    picked = jnp.sum(jnp.where(col == labels, logits, 0.0),
                     axis=-1, keepdims=True)
    valid = (labels != IGNORE).astype(jnp.float32)
    loss_rows = (lse - picked) * valid                           # (St, 1)
    loss_ref[0] = jnp.sum(loss_rows, axis=0, keepdims=True)      # (1, 1)
    cnt_ref[0] = jnp.sum(valid, axis=0, keepdims=True)           # (1, 1)


def decoder_stack_lm(x, enc_out, enc_mask, self_bias, labels, p, lnf, emb):
    B, St, D = x.shape
    Ss = enc_out.shape[1]
    V = emb.shape[0]
    L = p["wqkv"].shape[0]
    labels3 = labels.reshape(B, St, 1).astype(jnp.int32)
    return pl.pallas_call(
        _decoder_stack_kernel,
        grid=(B,),
        in_specs=[
            pl.BlockSpec((1, St, D), lambda b: (b, 0, 0)),           # x
            pl.BlockSpec((1, Ss, D), lambda b: (b, 0, 0)),           # enc_out
            pl.BlockSpec((1, 1, Ss), lambda b: (b, 0, 0)),           # enc mask
            pl.BlockSpec((N_HEADS, St, St), lambda b: (0, 0, 0)),    # self bias
            pl.BlockSpec((1, St, 1), lambda b: (b, 0, 0)),           # labels
            pl.BlockSpec((L, 1, D), lambda b: (0, 0, 0)),            # ln0
            pl.BlockSpec((L, D, 3 * HD), lambda b: (0, 0, 0)),       # packed qkv
            pl.BlockSpec((L, HD, D), lambda b: (0, 0, 0)),           # wo (self)
            pl.BlockSpec((L, 1, D), lambda b: (0, 0, 0)),            # ln1
            pl.BlockSpec((L, D, HD), lambda b: (0, 0, 0)),           # wq (cross)
            pl.BlockSpec((L, D, 2 * HD), lambda b: (0, 0, 0)),       # packed kv
            pl.BlockSpec((L, HD, D), lambda b: (0, 0, 0)),           # wo (cross)
            pl.BlockSpec((L, 1, D), lambda b: (0, 0, 0)),            # ln2
            pl.BlockSpec((L, D, D_FF), lambda b: (0, 0, 0)),         # wi
            pl.BlockSpec((L, D_FF, D), lambda b: (0, 0, 0)),         # wo
            pl.BlockSpec((1, D), lambda b: (0, 0)),                  # final ln
            pl.BlockSpec((V, D), lambda b: (0, 0)),                  # tied emb
        ],
        out_specs=[
            pl.BlockSpec((1, St, V), lambda b: (b, 0, 0)),           # logits
            pl.BlockSpec((1, 1, 1), lambda b: (b, 0, 0)),            # loss sum
            pl.BlockSpec((1, 1, 1), lambda b: (b, 0, 0)),            # valid count
        ],
        out_shape=[
            jax.ShapeDtypeStruct((B, St, V), jnp.float32),
            jax.ShapeDtypeStruct((B, 1, 1), jnp.float32),
            jax.ShapeDtypeStruct((B, 1, 1), jnp.float32),
        ],
        compiler_params=pltpu.CompilerParams(dimension_semantics=("parallel",)),
    )(x, enc_out, enc_mask, self_bias, labels3,
      p["ln0"], p["wqkv"], p["wo_sa"], p["ln1"], p["wq"], p["wkv"], p["wo_ca"],
      p["ln2"], p["wi"], p["wo2"], lnf, emb)


# ---------------- plain-JAX glue (index math only) ----------------
def _relative_position_bucket(relative_position, bidirectional, num_buckets,
                              max_distance):
    relative_buckets = jnp.zeros_like(relative_position)
    if bidirectional:
        num_buckets //= 2
        relative_buckets = relative_buckets + (
            (relative_position > 0).astype(jnp.int32) * num_buckets)
        relative_position = jnp.abs(relative_position)
    else:
        relative_position = -jnp.minimum(relative_position, 0)
    max_exact = num_buckets // 2
    is_small = relative_position < max_exact
    # clamp to >=1 before the log (robust for relative_position == 0)
    rel_pos_f = jnp.maximum(relative_position.astype(jnp.float32), 1.0)
    rel_if_large = max_exact + (
        jnp.log(rel_pos_f / max_exact) / jnp.log(max_distance / max_exact)
        * (num_buckets - max_exact)).astype(jnp.int32)
    rel_if_large = jnp.minimum(rel_if_large, num_buckets - 1)
    return relative_buckets + jnp.where(is_small, relative_position, rel_if_large)


def compute_position_bias(rel_emb, q_len, k_len, bidirectional):
    ctx = jnp.arange(q_len)[:, None]
    mem = jnp.arange(k_len)[None, :]
    buckets = _relative_position_bucket(mem - ctx, bidirectional,
                                        REL_BUCKETS, REL_MAX_DIST)
    bias = rel_emb[buckets]                       # (q, k, H)
    return jnp.transpose(bias, (2, 0, 1))         # (H, q, k)


def seq2seq_forward(params, input_ids, attention_mask, labels):
    """Mirrors T5ForConditionalGeneration(input_ids, attention_mask, labels)."""
    B, Ss = input_ids.shape
    St = labels.shape[1]
    enc_mask = attention_mask.astype(jnp.float32).reshape(B, 1, Ss)

    # ---- encoder (one fused kernel for the whole stack) ----
    enc_x = params["emb"][input_ids]
    enc_bias = compute_position_bias(params["enc_rel"], Ss, Ss, True)
    enc_out = encoder_stack(enc_x, enc_mask, enc_bias, params["enc"],
                            params["enc_final_ln"])

    # ---- decoder input: _shift_right (prepend start token, sanitize -100) ----
    dec_in = jnp.concatenate(
        [jnp.full((B, 1), DECODER_START, labels.dtype), labels[:, :-1]], axis=1)
    dec_in = jnp.where(dec_in == IGNORE, PAD_ID, dec_in)
    dec_x = params["emb"][dec_in]

    # ---- decoder + tied LM head + CE (one fused kernel) ----
    causal = jnp.where(jnp.arange(St)[None, :] <= jnp.arange(St)[:, None],
                       0.0, NEG)
    dec_bias = compute_position_bias(params["dec_rel"], St, St, False) \
        + causal[None]
    logits, loss_sum, cnt = decoder_stack_lm(
        dec_x, enc_out, enc_mask, dec_bias, labels, params["dec"],
        params["dec_final_ln"], params["emb"])
    loss = jnp.sum(loss_sum) / jnp.maximum(jnp.sum(cnt), 1.0)
    return {"loss": loss, "logits": logits}


# ---------------- deterministic parameter init (stacked per stack) ----------
def init_params(key):
    ks = iter(jax.random.split(key, 32))

    def w(shape, scale=0.05):
        return (scale * jax.random.normal(next(ks), shape)).astype(jnp.float32)

    ones_ld = jnp.ones((N_LAYERS, 1, D_MODEL), jnp.float32)
    ones_d = jnp.ones((1, D_MODEL), jnp.float32)

    enc = {"ln0": ones_ld,
           "wqkv": w((N_LAYERS, D_MODEL, 3 * HD)),
           "wo": w((N_LAYERS, HD, D_MODEL)),
           "ln1": ones_ld,
           "wi": w((N_LAYERS, D_MODEL, D_FF)),
           "wo2": w((N_LAYERS, D_FF, D_MODEL))}

    dec = {"ln0": ones_ld,
           "wqkv": w((N_LAYERS, D_MODEL, 3 * HD)),
           "wo_sa": w((N_LAYERS, HD, D_MODEL)),
           "ln1": ones_ld,
           "wq": w((N_LAYERS, D_MODEL, HD)),
           "wkv": w((N_LAYERS, D_MODEL, 2 * HD)),
           "wo_ca": w((N_LAYERS, HD, D_MODEL)),
           "ln2": ones_ld,
           "wi": w((N_LAYERS, D_MODEL, D_FF)),
           "wo2": w((N_LAYERS, D_FF, D_MODEL))}

    return {"emb": w((VOCAB, D_MODEL), 1.0),
            "enc_rel": w((REL_BUCKETS, N_HEADS)),
            "dec_rel": w((REL_BUCKETS, N_HEADS)),
            "enc_final_ln": ones_d, "dec_final_ln": ones_d,
            "enc": enc, "dec": dec}


# ---------------- demo ----------------
if __name__ == "__main__":
    key = jax.random.PRNGKey(0)
    pkey, ikey, lkey = jax.random.split(key, 3)
    params = init_params(pkey)

    B, S_SRC, S_TGT = 2, 8, 8
    input_ids = jax.random.randint(ikey, (B, S_SRC), 1, VOCAB, dtype=jnp.int32)
    attention_mask = jnp.ones((B, S_SRC), jnp.int32).at[1, 6:].set(0)
    labels = jax.random.randint(lkey, (B, S_TGT), 1, VOCAB, dtype=jnp.int32)

    out = jax.jit(seq2seq_forward)(params, input_ids, attention_mask, labels)
    out = jax.block_until_ready(out)

    assert out["logits"].shape == (B, S_TGT, VOCAB)
    assert out["logits"].dtype == jnp.float32
    assert bool(jnp.isfinite(out["loss"]))
    print("KERNEL_OK")
</pallas_src>

<mosaic_0001>
module attributes {stable_mosaic.version = 11 : i64} {
  func.func @_encoder_stack_kernel(%arg0: i32, %arg1: memref<1x8x128xf32, #tpu.memory_space<vmem>>, %arg2: memref<1x1x8xf32, #tpu.memory_space<vmem>>, %arg3: memref<4x8x8xf32, #tpu.memory_space<vmem>>, %arg4: memref<2x1x128xf32, #tpu.memory_space<vmem>>, %arg5: memref<2x128x384xf32, #tpu.memory_space<vmem>>, %arg6: memref<2x128x128xf32, #tpu.memory_space<vmem>>, %arg7: memref<2x1x128xf32, #tpu.memory_space<vmem>>, %arg8: memref<2x128x256xf32, #tpu.memory_space<vmem>>, %arg9: memref<2x256x128xf32, #tpu.memory_space<vmem>>, %arg10: memref<1x128xf32, #tpu.memory_space<vmem>>, %arg11: memref<1x8x128xf32, #tpu.memory_space<vmem>>) attributes {dimension_semantics = [#tpu.dimension_semantics<parallel>], iteration_bounds = array<i64: 2>, scalar_prefetch = 0 : i64, scratch_operands = 0 : i64, tpu.core_type = #tpu.core_type<tc>, window_params = [{transform_indices = @transform_0, window_bounds = array<i64: 1, 8, 128>}, {transform_indices = @transform_1, window_bounds = array<i64: 1, 1, 8>}, {pipeline_mode = #tpu.pipeline_mode<synchronous>, transform_indices = @transform_2, window_bounds = array<i64: 4, 8, 8>}, {pipeline_mode = #tpu.pipeline_mode<synchronous>, transform_indices = @transform_3, window_bounds = array<i64: 2, 1, 128>}, {pipeline_mode = #tpu.pipeline_mode<synchronous>, transform_indices = @transform_4, window_bounds = array<i64: 2, 128, 384>}, {pipeline_mode = #tpu.pipeline_mode<synchronous>, transform_indices = @transform_5, window_bounds = array<i64: 2, 128, 128>}, {pipeline_mode = #tpu.pipeline_mode<synchronous>, transform_indices = @transform_6, window_bounds = array<i64: 2, 1, 128>}, {pipeline_mode = #tpu.pipeline_mode<synchronous>, transform_indices = @transform_7, window_bounds = array<i64: 2, 128, 256>}, {pipeline_mode = #tpu.pipeline_mode<synchronous>, transform_indices = @transform_8, window_bounds = array<i64: 2, 256, 128>}, {pipeline_mode = #tpu.pipeline_mode<synchronous>, transform_indices = @transform_9, window_bounds = array<i64: 1, 128>}, {transform_indices = @transform_10, window_bounds = array<i64: 1, 8, 128>}]} {
    %c0 = arith.constant 0 : index
    %c0_0 = arith.constant 0 : index
    %c0_1 = arith.constant 0 : index
    %0 = vector.load %arg1[%c0, %c0_0, %c0_1] : memref<1x8x128xf32, #tpu.memory_space<vmem>>, vector<1x8x128xf32>
    %1 = vector.shape_cast %0 : vector<1x8x128xf32> to vector<8x128xf32>
    %c0_2 = arith.constant 0 : index
    %c0_3 = arith.constant 0 : index
    %c0_4 = arith.constant 0 : index
    %2 = vector.load %arg2[%c0_2, %c0_3, %c0_4] : memref<1x1x8xf32, #tpu.memory_space<vmem>>, vector<1x1x8xf32>
    %3 = vector.shape_cast %2 : vector<1x1x8xf32> to vector<1x8xf32>
    %cst = arith.constant 1.000000e+00 : f32
    %4 = vector.broadcast %cst : f32 to vector<1x8xf32>
    %5 = arith.subf %4, %3 : vector<1x8xf32>
    %cst_5 = arith.constant -1.000000e+09 : f32
    %6 = vector.broadcast %cst_5 : f32 to vector<1x8xf32>
    %7 = arith.mulf %5, %6 : vector<1x8xf32>
    %c0_6 = arith.constant 0 : index
    %c0_7 = arith.constant 0 : index
    %c0_8 = arith.constant 0 : index
    %8 = vector.load %arg4[%c0_6, %c0_7, %c0_8] : memref<2x1x128xf32, #tpu.memory_space<vmem>>, vector<1x1x128xf32>
    %9 = vector.shape_cast %8 : vector<1x1x128xf32> to vector<1x128xf32>
    %10 = arith.mulf %1, %1 : vector<8x128xf32>
    %cst_9 = arith.constant dense<0.000000e+00> : vector<8xf32>
    %11 = vector.multi_reduction <add>, %10, %cst_9 [1] : vector<8x128xf32> to vector<8xf32>
    %12 = vector.shape_cast %11 : vector<8xf32> to vector<8x1xf32>
    %cst_10 = arith.constant 1.280000e+02 : f32
    %13 = vector.broadcast %cst_10 : f32 to vector<8x1xf32>
    %14 = arith.divf %12, %13 : vector<8x1xf32>
    %cst_11 = arith.constant 9.99999997E-7 : f32
    %15 = vector.broadcast %cst_11 : f32 to vector<8x1xf32>
    %16 = arith.addf %14, %15 : vector<8x1xf32>
    %17 = math.rsqrt %16 : vector<8x1xf32>
    %18 = vector.broadcast %17 : vector<8x1xf32> to vector<8x128xf32>
    %19 = arith.mulf %1, %18 : vector<8x128xf32>
    %20 = vector.broadcast %9 : vector<1x128xf32> to vector<8x128xf32>
    %21 = arith.mulf %19, %20 : vector<8x128xf32>
    %c0_12 = arith.constant 0 : index
    %c0_13 = arith.constant 0 : index
    %c0_14 = arith.constant 0 : index
    %22 = vector.load %arg5[%c0_12, %c0_13, %c0_14] : memref<2x128x384xf32, #tpu.memory_space<vmem>>, vector<1x128x384xf32>
    %23 = vector.shape_cast %22 : vector<1x128x384xf32> to vector<128x384xf32>
    %cst_15 = arith.constant dense<0.000000e+00> : vector<8x384xf32>
    %24 = tpu.matmul %21, %23, %cst_15 {dimension_numbers = #tpu.dot_dimension_numbers<[1], [0], [0], [1], [0, 0, 1, 1], [], []>} : vector<8x128xf32>, vector<128x384xf32>, vector<8x384xf32> -> vector<8x384xf32>
    %25 = vector.extract_strided_slice %24 {offsets = [0, 0], sizes = [8, 128], strides = [1, 1]} : vector<8x384xf32> to vector<8x128xf32>
    %26 = vector.extract_strided_slice %24 {offsets = [0, 128], sizes = [8, 128], strides = [1, 1]} : vector<8x384xf32> to vector<8x128xf32>
    %27 = vector.extract_strided_slice %24 {offsets = [0, 256], sizes = [8, 128], strides = [1, 1]} : vector<8x384xf32> to vector<8x128xf32>
    %c0_16 = arith.constant 0 : index
    %c0_17 = arith.constant 0 : index
    %c0_18 = arith.constant 0 : index
    %28 = vector.load %arg6[%c0_16, %c0_17, %c0_18] : memref<2x128x128xf32, #tpu.memory_space<vmem>>, vector<1x128x128xf32>
    %29 = vector.shape_cast %28 : vector<1x128x128xf32> to vector<128x128xf32>
    %30 = vector.extract_strided_slice %25 {offsets = [0, 0], sizes = [8, 32], strides = [1, 1]} : vector<8x128xf32> to vector<8x32xf32>
    %31 = vector.extract_strided_slice %26 {offsets = [0, 0], sizes = [8, 32], strides = [1, 1]} : vector<8x128xf32> to vector<8x32xf32>
    %cst_19 = arith.constant dense<0.000000e+00> : vector<8x8xf32>
    %32 = tpu.matmul %30, %31, %cst_19 {dimension_numbers = #tpu.dot_dimension_numbers<[1], [1], [0], [0], [0, 0, 1, 0], [], []>} : vector<8x32xf32>, vector<8x32xf32>, vector<8x8xf32> -> vector<8x8xf32>
    %c0_20 = arith.constant 0 : index
    %c0_21 = arith.constant 0 : index
    %c0_22 = arith.constant 0 : index
    %33 = vector.load %arg3[%c0_20, %c0_21, %c0_22] : memref<4x8x8xf32, #tpu.memory_space<vmem>>, vector<1x8x8xf32>
    %34 = vector.shape_cast %33 : vector<1x8x8xf32> to vector<8x8xf32>
    %35 = vector.broadcast %7 : vector<1x8xf32> to vector<8x8xf32>
    %36 = arith.addf %34, %35 : vector<8x8xf32>
    %37 = arith.addf %32, %36 : vector<8x8xf32>
    %cst_23 = arith.constant dense<0xFF800000> : vector<8xf32>
    %38 = vector.multi_reduction <maximumf>, %37, %cst_23 [1] : vector<8x8xf32> to vector<8xf32>
    %39 = vector.shape_cast %38 : vector<8xf32> to vector<8x1xf32>
    %40 = vector.broadcast %39 : vector<8x1xf32> to vector<8x8xf32>
    %41 = arith.subf %37, %40 : vector<8x8xf32>
    %42 = math.exp %41 : vector<8x8xf32>
    %cst_24 = arith.constant dense<0.000000e+00> : vector<8xf32>
    %43 = vector.multi_reduction <add>, %42, %cst_24 [1] : vector<8x8xf32> to vector<8xf32>
    %44 = vector.shape_cast %43 : vector<8xf32> to vector<8x1xf32>
    %45 = vector.broadcast %44 : vector<8x1xf32> to vector<8x8xf32>
    %46 = arith.divf %42, %45 : vector<8x8xf32>
    %47 = vector.extract_strided_slice %27 {offsets = [0, 0], sizes = [8, 32], strides = [1, 1]} : vector<8x128xf32> to vector<8x32xf32>
    %cst_25 = arith.constant dense<0.000000e+00> : vector<8x32xf32>
    %48 = tpu.matmul %46, %47, %cst_25 {dimension_numbers = #tpu.dot_dimension_numbers<[1], [0], [0], [1], [0, 0, 1, 1], [], []>} : vector<8x8xf32>, vector<8x32xf32>, vector<8x32xf32> -> vector<8x32xf32>
    %49 = vector.extract_strided_slice %29 {offsets = [0, 0], sizes = [32, 128], strides = [1, 1]} : vector<128x128xf32> to vector<32x128xf32>
    %cst_26 = arith.constant dense<0.000000e+00> : vector<8x128xf32>
    %50 = tpu.matmul %48, %49, %cst_26 {dimension_numbers = #tpu.dot_dimension_numbers<[1], [0], [0], [1], [0, 0, 1, 1], [], []>} : vector<8x32xf32>, vector<32x128xf32>, vector<8x128xf32> -> vector<8x128xf32>
    %51 = vector.extract_strided_slice %25 {offsets = [0, 32], sizes = [8, 32], strides = [1, 1]} : vector<8x128xf32> to vector<8x32xf32>
    %52 = vector.extract_strided_slice %26 {offsets = [0, 32], sizes = [8, 32], strides = [1, 1]} : vector<8x128xf32> to vector<8x32xf32>
    %cst_27 = arith.constant dense<0.000000e+00> : vector<8x8xf32>
    %53 = tpu.matmul %51, %52, %cst_27 {dimension_numbers = #tpu.dot_dimension_numbers<[1], [1], [0], [0], [0, 0, 1, 0], [], []>} : vector<8x32xf32>, vector<8x32xf32>, vector<8x8xf32> -> vector<8x8xf32>
    %c1 = arith.constant 1 : index
    %c0_28 = arith.constant 0 : index
    %c0_29 = arith.constant 0 : index
    %54 = vector.load %arg3[%c1, %c0_28, %c0_29] : memref<4x8x8xf32, #tpu.memory_space<vmem>>, vector<1x8x8xf32>
    %55 = vector.shape_cast %54 : vector<1x8x8xf32> to vector<8x8xf32>
    %56 = vector.broadcast %7 : vector<1x8xf32> to vector<8x8xf32>
    %57 = arith.addf %55, %56 : vector<8x8xf32>
    %58 = arith.addf %53, %57 : vector<8x8xf32>
    %cst_30 = arith.constant dense<0xFF800000> : vector<8xf32>
    %59 = vector.multi_reduction <maximumf>, %58, %cst_30 [1] : vector<8x8xf32> to vector<8xf32>
    %60 = vector.shape_cast %59 : vector<8xf32> to vector<8x1xf32>
    %61 = vector.broadcast %60 : vector<8x1xf32> to vector<8x8xf32>
    %62 = arith.subf %58, %61 : vector<8x8xf32>
    %63 = math.exp %62 : vector<8x8xf32>
    %cst_31 = arith.constant dense<0.000000e+00> : vector<8xf32>
    %64 = vector.multi_reduction <add>, %63, %cst_31 [1] : vector<8x8xf32> to vector<8xf32>
    %65 = vector.shape_cast %64 : vector<8xf32> to vector<8x1xf32>
    %66 = vector.broadcast %65 : vector<8x1xf32> to vector<8x8xf32>
    %67 = arith.divf %63, %66 : vector<8x8xf32>
    %68 = vector.extract_strided_slice %27 {offsets = [0, 32], sizes = [8, 32], strides = [1, 1]} : vector<8x128xf32> to vector<8x32xf32>
    %cst_32 = arith.constant dense<0.000000e+00> : vector<8x32xf32>
    %69 = tpu.matmul %67, %68, %cst_32 {dimension_numbers = #tpu.dot_dimension_numbers<[1], [0], [0], [1], [0, 0, 1, 1], [], []>} : vector<8x8xf32>, vector<8x32xf32>, vector<8x32xf32> -> vector<8x32xf32>
    %70 = vector.extract_strided_slice %29 {offsets = [32, 0], sizes = [32, 128], strides = [1, 1]} : vector<128x128xf32> to vector<32x128xf32>
    %cst_33 = arith.constant dense<0.000000e+00> : vector<8x128xf32>
    %71 = tpu.matmul %69, %70, %cst_33 {dimension_numbers = #tpu.dot_dimension_numbers<[1], [0], [0], [1], [0, 0, 1, 1], [], []>} : vector<8x32xf32>, vector<32x128xf32>, vector<8x128xf32> -> vector<8x128xf32>
    %72 = arith.addf %50, %71 : vector<8x128xf32>
    %73 = vector.extract_strided_slice %25 {offsets = [0, 64], sizes = [8, 32], strides = [1, 1]} : vector<8x128xf32> to vector<8x32xf32>
    %74 = vector.extract_strided_slice %26 {offsets = [0, 64], sizes = [8, 32], strides = [1, 1]} : vector<8x128xf32> to vector<8x32xf32>
    %cst_34 = arith.constant dense<0.000000e+00> : vector<8x8xf32>
    %75 = tpu.matmul %73, %74, %cst_34 {dimension_numbers = #tpu.dot_dimension_numbers<[1], [1], [0], [0], [0, 0, 1, 0], [], []>} : vector<8x32xf32>, vector<8x32xf32>, vector<8x8xf32> -> vector<8x8xf32>
    %c2 = arith.constant 2 : index
    %c0_35 = arith.constant 0 : index
    %c0_36 = arith.constant 0 : index
    %76 = vector.load %arg3[%c2, %c0_35, %c0_36] : memref<4x8x8xf32, #tpu.memory_space<vmem>>, vector<1x8x8xf32>
    %77 = vector.shape_cast %76 : vector<1x8x8xf32> to vector<8x8xf32>
    %78 = vector.broadcast %7 : vector<1x8xf32> to vector<8x8xf32>
    %79 = arith.addf %77, %78 : vector<8x8xf32>
    %80 = arith.addf %75, %79 : vector<8x8xf32>
    %cst_37 = arith.constant dense<0xFF800000> : vector<8xf32>
    %81 = vector.multi_reduction <maximumf>, %80, %cst_37 [1] : vector<8x8xf32> to vector<8xf32>
    %82 = vector.shape_cast %81 : vector<8xf32> to vector<8x1xf32>
    %83 = vector.broadcast %82 : vector<8x1xf32> to vector<8x8xf32>
    %84 = arith.subf %80, %83 : vector<8x8xf32>
    %85 = math.exp %84 : vector<8x8xf32>
    %cst_38 = arith.constant dense<0.000000e+00> : vector<8xf32>
    %86 = vector.multi_reduction <add>, %85, %cst_38 [1] : vector<8x8xf32> to vector<8xf32>
    %87 = vector.shape_cast %86 : vector<8xf32> to vector<8x1xf32>
    %88 = vector.broadcast %87 : vector<8x1xf32> to vector<8x8xf32>
    %89 = arith.divf %85, %88 : vector<8x8xf32>
    %90 = vector.extract_strided_slice %27 {offsets = [0, 64], sizes = [8, 32], strides = [1, 1]} : vector<8x128xf32> to vector<8x32xf32>
    %cst_39 = arith.constant dense<0.000000e+00> : vector<8x32xf32>
    %91 = tpu.matmul %89, %90, %cst_39 {dimension_numbers = #tpu.dot_dimension_numbers<[1], [0], [0], [1], [0, 0, 1, 1], [], []>} : vector<8x8xf32>, vector<8x32xf32>, vector<8x32xf32> -> vector<8x32xf32>
    %92 = vector.extract_strided_slice %29 {offsets = [64, 0], sizes = [32, 128], strides = [1, 1]} : vector<128x128xf32> to vector<32x128xf32>
    %cst_40 = arith.constant dense<0.000000e+00> : vector<8x128xf32>
    %93 = tpu.matmul %91, %92, %cst_40 {dimension_numbers = #tpu.dot_dimension_numbers<[1], [0], [0], [1], [0, 0, 1, 1], [], []>} : vector<8x32xf32>, vector<32x128xf32>, vector<8x128xf32> -> vector<8x128xf32>
    %94 = arith.addf %72, %93 : vector<8x128xf32>
    %95 = vector.extract_strided_slice %25 {offsets = [0, 96], sizes = [8, 32], strides = [1, 1]} : vector<8x128xf32> to vector<8x32xf32>
    %96 = vector.extract_strided_slice %26 {offsets = [0, 96], sizes = [8, 32], strides = [1, 1]} : vector<8x128xf32> to vector<8x32xf32>
    %cst_41 = arith.constant dense<0.000000e+00> : vector<8x8xf32>
    %97 = tpu.matmul %95, %96, %cst_41 {dimension_numbers = #tpu.dot_dimension_numbers<[1], [1], [0], [0], [0, 0, 1, 0], [], []>} : vector<8x32xf32>, vector<8x32xf32>, vector<8x8xf32> -> vector<8x8xf32>
    %c3 = arith.constant 3 : index
    %c0_42 = arith.constant 0 : index
    %c0_43 = arith.constant 0 : index
    %98 = vector.load %arg3[%c3, %c0_42, %c0_43] : memref<4x8x8xf32, #tpu.memory_space<vmem>>, vector<1x8x8xf32>
    %99 = vector.shape_cast %98 : vector<1x8x8xf32> to vector<8x8xf32>
    %100 = vector.broadcast %7 : vector<1x8xf32> to vector<8x8xf32>
    %101 = arith.addf %99, %100 : vector<8x8xf32>
    %102 = arith.addf %97, %101 : vector<8x8xf32>
    %cst_44 = arith.constant dense<0xFF800000> : vector<8xf32>
    %103 = vector.multi_reduction <maximumf>, %102, %cst_44 [1] : vector<8x8xf32> to vector<8xf32>
    %104 = vector.shape_cast %103 : vector<8xf32> to vector<8x1xf32>
    %105 = vector.broadcast %104 : vector<8x1xf32> to vector<8x8xf32>
    %106 = arith.subf %102, %105 : vector<8x8xf32>
    %107 = math.exp %106 : vector<8x8xf32>
    %cst_45 = arith.constant dense<0.000000e+00> : vector<8xf32>
    %108 = vector.multi_reduction <add>, %107, %cst_45 [1] : vector<8x8xf32> to vector<8xf32>
    %109 = vector.shape_cast %108 : vector<8xf32> to vector<8x1xf32>
    %110 = vector.broadcast %109 : vector<8x1xf32> to vector<8x8xf32>
    %111 = arith.divf %107, %110 : vector<8x8xf32>
    %112 = vector.extract_strided_slice %27 {offsets = [0, 96], sizes = [8, 32], strides = [1, 1]} : vector<8x128xf32> to vector<8x32xf32>
    %cst_46 = arith.constant dense<0.000000e+00> : vector<8x32xf32>
    %113 = tpu.matmul %111, %112, %cst_46 {dimension_numbers = #tpu.dot_dimension_numbers<[1], [0], [0], [1], [0, 0, 1, 1], [], []>} : vector<8x8xf32>, vector<8x32xf32>, vector<8x32xf32> -> vector<8x32xf32>
    %114 = vector.extract_strided_slice %29 {offsets = [96, 0], sizes = [32, 128], strides = [1, 1]} : vector<128x128xf32> to vector<32x128xf32>
    %cst_47 = arith.constant dense<0.000000e+00> : vector<8x128xf32>
    %115 = tpu.matmul %113, %114, %cst_47 {dimension_numbers = #tpu.dot_dimension_numbers<[1], [0], [0], [1], [0, 0, 1, 1], [], []>} : vector<8x32xf32>, vector<32x128xf32>, vector<8x128xf32> -> vector<8x128xf32>
    %116 = arith.addf %94, %115 : vector<8x128xf32>
    %117 = arith.addf %1, %116 : vector<8x128xf32>
    %c0_48 = arith.constant 0 : index
    %c0_49 = arith.constant 0 : index
    %c0_50 = arith.constant 0 : index
    %118 = vector.load %arg7[%c0_48, %c0_49, %c0_50] : memref<2x1x128xf32, #tpu.memory_space<vmem>>, vector<1x1x128xf32>
    %119 = vector.shape_cast %118 : vector<1x1x128xf32> to vector<1x128xf32>
    %120 = arith.mulf %117, %117 : vector<8x128xf32>
    %cst_51 = arith.constant dense<0.000000e+00> : vector<8xf32>
    %121 = vector.multi_reduction <add>, %120, %cst_51 [1] : vector<8x128xf32> to vector<8xf32>
    %122 = vector.shape_cast %121 : vector<8xf32> to vector<8x1xf32>
    %cst_52 = arith.constant 1.280000e+02 : f32
    %123 = vector.broadcast %cst_52 : f32 to vector<8x1xf32>
    %124 = arith.divf %122, %123 : vector<8x1xf32>
    %cst_53 = arith.constant 9.99999997E-7 : f32
    %125 = vector.broadcast %cst_53 : f32 to vector<8x1xf32>
    %126 = arith.addf %124, %125 : vector<8x1xf32>
    %127 = math.rsqrt %126 : vector<8x1xf32>
    %128 = vector.broadcast %127 : vector<8x1xf32> to vector<8x128xf32>
    %129 = arith.mulf %117, %128 : vector<8x128xf32>
    %130 = vector.broadcast %119 : vector<1x128xf32> to vector<8x128xf32>
    %131 = arith.mulf %129, %130 : vector<8x128xf32>
    %c0_54 = arith.constant 0 : index
    %c0_55 = arith.constant 0 : index
    %c0_56 = arith.constant 0 : index
    %132 = vector.load %arg8[%c0_54, %c0_55, %c0_56] : memref<2x128x256xf32, #tpu.memory_space<vmem>>, vector<1x128x256xf32>
    %133 = vector.shape_cast %132 : vector<1x128x256xf32> to vector<128x256xf32>
    %cst_57 = arith.constant dense<0.000000e+00> : vector<8x256xf32>
    %134 = tpu.matmul %131, %133, %cst_57 {dimension_numbers = #tpu.dot_dimension_numbers<[1], [0], [0], [1], [0, 0, 1, 1], [], []>} : vector<8x128xf32>, vector<128x256xf32>, vector<8x256xf32> -> vector<8x256xf32>
    %cst_58 = arith.constant 0.000000e+00 : f32
    %135 = vector.broadcast %cst_58 : f32 to vector<8x256xf32>
    %136 = arith.maximumf %134, %135 : vector<8x256xf32>
    %c0_59 = arith.constant 0 : index
    %c0_60 = arith.constant 0 : index
    %c0_61 = arith.constant 0 : index
    %137 = vector.load %arg9[%c0_59, %c0_60, %c0_61] : memref<2x256x128xf32, #tpu.memory_space<vmem>>, vector<1x256x128xf32>
    %138 = vector.shape_cast %137 : vector<1x256x128xf32> to vector<256x128xf32>
    %cst_62 = arith.constant dense<0.000000e+00> : vector<8x128xf32>
    %139 = tpu.matmul %136, %138, %cst_62 {dimension_numbers = #tpu.dot_dimension_numbers<[1], [0], [0], [1], [0, 0, 1, 1], [], []>} : vector<8x256xf32>, vector<256x128xf32>, vector<8x128xf32> -> vector<8x128xf32>
    %140 = arith.addf %117, %139 : vector<8x128xf32>
    %c1_63 = arith.constant 1 : index
    %c0_64 = arith.constant 0 : index
    %c0_65 = arith.constant 0 : index
    %141 = vector.load %arg4[%c1_63, %c0_64, %c0_65] : memref<2x1x128xf32, #tpu.memory_space<vmem>>, vector<1x1x128xf32>
    %142 = vector.shape_cast %141 : vector<1x1x128xf32> to vector<1x128xf32>
    %143 = arith.mulf %140, %140 : vector<8x128xf32>
    %cst_66 = arith.constant dense<0.000000e+00> : vector<8xf32>
    %144 = vector.multi_reduction <add>, %143, %cst_66 [1] : vector<8x128xf32> to vector<8xf32>
    %145 = vector.shape_cast %144 : vector<8xf32> to vector<8x1xf32>
    %cst_67 = arith.constant 1.280000e+02 : f32
    %146 = vector.broadcast %cst_67 : f32 to vector<8x1xf32>
    %147 = arith.divf %145, %146 : vector<8x1xf32>
    %cst_68 = arith.constant 9.99999997E-7 : f32
    %148 = vector.broadcast %cst_68 : f32 to vector<8x1xf32>
    %149 = arith.addf %147, %148 : vector<8x1xf32>
    %150 = math.rsqrt %149 : vector<8x1xf32>
    %151 = vector.broadcast %150 : vector<8x1xf32> to vector<8x128xf32>
    %152 = arith.mulf %140, %151 : vector<8x128xf32>
    %153 = vector.broadcast %142 : vector<1x128xf32> to vector<8x128xf32>
    %154 = arith.mulf %152, %153 : vector<8x128xf32>
    %c1_69 = arith.constant 1 : index
    %c0_70 = arith.constant 0 : index
    %c0_71 = arith.constant 0 : index
    %155 = vector.load %arg5[%c1_69, %c0_70, %c0_71] : memref<2x128x384xf32, #tpu.memory_space<vmem>>, vector<1x128x384xf32>
    %156 = vector.shape_cast %155 : vector<1x128x384xf32> to vector<128x384xf32>
    %cst_72 = arith.constant dense<0.000000e+00> : vector<8x384xf32>
    %157 = tpu.matmul %154, %156, %cst_72 {dimension_numbers = #tpu.dot_dimension_numbers<[1], [0], [0], [1], [0, 0, 1, 1], [], []>} : vector<8x128xf32>, vector<128x384xf32>, vector<8x384xf32> -> vector<8x384xf32>
    %158 = vector.extract_strided_slice %157 {offsets = [0, 0], sizes = [8, 128], strides = [1, 1]} : vector<8x384xf32> to vector<8x128xf32>
    %159 = vector.extract_strided_slice %157 {offsets = [0, 128], sizes = [8, 128], strides = [1, 1]} : vector<8x384xf32> to vector<8x128xf32>
    %160 = vector.extract_strided_slice %157 {offsets = [0, 256], sizes = [8, 128], strides = [1, 1]} : vector<8x384xf32> to vector<8x128xf32>
    %c1_73 = arith.constant 1 : index
    %c0_74 = arith.constant 0 : index
    %c0_75 = arith.constant 0 : index
    %161 = vector.load %arg6[%c1_73, %c0_74, %c0_75] : memref<2x128x128xf32, #tpu.memory_space<vmem>>, vector<1x128x128xf32>
    %162 = vector.shape_cast %161 : vector<1x128x128xf32> to vector<128x128xf32>
    %163 = vector.extract_strided_slice %158 {offsets = [0, 0], sizes = [8, 32], strides = [1, 1]} : vector<8x128xf32> to vector<8x32xf32>
    %164 = vector.extract_strided_slice %159 {offsets = [0, 0], sizes = [8, 32], strides = [1, 1]} : vector<8x128xf32> to vector<8x32xf32>
    %cst_76 = arith.constant dense<0.000000e+00> : vector<8x8xf32>
    %165 = tpu.matmul %163, %164, %cst_76 {dimension_numbers = #tpu.dot_dimension_numbers<[1], [1], [0], [0], [0, 0, 1, 0], [], []>} : vector<8x32xf32>, vector<8x32xf32>, vector<8x8xf32> -> vector<8x8xf32>
    %c0_77 = arith.constant 0 : index
    %c0_78 = arith.constant 0 : index
    %c0_79 = arith.constant 0 : index
    %166 = vector.load %arg3[%c0_77, %c0_78, %c0_79] : memref<4x8x8xf32, #tpu.memory_space<vmem>>, vector<1x8x8xf32>
    %167 = vector.shape_cast %166 : vector<1x8x8xf32> to vector<8x8xf32>
    %168 = vector.broadcast %7 : vector<1x8xf32> to vector<8x8xf32>
    %169 = arith.addf %167, %168 : vector<8x8xf32>
    %170 = arith.addf %165, %169 : vector<8x8xf32>
    %cst_80 = arith.constant dense<0xFF800000> : vector<8xf32>
    %171 = vector.multi_reduction <maximumf>, %170, %cst_80 [1] : vector<8x8xf32> to vector<8xf32>
    %172 = vector.shape_cast %171 : vector<8xf32> to vector<8x1xf32>
    %173 = vector.broadcast %172 : vector<8x1xf32> to vector<8x8xf32>
    %174 = arith.subf %170, %173 : vector<8x8xf32>
    %175 = math.exp %174 : vector<8x8xf32>
    %cst_81 = arith.constant dense<0.000000e+00> : vector<8xf32>
    %176 = vector.multi_reduction <add>, %175, %cst_81 [1] : vector<8x8xf32> to vector<8xf32>
    %177 = vector.shape_cast %176 : vector<8xf32> to vector<8x1xf32>
    %178 = vector.broadcast %177 : vector<8x1xf32> to vector<8x8xf32>
    %179 = arith.divf %175, %178 : vector<8x8xf32>
    %180 = vector.extract_strided_slice %160 {offsets = [0, 0], sizes = [8, 32], strides = [1, 1]} : vector<8x128xf32> to vector<8x32xf32>
    %cst_82 = arith.constant dense<0.000000e+00> : vector<8x32xf32>
    %181 = tpu.matmul %179, %180, %cst_82 {dimension_numbers = #tpu.dot_dimension_numbers<[1], [0], [0], [1], [0, 0, 1, 1], [], []>} : vector<8x8xf32>, vector<8x32xf32>, vector<8x32xf32> -> vector<8x32xf32>
    %182 = vector.extract_strided_slice %162 {offsets = [0, 0], sizes = [32, 128], strides = [1, 1]} : vector<128x128xf32> to vector<32x128xf32>
    %cst_83 = arith.constant dense<0.000000e+00> : vector<8x128xf32>
    %183 = tpu.matmul %181, %182, %cst_83 {dimension_numbers = #tpu.dot_dimension_numbers<[1], [0], [0], [1], [0, 0, 1, 1], [], []>} : vector<8x32xf32>, vector<32x128xf32>, vector<8x128xf32> -> vector<8x128xf32>
    %184 = vector.extract_strided_slice %158 {offsets = [0, 32], sizes = [8, 32], strides = [1, 1]} : vector<8x128xf32> to vector<8x32xf32>
    %185 = vector.extract_strided_slice %159 {offsets = [0, 32], sizes = [8, 32], strides = [1, 1]} : vector<8x128xf32> to vector<8x32xf32>
    %cst_84 = arith.constant dense<0.000000e+00> : vector<8x8xf32>
    %186 = tpu.matmul %184, %185, %cst_84 {dimension_numbers = #tpu.dot_dimension_numbers<[1], [1], [0], [0], [0, 0, 1, 0], [], []>} : vector<8x32xf32>, vector<8x32xf32>, vector<8x8xf32> -> vector<8x8xf32>
    %c1_85 = arith.constant 1 : index
    %c0_86 = arith.constant 0 : index
    %c0_87 = arith.constant 0 : index
    %187 = vector.load %arg3[%c1_85, %c0_86, %c0_87] : memref<4x8x8xf32, #tpu.memory_space<vmem>>, vector<1x8x8xf32>
    %188 = vector.shape_cast %187 : vector<1x8x8xf32> to vector<8x8xf32>
    %189 = vector.broadcast %7 : vector<1x8xf32> to vector<8x8xf32>
    %190 = arith.addf %188, %189 : vector<8x8xf32>
    %191 = arith.addf %186, %190 : vector<8x8xf32>
    %cst_88 = arith.constant dense<0xFF800000> : vector<8xf32>
    %192 = vector.multi_reduction <maximumf>, %191, %cst_88 [1] : vector<8x8xf32> to vector<8xf32>
    %193 = vector.shape_cast %192 : vector<8xf32> to vector<8x1xf32>
    %194 = vector.broadcast %193 : vector<8x1xf32> to vector<8x8xf32>
    %195 = arith.subf %191, %194 : vector<8x8xf32>
    %196 = math.exp %195 : vector<8x8xf32>
    %cst_89 = arith.constant dense<0.000000e+00> : vector<8xf32>
    %197 = vector.multi_reduction <add>, %196, %cst_89 [1] : vector<8x8xf32> to vector<8xf32>
    %198 = vector.shape_cast %197 : vector<8xf32> to vector<8x1xf32>
    %199 = vector.broadcast %198 : vector<8x1xf32> to vector<8x8xf32>
    %200 = arith.divf %196, %199 : vector<8x8xf32>
    %201 = vector.extract_strided_slice %160 {offsets = [0, 32], sizes = [8, 32], strides = [1, 1]} : vector<8x128xf32> to vector<8x32xf32>
    %cst_90 = arith.constant dense<0.000000e+00> : vector<8x32xf32>
    %202 = tpu.matmul %200, %201, %cst_90 {dimension_numbers = #tpu.dot_dimension_numbers<[1], [0], [0], [1], [0, 0, 1, 1], [], []>} : vector<8x8xf32>, vector<8x32xf32>, vector<8x32xf32> -> vector<8x32xf32>
    %203 = vector.extract_strided_slice %162 {offsets = [32, 0], sizes = [32, 128], strides = [1, 1]} : vector<128x128xf32> to vector<32x128xf32>
    %cst_91 = arith.constant dense<0.000000e+00> : vector<8x128xf32>
    %204 = tpu.matmul %202, %203, %cst_91 {dimension_numbers = #tpu.dot_dimension_numbers<[1], [0], [0], [1], [0, 0, 1, 1], [], []>} : vector<8x32xf32>, vector<32x128xf32>, vector<8x128xf32> -> vector<8x128xf32>
    %205 = arith.addf %183, %204 : vector<8x128xf32>
    %206 = vector.extract_strided_slice %158 {offsets = [0, 64], sizes = [8, 32], strides = [1, 1]} : vector<8x128xf32> to vector<8x32xf32>
    %207 = vector.extract_strided_slice %159 {offsets = [0, 64], sizes = [8, 32], strides = [1, 1]} : vector<8x128xf32> to vector<8x32xf32>
    %cst_92 = arith.constant dense<0.000000e+00> : vector<8x8xf32>
    %208 = tpu.matmul %206, %207, %cst_92 {dimension_numbers = #tpu.dot_dimension_numbers<[1], [1], [0], [0], [0, 0, 1, 0], [], []>} : vector<8x32xf32>, vector<8x32xf32>, vector<8x8xf32> -> vector<8x8xf32>
    %c2_93 = arith.constant 2 : index
    %c0_94 = arith.constant 0 : index
    %c0_95 = arith.constant 0 : index
    %209 = vector.load %arg3[%c2_93, %c0_94, %c0_95] : memref<4x8x8xf32, #tpu.memory_space<vmem>>, vector<1x8x8xf32>
    %210 = vector.shape_cast %209 : vector<1x8x8xf32> to vector<8x8xf32>
    %211 = vector.broadcast %7 : vector<1x8xf32> to vector<8x8xf32>
    %212 = arith.addf %210, %211 : vector<8x8xf32>
    %213 = arith.addf %208, %212 : vector<8x8xf32>
    %cst_96 = arith.constant dense<0xFF800000> : vector<8xf32>
    %214 = vector.multi_reduction <maximumf>, %213, %cst_96 [1] : vector<8x8xf32> to vector<8xf32>
    %215 = vector.shape_cast %214 : vector<8xf32> to vector<8x1xf32>
    %216 = vector.broadcast %215 : vector<8x1xf32> to vector<8x8xf32>
    %217 = arith.subf %213, %216 : vector<8x8xf32>
    %218 = math.exp %217 : vector<8x8xf32>
    %cst_97 = arith.constant dense<0.000000e+00> : vector<8xf32>
    %219 = vector.multi_reduction <add>, %218, %cst_97 [1] : vector<8x8xf32> to vector<8xf32>
    %220 = vector.shape_cast %219 : vector<8xf32> to vector<8x1xf32>
    %221 = vector.broadcast %220 : vector<8x1xf32> to vector<8x8xf32>
    %222 = arith.divf %218, %221 : vector<8x8xf32>
    %223 = vector.extract_strided_slice %160 {offsets = [0, 64], sizes = [8, 32], strides = [1, 1]} : vector<8x128xf32> to vector<8x32xf32>
    %cst_98 = arith.constant dense<0.000000e+00> : vector<8x32xf32>
    %224 = tpu.matmul %222, %223, %cst_98 {dimension_numbers = #tpu.dot_dimension_numbers<[1], [0], [0], [1], [0, 0, 1, 1], [], []>} : vector<8x8xf32>, vector<8x32xf32>, vector<8x32xf32> -> vector<8x32xf32>
    %225 = vector.extract_strided_slice %162 {offsets = [64, 0], sizes = [32, 128], strides = [1, 1]} : vector<128x128xf32> to vector<32x128xf32>
    %cst_99 = arith.constant dense<0.000000e+00> : vector<8x128xf32>
    %226 = tpu.matmul %224, %225, %cst_99 {dimension_numbers = #tpu.dot_dimension_numbers<[1], [0], [0], [1], [0, 0, 1, 1], [], []>} : vector<8x32xf32>, vector<32x128xf32>, vector<8x128xf32> -> vector<8x128xf32>
    %227 = arith.addf %205, %226 : vector<8x128xf32>
    %228 = vector.extract_strided_slice %158 {offsets = [0, 96], sizes = [8, 32], strides = [1, 1]} : vector<8x128xf32> to vector<8x32xf32>
    %229 = vector.extract_strided_slice %159 {offsets = [0, 96], sizes = [8, 32], strides = [1, 1]} : vector<8x128xf32> to vector<8x32xf32>
    %cst_100 = arith.constant dense<0.000000e+00> : vector<8x8xf32>
    %230 = tpu.matmul %228, %229, %cst_100 {dimension_numbers = #tpu.dot_dimension_numbers<[1], [1], [0], [0], [0, 0, 1, 0], [], []>} : vector<8x32xf32>, vector<8x32xf32>, vector<8x8xf32> -> vector<8x8xf32>
    %c3_101 = arith.constant 3 : index
    %c0_102 = arith.constant 0 : index
    %c0_103 = arith.constant 0 : index
    %231 = vector.load %arg3[%c3_101, %c0_102, %c0_103] : memref<4x8x8xf32, #tpu.memory_space<vmem>>, vector<1x8x8xf32>
    %232 = vector.shape_cast %231 : vector<1x8x8xf32> to vector<8x8xf32>
    %233 = vector.broadcast %7 : vector<1x8xf32> to vector<8x8xf32>
    %234 = arith.addf %232, %233 : vector<8x8xf32>
    %235 = arith.addf %230, %234 : vector<8x8xf32>
    %cst_104 = arith.constant dense<0xFF800000> : vector<8xf32>
    %236 = vector.multi_reduction <maximumf>, %235, %cst_104 [1] : vector<8x8xf32> to vector<8xf32>
    %237 = vector.shape_cast %236 : vector<8xf32> to vector<8x1xf32>
    %238 = vector.broadcast %237 : vector<8x1xf32> to vector<8x8xf32>
    %239 = arith.subf %235, %238 : vector<8x8xf32>
    %240 = math.exp %239 : vector<8x8xf32>
    %cst_105 = arith.constant dense<0.000000e+00> : vector<8xf32>
    %241 = vector.multi_reduction <add>, %240, %cst_105 [1] : vector<8x8xf32> to vector<8xf32>
    %242 = vector.shape_cast %241 : vector<8xf32> to vector<8x1xf32>
    %243 = vector.broadcast %242 : vector<8x1xf32> to vector<8x8xf32>
    %244 = arith.divf %240, %243 : vector<8x8xf32>
    %245 = vector.extract_strided_slice %160 {offsets = [0, 96], sizes = [8, 32], strides = [1, 1]} : vector<8x128xf32> to vector<8x32xf32>
    %cst_106 = arith.constant dense<0.000000e+00> : vector<8x32xf32>
    %246 = tpu.matmul %244, %245, %cst_106 {dimension_numbers = #tpu.dot_dimension_numbers<[1], [0], [0], [1], [0, 0, 1, 1], [], []>} : vector<8x8xf32>, vector<8x32xf32>, vector<8x32xf32> -> vector<8x32xf32>
    %247 = vector.extract_strided_slice %162 {offsets = [96, 0], sizes = [32, 128], strides = [1, 1]} : vector<128x128xf32> to vector<32x128xf32>
    %cst_107 = arith.constant dense<0.000000e+00> : vector<8x128xf32>
    %248 = tpu.matmul %246, %247, %cst_107 {dimension_numbers = #tpu.dot_dimension_numbers<[1], [0], [0], [1], [0, 0, 1, 1], [], []>} : vector<8x32xf32>, vector<32x128xf32>, vector<8x128xf32> -> vector<8x128xf32>
    %249 = arith.addf %227, %248 : vector<8x128xf32>
    %250 = arith.addf %140, %249 : vector<8x128xf32>
    %c1_108 = arith.constant 1 : index
    %c0_109 = arith.constant 0 : index
    %c0_110 = arith.constant 0 : index
    %251 = vector.load %arg7[%c1_108, %c0_109, %c0_110] : memref<2x1x128xf32, #tpu.memory_space<vmem>>, vector<1x1x128xf32>
    %252 = vector.shape_cast %251 : vector<1x1x128xf32> to vector<1x128xf32>
    %253 = arith.mulf %250, %250 : vector<8x128xf32>
    %cst_111 = arith.constant dense<0.000000e+00> : vector<8xf32>
    %254 = vector.multi_reduction <add>, %253, %cst_111 [1] : vector<8x128xf32> to vector<8xf32>
    %255 = vector.shape_cast %254 : vector<8xf32> to vector<8x1xf32>
    %cst_112 = arith.constant 1.280000e+02 : f32
    %256 = vector.broadcast %cst_112 : f32 to vector<8x1xf32>
    %257 = arith.divf %255, %256 : vector<8x1xf32>
    %cst_113 = arith.constant 9.99999997E-7 : f32
    %258 = vector.broadcast %cst_113 : f32 to vector<8x1xf32>
    %259 = arith.addf %257, %258 : vector<8x1xf32>
    %260 = math.rsqrt %259 : vector<8x1xf32>
    %261 = vector.broadcast %260 : vector<8x1xf32> to vector<8x128xf32>
    %262 = arith.mulf %250, %261 : vector<8x128xf32>
    %263 = vector.broadcast %252 : vector<1x128xf32> to vector<8x128xf32>
    %264 = arith.mulf %262, %263 : vector<8x128xf32>
    %c1_114 = arith.constant 1 : index
    %c0_115 = arith.constant 0 : index
    %c0_116 = arith.constant 0 : index
    %265 = vector.load %arg8[%c1_114, %c0_115, %c0_116] : memref<2x128x256xf32, #tpu.memory_space<vmem>>, vector<1x128x256xf32>
    %266 = vector.shape_cast %265 : vector<1x128x256xf32> to vector<128x256xf32>
    %cst_117 = arith.constant dense<0.000000e+00> : vector<8x256xf32>
    %267 = tpu.matmul %264, %266, %cst_117 {dimension_numbers = #tpu.dot_dimension_numbers<[1], [0], [0], [1], [0, 0, 1, 1], [], []>} : vector<8x128xf32>, vector<128x256xf32>, vector<8x256xf32> -> vector<8x256xf32>
    %cst_118 = arith.constant 0.000000e+00 : f32
    %268 = vector.broadcast %cst_118 : f32 to vector<8x256xf32>
    %269 = arith.maximumf %267, %268 : vector<8x256xf32>
    %c1_119 = arith.constant 1 : index
    %c0_120 = arith.constant 0 : index
    %c0_121 = arith.constant 0 : index
    %270 = vector.load %arg9[%c1_119, %c0_120, %c0_121] : memref<2x256x128xf32, #tpu.memory_space<vmem>>, vector<1x256x128xf32>
    %271 = vector.shape_cast %270 : vector<1x256x128xf32> to vector<256x128xf32>
    %cst_122 = arith.constant dense<0.000000e+00> : vector<8x128xf32>
    %272 = tpu.matmul %269, %271, %cst_122 {dimension_numbers = #tpu.dot_dimension_numbers<[1], [0], [0], [1], [0, 0, 1, 1], [], []>} : vector<8x256xf32>, vector<256x128xf32>, vector<8x128xf32> -> vector<8x128xf32>
    %273 = arith.addf %250, %272 : vector<8x128xf32>
    %c0_123 = arith.constant 0 : index
    %c0_124 = arith.constant 0 : index
    %274 = vector.load %arg10[%c0_123, %c0_124] : memref<1x128xf32, #tpu.memory_space<vmem>>, vector<1x128xf32>
    %275 = arith.mulf %273, %273 : vector<8x128xf32>
    %cst_125 = arith.constant dense<0.000000e+00> : vector<8xf32>
    %276 = vector.multi_reduction <add>, %275, %cst_125 [1] : vector<8x128xf32> to vector<8xf32>
    %277 = vector.shape_cast %276 : vector<8xf32> to vector<8x1xf32>
    %cst_126 = arith.constant 1.280000e+02 : f32
    %278 = vector.broadcast %cst_126 : f32 to vector<8x1xf32>
    %279 = arith.divf %277, %278 : vector<8x1xf32>
    %cst_127 = arith.constant 9.99999997E-7 : f32
    %280 = vector.broadcast %cst_127 : f32 to vector<8x1xf32>
    %281 = arith.addf %279, %280 : vector<8x1xf32>
    %282 = math.rsqrt %281 : vector<8x1xf32>
    %283 = vector.broadcast %282 : vector<8x1xf32> to vector<8x128xf32>
    %284 = arith.mulf %273, %283 : vector<8x128xf32>
    %285 = vector.broadcast %274 : vector<1x128xf32> to vector<8x128xf32>
    %286 = arith.mulf %284, %285 : vector<8x128xf32>
    %c0_128 = arith.constant 0 : index
    %c0_129 = arith.constant 0 : index
    %c0_130 = arith.constant 0 : index
    %287 = vector.load %arg11[%c0_128, %c0_129, %c0_130] : memref<1x8x128xf32, #tpu.memory_space<vmem>>, vector<1x8x128xf32>
    %288 = vector.shape_cast %287 : vector<1x8x128xf32> to vector<8x128xf32>
    %289 = vector.shape_cast %286 : vector<8x128xf32> to vector<1x8x128xf32>
    tpu.vector_store %arg11[%c0_128, %c0_129, %c0_130], %289 {strides = array<i32>} : memref<1x8x128xf32, #tpu.memory_space<vmem>>, vector<1x8x128xf32>,
    return
  }
  func.func @transform_0(%arg0: i32) -> (i32, i32, i32) {
    %c0_i32 = arith.constant 0 : i32
    %c0_i32_0 = arith.constant 0 : i32
    %c0_i32_1 = arith.constant 0 : i32
    return %arg0, %c0_i32, %c0_i32_0 : i32, i32, i32
  }
  func.func @transform_1(%arg0: i32) -> (i32, i32, i32) {
    %c0_i32 = arith.constant 0 : i32
    %c0_i32_0 = arith.constant 0 : i32
    %c0_i32_1 = arith.constant 0 : i32
    return %arg0, %c0_i32, %c0_i32_0 : i32, i32, i32
  }
  func.func @transform_2(%arg0: i32) -> (i32, i32, i32) {
    %c0_i32 = arith.constant 0 : i32
    %c0_i32_0 = arith.constant 0 : i32
    %c0_i32_1 = arith.constant 0 : i32
    %c0_i32_2 = arith.constant 0 : i32
    return %c0_i32, %c0_i32_0, %c0_i32_1 : i32, i32, i32
  }
  func.func @transform_3(%arg0: i32) -> (i32, i32, i32) {
    %c0_i32 = arith.constant 0 : i32
    %c0_i32_0 = arith.constant 0 : i32
    %c0_i32_1 = arith.constant 0 : i32
    %c0_i32_2 = arith.constant 0 : i32
    return %c0_i32, %c0_i32_0, %c0_i32_1 : i32, i32, i32
  }
  func.func @transform_4(%arg0: i32) -> (i32, i32, i32) {
    %c0_i32 = arith.constant 0 : i32
    %c0_i32_0 = arith.constant 0 : i32
    %c0_i32_1 = arith.constant 0 : i32
    %c0_i32_2 = arith.constant 0 : i32
    return %c0_i32, %c0_i32_0, %c0_i32_1 : i32, i32, i32
  }
  func.func @transform_5(%arg0: i32) -> (i32, i32, i32) {
    %c0_i32 = arith.constant 0 : i32
    %c0_i32_0 = arith.constant 0 : i32
    %c0_i32_1 = arith.constant 0 : i32
    %c0_i32_2 = arith.constant 0 : i32
    return %c0_i32, %c0_i32_0, %c0_i32_1 : i32, i32, i32
  }
  func.func @transform_6(%arg0: i32) -> (i32, i32, i32) {
    %c0_i32 = arith.constant 0 : i32
    %c0_i32_0 = arith.constant 0 : i32
    %c0_i32_1 = arith.constant 0 : i32
    %c0_i32_2 = arith.constant 0 : i32
    return %c0_i32, %c0_i32_0, %c0_i32_1 : i32, i32, i32
  }
  func.func @transform_7(%arg0: i32) -> (i32, i32, i32) {
    %c0_i32 = arith.constant 0 : i32
    %c0_i32_0 = arith.constant 0 : i32
    %c0_i32_1 = arith.constant 0 : i32
    %c0_i32_2 = arith.constant 0 : i32
    return %c0_i32, %c0_i32_0, %c0_i32_1 : i32, i32, i32
  }
  func.func @transform_8(%arg0: i32) -> (i32, i32, i32) {
    %c0_i32 = arith.constant 0 : i32
    %c0_i32_0 = arith.constant 0 : i32
    %c0_i32_1 = arith.constant 0 : i32
    %c0_i32_2 = arith.constant 0 : i32
    return %c0_i32, %c0_i32_0, %c0_i32_1 : i32, i32, i32
  }
  func.func @transform_9(%arg0: i32) -> (i32, i32) {
    %c0_i32 = arith.constant 0 : i32
    %c0_i32_0 = arith.constant 0 : i32
    %c0_i32_1 = arith.constant 0 : i32
    return %c0_i32, %c0_i32_0 : i32, i32
  }
  func.func @transform_10(%arg0: i32) -> (i32, i32, i32) {
    %c0_i32 = arith.constant 0 : i32
    %c0_i32_0 = arith.constant 0 : i32
    %c0_i32_1 = arith.constant 0 : i32
    return %arg0, %c0_i32, %c0_i32_0 : i32, i32, i32
  }
}

module attributes {stable_mosaic.version = 11 : i64} {
  func.func @_decoder_stack_kernel(%arg0: i32, %arg1: memref<1x8x128xf32, #tpu.memory_space<vmem>>, %arg2: memref<1x8x128xf32, #tpu.memory_space<vmem>>, %arg3: memref<1x1x8xf32, #tpu.memory_space<vmem>>, %arg4: memref<4x8x8xf32, #tpu.memory_space<vmem>>, %arg5: memref<1x8x1xi32, #tpu.memory_space<vmem>>, %arg6: memref<2x1x128xf32, #tpu.memory_space<vmem>>, %arg7: memref<2x128x384xf32, #tpu.memory_space<vmem>>, %arg8: memref<2x128x128xf32, #tpu.memory_space<vmem>>, %arg9: memref<2x1x128xf32, #tpu.memory_space<vmem>>, %arg10: memref<2x128x128xf32, #tpu.memory_space<vmem>>, %arg11: memref<2x128x256xf32, #tpu.memory_space<vmem>>, %arg12: memref<2x128x128xf32, #tpu.memory_space<vmem>>, %arg13: memref<2x1x128xf32, #tpu.memory_space<vmem>>, %arg14: memref<2x128x256xf32, #tpu.memory_space<vmem>>, %arg15: memref<2x256x128xf32, #tpu.memory_space<vmem>>, %arg16: memref<1x128xf32, #tpu.memory_space<vmem>>, %arg17: memref<256x128xf32, #tpu.memory_space<vmem>>, %arg18: memref<1x8x256xf32, #tpu.memory_space<vmem>>, %arg19: memref<1x1x1xf32, #tpu.memory_space<vmem>>, %arg20: memref<1x1x1xf32, #tpu.memory_space<vmem>>) attributes {dimension_semantics = [#tpu.dimension_semantics<parallel>], iteration_bounds = array<i64: 2>, scalar_prefetch = 0 : i64, scratch_operands = 0 : i64, tpu.core_type = #tpu.core_type<tc>, window_params = [{transform_indices = @transform_0, window_bounds = array<i64: 1, 8, 128>}, {transform_indices = @transform_1, window_bounds = array<i64: 1, 8, 128>}, {transform_indices = @transform_2, window_bounds = array<i64: 1, 1, 8>}, {pipeline_mode = #tpu.pipeline_mode<synchronous>, transform_indices = @transform_3, window_bounds = array<i64: 4, 8, 8>}, {transform_indices = @transform_4, window_bounds = array<i64: 1, 8, 1>}, {pipeline_mode = #tpu.pipeline_mode<synchronous>, transform_indices = @transform_5, window_bounds = array<i64: 2, 1, 128>}, {pipeline_mode = #tpu.pipeline_mode<synchronous>, transform_indices = @transform_6, window_bounds = array<i64: 2, 128, 384>}, {pipeline_mode = #tpu.pipeline_mode<synchronous>, transform_indices = @transform_7, window_bounds = array<i64: 2, 128, 128>}, {pipeline_mode = #tpu.pipeline_mode<synchronous>, transform_indices = @transform_8, window_bounds = array<i64: 2, 1, 128>}, {pipeline_mode = #tpu.pipeline_mode<synchronous>, transform_indices = @transform_9, window_bounds = array<i64: 2, 128, 128>}, {pipeline_mode = #tpu.pipeline_mode<synchronous>, transform_indices = @transform_10, window_bounds = array<i64: 2, 128, 256>}, {pipeline_mode = #tpu.pipeline_mode<synchronous>, transform_indices = @transform_11, window_bounds = array<i64: 2, 128, 128>}, {pipeline_mode = #tpu.pipeline_mode<synchronous>, transform_indices = @transform_12, window_bounds = array<i64: 2, 1, 128>}, {pipeline_mode = #tpu.pipeline_mode<synchronous>, transform_indices = @transform_13, window_bounds = array<i64: 2, 128, 256>}, {pipeline_mode = #tpu.pipeline_mode<synchronous>, transform_indices = @transform_14, window_bounds = array<i64: 2, 256, 128>}, {pipeline_mode = #tpu.pipeline_mode<synchronous>, transform_indices = @transform_15, window_bounds = array<i64: 1, 128>}, {pipeline_mode = #tpu.pipeline_mode<synchronous>, transform_indices = @transform_16, window_bounds = array<i64: 256, 128>}, {transform_indices = @transform_17, window_bounds = array<i64: 1, 8, 256>}, {transform_indices = @transform_18, window_bounds = array<i64: 1, 1, 1>}, {transform_indices = @transform_19, window_bounds = array<i64: 1, 1, 1>}]} {
    %c0 = arith.constant 0 : index
    %c0_0 = arith.constant 0 : index
    %c0_1 = arith.constant 0 : index
    %0 = vector.load %arg1[%c0, %c0_0, %c0_1] : memref<1x8x128xf32, #tpu.memory_space<vmem>>, vector<1x8x128xf32>
    %1 = vector.shape_cast %0 : vector<1x8x128xf32> to vector<8x128xf32>
    %c0_2 = arith.constant 0 : index
    %c0_3 = arith.constant 0 : index
    %c0_4 = arith.constant 0 : index
    %2 = vector.load %arg2[%c0_2, %c0_3, %c0_4] : memref<1x8x128xf32, #tpu.memory_space<vmem>>, vector<1x8x128xf32>
    %3 = vector.shape_cast %2 : vector<1x8x128xf32> to vector<8x128xf32>
    %c0_5 = arith.constant 0 : index
    %c0_6 = arith.constant 0 : index
    %c0_7 = arith.constant 0 : index
    %4 = vector.load %arg3[%c0_5, %c0_6, %c0_7] : memref<1x1x8xf32, #tpu.memory_space<vmem>>, vector<1x1x8xf32>
    %5 = vector.shape_cast %4 : vector<1x1x8xf32> to vector<1x8xf32>
    %cst = arith.constant 1.000000e+00 : f32
    %6 = vector.broadcast %cst : f32 to vector<1x8xf32>
    %7 = arith.subf %6, %5 : vector<1x8xf32>
    %cst_8 = arith.constant -1.000000e+09 : f32
    %8 = vector.broadcast %cst_8 : f32 to vector<1x8xf32>
    %9 = arith.mulf %7, %8 : vector<1x8xf32>
    %c0_9 = arith.constant 0 : index
    %c0_10 = arith.constant 0 : index
    %c0_11 = arith.constant 0 : index
    %10 = vector.load %arg6[%c0_9, %c0_10, %c0_11] : memref<2x1x128xf32, #tpu.memory_space<vmem>>, vector<1x1x128xf32>
    %11 = vector.shape_cast %10 : vector<1x1x128xf32> to vector<1x128xf32>
    %12 = arith.mulf %1, %1 : vector<8x128xf32>
    %cst_12 = arith.constant dense<0.000000e+00> : vector<8xf32>
    %13 = vector.multi_reduction <add>, %12, %cst_12 [1] : vector<8x128xf32> to vector<8xf32>
    %14 = vector.shape_cast %13 : vector<8xf32> to vector<8x1xf32>
    %cst_13 = arith.constant 1.280000e+02 : f32
    %15 = vector.broadcast %cst_13 : f32 to vector<8x1xf32>
    %16 = arith.divf %14, %15 : vector<8x1xf32>
    %cst_14 = arith.constant 9.99999997E-7 : f32
    %17 = vector.broadcast %cst_14 : f32 to vector<8x1xf32>
    %18 = arith.addf %16, %17 : vector<8x1xf32>
    %19 = math.rsqrt %18 : vector<8x1xf32>
    %20 = vector.broadcast %19 : vector<8x1xf32> to vector<8x128xf32>
    %21 = arith.mulf %1, %20 : vector<8x128xf32>
    %22 = vector.broadcast %11 : vector<1x128xf32> to vector<8x128xf32>
    %23 = arith.mulf %21, %22 : vector<8x128xf32>
    %c0_15 = arith.constant 0 : index
    %c0_16 = arith.constant 0 : index
    %c0_17 = arith.constant 0 : index
    %24 = vector.load %arg7[%c0_15, %c0_16, %c0_17] : memref<2x128x384xf32, #tpu.memory_space<vmem>>, vector<1x128x384xf32>
    %25 = vector.shape_cast %24 : vector<1x128x384xf32> to vector<128x384xf32>
    %cst_18 = arith.constant dense<0.000000e+00> : vector<8x384xf32>
    %26 = tpu.matmul %23, %25, %cst_18 {dimension_numbers = #tpu.dot_dimension_numbers<[1], [0], [0], [1], [0, 0, 1, 1], [], []>} : vector<8x128xf32>, vector<128x384xf32>, vector<8x384xf32> -> vector<8x384xf32>
    %27 = vector.extract_strided_slice %26 {offsets = [0, 0], sizes = [8, 128], strides = [1, 1]} : vector<8x384xf32> to vector<8x128xf32>
    %28 = vector.extract_strided_slice %26 {offsets = [0, 128], sizes = [8, 128], strides = [1, 1]} : vector<8x384xf32> to vector<8x128xf32>
    %29 = vector.extract_strided_slice %26 {offsets = [0, 256], sizes = [8, 128], strides = [1, 1]} : vector<8x384xf32> to vector<8x128xf32>
    %c0_19 = arith.constant 0 : index
    %c0_20 = arith.constant 0 : index
    %c0_21 = arith.constant 0 : index
    %30 = vector.load %arg8[%c0_19, %c0_20, %c0_21] : memref<2x128x128xf32, #tpu.memory_space<vmem>>, vector<1x128x128xf32>
    %31 = vector.shape_cast %30 : vector<1x128x128xf32> to vector<128x128xf32>
    %32 = vector.extract_strided_slice %27 {offsets = [0, 0], sizes = [8, 32], strides = [1, 1]} : vector<8x128xf32> to vector<8x32xf32>
    %33 = vector.extract_strided_slice %28 {offsets = [0, 0], sizes = [8, 32], strides = [1, 1]} : vector<8x128xf32> to vector<8x32xf32>
    %cst_22 = arith.constant dense<0.000000e+00> : vector<8x8xf32>
    %34 = tpu.matmul %32, %33, %cst_22 {dimension_numbers = #tpu.dot_dimension_numbers<[1], [1], [0], [0], [0, 0, 1, 0], [], []>} : vector<8x32xf32>, vector<8x32xf32>, vector<8x8xf32> -> vector<8x8xf32>
    %c0_23 = arith.constant 0 : index
    %c0_24 = arith.constant 0 : index
    %c0_25 = arith.constant 0 : index
    %35 = vector.load %arg4[%c0_23, %c0_24, %c0_25] : memref<4x8x8xf32, #tpu.memory_space<vmem>>, vector<1x8x8xf32>
    %36 = vector.shape_cast %35 : vector<1x8x8xf32> to vector<8x8xf32>
    %37 = arith.addf %34, %36 : vector<8x8xf32>
    %cst_26 = arith.constant dense<0xFF800000> : vector<8xf32>
    %38 = vector.multi_reduction <maximumf>, %37, %cst_26 [1] : vector<8x8xf32> to vector<8xf32>
    %39 = vector.shape_cast %38 : vector<8xf32> to vector<8x1xf32>
    %40 = vector.broadcast %39 : vector<8x1xf32> to vector<8x8xf32>
    %41 = arith.subf %37, %40 : vector<8x8xf32>
    %42 = math.exp %41 : vector<8x8xf32>
    %cst_27 = arith.constant dense<0.000000e+00> : vector<8xf32>
    %43 = vector.multi_reduction <add>, %42, %cst_27 [1] : vector<8x8xf32> to vector<8xf32>
    %44 = vector.shape_cast %43 : vector<8xf32> to vector<8x1xf32>
    %45 = vector.broadcast %44 : vector<8x1xf32> to vector<8x8xf32>
    %46 = arith.divf %42, %45 : vector<8x8xf32>
    %47 = vector.extract_strided_slice %29 {offsets = [0, 0], sizes = [8, 32], strides = [1, 1]} : vector<8x128xf32> to vector<8x32xf32>
    %cst_28 = arith.constant dense<0.000000e+00> : vector<8x32xf32>
    %48 = tpu.matmul %46, %47, %cst_28 {dimension_numbers = #tpu.dot_dimension_numbers<[1], [0], [0], [1], [0, 0, 1, 1], [], []>} : vector<8x8xf32>, vector<8x32xf32>, vector<8x32xf32> -> vector<8x32xf32>
    %49 = vector.extract_strided_slice %31 {offsets = [0, 0], sizes = [32, 128], strides = [1, 1]} : vector<128x128xf32> to vector<32x128xf32>
    %cst_29 = arith.constant dense<0.000000e+00> : vector<8x128xf32>
    %50 = tpu.matmul %48, %49, %cst_29 {dimension_numbers = #tpu.dot_dimension_numbers<[1], [0], [0], [1], [0, 0, 1, 1], [], []>} : vector<8x32xf32>, vector<32x128xf32>, vector<8x128xf32> -> vector<8x128xf32>
    %51 = vector.extract_strided_slice %27 {offsets = [0, 32], sizes = [8, 32], strides = [1, 1]} : vector<8x128xf32> to vector<8x32xf32>
    %52 = vector.extract_strided_slice %28 {offsets = [0, 32], sizes = [8, 32], strides = [1, 1]} : vector<8x128xf32> to vector<8x32xf32>
    %cst_30 = arith.constant dense<0.000000e+00> : vector<8x8xf32>
    %53 = tpu.matmul %51, %52, %cst_30 {dimension_numbers = #tpu.dot_dimension_numbers<[1], [1], [0], [0], [0, 0, 1, 0], [], []>} : vector<8x32xf32>, vector<8x32xf32>, vector<8x8xf32> -> vector<8x8xf32>
    %c1 = arith.constant 1 : index
    %c0_31 = arith.constant 0 : index
    %c0_32 = arith.constant 0 : index
    %54 = vector.load %arg4[%c1, %c0_31, %c0_32] : memref<4x8x8xf32, #tpu.memory_space<vmem>>, vector<1x8x8xf32>
    %55 = vector.shape_cast %54 : vector<1x8x8xf32> to vector<8x8xf32>
    %56 = arith.addf %53, %55 : vector<8x8xf32>
    %cst_33 = arith.constant dense<0xFF800000> : vector<8xf32>
    %57 = vector.multi_reduction <maximumf>, %56, %cst_33 [1] : vector<8x8xf32> to vector<8xf32>
    %58 = vector.shape_cast %57 : vector<8xf32> to vector<8x1xf32>
    %59 = vector.broadcast %58 : vector<8x1xf32> to vector<8x8xf32>
    %60 = arith.subf %56, %59 : vector<8x8xf32>
    %61 = math.exp %60 : vector<8x8xf32>
    %cst_34 = arith.constant dense<0.000000e+00> : vector<8xf32>
    %62 = vector.multi_reduction <add>, %61, %cst_34 [1] : vector<8x8xf32> to vector<8xf32>
    %63 = vector.shape_cast %62 : vector<8xf32> to vector<8x1xf32>
    %64 = vector.broadcast %63 : vector<8x1xf32> to vector<8x8xf32>
    %65 = arith.divf %61, %64 : vector<8x8xf32>
    %66 = vector.extract_strided_slice %29 {offsets = [0, 32], sizes = [8, 32], strides = [1, 1]} : vector<8x128xf32> to vector<8x32xf32>
    %cst_35 = arith.constant dense<0.000000e+00> : vector<8x32xf32>
    %67 = tpu.matmul %65, %66, %cst_35 {dimension_numbers = #tpu.dot_dimension_numbers<[1], [0], [0], [1], [0, 0, 1, 1], [], []>} : vector<8x8xf32>, vector<8x32xf32>, vector<8x32xf32> -> vector<8x32xf32>
    %68 = vector.extract_strided_slice %31 {offsets = [32, 0], sizes = [32, 128], strides = [1, 1]} : vector<128x128xf32> to vector<32x128xf32>
    %cst_36 = arith.constant dense<0.000000e+00> : vector<8x128xf32>
    %69 = tpu.matmul %67, %68, %cst_36 {dimension_numbers = #tpu.dot_dimension_numbers<[1], [0], [0], [1], [0, 0, 1, 1], [], []>} : vector<8x32xf32>, vector<32x128xf32>, vector<8x128xf32> -> vector<8x128xf32>
    %70 = arith.addf %50, %69 : vector<8x128xf32>
    %71 = vector.extract_strided_slice %27 {offsets = [0, 64], sizes = [8, 32], strides = [1, 1]} : vector<8x128xf32> to vector<8x32xf32>
    %72 = vector.extract_strided_slice %28 {offsets = [0, 64], sizes = [8, 32], strides = [1, 1]} : vector<8x128xf32> to vector<8x32xf32>
    %cst_37 = arith.constant dense<0.000000e+00> : vector<8x8xf32>
    %73 = tpu.matmul %71, %72, %cst_37 {dimension_numbers = #tpu.dot_dimension_numbers<[1], [1], [0], [0], [0, 0, 1, 0], [], []>} : vector<8x32xf32>, vector<8x32xf32>, vector<8x8xf32> -> vector<8x8xf32>
    %c2 = arith.constant 2 : index
    %c0_38 = arith.constant 0 : index
    %c0_39 = arith.constant 0 : index
    %74 = vector.load %arg4[%c2, %c0_38, %c0_39] : memref<4x8x8xf32, #tpu.memory_space<vmem>>, vector<1x8x8xf32>
    %75 = vector.shape_cast %74 : vector<1x8x8xf32> to vector<8x8xf32>
    %76 = arith.addf %73, %75 : vector<8x8xf32>
    %cst_40 = arith.constant dense<0xFF800000> : vector<8xf32>
    %77 = vector.multi_reduction <maximumf>, %76, %cst_40 [1] : vector<8x8xf32> to vector<8xf32>
    %78 = vector.shape_cast %77 : vector<8xf32> to vector<8x1xf32>
    %79 = vector.broadcast %78 : vector<8x1xf32> to vector<8x8xf32>
    %80 = arith.subf %76, %79 : vector<8x8xf32>
    %81 = math.exp %80 : vector<8x8xf32>
    %cst_41 = arith.constant dense<0.000000e+00> : vector<8xf32>
    %82 = vector.multi_reduction <add>, %81, %cst_41 [1] : vector<8x8xf32> to vector<8xf32>
    %83 = vector.shape_cast %82 : vector<8xf32> to vector<8x1xf32>
    %84 = vector.broadcast %83 : vector<8x1xf32> to vector<8x8xf32>
    %85 = arith.divf %81, %84 : vector<8x8xf32>
    %86 = vector.extract_strided_slice %29 {offsets = [0, 64], sizes = [8, 32], strides = [1, 1]} : vector<8x128xf32> to vector<8x32xf32>
    %cst_42 = arith.constant dense<0.000000e+00> : vector<8x32xf32>
    %87 = tpu.matmul %85, %86, %cst_42 {dimension_numbers = #tpu.dot_dimension_numbers<[1], [0], [0], [1], [0, 0, 1, 1], [], []>} : vector<8x8xf32>, vector<8x32xf32>, vector<8x32xf32> -> vector<8x32xf32>
    %88 = vector.extract_strided_slice %31 {offsets = [64, 0], sizes = [32, 128], strides = [1, 1]} : vector<128x128xf32> to vector<32x128xf32>
    %cst_43 = arith.constant dense<0.000000e+00> : vector<8x128xf32>
    %89 = tpu.matmul %87, %88, %cst_43 {dimension_numbers = #tpu.dot_dimension_numbers<[1], [0], [0], [1], [0, 0, 1, 1], [], []>} : vector<8x32xf32>, vector<32x128xf32>, vector<8x128xf32> -> vector<8x128xf32>
    %90 = arith.addf %70, %89 : vector<8x128xf32>
    %91 = vector.extract_strided_slice %27 {offsets = [0, 96], sizes = [8, 32], strides = [1, 1]} : vector<8x128xf32> to vector<8x32xf32>
    %92 = vector.extract_strided_slice %28 {offsets = [0, 96], sizes = [8, 32], strides = [1, 1]} : vector<8x128xf32> to vector<8x32xf32>
    %cst_44 = arith.constant dense<0.000000e+00> : vector<8x8xf32>
    %93 = tpu.matmul %91, %92, %cst_44 {dimension_numbers = #tpu.dot_dimension_numbers<[1], [1], [0], [0], [0, 0, 1, 0], [], []>} : vector<8x32xf32>, vector<8x32xf32>, vector<8x8xf32> -> vector<8x8xf32>
    %c3 = arith.constant 3 : index
    %c0_45 = arith.constant 0 : index
    %c0_46 = arith.constant 0 : index
    %94 = vector.load %arg4[%c3, %c0_45, %c0_46] : memref<4x8x8xf32, #tpu.memory_space<vmem>>, vector<1x8x8xf32>
    %95 = vector.shape_cast %94 : vector<1x8x8xf32> to vector<8x8xf32>
    %96 = arith.addf %93, %95 : vector<8x8xf32>
    %cst_47 = arith.constant dense<0xFF800000> : vector<8xf32>
    %97 = vector.multi_reduction <maximumf>, %96, %cst_47 [1] : vector<8x8xf32> to vector<8xf32>
    %98 = vector.shape_cast %97 : vector<8xf32> to vector<8x1xf32>
    %99 = vector.broadcast %98 : vector<8x1xf32> to vector<8x8xf32>
    %100 = arith.subf %96, %99 : vector<8x8xf32>
    %101 = math.exp %100 : vector<8x8xf32>
    %cst_48 = arith.constant dense<0.000000e+00> : vector<8xf32>
    %102 = vector.multi_reduction <add>, %101, %cst_48 [1] : vector<8x8xf32> to vector<8xf32>
    %103 = vector.shape_cast %102 : vector<8xf32> to vector<8x1xf32>
    %104 = vector.broadcast %103 : vector<8x1xf32> to vector<8x8xf32>
    %105 = arith.divf %101, %104 : vector<8x8xf32>
    %106 = vector.extract_strided_slice %29 {offsets = [0, 96], sizes = [8, 32], strides = [1, 1]} : vector<8x128xf32> to vector<8x32xf32>
    %cst_49 = arith.constant dense<0.000000e+00> : vector<8x32xf32>
    %107 = tpu.matmul %105, %106, %cst_49 {dimension_numbers = #tpu.dot_dimension_numbers<[1], [0], [0], [1], [0, 0, 1, 1], [], []>} : vector<8x8xf32>, vector<8x32xf32>, vector<8x32xf32> -> vector<8x32xf32>
    %108 = vector.extract_strided_slice %31 {offsets = [96, 0], sizes = [32, 128], strides = [1, 1]} : vector<128x128xf32> to vector<32x128xf32>
    %cst_50 = arith.constant dense<0.000000e+00> : vector<8x128xf32>
    %109 = tpu.matmul %107, %108, %cst_50 {dimension_numbers = #tpu.dot_dimension_numbers<[1], [0], [0], [1], [0, 0, 1, 1], [], []>} : vector<8x32xf32>, vector<32x128xf32>, vector<8x128xf32> -> vector<8x128xf32>
    %110 = arith.addf %90, %109 : vector<8x128xf32>
    %111 = arith.addf %1, %110 : vector<8x128xf32>
    %c0_51 = arith.constant 0 : index
    %c0_52 = arith.constant 0 : index
    %c0_53 = arith.constant 0 : index
    %112 = vector.load %arg9[%c0_51, %c0_52, %c0_53] : memref<2x1x128xf32, #tpu.memory_space<vmem>>, vector<1x1x128xf32>
    %113 = vector.shape_cast %112 : vector<1x1x128xf32> to vector<1x128xf32>
    %114 = arith.mulf %111, %111 : vector<8x128xf32>
    %cst_54 = arith.constant dense<0.000000e+00> : vector<8xf32>
    %115 = vector.multi_reduction <add>, %114, %cst_54 [1] : vector<8x128xf32> to vector<8xf32>
    %116 = vector.shape_cast %115 : vector<8xf32> to vector<8x1xf32>
    %cst_55 = arith.constant 1.280000e+02 : f32
    %117 = vector.broadcast %cst_55 : f32 to vector<8x1xf32>
    %118 = arith.divf %116, %117 : vector<8x1xf32>
    %cst_56 = arith.constant 9.99999997E-7 : f32
    %119 = vector.broadcast %cst_56 : f32 to vector<8x1xf32>
    %120 = arith.addf %118, %119 : vector<8x1xf32>
    %121 = math.rsqrt %120 : vector<8x1xf32>
    %122 = vector.broadcast %121 : vector<8x1xf32> to vector<8x128xf32>
    %123 = arith.mulf %111, %122 : vector<8x128xf32>
    %124 = vector.broadcast %113 : vector<1x128xf32> to vector<8x128xf32>
    %125 = arith.mulf %123, %124 : vector<8x128xf32>
    %c0_57 = arith.constant 0 : index
    %c0_58 = arith.constant 0 : index
    %c0_59 = arith.constant 0 : index
    %126 = vector.load %arg10[%c0_57, %c0_58, %c0_59] : memref<2x128x128xf32, #tpu.memory_space<vmem>>, vector<1x128x128xf32>
    %127 = vector.shape_cast %126 : vector<1x128x128xf32> to vector<128x128xf32>
    %cst_60 = arith.constant dense<0.000000e+00> : vector<8x128xf32>
    %128 = tpu.matmul %125, %127, %cst_60 {dimension_numbers = #tpu.dot_dimension_numbers<[1], [0], [0], [1], [0, 0, 1, 1], [], []>} : vector<8x128xf32>, vector<128x128xf32>, vector<8x128xf32> -> vector<8x128xf32>
    %c0_61 = arith.constant 0 : index
    %c0_62 = arith.constant 0 : index
    %c0_63 = arith.constant 0 : index
    %129 = vector.load %arg11[%c0_61, %c0_62, %c0_63] : memref<2x128x256xf32, #tpu.memory_space<vmem>>, vector<1x128x256xf32>
    %130 = vector.shape_cast %129 : vector<1x128x256xf32> to vector<128x256xf32>
    %cst_64 = arith.constant dense<0.000000e+00> : vector<8x256xf32>
    %131 = tpu.matmul %3, %130, %cst_64 {dimension_numbers = #tpu.dot_dimension_numbers<[1], [0], [0], [1], [0, 0, 1, 1], [], []>} : vector<8x128xf32>, vector<128x256xf32>, vector<8x256xf32> -> vector<8x256xf32>
    %132 = vector.extract_strided_slice %131 {offsets = [0, 0], sizes = [8, 128], strides = [1, 1]} : vector<8x256xf32> to vector<8x128xf32>
    %133 = vector.extract_strided_slice %131 {offsets = [0, 128], sizes = [8, 128], strides = [1, 1]} : vector<8x256xf32> to vector<8x128xf32>
    %c0_65 = arith.constant 0 : index
    %c0_66 = arith.constant 0 : index
    %c0_67 = arith.constant 0 : index
    %134 = vector.load %arg12[%c0_65, %c0_66, %c0_67] : memref<2x128x128xf32, #tpu.memory_space<vmem>>, vector<1x128x128xf32>
    %135 = vector.shape_cast %134 : vector<1x128x128xf32> to vector<128x128xf32>
    %136 = vector.extract_strided_slice %128 {offsets = [0, 0], sizes = [8, 32], strides = [1, 1]} : vector<8x128xf32> to vector<8x32xf32>
    %137 = vector.extract_strided_slice %132 {offsets = [0, 0], sizes = [8, 32], strides = [1, 1]} : vector<8x128xf32> to vector<8x32xf32>
    %cst_68 = arith.constant dense<0.000000e+00> : vector<8x8xf32>
    %138 = tpu.matmul %136, %137, %cst_68 {dimension_numbers = #tpu.dot_dimension_numbers<[1], [1], [0], [0], [0, 0, 1, 0], [], []>} : vector<8x32xf32>, vector<8x32xf32>, vector<8x8xf32> -> vector<8x8xf32>
    %139 = vector.broadcast %9 : vector<1x8xf32> to vector<8x8xf32>
    %140 = arith.addf %138, %139 : vector<8x8xf32>
    %cst_69 = arith.constant dense<0xFF800000> : vector<8xf32>
    %141 = vector.multi_reduction <maximumf>, %140, %cst_69 [1] : vector<8x8xf32> to vector<8xf32>
    %142 = vector.shape_cast %141 : vector<8xf32> to vector<8x1xf32>
    %143 = vector.broadcast %142 : vector<8x1xf32> to vector<8x8xf32>
    %144 = arith.subf %140, %143 : vector<8x8xf32>
    %145 = math.exp %144 : vector<8x8xf32>
    %cst_70 = arith.constant dense<0.000000e+00> : vector<8xf32>
    %146 = vector.multi_reduction <add>, %145, %cst_70 [1] : vector<8x8xf32> to vector<8xf32>
    %147 = vector.shape_cast %146 : vector<8xf32> to vector<8x1xf32>
    %148 = vector.broadcast %147 : vector<8x1xf32> to vector<8x8xf32>
    %149 = arith.divf %145, %148 : vector<8x8xf32>
    %150 = vector.extract_strided_slice %133 {offsets = [0, 0], sizes = [8, 32], strides = [1, 1]} : vector<8x128xf32> to vector<8x32xf32>
    %cst_71 = arith.constant dense<0.000000e+00> : vector<8x32xf32>
    %151 = tpu.matmul %149, %150, %cst_71 {dimension_numbers = #tpu.dot_dimension_numbers<[1], [0], [0], [1], [0, 0, 1, 1], [], []>} : vector<8x8xf32>, vector<8x32xf32>, vector<8x32xf32> -> vector<8x32xf32>
    %152 = vector.extract_strided_slice %135 {offsets = [0, 0], sizes = [32, 128], strides = [1, 1]} : vector<128x128xf32> to vector<32x128xf32>
    %cst_72 = arith.constant dense<0.000000e+00> : vector<8x128xf32>
    %153 = tpu.matmul %151, %152, %cst_72 {dimension_numbers = #tpu.dot_dimension_numbers<[1], [0], [0], [1], [0, 0, 1, 1], [], []>} : vector<8x32xf32>, vector<32x128xf32>, vector<8x128xf32> -> vector<8x128xf32>
    %154 = vector.extract_strided_slice %128 {offsets = [0, 32], sizes = [8, 32], strides = [1, 1]} : vector<8x128xf32> to vector<8x32xf32>
    %155 = vector.extract_strided_slice %132 {offsets = [0, 32], sizes = [8, 32], strides = [1, 1]} : vector<8x128xf32> to vector<8x32xf32>
    %cst_73 = arith.constant dense<0.000000e+00> : vector<8x8xf32>
    %156 = tpu.matmul %154, %155, %cst_73 {dimension_numbers = #tpu.dot_dimension_numbers<[1], [1], [0], [0], [0, 0, 1, 0], [], []>} : vector<8x32xf32>, vector<8x32xf32>, vector<8x8xf32> -> vector<8x8xf32>
    %157 = vector.broadcast %9 : vector<1x8xf32> to vector<8x8xf32>
    %158 = arith.addf %156, %157 : vector<8x8xf32>
    %cst_74 = arith.constant dense<0xFF800000> : vector<8xf32>
    %159 = vector.multi_reduction <maximumf>, %158, %cst_74 [1] : vector<8x8xf32> to vector<8xf32>
    %160 = vector.shape_cast %159 : vector<8xf32> to vector<8x1xf32>
    %161 = vector.broadcast %160 : vector<8x1xf32> to vector<8x8xf32>
    %162 = arith.subf %158, %161 : vector<8x8xf32>
    %163 = math.exp %162 : vector<8x8xf32>
    %cst_75 = arith.constant dense<0.000000e+00> : vector<8xf32>
    %164 = vector.multi_reduction <add>, %163, %cst_75 [1] : vector<8x8xf32> to vector<8xf32>
    %165 = vector.shape_cast %164 : vector<8xf32> to vector<8x1xf32>
    %166 = vector.broadcast %165 : vector<8x1xf32> to vector<8x8xf32>
    %167 = arith.divf %163, %166 : vector<8x8xf32>
    %168 = vector.extract_strided_slice %133 {offsets = [0, 32], sizes = [8, 32], strides = [1, 1]} : vector<8x128xf32> to vector<8x32xf32>
    %cst_76 = arith.constant dense<0.000000e+00> : vector<8x32xf32>
    %169 = tpu.matmul %167, %168, %cst_76 {dimension_numbers = #tpu.dot_dimension_numbers<[1], [0], [0], [1], [0, 0, 1, 1], [], []>} : vector<8x8xf32>, vector<8x32xf32>, vector<8x32xf32> -> vector<8x32xf32>
    %170 = vector.extract_strided_slice %135 {offsets = [32, 0], sizes = [32, 128], strides = [1, 1]} : vector<128x128xf32> to vector<32x128xf32>
    %cst_77 = arith.constant dense<0.000000e+00> : vector<8x128xf32>
    %171 = tpu.matmul %169, %170, %cst_77 {dimension_numbers = #tpu.dot_dimension_numbers<[1], [0], [0], [1], [0, 0, 1, 1], [], []>} : vector<8x32xf32>, vector<32x128xf32>, vector<8x128xf32> -> vector<8x128xf32>
    %172 = arith.addf %153, %171 : vector<8x128xf32>
    %173 = vector.extract_strided_slice %128 {offsets = [0, 64], sizes = [8, 32], strides = [1, 1]} : vector<8x128xf32> to vector<8x32xf32>
    %174 = vector.extract_strided_slice %132 {offsets = [0, 64], sizes = [8, 32], strides = [1, 1]} : vector<8x128xf32> to vector<8x32xf32>
    %cst_78 = arith.constant dense<0.000000e+00> : vector<8x8xf32>
    %175 = tpu.matmul %173, %174, %cst_78 {dimension_numbers = #tpu.dot_dimension_numbers<[1], [1], [0], [0], [0, 0, 1, 0], [], []>} : vector<8x32xf32>, vector<8x32xf32>, vector<8x8xf32> -> vector<8x8xf32>
    %176 = vector.broadcast %9 : vector<1x8xf32> to vector<8x8xf32>
    %177 = arith.addf %175, %176 : vector<8x8xf32>
    %cst_79 = arith.constant dense<0xFF800000> : vector<8xf32>
    %178 = vector.multi_reduction <maximumf>, %177, %cst_79 [1] : vector<8x8xf32> to vector<8xf32>
    %179 = vector.shape_cast %178 : vector<8xf32> to vector<8x1xf32>
    %180 = vector.broadcast %179 : vector<8x1xf32> to vector<8x8xf32>
    %181 = arith.subf %177, %180 : vector<8x8xf32>
    %182 = math.exp %181 : vector<8x8xf32>
    %cst_80 = arith.constant dense<0.000000e+00> : vector<8xf32>
    %183 = vector.multi_reduction <add>, %182, %cst_80 [1] : vector<8x8xf32> to vector<8xf32>
    %184 = vector.shape_cast %183 : vector<8xf32> to vector<8x1xf32>
    %185 = vector.broadcast %184 : vector<8x1xf32> to vector<8x8xf32>
    %186 = arith.divf %182, %185 : vector<8x8xf32>
    %187 = vector.extract_strided_slice %133 {offsets = [0, 64], sizes = [8, 32], strides = [1, 1]} : vector<8x128xf32> to vector<8x32xf32>
    %cst_81 = arith.constant dense<0.000000e+00> : vector<8x32xf32>
    %188 = tpu.matmul %186, %187, %cst_81 {dimension_numbers = #tpu.dot_dimension_numbers<[1], [0], [0], [1], [0, 0, 1, 1], [], []>} : vector<8x8xf32>, vector<8x32xf32>, vector<8x32xf32> -> vector<8x32xf32>
    %189 = vector.extract_strided_slice %135 {offsets = [64, 0], sizes = [32, 128], strides = [1, 1]} : vector<128x128xf32> to vector<32x128xf32>
    %cst_82 = arith.constant dense<0.000000e+00> : vector<8x128xf32>
    %190 = tpu.matmul %188, %189, %cst_82 {dimension_numbers = #tpu.dot_dimension_numbers<[1], [0], [0], [1], [0, 0, 1, 1], [], []>} : vector<8x32xf32>, vector<32x128xf32>, vector<8x128xf32> -> vector<8x128xf32>
    %191 = arith.addf %172, %190 : vector<8x128xf32>
    %192 = vector.extract_strided_slice %128 {offsets = [0, 96], sizes = [8, 32], strides = [1, 1]} : vector<8x128xf32> to vector<8x32xf32>
    %193 = vector.extract_strided_slice %132 {offsets = [0, 96], sizes = [8, 32], strides = [1, 1]} : vector<8x128xf32> to vector<8x32xf32>
    %cst_83 = arith.constant dense<0.000000e+00> : vector<8x8xf32>
    %194 = tpu.matmul %192, %193, %cst_83 {dimension_numbers = #tpu.dot_dimension_numbers<[1], [1], [0], [0], [0, 0, 1, 0], [], []>} : vector<8x32xf32>, vector<8x32xf32>, vector<8x8xf32> -> vector<8x8xf32>
    %195 = vector.broadcast %9 : vector<1x8xf32> to vector<8x8xf32>
    %196 = arith.addf %194, %195 : vector<8x8xf32>
    %cst_84 = arith.constant dense<0xFF800000> : vector<8xf32>
    %197 = vector.multi_reduction <maximumf>, %196, %cst_84 [1] : vector<8x8xf32> to vector<8xf32>
    %198 = vector.shape_cast %197 : vector<8xf32> to vector<8x1xf32>
    %199 = vector.broadcast %198 : vector<8x1xf32> to vector<8x8xf32>
    %200 = arith.subf %196, %199 : vector<8x8xf32>
    %201 = math.exp %200 : vector<8x8xf32>
    %cst_85 = arith.constant dense<0.000000e+00> : vector<8xf32>
    %202 = vector.multi_reduction <add>, %201, %cst_85 [1] : vector<8x8xf32> to vector<8xf32>
    %203 = vector.shape_cast %202 : vector<8xf32> to vector<8x1xf32>
    %204 = vector.broadcast %203 : vector<8x1xf32> to vector<8x8xf32>
    %205 = arith.divf %201, %204 : vector<8x8xf32>
    %206 = vector.extract_strided_slice %133 {offsets = [0, 96], sizes = [8, 32], strides = [1, 1]} : vector<8x128xf32> to vector<8x32xf32>
    %cst_86 = arith.constant dense<0.000000e+00> : vector<8x32xf32>
    %207 = tpu.matmul %205, %206, %cst_86 {dimension_numbers = #tpu.dot_dimension_numbers<[1], [0], [0], [1], [0, 0, 1, 1], [], []>} : vector<8x8xf32>, vector<8x32xf32>, vector<8x32xf32> -> vector<8x32xf32>
    %208 = vector.extract_strided_slice %135 {offsets = [96, 0], sizes = [32, 128], strides = [1, 1]} : vector<128x128xf32> to vector<32x128xf32>
    %cst_87 = arith.constant dense<0.000000e+00> : vector<8x128xf32>
    %209 = tpu.matmul %207, %208, %cst_87 {dimension_numbers = #tpu.dot_dimension_numbers<[1], [0], [0], [1], [0, 0, 1, 1], [], []>} : vector<8x32xf32>, vector<32x128xf32>, vector<8x128xf32> -> vector<8x128xf32>
    %210 = arith.addf %191, %209 : vector<8x128xf32>
    %211 = arith.addf %111, %210 : vector<8x128xf32>
    %c0_88 = arith.constant 0 : index
    %c0_89 = arith.constant 0 : index
    %c0_90 = arith.constant 0 : index
    %212 = vector.load %arg13[%c0_88, %c0_89, %c0_90] : memref<2x1x128xf32, #tpu.memory_space<vmem>>, vector<1x1x128xf32>
    %213 = vector.shape_cast %212 : vector<1x1x128xf32> to vector<1x128xf32>
    %214 = arith.mulf %211, %211 : vector<8x128xf32>
    %cst_91 = arith.constant dense<0.000000e+00> : vector<8xf32>
    %215 = vector.multi_reduction <add>, %214, %cst_91 [1] : vector<8x128xf32> to vector<8xf32>
    %216 = vector.shape_cast %215 : vector<8xf32> to vector<8x1xf32>
    %cst_92 = arith.constant 1.280000e+02 : f32
    %217 = vector.broadcast %cst_92 : f32 to vector<8x1xf32>
    %218 = arith.divf %216, %217 : vector<8x1xf32>
    %cst_93 = arith.constant 9.99999997E-7 : f32
    %219 = vector.broadcast %cst_93 : f32 to vector<8x1xf32>
    %220 = arith.addf %218, %219 : vector<8x1xf32>
    %221 = math.rsqrt %220 : vector<8x1xf32>
    %222 = vector.broadcast %221 : vector<8x1xf32> to vector<8x128xf32>
    %223 = arith.mulf %211, %222 : vector<8x128xf32>
    %224 = vector.broadcast %213 : vector<1x128xf32> to vector<8x128xf32>
    %225 = arith.mulf %223, %224 : vector<8x128xf32>
    %c0_94 = arith.constant 0 : index
    %c0_95 = arith.constant 0 : index
    %c0_96 = arith.constant 0 : index
    %226 = vector.load %arg14[%c0_94, %c0_95, %c0_96] : memref<2x128x256xf32, #tpu.memory_space<vmem>>, vector<1x128x256xf32>
    %227 = vector.shape_cast %226 : vector<1x128x256xf32> to vector<128x256xf32>
    %cst_97 = arith.constant dense<0.000000e+00> : vector<8x256xf32>
    %228 = tpu.matmul %225, %227, %cst_97 {dimension_numbers = #tpu.dot_dimension_numbers<[1], [0], [0], [1], [0, 0, 1, 1], [], []>} : vector<8x128xf32>, vector<128x256xf32>, vector<8x256xf32> -> vector<8x256xf32>
    %cst_98 = arith.constant 0.000000e+00 : f32
    %229 = vector.broadcast %cst_98 : f32 to vector<8x256xf32>
    %230 = arith.maximumf %228, %229 : vector<8x256xf32>
    %c0_99 = arith.constant 0 : index
    %c0_100 = arith.constant 0 : index
    %c0_101 = arith.constant 0 : index
    %231 = vector.load %arg15[%c0_99, %c0_100, %c0_101] : memref<2x256x128xf32, #tpu.memory_space<vmem>>, vector<1x256x128xf32>
    %232 = vector.shape_cast %231 : vector<1x256x128xf32> to vector<256x128xf32>
    %cst_102 = arith.constant dense<0.000000e+00> : vector<8x128xf32>
    %233 = tpu.matmul %230, %232, %cst_102 {dimension_numbers = #tpu.dot_dimension_numbers<[1], [0], [0], [1], [0, 0, 1, 1], [], []>} : vector<8x256xf32>, vector<256x128xf32>, vector<8x128xf32> -> vector<8x128xf32>
    %234 = arith.addf %211, %233 : vector<8x128xf32>
    %c1_103 = arith.constant 1 : index
    %c0_104 = arith.constant 0 : index
    %c0_105 = arith.constant 0 : index
    %235 = vector.load %arg6[%c1_103, %c0_104, %c0_105] : memref<2x1x128xf32, #tpu.memory_space<vmem>>, vector<1x1x128xf32>
    %236 = vector.shape_cast %235 : vector<1x1x128xf32> to vector<1x128xf32>
    %237 = arith.mulf %234, %234 : vector<8x128xf32>
    %cst_106 = arith.constant dense<0.000000e+00> : vector<8xf32>
    %238 = vector.multi_reduction <add>, %237, %cst_106 [1] : vector<8x128xf32> to vector<8xf32>
    %239 = vector.shape_cast %238 : vector<8xf32> to vector<8x1xf32>
    %cst_107 = arith.constant 1.280000e+02 : f32
    %240 = vector.broadcast %cst_107 : f32 to vector<8x1xf32>
    %241 = arith.divf %239, %240 : vector<8x1xf32>
    %cst_108 = arith.constant 9.99999997E-7 : f32
    %242 = vector.broadcast %cst_108 : f32 to vector<8x1xf32>
    %243 = arith.addf %241, %242 : vector<8x1xf32>
    %244 = math.rsqrt %243 : vector<8x1xf32>
    %245 = vector.broadcast %244 : vector<8x1xf32> to vector<8x128xf32>
    %246 = arith.mulf %234, %245 : vector<8x128xf32>
    %247 = vector.broadcast %236 : vector<1x128xf32> to vector<8x128xf32>
    %248 = arith.mulf %246, %247 : vector<8x128xf32>
    %c1_109 = arith.constant 1 : index
    %c0_110 = arith.constant 0 : index
    %c0_111 = arith.constant 0 : index
    %249 = vector.load %arg7[%c1_109, %c0_110, %c0_111] : memref<2x128x384xf32, #tpu.memory_space<vmem>>, vector<1x128x384xf32>
    %250 = vector.shape_cast %249 : vector<1x128x384xf32> to vector<128x384xf32>
    %cst_112 = arith.constant dense<0.000000e+00> : vector<8x384xf32>
    %251 = tpu.matmul %248, %250, %cst_112 {dimension_numbers = #tpu.dot_dimension_numbers<[1], [0], [0], [1], [0, 0, 1, 1], [], []>} : vector<8x128xf32>, vector<128x384xf32>, vector<8x384xf32> -> vector<8x384xf32>
    %252 = vector.extract_strided_slice %251 {offsets = [0, 0], sizes = [8, 128], strides = [1, 1]} : vector<8x384xf32> to vector<8x128xf32>
    %253 = vector.extract_strided_slice %251 {offsets = [0, 128], sizes = [8, 128], strides = [1, 1]} : vector<8x384xf32> to vector<8x128xf32>
    %254 = vector.extract_strided_slice %251 {offsets = [0, 256], sizes = [8, 128], strides = [1, 1]} : vector<8x384xf32> to vector<8x128xf32>
    %c1_113 = arith.constant 1 : index
    %c0_114 = arith.constant 0 : index
    %c0_115 = arith.constant 0 : index
    %255 = vector.load %arg8[%c1_113, %c0_114, %c0_115] : memref<2x128x128xf32, #tpu.memory_space<vmem>>, vector<1x128x128xf32>
    %256 = vector.shape_cast %255 : vector<1x128x128xf32> to vector<128x128xf32>
    %257 = vector.extract_strided_slice %252 {offsets = [0, 0], sizes = [8, 32], strides = [1, 1]} : vector<8x128xf32> to vector<8x32xf32>
    %258 = vector.extract_strided_slice %253 {offsets = [0, 0], sizes = [8, 32], strides = [1, 1]} : vector<8x128xf32> to vector<8x32xf32>
    %cst_116 = arith.constant dense<0.000000e+00> : vector<8x8xf32>
    %259 = tpu.matmul %257, %258, %cst_116 {dimension_numbers = #tpu.dot_dimension_numbers<[1], [1], [0], [0], [0, 0, 1, 0], [], []>} : vector<8x32xf32>, vector<8x32xf32>, vector<8x8xf32> -> vector<8x8xf32>
    %c0_117 = arith.constant 0 : index
    %c0_118 = arith.constant 0 : index
    %c0_119 = arith.constant 0 : index
    %260 = vector.load %arg4[%c0_117, %c0_118, %c0_119] : memref<4x8x8xf32, #tpu.memory_space<vmem>>, vector<1x8x8xf32>
    %261 = vector.shape_cast %260 : vector<1x8x8xf32> to vector<8x8xf32>
    %262 = arith.addf %259, %261 : vector<8x8xf32>
    %cst_120 = arith.constant dense<0xFF800000> : vector<8xf32>
    %263 = vector.multi_reduction <maximumf>, %262, %cst_120 [1] : vector<8x8xf32> to vector<8xf32>
    %264 = vector.shape_cast %263 : vector<8xf32> to vector<8x1xf32>
    %265 = vector.broadcast %264 : vector<8x1xf32> to vector<8x8xf32>
    %266 = arith.subf %262, %265 : vector<8x8xf32>
    %267 = math.exp %266 : vector<8x8xf32>
    %cst_121 = arith.constant dense<0.000000e+00> : vector<8xf32>
    %268 = vector.multi_reduction <add>, %267, %cst_121 [1] : vector<8x8xf32> to vector<8xf32>
    %269 = vector.shape_cast %268 : vector<8xf32> to vector<8x1xf32>
    %270 = vector.broadcast %269 : vector<8x1xf32> to vector<8x8xf32>
    %271 = arith.divf %267, %270 : vector<8x8xf32>
    %272 = vector.extract_strided_slice %254 {offsets = [0, 0], sizes = [8, 32], strides = [1, 1]} : vector<8x128xf32> to vector<8x32xf32>
    %cst_122 = arith.constant dense<0.000000e+00> : vector<8x32xf32>
    %273 = tpu.matmul %271, %272, %cst_122 {dimension_numbers = #tpu.dot_dimension_numbers<[1], [0], [0], [1], [0, 0, 1, 1], [], []>} : vector<8x8xf32>, vector<8x32xf32>, vector<8x32xf32> -> vector<8x32xf32>
    %274 = vector.extract_strided_slice %256 {offsets = [0, 0], sizes = [32, 128], strides = [1, 1]} : vector<128x128xf32> to vector<32x128xf32>
    %cst_123 = arith.constant dense<0.000000e+00> : vector<8x128xf32>
    %275 = tpu.matmul %273, %274, %cst_123 {dimension_numbers = #tpu.dot_dimension_numbers<[1], [0], [0], [1], [0, 0, 1, 1], [], []>} : vector<8x32xf32>, vector<32x128xf32>, vector<8x128xf32> -> vector<8x128xf32>
    %276 = vector.extract_strided_slice %252 {offsets = [0, 32], sizes = [8, 32], strides = [1, 1]} : vector<8x128xf32> to vector<8x32xf32>
    %277 = vector.extract_strided_slice %253 {offsets = [0, 32], sizes = [8, 32], strides = [1, 1]} : vector<8x128xf32> to vector<8x32xf32>
    %cst_124 = arith.constant dense<0.000000e+00> : vector<8x8xf32>
    %278 = tpu.matmul %276, %277, %cst_124 {dimension_numbers = #tpu.dot_dimension_numbers<[1], [1], [0], [0], [0, 0, 1, 0], [], []>} : vector<8x32xf32>, vector<8x32xf32>, vector<8x8xf32> -> vector<8x8xf32>
    %c1_125 = arith.constant 1 : index
    %c0_126 = arith.constant 0 : index
    %c0_127 = arith.constant 0 : index
    %279 = vector.load %arg4[%c1_125, %c0_126, %c0_127] : memref<4x8x8xf32, #tpu.memory_space<vmem>>, vector<1x8x8xf32>
    %280 = vector.shape_cast %279 : vector<1x8x8xf32> to vector<8x8xf32>
    %281 = arith.addf %278, %280 : vector<8x8xf32>
    %cst_128 = arith.constant dense<0xFF800000> : vector<8xf32>
    %282 = vector.multi_reduction <maximumf>, %281, %cst_128 [1] : vector<8x8xf32> to vector<8xf32>
    %283 = vector.shape_cast %282 : vector<8xf32> to vector<8x1xf32>
    %284 = vector.broadcast %283 : vector<8x1xf32> to vector<8x8xf32>
    %285 = arith.subf %281, %284 : vector<8x8xf32>
    %286 = math.exp %285 : vector<8x8xf32>
    %cst_129 = arith.constant dense<0.000000e+00> : vector<8xf32>
    %287 = vector.multi_reduction <add>, %286, %cst_129 [1] : vector<8x8xf32> to vector<8xf32>
    %288 = vector.shape_cast %287 : vector<8xf32> to vector<8x1xf32>
    %289 = vector.broadcast %288 : vector<8x1xf32> to vector<8x8xf32>
    %290 = arith.divf %286, %289 : vector<8x8xf32>
    %291 = vector.extract_strided_slice %254 {offsets = [0, 32], sizes = [8, 32], strides = [1, 1]} : vector<8x128xf32> to vector<8x32xf32>
    %cst_130 = arith.constant dense<0.000000e+00> : vector<8x32xf32>
    %292 = tpu.matmul %290, %291, %cst_130 {dimension_numbers = #tpu.dot_dimension_numbers<[1], [0], [0], [1], [0, 0, 1, 1], [], []>} : vector<8x8xf32>, vector<8x32xf32>, vector<8x32xf32> -> vector<8x32xf32>
    %293 = vector.extract_strided_slice %256 {offsets = [32, 0], sizes = [32, 128], strides = [1, 1]} : vector<128x128xf32> to vector<32x128xf32>
    %cst_131 = arith.constant dense<0.000000e+00> : vector<8x128xf32>
    %294 = tpu.matmul %292, %293, %cst_131 {dimension_numbers = #tpu.dot_dimension_numbers<[1], [0], [0], [1], [0, 0, 1, 1], [], []>} : vector<8x32xf32>, vector<32x128xf32>, vector<8x128xf32> -> vector<8x128xf32>
    %295 = arith.addf %275, %294 : vector<8x128xf32>
    %296 = vector.extract_strided_slice %252 {offsets = [0, 64], sizes = [8, 32], strides = [1, 1]} : vector<8x128xf32> to vector<8x32xf32>
    %297 = vector.extract_strided_slice %253 {offsets = [0, 64], sizes = [8, 32], strides = [1, 1]} : vector<8x128xf32> to vector<8x32xf32>
    %cst_132 = arith.constant dense<0.000000e+00> : vector<8x8xf32>
    %298 = tpu.matmul %296, %297, %cst_132 {dimension_numbers = #tpu.dot_dimension_numbers<[1], [1], [0], [0], [0, 0, 1, 0], [], []>} : vector<8x32xf32>, vector<8x32xf32>, vector<8x8xf32> -> vector<8x8xf32>
    %c2_133 = arith.constant 2 : index
    %c0_134 = arith.constant 0 : index
    %c0_135 = arith.constant 0 : index
    %299 = vector.load %arg4[%c2_133, %c0_134, %c0_135] : memref<4x8x8xf32, #tpu.memory_space<vmem>>, vector<1x8x8xf32>
    %300 = vector.shape_cast %299 : vector<1x8x8xf32> to vector<8x8xf32>
    %301 = arith.addf %298, %300 : vector<8x8xf32>
    %cst_136 = arith.constant dense<0xFF800000> : vector<8xf32>
    %302 = vector.multi_reduction <maximumf>, %301, %cst_136 [1] : vector<8x8xf32> to vector<8xf32>
    %303 = vector.shape_cast %302 : vector<8xf32> to vector<8x1xf32>
    %304 = vector.broadcast %303 : vector<8x1xf32> to vector<8x8xf32>
    %305 = arith.subf %301, %304 : vector<8x8xf32>
    %306 = math.exp %305 : vector<8x8xf32>
    %cst_137 = arith.constant dense<0.000000e+00> : vector<8xf32>
    %307 = vector.multi_reduction <add>, %306, %cst_137 [1] : vector<8x8xf32> to vector<8xf32>
    %308 = vector.shape_cast %307 : vector<8xf32> to vector<8x1xf32>
    %309 = vector.broadcast %308 : vector<8x1xf32> to vector<8x8xf32>
    %310 = arith.divf %306, %309 : vector<8x8xf32>
    %311 = vector.extract_strided_slice %254 {offsets = [0, 64], sizes = [8, 32], strides = [1, 1]} : vector<8x128xf32> to vector<8x32xf32>
    %cst_138 = arith.constant dense<0.000000e+00> : vector<8x32xf32>
    %312 = tpu.matmul %310, %311, %cst_138 {dimension_numbers = #tpu.dot_dimension_numbers<[1], [0], [0], [1], [0, 0, 1, 1], [], []>} : vector<8x8xf32>, vector<8x32xf32>, vector<8x32xf32> -> vector<8x32xf32>
    %313 = vector.extract_strided_slice %256 {offsets = [64, 0], sizes = [32, 128], strides = [1, 1]} : vector<128x128xf32> to vector<32x128xf32>
    %cst_139 = arith.constant dense<0.000000e+00> : vector<8x128xf32>
    %314 = tpu.matmul %312, %313, %cst_139 {dimension_numbers = #tpu.dot_dimension_numbers<[1], [0], [0], [1], [0, 0, 1, 1], [], []>} : vector<8x32xf32>, vector<32x128xf32>, vector<8x128xf32> -> vector<8x128xf32>
    %315 = arith.addf %295, %314 : vector<8x128xf32>
    %316 = vector.extract_strided_slice %252 {offsets = [0, 96], sizes = [8, 32], strides = [1, 1]} : vector<8x128xf32> to vector<8x32xf32>
    %317 = vector.extract_strided_slice %253 {offsets = [0, 96], sizes = [8, 32], strides = [1, 1]} : vector<8x128xf32> to vector<8x32xf32>
    %cst_140 = arith.constant dense<0.000000e+00> : vector<8x8xf32>
    %318 = tpu.matmul %316, %317, %cst_140 {dimension_numbers = #tpu.dot_dimension_numbers<[1], [1], [0], [0], [0, 0, 1, 0], [], []>} : vector<8x32xf32>, vector<8x32xf32>, vector<8x8xf32> -> vector<8x8xf32>
    %c3_141 = arith.constant 3 : index
    %c0_142 = arith.constant 0 : index
    %c0_143 = arith.constant 0 : index
    %319 = vector.load %arg4[%c3_141, %c0_142, %c0_143] : memref<4x8x8xf32, #tpu.memory_space<vmem>>, vector<1x8x8xf32>
    %320 = vector.shape_cast %319 : vector<1x8x8xf32> to vector<8x8xf32>
    %321 = arith.addf %318, %320 : vector<8x8xf32>
    %cst_144 = arith.constant dense<0xFF800000> : vector<8xf32>
    %322 = vector.multi_reduction <maximumf>, %321, %cst_144 [1] : vector<8x8xf32> to vector<8xf32>
    %323 = vector.shape_cast %322 : vector<8xf32> to vector<8x1xf32>
    %324 = vector.broadcast %323 : vector<8x1xf32> to vector<8x8xf32>
    %325 = arith.subf %321, %324 : vector<8x8xf32>
    %326 = math.exp %325 : vector<8x8xf32>
    %cst_145 = arith.constant dense<0.000000e+00> : vector<8xf32>
    %327 = vector.multi_reduction <add>, %326, %cst_145 [1] : vector<8x8xf32> to vector<8xf32>
    %328 = vector.shape_cast %327 : vector<8xf32> to vector<8x1xf32>
    %329 = vector.broadcast %328 : vector<8x1xf32> to vector<8x8xf32>
    %330 = arith.divf %326, %329 : vector<8x8xf32>
    %331 = vector.extract_strided_slice %254 {offsets = [0, 96], sizes = [8, 32], strides = [1, 1]} : vector<8x128xf32> to vector<8x32xf32>
    %cst_146 = arith.constant dense<0.000000e+00> : vector<8x32xf32>
    %332 = tpu.matmul %330, %331, %cst_146 {dimension_numbers = #tpu.dot_dimension_numbers<[1], [0], [0], [1], [0, 0, 1, 1], [], []>} : vector<8x8xf32>, vector<8x32xf32>, vector<8x32xf32> -> vector<8x32xf32>
    %333 = vector.extract_strided_slice %256 {offsets = [96, 0], sizes = [32, 128], strides = [1, 1]} : vector<128x128xf32> to vector<32x128xf32>
    %cst_147 = arith.constant dense<0.000000e+00> : vector<8x128xf32>
    %334 = tpu.matmul %332, %333, %cst_147 {dimension_numbers = #tpu.dot_dimension_numbers<[1], [0], [0], [1], [0, 0, 1, 1], [], []>} : vector<8x32xf32>, vector<32x128xf32>, vector<8x128xf32> -> vector<8x128xf32>
    %335 = arith.addf %315, %334 : vector<8x128xf32>
    %336 = arith.addf %234, %335 : vector<8x128xf32>
    %c1_148 = arith.constant 1 : index
    %c0_149 = arith.constant 0 : index
    %c0_150 = arith.constant 0 : index
    %337 = vector.load %arg9[%c1_148, %c0_149, %c0_150] : memref<2x1x128xf32, #tpu.memory_space<vmem>>, vector<1x1x128xf32>
    %338 = vector.shape_cast %337 : vector<1x1x128xf32> to vector<1x128xf32>
    %339 = arith.mulf %336, %336 : vector<8x128xf32>
    %cst_151 = arith.constant dense<0.000000e+00> : vector<8xf32>
    %340 = vector.multi_reduction <add>, %339, %cst_151 [1] : vector<8x128xf32> to vector<8xf32>
    %341 = vector.shape_cast %340 : vector<8xf32> to vector<8x1xf32>
    %cst_152 = arith.constant 1.280000e+02 : f32
    %342 = vector.broadcast %cst_152 : f32 to vector<8x1xf32>
    %343 = arith.divf %341, %342 : vector<8x1xf32>
    %cst_153 = arith.constant 9.99999997E-7 : f32
    %344 = vector.broadcast %cst_153 : f32 to vector<8x1xf32>
    %345 = arith.addf %343, %344 : vector<8x1xf32>
    %346 = math.rsqrt %345 : vector<8x1xf32>
    %347 = vector.broadcast %346 : vector<8x1xf32> to vector<8x128xf32>
    %348 = arith.mulf %336, %347 : vector<8x128xf32>
    %349 = vector.broadcast %338 : vector<1x128xf32> to vector<8x128xf32>
    %350 = arith.mulf %348, %349 : vector<8x128xf32>
    %c1_154 = arith.constant 1 : index
    %c0_155 = arith.constant 0 : index
    %c0_156 = arith.constant 0 : index
    %351 = vector.load %arg10[%c1_154, %c0_155, %c0_156] : memref<2x128x128xf32, #tpu.memory_space<vmem>>, vector<1x128x128xf32>
    %352 = vector.shape_cast %351 : vector<1x128x128xf32> to vector<128x128xf32>
    %cst_157 = arith.constant dense<0.000000e+00> : vector<8x128xf32>
    %353 = tpu.matmul %350, %352, %cst_157 {dimension_numbers = #tpu.dot_dimension_numbers<[1], [0], [0], [1], [0, 0, 1, 1], [], []>} : vector<8x128xf32>, vector<128x128xf32>, vector<8x128xf32> -> vector<8x128xf32>
    %c1_158 = arith.constant 1 : index
    %c0_159 = arith.constant 0 : index
    %c0_160 = arith.constant 0 : index
    %354 = vector.load %arg11[%c1_158, %c0_159, %c0_160] : memref<2x128x256xf32, #tpu.memory_space<vmem>>, vector<1x128x256xf32>
    %355 = vector.shape_cast %354 : vector<1x128x256xf32> to vector<128x256xf32>
    %cst_161 = arith.constant dense<0.000000e+00> : vector<8x256xf32>
    %356 = tpu.matmul %3, %355, %cst_161 {dimension_numbers = #tpu.dot_dimension_numbers<[1], [0], [0], [1], [0, 0, 1, 1], [], []>} : vector<8x128xf32>, vector<128x256xf32>, vector<8x256xf32> -> vector<8x256xf32>
    %357 = vector.extract_strided_slice %356 {offsets = [0, 0], sizes = [8, 128], strides = [1, 1]} : vector<8x256xf32> to vector<8x128xf32>
    %358 = vector.extract_strided_slice %356 {offsets = [0, 128], sizes = [8, 128], strides = [1, 1]} : vector<8x256xf32> to vector<8x128xf32>
    %c1_162 = arith.constant 1 : index
    %c0_163 = arith.constant 0 : index
    %c0_164 = arith.constant 0 : index
    %359 = vector.load %arg12[%c1_162, %c0_163, %c0_164] : memref<2x128x128xf32, #tpu.memory_space<vmem>>, vector<1x128x128xf32>
    %360 = vector.shape_cast %359 : vector<1x128x128xf32> to vector<128x128xf32>
    %361 = vector.extract_strided_slice %353 {offsets = [0, 0], sizes = [8, 32], strides = [1, 1]} : vector<8x128xf32> to vector<8x32xf32>
    %362 = vector.extract_strided_slice %357 {offsets = [0, 0], sizes = [8, 32], strides = [1, 1]} : vector<8x128xf32> to vector<8x32xf32>
    %cst_165 = arith.constant dense<0.000000e+00> : vector<8x8xf32>
    %363 = tpu.matmul %361, %362, %cst_165 {dimension_numbers = #tpu.dot_dimension_numbers<[1], [1], [0], [0], [0, 0, 1, 0], [], []>} : vector<8x32xf32>, vector<8x32xf32>, vector<8x8xf32> -> vector<8x8xf32>
    %364 = vector.broadcast %9 : vector<1x8xf32> to vector<8x8xf32>
    %365 = arith.addf %363, %364 : vector<8x8xf32>
    %cst_166 = arith.constant dense<0xFF800000> : vector<8xf32>
    %366 = vector.multi_reduction <maximumf>, %365, %cst_166 [1] : vector<8x8xf32> to vector<8xf32>
    %367 = vector.shape_cast %366 : vector<8xf32> to vector<8x1xf32>
    %368 = vector.broadcast %367 : vector<8x1xf32> to vector<8x8xf32>
    %369 = arith.subf %365, %368 : vector<8x8xf32>
    %370 = math.exp %369 : vector<8x8xf32>
    %cst_167 = arith.constant dense<0.000000e+00> : vector<8xf32>
    %371 = vector.multi_reduction <add>, %370, %cst_167 [1] : vector<8x8xf32> to vector<8xf32>
    %372 = vector.shape_cast %371 : vector<8xf32> to vector<8x1xf32>
    %373 = vector.broadcast %372 : vector<8x1xf32> to vector<8x8xf32>
    %374 = arith.divf %370, %373 : vector<8x8xf32>
    %375 = vector.extract_strided_slice %358 {offsets = [0, 0], sizes = [8, 32], strides = [1, 1]} : vector<8x128xf32> to vector<8x32xf32>
    %cst_168 = arith.constant dense<0.000000e+00> : vector<8x32xf32>
    %376 = tpu.matmul %374, %375, %cst_168 {dimension_numbers = #tpu.dot_dimension_numbers<[1], [0], [0], [1], [0, 0, 1, 1], [], []>} : vector<8x8xf32>, vector<8x32xf32>, vector<8x32xf32> -> vector<8x32xf32>
    %377 = vector.extract_strided_slice %360 {offsets = [0, 0], sizes = [32, 128], strides = [1, 1]} : vector<128x128xf32> to vector<32x128xf32>
    %cst_169 = arith.constant dense<0.000000e+00> : vector<8x128xf32>
    %378 = tpu.matmul %376, %377, %cst_169 {dimension_numbers = #tpu.dot_dimension_numbers<[1], [0], [0], [1], [0, 0, 1, 1], [], []>} : vector<8x32xf32>, vector<32x128xf32>, vector<8x128xf32> -> vector<8x128xf32>
    %379 = vector.extract_strided_slice %353 {offsets = [0, 32], sizes = [8, 32], strides = [1, 1]} : vector<8x128xf32> to vector<8x32xf32>
    %380 = vector.extract_strided_slice %357 {offsets = [0, 32], sizes = [8, 32], strides = [1, 1]} : vector<8x128xf32> to vector<8x32xf32>
    %cst_170 = arith.constant dense<0.000000e+00> : vector<8x8xf32>
    %381 = tpu.matmul %379, %380, %cst_170 {dimension_numbers = #tpu.dot_dimension_numbers<[1], [1], [0], [0], [0, 0, 1, 0], [], []>} : vector<8x32xf32>, vector<8x32xf32>, vector<8x8xf32> -> vector<8x8xf32>
    %382 = vector.broadcast %9 : vector<1x8xf32> to vector<8x8xf32>
    %383 = arith.addf %381, %382 : vector<8x8xf32>
    %cst_171 = arith.constant dense<0xFF800000> : vector<8xf32>
    %384 = vector.multi_reduction <maximumf>, %383, %cst_171 [1] : vector<8x8xf32> to vector<8xf32>
    %385 = vector.shape_cast %384 : vector<8xf32> to vector<8x1xf32>
    %386 = vector.broadcast %385 : vector<8x1xf32> to vector<8x8xf32>
    %387 = arith.subf %383, %386 : vector<8x8xf32>
    %388 = math.exp %387 : vector<8x8xf32>
    %cst_172 = arith.constant dense<0.000000e+00> : vector<8xf32>
    %389 = vector.multi_reduction <add>, %388, %cst_172 [1] : vector<8x8xf32> to vector<8xf32>
    %390 = vector.shape_cast %389 : vector<8xf32> to vector<8x1xf32>
    %391 = vector.broadcast %390 : vector<8x1xf32> to vector<8x8xf32>
    %392 = arith.divf %388, %391 : vector<8x8xf32>
    %393 = vector.extract_strided_slice %358 {offsets = [0, 32], sizes = [8, 32], strides = [1, 1]} : vector<8x128xf32> to vector<8x32xf32>
    %cst_173 = arith.constant dense<0.000000e+00> : vector<8x32xf32>
    %394 = tpu.matmul %392, %393, %cst_173 {dimension_numbers = #tpu.dot_dimension_numbers<[1], [0], [0], [1], [0, 0, 1, 1], [], []>} : vector<8x8xf32>, vector<8x32xf32>, vector<8x32xf32> -> vector<8x32xf32>
    %395 = vector.extract_strided_slice %360 {offsets = [32, 0], sizes = [32, 128], strides = [1, 1]} : vector<128x128xf32> to vector<32x128xf32>
    %cst_174 = arith.constant dense<0.000000e+00> : vector<8x128xf32>
    %396 = tpu.matmul %394, %395, %cst_174 {dimension_numbers = #tpu.dot_dimension_numbers<[1], [0], [0], [1], [0, 0, 1, 1], [], []>} : vector<8x32xf32>, vector<32x128xf32>, vector<8x128xf32> -> vector<8x128xf32>
    %397 = arith.addf %378, %396 : vector<8x128xf32>
    %398 = vector.extract_strided_slice %353 {offsets = [0, 64], sizes = [8, 32], strides = [1, 1]} : vector<8x128xf32> to vector<8x32xf32>
    %399 = vector.extract_strided_slice %357 {offsets = [0, 64], sizes = [8, 32], strides = [1, 1]} : vector<8x128xf32> to vector<8x32xf32>
    %cst_175 = arith.constant dense<0.000000e+00> : vector<8x8xf32>
    %400 = tpu.matmul %398, %399, %cst_175 {dimension_numbers = #tpu.dot_dimension_numbers<[1], [1], [0], [0], [0, 0, 1, 0], [], []>} : vector<8x32xf32>, vector<8x32xf32>, vector<8x8xf32> -> vector<8x8xf32>
    %401 = vector.broadcast %9 : vector<1x8xf32> to vector<8x8xf32>
    %402 = arith.addf %400, %401 : vector<8x8xf32>
    %cst_176 = arith.constant dense<0xFF800000> : vector<8xf32>
    %403 = vector.multi_reduction <maximumf>, %402, %cst_176 [1] : vector<8x8xf32> to vector<8xf32>
    %404 = vector.shape_cast %403 : vector<8xf32> to vector<8x1xf32>
    %405 = vector.broadcast %404 : vector<8x1xf32> to vector<8x8xf32>
    %406 = arith.subf %402, %405 : vector<8x8xf32>
    %407 = math.exp %406 : vector<8x8xf32>
    %cst_177 = arith.constant dense<0.000000e+00> : vector<8xf32>
    %408 = vector.multi_reduction <add>, %407, %cst_177 [1] : vector<8x8xf32> to vector<8xf32>
    %409 = vector.shape_cast %408 : vector<8xf32> to vector<8x1xf32>
    %410 = vector.broadcast %409 : vector<8x1xf32> to vector<8x8xf32>
    %411 = arith.divf %407, %410 : vector<8x8xf32>
    %412 = vector.extract_strided_slice %358 {offsets = [0, 64], sizes = [8, 32], strides = [1, 1]} : vector<8x128xf32> to vector<8x32xf32>
    %cst_178 = arith.constant dense<0.000000e+00> : vector<8x32xf32>
    %413 = tpu.matmul %411, %412, %cst_178 {dimension_numbers = #tpu.dot_dimension_numbers<[1], [0], [0], [1], [0, 0, 1, 1], [], []>} : vector<8x8xf32>, vector<8x32xf32>, vector<8x32xf32> -> vector<8x32xf32>
    %414 = vector.extract_strided_slice %360 {offsets = [64, 0], sizes = [32, 128], strides = [1, 1]} : vector<128x128xf32> to vector<32x128xf32>
    %cst_179 = arith.constant dense<0.000000e+00> : vector<8x128xf32>
    %415 = tpu.matmul %413, %414, %cst_179 {dimension_numbers = #tpu.dot_dimension_numbers<[1], [0], [0], [1], [0, 0, 1, 1], [], []>} : vector<8x32xf32>, vector<32x128xf32>, vector<8x128xf32> -> vector<8x128xf32>
    %416 = arith.addf %397, %415 : vector<8x128xf32>
    %417 = vector.extract_strided_slice %353 {offsets = [0, 96], sizes = [8, 32], strides = [1, 1]} : vector<8x128xf32> to vector<8x32xf32>
    %418 = vector.extract_strided_slice %357 {offsets = [0, 96], sizes = [8, 32], strides = [1, 1]} : vector<8x128xf32> to vector<8x32xf32>
    %cst_180 = arith.constant dense<0.000000e+00> : vector<8x8xf32>
    %419 = tpu.matmul %417, %418, %cst_180 {dimension_numbers = #tpu.dot_dimension_numbers<[1], [1], [0], [0], [0, 0, 1, 0], [], []>} : vector<8x32xf32>, vector<8x32xf32>, vector<8x8xf32> -> vector<8x8xf32>
    %420 = vector.broadcast %9 : vector<1x8xf32> to vector<8x8xf32>
    %421 = arith.addf %419, %420 : vector<8x8xf32>
    %cst_181 = arith.constant dense<0xFF800000> : vector<8xf32>
    %422 = vector.multi_reduction <maximumf>, %421, %cst_181 [1] : vector<8x8xf32> to vector<8xf32>
    %423 = vector.shape_cast %422 : vector<8xf32> to vector<8x1xf32>
    %424 = vector.broadcast %423 : vector<8x1xf32> to vector<8x8xf32>
    %425 = arith.subf %421, %424 : vector<8x8xf32>
    %426 = math.exp %425 : vector<8x8xf32>
    %cst_182 = arith.constant dense<0.000000e+00> : vector<8xf32>
    %427 = vector.multi_reduction <add>, %426, %cst_182 [1] : vector<8x8xf32> to vector<8xf32>
    %428 = vector.shape_cast %427 : vector<8xf32> to vector<8x1xf32>
    %429 = vector.broadcast %428 : vector<8x1xf32> to vector<8x8xf32>
    %430 = arith.divf %426, %429 : vector<8x8xf32>
    %431 = vector.extract_strided_slice %358 {offsets = [0, 96], sizes = [8, 32], strides = [1, 1]} : vector<8x128xf32> to vector<8x32xf32>
    %cst_183 = arith.constant dense<0.000000e+00> : vector<8x32xf32>
    %432 = tpu.matmul %430, %431, %cst_183 {dimension_numbers = #tpu.dot_dimension_numbers<[1], [0], [0], [1], [0, 0, 1, 1], [], []>} : vector<8x8xf32>, vector<8x32xf32>, vector<8x32xf32> -> vector<8x32xf32>
    %433 = vector.extract_strided_slice %360 {offsets = [96, 0], sizes = [32, 128], strides = [1, 1]} : vector<128x128xf32> to vector<32x128xf32>
    %cst_184 = arith.constant dense<0.000000e+00> : vector<8x128xf32>
    %434 = tpu.matmul %432, %433, %cst_184 {dimension_numbers = #tpu.dot_dimension_numbers<[1], [0], [0], [1], [0, 0, 1, 1], [], []>} : vector<8x32xf32>, vector<32x128xf32>, vector<8x128xf32> -> vector<8x128xf32>
    %435 = arith.addf %416, %434 : vector<8x128xf32>
    %436 = arith.addf %336, %435 : vector<8x128xf32>
    %c1_185 = arith.constant 1 : index
    %c0_186 = arith.constant 0 : index
    %c0_187 = arith.constant 0 : index
    %437 = vector.load %arg13[%c1_185, %c0_186, %c0_187] : memref<2x1x128xf32, #tpu.memory_space<vmem>>, vector<1x1x128xf32>
    %438 = vector.shape_cast %437 : vector<1x1x128xf32> to vector<1x128xf32>
    %439 = arith.mulf %436, %436 : vector<8x128xf32>
    %cst_188 = arith.constant dense<0.000000e+00> : vector<8xf32>
    %440 = vector.multi_reduction <add>, %439, %cst_188 [1] : vector<8x128xf32> to vector<8xf32>
    %441 = vector.shape_cast %440 : vector<8xf32> to vector<8x1xf32>
    %cst_189 = arith.constant 1.280000e+02 : f32
    %442 = vector.broadcast %cst_189 : f32 to vector<8x1xf32>
    %443 = arith.divf %441, %442 : vector<8x1xf32>
    %cst_190 = arith.constant 9.99999997E-7 : f32
    %444 = vector.broadcast %cst_190 : f32 to vector<8x1xf32>
    %445 = arith.addf %443, %444 : vector<8x1xf32>
    %446 = math.rsqrt %445 : vector<8x1xf32>
    %447 = vector.broadcast %446 : vector<8x1xf32> to vector<8x128xf32>
    %448 = arith.mulf %436, %447 : vector<8x128xf32>
    %449 = vector.broadcast %438 : vector<1x128xf32> to vector<8x128xf32>
    %450 = arith.mulf %448, %449 : vector<8x128xf32>
    %c1_191 = arith.constant 1 : index
    %c0_192 = arith.constant 0 : index
    %c0_193 = arith.constant 0 : index
    %451 = vector.load %arg14[%c1_191, %c0_192, %c0_193] : memref<2x128x256xf32, #tpu.memory_space<vmem>>, vector<1x128x256xf32>
    %452 = vector.shape_cast %451 : vector<1x128x256xf32> to vector<128x256xf32>
    %cst_194 = arith.constant dense<0.000000e+00> : vector<8x256xf32>
    %453 = tpu.matmul %450, %452, %cst_194 {dimension_numbers = #tpu.dot_dimension_numbers<[1], [0], [0], [1], [0, 0, 1, 1], [], []>} : vector<8x128xf32>, vector<128x256xf32>, vector<8x256xf32> -> vector<8x256xf32>
    %cst_195 = arith.constant 0.000000e+00 : f32
    %454 = vector.broadcast %cst_195 : f32 to vector<8x256xf32>
    %455 = arith.maximumf %453, %454 : vector<8x256xf32>
    %c1_196 = arith.constant 1 : index
    %c0_197 = arith.constant 0 : index
    %c0_198 = arith.constant 0 : index
    %456 = vector.load %arg15[%c1_196, %c0_197, %c0_198] : memref<2x256x128xf32, #tpu.memory_space<vmem>>, vector<1x256x128xf32>
    %457 = vector.shape_cast %456 : vector<1x256x128xf32> to vector<256x128xf32>
    %cst_199 = arith.constant dense<0.000000e+00> : vector<8x128xf32>
    %458 = tpu.matmul %455, %457, %cst_199 {dimension_numbers = #tpu.dot_dimension_numbers<[1], [0], [0], [1], [0, 0, 1, 1], [], []>} : vector<8x256xf32>, vector<256x128xf32>, vector<8x128xf32> -> vector<8x128xf32>
    %459 = arith.addf %436, %458 : vector<8x128xf32>
    %c0_200 = arith.constant 0 : index
    %c0_201 = arith.constant 0 : index
    %460 = vector.load %arg16[%c0_200, %c0_201] : memref<1x128xf32, #tpu.memory_space<vmem>>, vector<1x128xf32>
    %461 = arith.mulf %459, %459 : vector<8x128xf32>
    %cst_202 = arith.constant dense<0.000000e+00> : vector<8xf32>
    %462 = vector.multi_reduction <add>, %461, %cst_202 [1] : vector<8x128xf32> to vector<8xf32>
    %463 = vector.shape_cast %462 : vector<8xf32> to vector<8x1xf32>
    %cst_203 = arith.constant 1.280000e+02 : f32
    %464 = vector.broadcast %cst_203 : f32 to vector<8x1xf32>
    %465 = arith.divf %463, %464 : vector<8x1xf32>
    %cst_204 = arith.constant 9.99999997E-7 : f32
    %466 = vector.broadcast %cst_204 : f32 to vector<8x1xf32>
    %467 = arith.addf %465, %466 : vector<8x1xf32>
    %468 = math.rsqrt %467 : vector<8x1xf32>
    %469 = vector.broadcast %468 : vector<8x1xf32> to vector<8x128xf32>
    %470 = arith.mulf %459, %469 : vector<8x128xf32>
    %471 = vector.broadcast %460 : vector<1x128xf32> to vector<8x128xf32>
    %472 = arith.mulf %470, %471 : vector<8x128xf32>
    %cst_205 = arith.constant 0.0883883461 : f32
    %473 = vector.broadcast %cst_205 : f32 to vector<8x128xf32>
    %474 = arith.mulf %472, %473 : vector<8x128xf32>
    %c0_206 = arith.constant 0 : index
    %c0_207 = arith.constant 0 : index
    %475 = vector.load %arg17[%c0_206, %c0_207] : memref<256x128xf32, #tpu.memory_space<vmem>>, vector<256x128xf32>
    %cst_208 = arith.constant dense<0.000000e+00> : vector<8x256xf32>
    %476 = tpu.matmul %474, %475, %cst_208 {dimension_numbers = #tpu.dot_dimension_numbers<[1], [1], [0], [0], [0, 0, 1, 0], [], []>} : vector<8x128xf32>, vector<256x128xf32>, vector<8x256xf32> -> vector<8x256xf32>
    %c0_209 = arith.constant 0 : index
    %c0_210 = arith.constant 0 : index
    %c0_211 = arith.constant 0 : index
    %477 = vector.load %arg18[%c0_209, %c0_210, %c0_211] : memref<1x8x256xf32, #tpu.memory_space<vmem>>, vector<1x8x256xf32>
    %478 = vector.shape_cast %477 : vector<1x8x256xf32> to vector<8x256xf32>
    %479 = vector.shape_cast %476 : vector<8x256xf32> to vector<1x8x256xf32>
    tpu.vector_store %arg18[%c0_209, %c0_210, %c0_211], %479 {strides = array<i32>} : memref<1x8x256xf32, #tpu.memory_space<vmem>>, vector<1x8x256xf32>,
    %c0_212 = arith.constant 0 : index
    %c0_213 = arith.constant 0 : index
    %c0_214 = arith.constant 0 : index
    %480 = vector.load %arg5[%c0_212, %c0_213, %c0_214] : memref<1x8x1xi32, #tpu.memory_space<vmem>>, vector<1x8x1xi32>
    %481 = vector.shape_cast %480 : vector<1x8x1xi32> to vector<8x1xi32>
    %cst_215 = arith.constant dense<0xFF800000> : vector<8xf32>
    %482 = vector.multi_reduction <maximumf>, %476, %cst_215 [1] : vector<8x256xf32> to vector<8xf32>
    %483 = vector.shape_cast %482 : vector<8xf32> to vector<8x1xf32>
    %484 = vector.broadcast %483 : vector<8x1xf32> to vector<8x256xf32>
    %485 = arith.subf %476, %484 : vector<8x256xf32>
    %486 = math.exp %485 : vector<8x256xf32>
    %cst_216 = arith.constant dense<0.000000e+00> : vector<8xf32>
    %487 = vector.multi_reduction <add>, %486, %cst_216 [1] : vector<8x256xf32> to vector<8xf32>
    %488 = vector.shape_cast %487 : vector<8xf32> to vector<8x1xf32>
    %489 = math.log %488 : vector<8x1xf32>
    %490 = arith.addf %483, %489 : vector<8x1xf32>
    %491 = tpu.iota {dimensions = array<i32: 1>} : vector<8x256xi32>
    %492 = vector.broadcast %481 : vector<8x1xi32> to vector<8x256xi32>
    %493 = arith.cmpi eq, %491, %492 : vector<8x256xi32>
    %cst_217 = arith.constant 0.000000e+00 : f32
    %494 = vector.broadcast %cst_217 : f32 to vector<8x256xf32>
    %495 = arith.select %493, %476, %494 : vector<8x256xi1>, vector<8x256xf32>
    %cst_218 = arith.constant dense<0.000000e+00> : vector<8xf32>
    %496 = vector.multi_reduction <add>, %495, %cst_218 [1] : vector<8x256xf32> to vector<8xf32>
    %497 = vector.shape_cast %496 : vector<8xf32> to vector<8x1xf32>
    %c-100_i32 = arith.constant -100 : i32
    %498 = vector.broadcast %c-100_i32 : i32 to vector<8x1xi32>
    %499 = arith.cmpi ne, %481, %498 : vector<8x1xi32>
    %500 = arith.extui %499 : vector<8x1xi1> to vector<8x1xi32>
    %501 = arith.sitofp %500 : vector<8x1xi32> to vector<8x1xf32>
    %502 = arith.subf %490, %497 : vector<8x1xf32>
    %503 = arith.mulf %502, %501 : vector<8x1xf32>
    %cst_219 = arith.constant dense<0.000000e+00> : vector<1xf32>
    %504 = vector.multi_reduction <add>, %503, %cst_219 [0] : vector<8x1xf32> to vector<1xf32>
    %505 = vector.shape_cast %504 : vector<1xf32> to vector<1x1xf32>
    %c0_220 = arith.constant 0 : index
    %c0_221 = arith.constant 0 : index
    %c0_222 = arith.constant 0 : index
    %506 = vector.load %arg19[%c0_220, %c0_221, %c0_222] : memref<1x1x1xf32, #tpu.memory_space<vmem>>, vector<1x1x1xf32>
    %507 = vector.shape_cast %506 : vector<1x1x1xf32> to vector<1x1xf32>
    %508 = vector.shape_cast %505 : vector<1x1xf32> to vector<1x1x1xf32>
    tpu.vector_store %arg19[%c0_220, %c0_221, %c0_222], %508 {strides = array<i32>} : memref<1x1x1xf32, #tpu.memory_space<vmem>>, vector<1x1x1xf32>,
    %cst_223 = arith.constant dense<0.000000e+00> : vector<1xf32>
    %509 = vector.multi_reduction <add>, %501, %cst_223 [0] : vector<8x1xf32> to vector<1xf32>
    %510 = vector.shape_cast %509 : vector<1xf32> to vector<1x1xf32>
    %c0_224 = arith.constant 0 : index
    %c0_225 = arith.constant 0 : index
    %c0_226 = arith.constant 0 : index
    %511 = vector.load %arg20[%c0_224, %c0_225, %c0_226] : memref<1x1x1xf32, #tpu.memory_space<vmem>>, vector<1x1x1xf32>
    %512 = vector.shape_cast %511 : vector<1x1x1xf32> to vector<1x1xf32>
    %513 = vector.shape_cast %510 : vector<1x1xf32> to vector<1x1x1xf32>
    tpu.vector_store %arg20[%c0_224, %c0_225, %c0_226], %513 {strides = array<i32>} : memref<1x1x1xf32, #tpu.memory_space<vmem>>, vector<1x1x1xf32>,
    return
  }
  func.func @transform_0(%arg0: i32) -> (i32, i32, i32) {
    %c0_i32 = arith.constant 0 : i32
    %c0_i32_0 = arith.constant 0 : i32
    %c0_i32_1 = arith.constant 0 : i32
    return %arg0, %c0_i32, %c0_i32_0 : i32, i32, i32
  }
  func.func @transform_1(%arg0: i32) -> (i32, i32, i32) {
    %c0_i32 = arith.constant 0 : i32
    %c0_i32_0 = arith.constant 0 : i32
    %c0_i32_1 = arith.constant 0 : i32
    return %arg0, %c0_i32, %c0_i32_0 : i32, i32, i32
  }
  func.func @transform_2(%arg0: i32) -> (i32, i32, i32) {
    %c0_i32 = arith.constant 0 : i32
    %c0_i32_0 = arith.constant 0 : i32
    %c0_i32_1 = arith.constant 0 : i32
    return %arg0, %c0_i32, %c0_i32_0 : i32, i32, i32
  }
  func.func @transform_3(%arg0: i32) -> (i32, i32, i32) {
    %c0_i32 = arith.constant 0 : i32
    %c0_i32_0 = arith.constant 0 : i32
    %c0_i32_1 = arith.constant 0 : i32
    %c0_i32_2 = arith.constant 0 : i32
    return %c0_i32, %c0_i32_0, %c0_i32_1 : i32, i32, i32
  }
  func.func @transform_4(%arg0: i32) -> (i32, i32, i32) {
    %c0_i32 = arith.constant 0 : i32
    %c0_i32_0 = arith.constant 0 : i32
    %c0_i32_1 = arith.constant 0 : i32
    return %arg0, %c0_i32, %c0_i32_0 : i32, i32, i32
  }
  func.func @transform_5(%arg0: i32) -> (i32, i32, i32) {
    %c0_i32 = arith.constant 0 : i32
    %c0_i32_0 = arith.constant 0 : i32
    %c0_i32_1 = arith.constant 0 : i32
    %c0_i32_2 = arith.constant 0 : i32
    return %c0_i32, %c0_i32_0, %c0_i32_1 : i32, i32, i32
  }
  func.func @transform_6(%arg0: i32) -> (i32, i32, i32) {
    %c0_i32 = arith.constant 0 : i32
    %c0_i32_0 = arith.constant 0 : i32
    %c0_i32_1 = arith.constant 0 : i32
    %c0_i32_2 = arith.constant 0 : i32
    return %c0_i32, %c0_i32_0, %c0_i32_1 : i32, i32, i32
  }
  func.func @transform_7(%arg0: i32) -> (i32, i32, i32) {
    %c0_i32 = arith.constant 0 : i32
    %c0_i32_0 = arith.constant 0 : i32
    %c0_i32_1 = arith.constant 0 : i32
    %c0_i32_2 = arith.constant 0 : i32
    return %c0_i32, %c0_i32_0, %c0_i32_1 : i32, i32, i32
  }
  func.func @transform_8(%arg0: i32) -> (i32, i32, i32) {
    %c0_i32 = arith.constant 0 : i32
    %c0_i32_0 = arith.constant 0 : i32
    %c0_i32_1 = arith.constant 0 : i32
    %c0_i32_2 = arith.constant 0 : i32
    return %c0_i32, %c0_i32_0, %c0_i32_1 : i32, i32, i32
  }
  func.func @transform_9(%arg0: i32) -> (i32, i32, i32) {
    %c0_i32 = arith.constant 0 : i32
    %c0_i32_0 = arith.constant 0 : i32
    %c0_i32_1 = arith.constant 0 : i32
    %c0_i32_2 = arith.constant 0 : i32
    return %c0_i32, %c0_i32_0, %c0_i32_1 : i32, i32, i32
  }
  func.func @transform_10(%arg0: i32) -> (i32, i32, i32) {
    %c0_i32 = arith.constant 0 : i32
    %c0_i32_0 = arith.constant 0 : i32
    %c0_i32_1 = arith.constant 0 : i32
    %c0_i32_2 = arith.constant 0 : i32
    return %c0_i32, %c0_i32_0, %c0_i32_1 : i32, i32, i32
  }
  func.func @transform_11(%arg0: i32) -> (i32, i32, i32) {
    %c0_i32 = arith.constant 0 : i32
    %c0_i32_0 = arith.constant 0 : i32
    %c0_i32_1 = arith.constant 0 : i32
    %c0_i32_2 = arith.constant 0 : i32
    return %c0_i32, %c0_i32_0, %c0_i32_1 : i32, i32, i32
  }
  func.func @transform_12(%arg0: i32) -> (i32, i32, i32) {
    %c0_i32 = arith.constant 0 : i32
    %c0_i32_0 = arith.constant 0 : i32
    %c0_i32_1 = arith.constant 0 : i32
    %c0_i32_2 = arith.constant 0 : i32
    return %c0_i32, %c0_i32_0, %c0_i32_1 : i32, i32, i32
  }
  func.func @transform_13(%arg0: i32) -> (i32, i32, i32) {
    %c0_i32 = arith.constant 0 : i32
    %c0_i32_0 = arith.constant 0 : i32
    %c0_i32_1 = arith.constant 0 : i32
    %c0_i32_2 = arith.constant 0 : i32
    return %c0_i32, %c0_i32_0, %c0_i32_1 : i32, i32, i32
  }
  func.func @transform_14(%arg0: i32) -> (i32, i32, i32) {
    %c0_i32 = arith.constant 0 : i32
    %c0_i32_0 = arith.constant 0 : i32
    %c0_i32_1 = arith.constant 0 : i32
    %c0_i32_2 = arith.constant 0 : i32
    return %c0_i32, %c0_i32_0, %c0_i32_1 : i32, i32, i32
  }
  func.func @transform_15(%arg0: i32) -> (i32, i32) {
    %c0_i32 = arith.constant 0 : i32
    %c0_i32_0 = arith.constant 0 : i32
    %c0_i32_1 = arith.constant 0 : i32
    return %c0_i32, %c0_i32_0 : i32, i32
  }
  func.func @transform_16(%arg0: i32) -> (i32, i32) {
    %c0_i32 = arith.constant 0 : i32
    %c0_i32_0 = arith.constant 0 : i32
    %c0_i32_1 = arith.constant 0 : i32
    return %c0_i32, %c0_i32_0 : i32, i32
  }
  func.func @transform_17(%arg0: i32) -> (i32, i32, i32) {
    %c0_i32 = arith.constant 0 : i32
    %c0_i32_0 = arith.constant 0 : i32
    %c0_i32_1 = arith.constant 0 : i32
    return %arg0, %c0_i32, %c0_i32_0 : i32, i32, i32
  }
  func.func @transform_18(%arg0: i32) -> (i32, i32, i32) {
    %c0_i32 = arith.constant 0 : i32
    %c0_i32_0 = arith.constant 0 : i32
    %c0_i32_1 = arith.constant 0 : i32
    return %arg0, %c0_i32, %c0_i32_0 : i32, i32, i32
  }
  func.func @transform_19(%arg0: i32) -> (i32, i32, i32) {
    %c0_i32 = arith.constant 0 : i32
    %c0_i32_0 = arith.constant 0 : i32
    %c0_i32_1 = arith.constant 0 : i32
    return %arg0, %c0_i32, %c0_i32_0 : i32, i32, i32
  }
}

</mosaic_0001>

<bundles_post_ra>
// kernel: seq2seq_forward.2
= control target key start
LH: loop header
LB: loop body
LE: loop exit
PB: predicated region body
PF: predicated region fallthrough
CT: control target
= control target key end

     0   :  { %15 = vsyncpa [#allocation3], 0  ;;  %s5005_s0 = inlined_call_operand.vmem [shape: f32[2,8,128], index: 0, kind: input, shape index: {}]   ;;  %s5006_s1 = inlined_call_operand.vmem [shape: f32[2,1,8], index: 1, kind: input, shape index: {}]   ;;  %s5007_s2 = inlined_call_operand.vmem [shape: f32[4,8,8], index: 2, kind: input, shape index: {}]   ;;  %s5008_s3 = inlined_call_operand.vmem [shape: f32[2,1,128], index: 3, kind: input, shape index: {}]   ;;  %s5009_s4 = inlined_call_operand.hbm [shape: f32[2,128,384], index: 4, kind: input, shape index: {}]   ;;  %s5010_s5 = inlined_call_operand.hbm [shape: f32[2,128,128], index: 5, kind: input, shape index: {}]   ;;  %s5011_s6 = inlined_call_operand.vmem [shape: f32[2,1,128], index: 6, kind: input, shape index: {}]   ;;  %s5012_s7 = inlined_call_operand.vmem [shape: f32[2,128,256], index: 7, kind: input, shape index: {}]   ;;  %s5013_s8 = inlined_call_operand.hbm [shape: f32[2,256,128], index: 8, kind: input, shape index: {}]   ;;  %s5014_s9 = inlined_call_operand.vmem [shape: f32[1,128], index: 9, kind: input, shape index: {}]   ;;  %s5015_s10 = inlined_call_operand.vmem [shape: f32[2,8,128], index: 10, kind: output, shape index: {}]  }
   0x1   :  { %16 = vsyncpa [#allocation5], 0  ;;  %s4390_s13 = smov 0  }
   0x2 LB: > { %s4322_s14 = smov [#allocation4]   ;;  %s4396_s16 = sadd.s32 4294967295, %s4320_s13   ;;  %s4320_s13 = sphi %s4390_s13, %s22_s13  }
   0x3   : > { %s304_s15 = sshll.u32 %s4322_s14, 4  ;;  %p3342_p0 = scmp.ge.s32.totalorder %s4320_s13, 1  ;;  %s4405_s15 = int_to_ptr.vmem [resolvable:$true] %s304_s15 }
   0x4   : > { %p273_p1 = scmp.lt.s32.totalorder %s4320_s13, 3  ;;  %p5016_p2 = scmp.eq.s32.totalorder %s4396_s16, 0 }
   0x5   : > { %s4323_s18 = smov [#allocation2]   ;;  %s4324_s21 = smov [#allocation6]  }
   0x6   : > { %p4401_p3 = pnand %p3342_p0, %p273_p1  ;;  %s291_s19 = sshll.u32 %s4323_s18, 4  ;;  %s4409_s19 = int_to_ptr.vmem [resolvable:$true] %s291_s19 }
   0x7   : > { %s4417_s22 = sshll.u32 %s4324_s21, 4  ;;  %s4222_s25 = scalar_lea.hbm %s5010_s5, 4096  ;;  %s324_s22 = int_to_ptr.vmem [resolvable:$true] %s4417_s22 }
   0x8   : > { %s5018_s17 = scalar_select %p4401_p3, 1, 0 }
   0x9   : > { %p4143_p4 = pneg %p4401_p3  ;;  %p4223_p6 = scmp.ne.s32.totalorder %s5010_s5, %s4222_s25 }
   0xa   : > { %p4229_p10 = scmp.lt.u32.totalorder %s4222_s25, %s5010_s5 }
   0xb   : > { %p4413_p5 = pnand %p5016_p2, %p4143_p4 }
   0xd   : > { %p4427_p7 = pneg %p4413_p5 }
   0xf   : > { %p4225_p8 = pnand %p4427_p7, %p4223_p6 }
  0x11   : > { %p4226_p9 = pneg %p4225_p8 }
  0x13   : > { %p4231_p11 = pnand %p4229_p10, %p4226_p9 }
  0x15   : > { %4234 = shalt.err (!%p4231_p11)
}
  0x16   : > { %s4235_s11 = scalar_lea.vmem %s4405_s15, 4096  ;;  %p4243_p1 = scmp.lt.s32.totalorder %s4405_s15, %s4405_s15 }
  0x17   : > { %p4236_p12 = scmp.ne.s32.totalorder %s4405_s15, %s4235_s11  ;;  %p4244_p4 = scmp.lt.s32.totalorder %s4235_s11, %s4235_s11 }
  0x19   : > { %p4238_p13 = pnand %p4236_p12, %p4427_p7  ;;  %p4245_p6 = por %p4244_p4, %p4243_p1 }
  0x1b   : > { %p4239_p0 = pneg %p4238_p13 }
  0x1d   : > { %p4246_p8 = pnand %p4245_p6, %p4239_p0 }
  0x1f   : > { %4249 = shalt.err (!%p4246_p8)
}
  0x20   : > { %s4325_s12 = smov 128   ;;  %s4326_s14 = smov 8  }
  0x21   : > { %4149 = dma.hbm_to_vmem [thread:$0]  (!%p4413_p5), %s5010_s5, 4096, %s4405_s15, [#allocation5], %s4325_s12, %s4325_s12, %s4326_s14  }
  0x22   : > { %s4250_s25 = scalar_lea.hbm %s5009_s4, 12288 }
  0x23   : > { %p4251_p9 = scmp.ne.s32.totalorder %s5009_s4, %s4250_s25  ;;  %p4257_p12 = scmp.lt.u32.totalorder %s4250_s25, %s5009_s4 }
  0x25   : > { %p4253_p10 = pnand %p4251_p9, %p4427_p7 }
  0x27   : > { %p4254_p11 = pneg %p4253_p10 }
  0x29   : > { %p4259_p13 = pnand %p4257_p12, %p4254_p11 }
  0x2b   : > { %4262 = shalt.err (!%p4259_p13)
}
  0x2c   : > { %s4263_s15 = scalar_lea.vmem %s4409_s19, 12288  ;;  %p4271_p6 = scmp.lt.s32.totalorder %s4409_s19, %s4409_s19 }
  0x2d   : > { %p4264_p0 = scmp.ne.s32.totalorder %s4409_s19, %s4263_s15  ;;  %p4272_p8 = scmp.lt.s32.totalorder %s4263_s15, %s4263_s15 }
  0x2f   : > { %p4266_p1 = pnand %p4264_p0, %p4427_p7  ;;  %p4273_p9 = por %p4272_p8, %p4271_p6 }
  0x31   : > { %p4267_p4 = pneg %p4266_p1 }
  0x33   : > { %p4274_p10 = pnand %p4273_p9, %p4267_p4 }
  0x35   : > { %4277 = shalt.err (!%p4274_p10)
}
  0x36   : > { %s4327_s11 = smov 384   ;;  %s4328_s18 = smov 24  }
  0x37   : > { %4146 = dma.hbm_to_vmem [thread:$0]  (!%p4413_p5), %s5009_s4, 12288, %s4409_s19, [#allocation3], %s4327_s11, %s4327_s11, %s4328_s18  }
  0x38   : > { %s4278_s26 = scalar_lea.hbm %s5013_s8, 8192 }
  0x39   : > { %p4279_p11 = scmp.ne.s32.totalorder %s5013_s8, %s4278_s26  ;;  %p4285_p0 = scmp.lt.u32.totalorder %s4278_s26, %s5013_s8 }
  0x3b   : > { %p4281_p12 = pnand %p4279_p11, %p4427_p7 }
  0x3d   : > { %p4282_p13 = pneg %p4281_p12 }
  0x3f   : > { %p4287_p1 = pnand %p4285_p0, %p4282_p13 }
  0x41   : > { %4290 = shalt.err (!%p4287_p1)
}
  0x42   : > { %s4291_s21 = scalar_lea.vmem %s324_s22, 8192  ;;  %p4299_p9 = scmp.lt.s32.totalorder %s324_s22, %s324_s22 }
  0x43   : > { %p4292_p4 = scmp.ne.s32.totalorder %s324_s22, %s4291_s21  ;;  %p4300_p10 = scmp.lt.s32.totalorder %s4291_s21, %s4291_s21 }
  0x45   : > { %p4294_p6 = pnand %p4292_p4, %p4427_p7  ;;  %p4301_p2 = por %p4300_p10, %p4299_p9 }
  0x47   : > { %p4295_p8 = pneg %p4294_p6 }
  0x49   : > { %p4302_p3 = pnand %p4301_p2, %p4295_p8 }
  0x4b   : > { %4305 = shalt.err (!%p4302_p3)
}
  0x4c   : > { %4152 = dma.hbm_to_vmem [thread:$0]  (!%p4413_p5), %s5013_s8, 8192, %s324_s22, [#allocation5], %s4325_s12, %s4325_s12, %s4326_s14  }
  0x4d   : > { %p5021_p11 = scmp.ne.s32.totalorder %s5018_s17, 0 }
  0x4e   : > { %p5022_p7 = scmp.eq.s32.totalorder (!%p5021_p11), %s4396_s16, 0 }
  0x4f   : > { %355 = sbr.rel (%p5021_p11) target bundleno = 6904 (0x1af8), region = 60 }
  0x56   : > { %4311 = dma.done.wait (%p5022_p7), [#allocation3], 12288   ;;  %p5023_p12 = pmov %p5022_p7 }
  0x57   : > { %p5024_p2 = pmov %p5022_p7 }
  0x58   : > { %4313 = vsyncadd (%p5023_p12), [#allocation3], 4294955008 }
  0x59   : > { %4315 = dma.done.wait (%p5024_p2), [#allocation5], 12288   ;;  %p5025_p3 = pmov %p5024_p2 }
  0x5a   : > { %p402_p13 = scmp.lt.s32.totalorder %s4396_s16, 1  ;;  %v4329_v0 = vmov 0.0|0.0   ;;  %v434_v2 = vld [vmem:[#allocation2 + $0x8] sm:$0xff]  ;;  %v437_v4 = vld [vmem:[#allocation2 + $0x20] sm:$0xff]  ;;  %v436_v6 = vld [vmem:[#allocation2 + $0x18] sm:$0xff]  ;;  %v4330_v55 = vmov 0.0  }
  0x5b   : > { %4317 = vsyncadd (%p5025_p3), [#allocation5], 4294955008  ;;  %3875 = vmatprep.subr.bf16.mxu1 %v4329_v0  ;;  %v433_v5 = vld [vmem:[#allocation2] sm:$0xff]  ;;  %v3843_v7 = vpack.c.bf16 %v437_v4, %v434_v2  ;;  %v435_v9 = vld [vmem:[#allocation2 + $0x10] sm:$0xff]  ;;  %545 = vmatprep.mubr.f32.mxu0 %v4330_v55  ;;  %vm4331_vm0 = vmmov 0   ;;  %vm646_vm1 = vcmask 261120  }
  0x5c   : > { %s5027_s16 = smov (!%p402_p13, %s4396_s16), 1  ;;  %v3845_v8 = vpack.c.bf16 %v436_v6, %v433_v5  ;;  %v438_v10 = vld [vmem:[#allocation2 + $0x28] sm:$0xff]  ;;  %v440_v11 = vld [vmem:[#allocation2 + $0x38] sm:$0xff]  ;;  %v443_v13 = vld [vmem:[#allocation2 + $0x50] sm:$0xff]  ;;  %3637 = vmatprep.mubr.msk.f32.mxu1 %vm4331_vm0, %v4330_v55  ;;  %s4332_s18 = smov 96   ;;  %vm723_vm2 = vcmask 64512  }
  0x5d   : > { %s3351_s17 = sshll.u32 %s5027_s16, 3  ;;  %v3876_v12 = vpack.c.bf16 %v438_v10, %v435_v9  ;;  %v439_v14 = vld [vmem:[#allocation2 + $0x30] sm:$0xff]  ;;  %v442_v15 = vld [vmem:[#allocation2 + $0x48] sm:$0xff]  ;;  %3844 = vmatprep.subr.bf16.mxu0 %v3843_v7  ;;  %v3847_v16 = vpack.c.bf16 %v443_v13, %v440_v11  ;;  %v441_v17 = vld [vmem:[#allocation2 + $0x40] sm:$0xff]  ;;  %s408_s25 = scalar_lea.vmem %s5006_s1, %s5027_s16 }
  0x5e   : > { %s405_s28 = scalar_lea.vmem %s5005_s0, %s3351_s17  ;;  %v444_v18 = vld [vmem:[#allocation2 + $0x58] sm:$0xff]  ;;  %v446_v19 = vld [vmem:[#allocation2 + $0x68] sm:$0xff]  ;;  %3846 = vmatpush1.bf16.msra.mxu0 %v3845_v8  ;;  %v3849_v20 = vpack.c.bf16 %v442_v15, %v439_v14  ;;  %v449_v22 = vld [vmem:[#allocation2 + $0x80] sm:$0xff]  ;;  %s4333_s15 = smov 64  }
  0x5f   : > { %v4517_v1 = vld [vmem:[%s405_s28] sm:$0xff]  ;;  %3877 = vmatpush3.bf16.msra.mxu1 %v3876_v12  ;;  %v3879_v21 = vpack.c.bf16 %v444_v18, %v441_v17  ;;  %3848 = vmatprep.subr.bf16.mxu0 %v3847_v16  ;;  %v3851_v24 = vpack.c.bf16 %v449_v22, %v446_v19  ;;  %v448_v25 = vld [vmem:[#allocation2 + $0x78] sm:$0xff]  ;;  %v447_v26 = vld [vmem:[#allocation2 + $0x70] sm:$0xff]  ;;  %s4334_s11 = smov 32  }
  0x60   : > { %v418_v3 = vmul.f32 %v4517_v1, %v4517_v1  ;;  %v445_v23 = vld [vmem:[#allocation2 + $0x60] sm:$0xff]  ;;  %3878 = vmatprep.subr.bf16.mxu1 %v4329_v0  ;;  %v450_v27 = vld [vmem:[#allocation2 + $0x88] sm:$0xff]  ;;  %v452_v28 = vld [vmem:[#allocation2 + $0x98] sm:$0xff] }
  0x61   : > { %v455_v29 = vld [vmem:[#allocation2 + $0xb0] sm:$0xff]  ;;  %v3853_v30 = vpack.c.bf16 %v448_v25, %v445_v23  ;;  %v3882_v31 = vpack.c.bf16 %v450_v27, %v447_v26  ;;  %v454_v34 = vld [vmem:[#allocation2 + $0xa8] sm:$0xff]  ;;  %v453_v35 = vld [vmem:[#allocation2 + $0xa0] sm:$0xff]  ;;  %v640_v27 = vlaneseq }
  0x62   : > { %419 = vadd.xlane.f32.xlu0 %v418_v3  ;;  %3850 = vmatpush1.bf16.msra.mxu0 %v3849_v20  ;;  %v3855_v32 = vpack.c.bf16 %v455_v29, %v452_v28  ;;  %v451_v33 = vld [vmem:[#allocation2 + $0x90] sm:$0xff]  ;;  %v456_v37 = vld [vmem:[#allocation2 + $0xb8] sm:$0xff]  ;;  %v458_v39 = vld [vmem:[#allocation2 + $0xc8] sm:$0xff] }
  0x63   : > { %3880 = vmatpush3.bf16.msra.mxu1 %v3879_v21  ;;  %3852 = vmatprep.subr.bf16.mxu0 %v3851_v24  ;;  %v3857_v36 = vpack.c.bf16 %v454_v34, %v451_v33  ;;  %v3885_v38 = vpack.c.bf16 %v456_v37, %v453_v35  ;;  %v461_v40 = vld [vmem:[#allocation2 + $0xe0] sm:$0xff]  ;;  %v460_v43 = vld [vmem:[#allocation2 + $0xd8] sm:$0xff]  ;;  %v459_v44 = vld [vmem:[#allocation2 + $0xd0] sm:$0xff] }
  0x64   : > { %3881 = vmatprep.subr.bf16.mxu1 %v4329_v0  ;;  %v3859_v41 = vpack.c.bf16 %v461_v40, %v458_v39  ;;  %v457_v42 = vld [vmem:[#allocation2 + $0xc0] sm:$0xff]  ;;  %v462_v46 = vld [vmem:[#allocation2 + $0xe8] sm:$0xff]  ;;  %v464_v48 = vld [vmem:[#allocation2 + $0xf8] sm:$0xff] }
  0x65   : > { %v3861_v45 = vpack.c.bf16 %v460_v43, %v457_v42  ;;  %v3888_v47 = vpack.c.bf16 %v462_v46, %v459_v44  ;;  %v467_v49 = vld [vmem:[#allocation2 + $0x110] sm:$0xff]  ;;  %v466_v52 = vld [vmem:[#allocation2 + $0x108] sm:$0xff]  ;;  %v465_v53 = vld [vmem:[#allocation2 + $0x100] sm:$0xff] }
  0x66   : > { %3854 = vmatpush1.bf16.msra.mxu0 %v3853_v30  ;;  %v463_v50 = vld [vmem:[#allocation2 + $0xf0] sm:$0xff]  ;;  %v3863_v51 = vpack.c.bf16 %v467_v49, %v464_v48  ;;  %v468_v54 = vld [vmem:[#allocation2 + $0x118] sm:$0xff]  ;;  %v470_v58 = vld [vmem:[#allocation2 + $0x128] sm:$0xff]  ;;  %v641_v30 = vshrl.u32 %v640_v27, 7 }
  0x67   : > { %3883 = vmatpush3.bf16.msra.mxu1 %v3882_v31  ;;  %3856 = vmatprep.subr.bf16.mxu0 %v3855_v32  ;;  %v3865_v56 = vpack.c.bf16 %v466_v52, %v463_v50  ;;  %v3891_v57 = vpack.c.bf16 %v468_v54, %v465_v53  ;;  %v473_v59 = vld [vmem:[#allocation2 + $0x140] sm:$0xff]  ;;  %v472_v62 = vld [vmem:[#allocation2 + $0x138] sm:$0xff]  ;;  %v471_v63 = vld [vmem:[#allocation2 + $0x130] sm:$0xff] }
  0x68   : > { %3884 = vmatprep.subr.bf16.mxu1 %v4329_v0  ;;  %v469_v60 = vld [vmem:[#allocation2 + $0x120] sm:$0xff]  ;;  %v3867_v61 = vpack.c.bf16 %v473_v59, %v470_v58  ;;  %v474_v2 = vld [vmem:[#allocation2 + $0x148] sm:$0xff]  ;;  %v476_v4 = vld [vmem:[#allocation2 + $0x158] sm:$0xff]  ;;  %v642_v32 = vsub.s32 0, %v641_v30 }
  0x69   : > { %v3869_v3 = vpack.c.bf16 %v472_v62, %v469_v60  ;;  %v479_v5 = vld [vmem:[#allocation2 + $0x170] sm:$0xff]  ;;  %v3894_v6 = vpack.c.bf16 %v474_v2, %v471_v63  ;;  %v478_v9 = vld [vmem:[#allocation2 + $0x168] sm:$0xff]  ;;  %v477_v10 = vld [vmem:[#allocation2 + $0x160] sm:$0xff] }
  0x6a   : > { %3858 = vmatpush1.bf16.msra.mxu0 %v3857_v36  ;;  %v3871_v7 = vpack.c.bf16 %v479_v5, %v476_v4  ;;  %v475_v8 = vld [vmem:[#allocation2 + $0x150] sm:$0xff]  ;;  %v480_v11 = vld [vmem:[#allocation2 + $0x178] sm:$0xff]  ;;  %v3353_v18 = vld [vmem:[%s5008_s3] ss:$0 sm:$0xff] }
  0x6b   : > { %3886 = vmatpush3.bf16.msra.mxu1 %v3885_v38  ;;  %3860 = vmatprep.subr.bf16.mxu0 %v3859_v41  ;;  %v3873_v12 = vpack.c.bf16 %v478_v9, %v475_v8  ;;  %v3897_v13 = vpack.c.bf16 %v480_v11, %v477_v10  ;;  %v414_v28 = vld [vmem:[%s408_s25] sm:$0x1]  ;;  %v3357_v40 = vld [vmem:[%s5007_s2 + $0x8] sm:$0xff]  ;;  %v628_v62 = vld [vmem:[#allocation4 + $0x30] sm:$0xff] }
  0x6c   : > { %3887 = vmatprep.subr.bf16.mxu1 %v4329_v0  ;;  %v415_v29 = vsub.f32 1.0, %v414_v28  ;;  %v638_v34 = vld [vmem:[%s5007_s2] sm:$0xff]  ;;  %v629_v2 = vld [vmem:[#allocation4 + $0x38] sm:$0xff]  ;;  %v624_v11 = vld [vmem:[#allocation4 + $0x10] sm:$0xff] }
  0x6d   : > { %v626_v60 = vld [vmem:[#allocation4 + $0x20] sm:$0xff] }
  0x6e   : > { %3862 = vmatpush1.bf16.msra.mxu0 %v3861_v45  ;;  %v416_v31 = vmul.f32 -1e+09, %v415_v29 }
  0x6f   : > { %3889 = vmatpush3.bf16.msra.mxu1 %v3888_v47  ;;  %3864 = vmatprep.subr.bf16.mxu0 %v3863_v51 }
  0x70   : > { %3890 = vmatprep.subr.bf16.mxu1 %v4329_v0  ;;  %v4569_v33 = vrot.slane %v416_v31, %v642_v32 }
  0x72   : > { %3866 = vmatpush1.bf16.msra.mxu0 %v3865_v56  ;;  %v4575_v35 = vadd.f32 %v4569_v33, %v638_v34  ;;  %v4583_v41 = vadd.f32 %v3357_v40, %v4569_v33 }
  0x73   : > { %3892 = vmatpush3.bf16.msra.mxu1 %v3891_v57  ;;  %3868 = vmatprep.subr.bf16.mxu0 %v3867_v61  ;;  %v627_v61 = vld [vmem:[#allocation4 + $0x28] sm:$0xff] }
  0x74   : > { %3893 = vmatprep.subr.bf16.mxu1 %v4329_v0  ;;  %v3900_v63 = vpack.c.bf16 %v627_v61, %v626_v60 }
  0x76   : > { %3870 = vmatpush1.bf16.msra.mxu0 %v3869_v3  ;;  %v3903_v3 = vpack.c.bf16 %v629_v2, %v628_v62 }
  0x77   : > { %3895 = vmatpush3.bf16.msra.mxu1 %v3894_v6  ;;  %3872 = vmatprep.subr.bf16.mxu0 %v3871_v7  ;;  %v622_v6 = vld [vmem:[#allocation4] sm:$0xff]  ;;  %v623_v7 = vld [vmem:[#allocation4 + $0x8] sm:$0xff] }
  0x78   : > { %3896 = vmatprep.subr.bf16.mxu1 %v4329_v0  ;;  %v3906_v9 = vpack.c.bf16 %v623_v7, %v622_v6  ;;  %v636_v6 = vld [vmem:[#allocation4 + $0x70] sm:$0xff] }
  0x7a   : > { %3874 = vmatpush1.bf16.msra.mxu0 %v3873_v12  ;;  %v625_v12 = vld [vmem:[#allocation4 + $0x18] sm:$0xff] }
  0x7b   : > { %3898 = vmatpush3.bf16.msra.mxu1 %v3897_v13  ;;  %3650 = vmatprep.subr.mxu0 %v4330_v55  ;;  %v3909_v13 = vpack.c.bf16 %v625_v12, %v624_v11 }
  0x7c   : > { %3640 = vmatprep.subr.mxu1 %v4330_v55 }
  0xef   : > { %v420_v14 = vpop.xlane.xlu0 %419 }
  0xf0   : > { %v422_v15 = vmul.f32 0.0078125, %v420_v14 }
  0xf2   : > { %v423_v16 = vadd.f32 1e-06, %v422_v15 }
  0xf4   : > { %4180 = vrsqrt.f32 %v423_v16 }
  0xfe   : > { %v4181_v17 = vpop.eup %4180 }
  0xff   : > { %v425_v19 = vmul.f32 %v4181_v17, %v4517_v1 }
 0x101   : > { %v432_v20 = vmul.f32 %v3353_v18, %v425_v19 }
 0x103   : > { %546 = vmatmul.mubr.f32.vlgmr.msra.gmra.mrb[0].mxu0 %v432_v20  ;;  %3638 = vmatmul.mubr.f32.vlgmr.msra.gmra.mrb[0].mxu1 %v432_v20 }
 0x104   : > { %3642 = vmatprep.mubr.msk.f32.mxu1 %vm4331_vm0, %v4330_v55  ;;  %3652 = vmatprep.mubr.msk.f32.mxu0 %vm4331_vm0, %v4330_v55 }
 0x1d6   : > { %v4541_v21 = vpop.f32.mrb[0].mxu0  ;;  %v4543_v22 = vpop.f32.mrb[0].mxu1 }
 0x1d7   : > { %v3639_v23 = vpop.f32.mrb[1].mxu1  ;;  %811 = vrot.lane.b32.xlu1 %v4541_v21, %s4332_s18  ;;  %v4547_v24 = vpop.f32.mrb[1].mxu0 }
 0x1d8   : > { %813 = vrot.lane.b32.xlu0 %v4547_v24, %s4332_s18  ;;  %3641 = vmatpush3.xpose.msk.msra.mxu1 %vm646_vm1, %v4547_v24 }
 0x1d9   : > { %3645 = vmatprep.subr.mxu1 %v4330_v55 }
 0x1db   : > { %3643 = vmatmul.mubr.msk.f32.vlgmr.msra.gmra.mrb[2].mxu1 %vm646_vm1, %v4541_v21 }
 0x1dc   : > { %3646 = vmatpush3.msra.mxu1 %v4543_v22  ;;  %3647 = vmatprep.mubr.msk.f32.mxu1 %vm4331_vm0, %v4330_v55 }
 0x1dd   : > { %3655 = vmatprep.subr.mxu1 %v4330_v55 }
 0x249   : > { %v812_v26 = vpop.permute.xlu1 %811 }
 0x24a   : > { %v814_v25 = vpop.permute.xlu0 %813 }
 0x24b   : > { %3651 = vmatpush3.xpose.msk.msra.mxu0 %vm646_vm1, %v814_v25  ;;  %v3363_v25 = vld [vmem:[%s5007_s2 + $0x10] sm:$0xff] }
 0x24c   : > { %3899 = vmatprep.subr.bf16.mxu0 %v4329_v0  ;;  %v4623_v29 = vadd.f32 %v3363_v25, %v4569_v33  ;;  %v1628_v25 = vld [vmem:[%s5012_s7 + $0x28] sm:$0xff] }
 0x24e   : > { %3653 = vmatmul.mubr.msk.f32.vlgmr.msra.gmra.mrb[2].mxu0 %vm646_vm1, %v812_v26 }
 0x24f   : > { %3668 = vmatprep.mubr.msk.f32.mxu0 %vm4331_vm0, %v4330_v55  ;;  %3901 = vmatpush3.bf16.msra.mxu0 %v3900_v63 }
 0x250   : > { %3902 = vmatprep.subr.bf16.mxu0 %v4329_v0 }
 0x253   : > { %3904 = vmatpush3.bf16.msra.mxu0 %v3903_v3 }
 0x254   : > { %3682 = vmatprep.subr.mxu0 %v4330_v55 }
 0x2ae   : > { %v719_v36 = vpop.f32.mrb[2].mxu1 }
 0x2af   : > { %v720_v37 = vadd.f32 %v719_v36, %v4575_v35  ;;  %v3644_v38 = vpop.f32.mrb[3].mxu1 }
 0x2b1   : > { %v724_v39 = vsel %vm723_vm2, %v720_v37, -inf }
 0x2b2   : > { %725 = vmax.xlane.f32.xlu1 %v724_v39 }
 0x321   : > { %v885_v42 = vpop.f32.mrb[2].mxu0 }
 0x322   : > { %v886_v43 = vadd.f32 %v885_v42, %v4583_v41  ;;  %v3654_v44 = vpop.f32.mrb[3].mxu0 }
 0x323   : > { %v631_v44 = vld [vmem:[#allocation4 + $0x48] sm:$0xff] }
 0x324   : > { %v889_v45 = vsel %vm723_vm2, %v886_v43, -inf }
 0x325   : > { %890 = vmax.xlane.f32.xlu0 %v889_v45  ;;  %v632_v45 = vld [vmem:[#allocation4 + $0x50] sm:$0xff] }
 0x33b   : > { %1128 = vrot.lane.b32.xlu0 %v4547_v24, %s4333_s15 }
 0x33f   : > { %v726_v46 = vpop.xlane.xlu1 %725 }
 0x340   : > { %v727_v47 = vsub.f32 %v720_v37, %v726_v46 }
 0x342   : > { %v728_v48 = vmul.f32 1.442695, %v727_v47 }
 0x344   : > { %4182 = vpow2.f32 %v728_v48 }
 0x34e   : > { %v4183_v49 = vpop.eup %4182 }
 0x34f   : > { %v730_v50 = vsel %vm723_vm2, %v4183_v49, 0.0 }
 0x350   : > { %731 = vadd.xlane.f32.xlu1 %v730_v50 }
 0x3b2   : > { %v891_v51 = vpop.xlane.xlu0 %890 }
 0x3b3   : > { %v892_v52 = vsub.f32 %v886_v43, %v891_v51  ;;  %v630_v43 = vld [vmem:[#allocation4 + $0x40] sm:$0xff] }
 0x3b4   : > { %v3912_v46 = vpack.c.bf16 %v631_v44, %v630_v43 }
 0x3b5   : > { %v893_v53 = vmul.f32 1.442695, %v892_v52  ;;  %v3368_v52 = vld [vmem:[%s5007_s2 + $0x18] sm:$0xff] }
 0x3b6   : > { %v1129_v17 = vpop.permute.xlu0 %1128 }
 0x3b7   : > { %4184 = vpow2.f32 %v893_v53 }
 0x3c1   : > { %v4185_v54 = vpop.eup %4184 }
 0x3c2   : > { %v895_v56 = vsel %vm723_vm2, %v4185_v54, 0.0 }
 0x3c3   : > { %896 = vadd.xlane.f32.xlu1 %v895_v56  ;;  %v4650_v56 = vadd.f32 %v3368_v52, %v4569_v33 }
 0x3d4   : > { %901 = vrot.lane.b32.xlu1 %v4543_v22, %s4332_s18 }
 0x3d8   : > { %1126 = vrot.lane.b32.xlu1 %v4541_v21, %s4333_s15 }
 0x3dd   : > { %v732_v57 = vpop.xlane.xlu1 %731 }
 0x3de   : > { %4186 = vrcp.f32 %v732_v57 }
 0x3e8   : > { %v4187_v58 = vpop.eup %4186 }
 0x3e9   : > { %v734_v59 = vmul.f32 %v4187_v58, %v4183_v49 }
 0x3eb   : > { %3648 = vmatmul.mubr.msk.f32.vlgmr.msra.gmra.mrb[4].mxu1 %vm723_vm2, %v734_v59 }
 0x3ec   : > { %3657 = vmatprep.mubr.msk.f32.mxu1 %vm4331_vm0, %v4330_v55 }
 0x450   : > { %v897_v4 = vpop.xlane.xlu1 %896 }
 0x451   : > { %4188 = vrcp.f32 %v897_v4  ;;  %v634_v4 = vld [vmem:[#allocation4 + $0x60] sm:$0xff] }
 0x454   : > { %v902_v5 = vpop.permute.xlu1 %901 }
 0x455   : > { %3656 = vmatpush3.msra.mxu1 %v902_v5  ;;  %v635_v5 = vld [vmem:[#allocation4 + $0x68] sm:$0xff] }
 0x456   : > { %3905 = vmatprep.subr.bf16.mxu1 %v4329_v0  ;;  %v3918_v7 = vpack.c.bf16 %v635_v5, %v634_v4  ;;  %v1647_v4 = vld [vmem:[%s5012_s7 + $0xc0] sm:$0xff]  ;;  %v1649_v5 = vld [vmem:[%s5012_s7 + $0xd0] sm:$0xff] }
 0x458   : > { %v1127_v19 = vpop.permute.xlu1 %1126 }
 0x45b   : > { %v4189_v8 = vpop.eup %4188 }
 0x45c   : > { %v899_v10 = vmul.f32 %v4189_v8, %v4185_v54  ;;  %v637_v8 = vld [vmem:[#allocation4 + $0x78] sm:$0xff] }
 0x45e   : > { %3658 = vmatmul.mubr.msk.f32.vlgmr.msra.gmra.mrb[6].mxu1 %vm723_vm2, %v899_v10 }
 0x45f   : > { %3907 = vmatpush3.bf16.msra.mxu1 %v3906_v9  ;;  %3679 = vmatprep.mubr.msk.f32.mxu1 %vm4331_vm0, %v4330_v55  ;;  %v3921_v9 = vpack.c.bf16 %v637_v8, %v636_v6  ;;  %v1652_v6 = vld [vmem:[%s5012_s7 + $0xe8] sm:$0xff]  ;;  %v3949_v8 = vpack.c.bf16 %v1649_v5, %v1647_v4  ;;  %v1758_v5 = vld [vmem:[#allocation6 + $0xf0] sm:$0xff] }
 0x460   : > { %3908 = vmatprep.subr.bf16.mxu1 %v4329_v0 }
 0x463   : > { %3910 = vmatpush3.bf16.msra.mxu1 %v3909_v13 }
 0x464   : > { %3687 = vmatprep.subr.mxu1 %v4330_v55 }
 0x4be   : > { %v804_v14 = vpop.f32.mrb[4].mxu1 }
 0x4bf   : > { %v3649_v15 = vpop.f32.mrb[5].mxu1  ;;  %3680 = vmatmul.mubr.msk.f32.vlgmr.msra.gmra.mrb[8].mxu1 %vm646_vm1, %v804_v14 }
 0x4c0   : > { %3689 = vmatprep.mubr.msk.f32.mxu1 %vm4331_vm0, %v4330_v55 }
 0x531   : > { %v973_v16 = vpop.f32.mrb[6].mxu1 }
 0x532   : > { %v3659_v18 = vpop.f32.mrb[7].mxu1  ;;  %3669 = vmatmul.mubr.msk.f32.vlgmr.msra.gmra.mrb[4].mxu0 %vm646_vm1, %v973_v16 }
 0x533   : > { %3683 = vmatpush3.xpose.msk.msra.mxu0 %vm646_vm1, %v1129_v17  ;;  %3684 = vmatprep.mubr.msk.f32.mxu0 %vm4331_vm0, %v4330_v55  ;;  %v1624_v17 = vld [vmem:[%s5012_s7 + $0x8] sm:$0xff]  ;;  %v1626_v18 = vld [vmem:[%s5012_s7 + $0x18] sm:$0xff] }
 0x534   : > { %3911 = vmatprep.subr.bf16.mxu0 %v4329_v0 }
 0x536   : > { %3685 = vmatmul.mubr.msk.f32.vlgmr.msra.gmra.mrb[6].mxu0 %vm646_vm1, %v1127_v19  ;;  %v1623_v19 = vld [vmem:[%s5012_s7] sm:$0xff] }
 0x537   : > { %3700 = vmatprep.mubr.msk.f32.mxu0 %vm4331_vm0, %v4330_v55  ;;  %3913 = vmatpush3.bf16.msra.mxu0 %v3912_v46 }
 0x538   : > { %3914 = vmatprep.subr.bf16.mxu0 %v4329_v0 }
 0x592   : > { %v1119_v20 = vpop.f32.mrb[8].mxu1 }
 0x593   : > { %v3681_v23 = vpop.f32.mrb[9].mxu1 }
 0x594   : > { %v1625_v23 = vld [vmem:[%s5012_s7 + $0x10] sm:$0xff] }
 0x605   : > { %v1046_v26 = vpop.f32.mrb[4].mxu0 }
 0x606   : > { %v4620_v27 = vadd.f32 %v1119_v20, %v1046_v26  ;;  %v3670_v28 = vpop.f32.mrb[5].mxu0  ;;  %v3923_v20 = vpack.c.bf16 %v1626_v18, %v1624_v17  ;;  %v1630_v26 = vld [vmem:[%s5012_s7 + $0x38] sm:$0xff]  ;;  %v1746_v17 = vld [vmem:[#allocation6 + $0x90] sm:$0xff] }
 0x607   : > { %v3927_v28 = vpack.c.bf16 %v1630_v26, %v1628_v25  ;;  %v1747_v18 = vld [vmem:[#allocation6 + $0x98] sm:$0xff]  ;;  %v1748_v26 = vld [vmem:[#allocation6 + $0xa0] sm:$0xff] }
 0x608   : > { %v1731_v25 = vld [vmem:[#allocation6 + $0x18] sm:$0xff] }
 0x609   : > { %v1200_v30 = vpop.f32.mrb[6].mxu0 }
 0x60a   : > { %v1201_v31 = vadd.f32 %v1200_v30, %v4623_v29  ;;  %v3686_v32 = vpop.f32.mrb[7].mxu0  ;;  %v1627_v30 = vld [vmem:[%s5012_s7 + $0x20] sm:$0xff] }
 0x60b   : > { %v1632_v32 = vld [vmem:[%s5012_s7 + $0x48] sm:$0xff] }
 0x60c   : > { %v1204_v34 = vsel %vm723_vm2, %v1201_v31, -inf }
 0x60d   : > { %1205 = vmax.xlane.f32.xlu1 %v1204_v34  ;;  %v1634_v34 = vld [vmem:[%s5012_s7 + $0x58] sm:$0xff] }
 0x61e   : > { %1215 = vrot.lane.b32.xlu1 %v4543_v22, %s4333_s15 }
 0x622   : > { %1368 = vrot.lane.b32.xlu1 %v4541_v21, %s4334_s11  ;;  %v633_v21 = vld [vmem:[#allocation4 + $0x58] sm:$0xff] }
 0x623   : > { %v3915_v47 = vpack.c.bf16 %v633_v21, %v632_v45 }
 0x625   : > { %3916 = vmatpush3.bf16.msra.mxu0 %v3915_v47 }
 0x626   : > { %3917 = vmatprep.subr.bf16.mxu0 %v4329_v0 }
 0x69a   : > { %v1206_v36 = vpop.xlane.xlu1 %1205 }
 0x69b   : > { %v1207_v37 = vsub.f32 %v1201_v31, %v1206_v36  ;;  %v1629_v31 = vld [vmem:[%s5012_s7 + $0x30] sm:$0xff] }
 0x69c   : > { %v3929_v36 = vpack.c.bf16 %v1629_v31, %v1627_v30  ;;  %v1732_v31 = vld [vmem:[#allocation6 + $0x20] sm:$0xff] }
 0x69d   : > { %v1208_v38 = vmul.f32 1.442695, %v1207_v37  ;;  %v3931_v37 = vpack.c.bf16 %v1634_v34, %v1632_v32  ;;  %v1733_v32 = vld [vmem:[#allocation6 + $0x28] sm:$0xff]  ;;  %v1750_v34 = vld [vmem:[#allocation6 + $0xb0] sm:$0xff] }
 0x69e   : > { %v1216_v39 = vpop.permute.xlu1 %1215 }
 0x69f   : > { %4190 = vpow2.f32 %v1208_v38  ;;  %3688 = vmatpush3.msra.mxu1 %v1216_v39  ;;  %v1631_v38 = vld [vmem:[%s5012_s7 + $0x40] sm:$0xff]  ;;  %v1633_v39 = vld [vmem:[%s5012_s7 + $0x50] sm:$0xff] }
 0x6a0   : > { %3703 = vmatprep.subr.mxu1 %v4330_v55  ;;  %v3933_v43 = vpack.c.bf16 %v1633_v39, %v1631_v38  ;;  %v1734_v39 = vld [vmem:[#allocation6 + $0x30] sm:$0xff] }
 0x6a9   : > { %v4191_v40 = vpop.eup %4190 }
 0x6aa   : > { %v1210_v42 = vsel %vm723_vm2, %v4191_v40, 0.0 }
 0x6ab   : > { %1211 = vadd.xlane.f32.xlu0 %v1210_v42  ;;  %v1638_v42 = vld [vmem:[%s5012_s7 + $0x78] sm:$0xff] }
 0x6c1   : > { %1370 = vrot.lane.b32.xlu0 %v4547_v24, %s4334_s11  ;;  %v1369_v24 = vpop.permute.xlu1 %1368 }
 0x738   : > { %v1212_v48 = vpop.xlane.xlu0 %1211 }
 0x739   : > { %4192 = vrcp.f32 %v1212_v48 }
 0x73c   : > { %v1371_v51 = vpop.permute.xlu0 %1370 }
 0x743   : > { %v4193_v49 = vpop.eup %4192 }
 0x744   : > { %v1214_v50 = vmul.f32 %v4193_v49, %v4191_v40  ;;  %v1636_v40 = vld [vmem:[%s5012_s7 + $0x68] sm:$0xff]  ;;  %v1635_v49 = vld [vmem:[%s5012_s7 + $0x60] sm:$0xff] }
 0x745   : > { %v3935_v44 = vpack.c.bf16 %v1638_v42, %v1636_v40  ;;  %v1735_v40 = vld [vmem:[#allocation6 + $0x38] sm:$0xff]  ;;  %v1752_v42 = vld [vmem:[#allocation6 + $0xc0] sm:$0xff] }
 0x746   : > { %3690 = vmatmul.mubr.msk.f32.vlgmr.msra.gmra.mrb[10].mxu1 %vm723_vm2, %v1214_v50  ;;  %v1637_v50 = vld [vmem:[%s5012_s7 + $0x70] sm:$0xff] }
 0x747   : > { %3704 = vmatpush3.xpose.msk.msra.mxu1 %vm646_vm1, %v1371_v51  ;;  %3705 = vmatprep.mubr.msk.f32.mxu1 %vm4331_vm0, %v4330_v55  ;;  %v3937_v51 = vpack.c.bf16 %v1637_v50, %v1635_v49  ;;  %v1755_v49 = vld [vmem:[#allocation6 + $0xd8] sm:$0xff] }
 0x748   : > { %3708 = vmatprep.subr.mxu1 %v4330_v55 }
 0x74a   : > { %3706 = vmatmul.mubr.msk.f32.vlgmr.msra.gmra.mrb[12].mxu1 %vm646_vm1, %v1369_v24  ;;  %v1640_v24 = vld [vmem:[%s5012_s7 + $0x88] sm:$0xff] }
 0x74b   : > { %3710 = vmatprep.mubr.msk.f32.mxu1 %vm4331_vm0, %v4330_v55 }
 0x819   : > { %v1287_v53 = vpop.f32.mrb[10].mxu1 }
 0x81a   : > { %v3691_v54 = vpop.f32.mrb[11].mxu1  ;;  %3701 = vmatmul.mubr.msk.f32.vlgmr.msra.gmra.mrb[8].mxu0 %vm646_vm1, %v1287_v53  ;;  %v1639_v53 = vld [vmem:[%s5012_s7 + $0x80] sm:$0xff] }
 0x81b   : > { %3721 = vmatprep.mubr.msk.f32.mxu0 %vm4331_vm0, %v4330_v55  ;;  %3919 = vmatpush3.bf16.msra.mxu0 %v3918_v7  ;;  %v1641_v54 = vld [vmem:[%s5012_s7 + $0x90] sm:$0xff]  ;;  %v1654_v7 = vld [vmem:[%s5012_s7 + $0xf8] sm:$0xff] }
 0x81c   : > { %3920 = vmatprep.subr.bf16.mxu0 %v4329_v0 }
 0x81d   : > { %v1442_v57 = vpop.f32.mrb[12].mxu1 }
 0x81e   : > { %v1443_v58 = vadd.f32 %v1442_v57, %v4650_v56  ;;  %v3707_v59 = vpop.f32.mrb[13].mxu1  ;;  %v3941_v57 = vpack.c.bf16 %v1641_v54, %v1639_v53  ;;  %v1757_v53 = vld [vmem:[#allocation6 + $0xe8] sm:$0xff] }
 0x81f   : > { %3922 = vmatpush3.bf16.msra.mxu0 %v3921_v9  ;;  %v1646_v59 = vld [vmem:[%s5012_s7 + $0xb8] sm:$0xff]  ;;  %v3951_v9 = vpack.c.bf16 %v1654_v7, %v1652_v6 }
 0x820   : > { %v1446_v60 = vsel %vm723_vm2, %v1443_v58, -inf  ;;  %v1759_v6 = vld [vmem:[#allocation6 + $0xf8] sm:$0xff] }
 0x821   : > { %1447 = vmax.xlane.f32.xlu1 %v1446_v60  ;;  %v1643_v60 = vld [vmem:[%s5012_s7 + $0xa0] sm:$0xff]  ;;  %v3983_v7 = vpack.c.bf16 %v1759_v6, %v1758_v5  ;;  %v1877_v5 = vld [vmem:[#allocation2 + $0x268] sm:$0xff] }
 0x832   : > { %1457 = vrot.lane.b32.xlu1 %v4543_v22, %s4334_s11 }
 0x8ae   : > { %v1448_v61 = vpop.xlane.xlu1 %1447 }
 0x8af   : > { %v1449_v62 = vsub.f32 %v1443_v58, %v1448_v61  ;;  %v1644_v58 = vld [vmem:[%s5012_s7 + $0xa8] sm:$0xff] }
 0x8b0   : > { %v3943_v61 = vpack.c.bf16 %v1646_v59, %v1644_v58  ;;  %v1740_v58 = vld [vmem:[#allocation6 + $0x60] sm:$0xff]  ;;  %v1741_v59 = vld [vmem:[#allocation6 + $0x68] sm:$0xff] }
 0x8b1   : > { %v1450_v63 = vmul.f32 1.442695, %v1449_v62  ;;  %v1645_v62 = vld [vmem:[%s5012_s7 + $0xb0] sm:$0xff] }
 0x8b2   : > { %v1458_v2 = vpop.permute.xlu1 %1457 }
 0x8b3   : > { %4194 = vpow2.f32 %v1450_v63  ;;  %3709 = vmatpush3.msra.mxu1 %v1458_v2  ;;  %v1648_v63 = vld [vmem:[%s5012_s7 + $0xc8] sm:$0xff]  ;;  %v1650_v2 = vld [vmem:[%s5012_s7 + $0xd8] sm:$0xff] }
 0x8b4   : > { %3924 = vmatprep.subr.bf16.mxu1 %v3923_v20  ;;  %v3959_v20 = vpack.c.bf16 %v1747_v18, %v1746_v17  ;;  %v1851_v18 = vld [vmem:[#allocation2 + $0x198] sm:$0xff] }
 0x8bd   : > { %v4195_v33 = vpop.eup %4194 }
 0x8be   : > { %v1452_v3 = vsel %vm723_vm2, %v4195_v33, 0.0 }
 0x8bf   : > { %1453 = vadd.xlane.f32.xlu0 %v1452_v3  ;;  %v3947_v3 = vpack.c.bf16 %v1650_v2, %v1648_v63 }
 0x8ed   : > { %v1360_v22 = vpop.f32.mrb[8].mxu0 }
 0x8ee   : > { %v1364_v10 = vadd.f32 %v1360_v22, %v4620_v27  ;;  %v3702_v11 = vpop.f32.mrb[9].mxu0  ;;  %v3925_v27 = vpack.c.bf16 %v1625_v23, %v1623_v19  ;;  %v1651_v22 = vld [vmem:[%s5012_s7 + $0xe0] sm:$0xff]  ;;  %v1730_v23 = vld [vmem:[#allocation6 + $0x10] sm:$0xff] }
 0x94c   : > { %v1454_v12 = vpop.xlane.xlu0 %1453 }
 0x94d   : > { %4196 = vrcp.f32 %v1454_v12  ;;  %v1744_v12 = vld [vmem:[#allocation6 + $0x80] sm:$0xff] }
 0x957   : > { %v4197_v13 = vpop.eup %4196 }
 0x958   : > { %v1456_v14 = vmul.f32 %v4197_v13, %v4195_v33  ;;  %v3945_v33 = vpack.c.bf16 %v1645_v62, %v1643_v60  ;;  %v1745_v13 = vld [vmem:[#allocation6 + $0x88] sm:$0xff]  ;;  %v3981_v60 = vpack.c.bf16 %v1741_v59, %v1740_v58  ;;  %v1868_v58 = vld [vmem:[#allocation2 + $0x220] sm:$0xff] }
 0x95a   : > { %3711 = vmatmul.mubr.msk.f32.vlgmr.msra.gmra.mrb[14].mxu1 %vm723_vm2, %v1456_v14  ;;  %v1728_v14 = vld [vmem:[#allocation6] sm:$0xff] }
 0x95b   : > { %1719 = vmatprep.mubr.f32.mxu1 %v4330_v55  ;;  %3926 = vmatpush1.bf16.msra.mxu1 %v3925_v27  ;;  %v1749_v27 = vld [vmem:[#allocation6 + $0xa8] sm:$0xff] }
 0x95c   : > { %3928 = vmatprep.subr.bf16.mxu1 %v3927_v28  ;;  %v3961_v28 = vpack.c.bf16 %v1731_v25, %v1730_v23  ;;  %v3963_v30 = vpack.c.bf16 %v1749_v27, %v1748_v26  ;;  %v1855_v26 = vld [vmem:[#allocation2 + $0x1b8] sm:$0xff]  ;;  %v1858_v27 = vld [vmem:[#allocation2 + $0x1d0] sm:$0xff] }
 0x95f   : > { %3930 = vmatpush1.bf16.msra.mxu1 %v3929_v36  ;;  %v1751_v36 = vld [vmem:[#allocation6 + $0xb8] sm:$0xff] }
 0x960   : > { %3932 = vmatprep.subr.bf16.mxu1 %v3931_v37  ;;  %v3965_v37 = vpack.c.bf16 %v1733_v32, %v1732_v31  ;;  %v3967_v38 = vpack.c.bf16 %v1751_v36, %v1750_v34  ;;  %v1857_v31 = vld [vmem:[#allocation2 + $0x1c8] sm:$0xff]  ;;  %v1856_v32 = vld [vmem:[#allocation2 + $0x1c0] sm:$0xff]  ;;  %v1859_v34 = vld [vmem:[#allocation2 + $0x1d8] sm:$0xff] }
 0x963   : > { %3934 = vmatpush1.bf16.msra.mxu1 %v3933_v43  ;;  %v1753_v43 = vld [vmem:[#allocation6 + $0xc8] sm:$0xff] }
 0x964   : > { %3936 = vmatprep.subr.bf16.mxu1 %v3935_v44  ;;  %v3969_v44 = vpack.c.bf16 %v1735_v40, %v1734_v39  ;;  %v1864_v39 = vld [vmem:[#allocation2 + $0x200] sm:$0xff] }
 0x965   : > { %v1860_v40 = vld [vmem:[#allocation2 + $0x1e0] sm:$0xff] }
 0x967   : > { %3938 = vmatpush1.bf16.msra.mxu1 %v3937_v51 }
 0xa2d   : > { %v1529_v15 = vpop.f32.mrb[14].mxu1 }
 0xa2e   : > { %v3712_v16 = vpop.f32.mrb[15].mxu1  ;;  %3722 = vmatmul.mubr.msk.f32.vlgmr.msra.gmra.mrb[10].mxu0 %vm646_vm1, %v1529_v15  ;;  %v3955_v15 = vpack.c.bf16 %v1745_v13, %v1744_v12 }
 0xa2f   : > { %v1729_v16 = vld [vmem:[#allocation6 + $0x8] sm:$0xff] }
 0xa30   : > { %v3957_v19 = vpack.c.bf16 %v1729_v16, %v1728_v14  ;;  %3956 = vmatprep.subr.bf16.mxu0 %v3955_v15  ;;  %v1849_v14 = vld [vmem:[#allocation2 + $0x188] sm:$0xff]  ;;  %v1852_v15 = vld [vmem:[#allocation2 + $0x1a0] sm:$0xff] }
 0xa31   : > { %v1848_v16 = vld [vmem:[#allocation2 + $0x180] sm:$0xff]  ;;  %v3987_v17 = vpack.c.bf16 %v1852_v15, %v1849_v14  ;;  %v1885_v15 = vld [vmem:[#allocation2 + $0x2a8] sm:$0xff] }
 0xa32   : > { %3958 = vmatpush3.bf16.msra.mxu0 %v3957_v19  ;;  %v1850_v19 = vld [vmem:[#allocation2 + $0x190] sm:$0xff]  ;;  %v3989_v23 = vpack.c.bf16 %v1851_v18, %v1848_v16  ;;  %v1888_v16 = vld [vmem:[#allocation2 + $0x2c0] sm:$0xff] }
 0xa33   : > { %3960 = vmatprep.subr.bf16.mxu0 %v3959_v20  ;;  %v1853_v20 = vld [vmem:[#allocation2 + $0x1a8] sm:$0xff]  ;;  %v4011_v18 = vpack.c.bf16 %v1888_v16, %v1885_v15  ;;  %v2038_v16 = vld [vmem:[#allocation4 + $0x80] sm:$0xff] }
 0xa34   : > { %v4020_v25 = vpack.c.bf16 %v1853_v20, %v1850_v19  ;;  %v1887_v19 = vld [vmem:[#allocation2 + $0x2b8] sm:$0xff]  ;;  %v1886_v20 = vld [vmem:[#allocation2 + $0x2b0] sm:$0xff] }
 0xa36   : > { %3962 = vmatpush3.bf16.msra.mxu0 %v3961_v28  ;;  %v1854_v28 = vld [vmem:[#allocation2 + $0x1b0] sm:$0xff] }
 0xa37   : > { %3964 = vmatprep.subr.bf16.mxu0 %v3963_v30  ;;  %v3991_v30 = vpack.c.bf16 %v1858_v27, %v1855_v26  ;;  %v3993_v36 = vpack.c.bf16 %v1857_v31, %v1854_v28  ;;  %v1894_v26 = vld [vmem:[#allocation2 + $0x2f0] sm:$0xff] }
 0xa38   : > { %v1890_v31 = vld [vmem:[#allocation2 + $0x2d0] sm:$0xff] }
 0xa3a   : > { %3966 = vmatpush3.bf16.msra.mxu0 %v3965_v37  ;;  %v4023_v37 = vpack.c.bf16 %v1859_v34, %v1856_v32  ;;  %v1893_v32 = vld [vmem:[#allocation2 + $0x2e8] sm:$0xff]  ;;  %v1892_v34 = vld [vmem:[#allocation2 + $0x2e0] sm:$0xff] }
 0xa3b   : > { %3968 = vmatprep.subr.bf16.mxu0 %v3967_v38  ;;  %v1861_v38 = vld [vmem:[#allocation2 + $0x1e8] sm:$0xff] }
 0xa3e   : > { %3970 = vmatpush3.bf16.msra.mxu0 %v3969_v44  ;;  %v1862_v44 = vld [vmem:[#allocation2 + $0x1f0] sm:$0xff] }
 0xb01   : > { %v1602_v45 = vpop.f32.mrb[10].mxu0 }
 0xb02   : > { %v1606_v46 = vadd.f32 %v1602_v45, %v1364_v10  ;;  %v3723_v21 = vpop.f32.mrb[11].mxu0  ;;  %v1653_v10 = vld [vmem:[%s5012_s7 + $0xf0] sm:$0xff]  ;;  %v3971_v45 = vpack.c.bf16 %v1753_v43, %v1752_v42  ;;  %v3995_v42 = vpack.c.bf16 %v1864_v39, %v1861_v38  ;;  %v1863_v43 = vld [vmem:[#allocation2 + $0x1f8] sm:$0xff] }
 0xb03   : > { %v3953_v11 = vpack.c.bf16 %v1653_v10, %v1651_v22  ;;  %v1737_v21 = vld [vmem:[#allocation6 + $0x48] sm:$0xff] }
 0xb04   : > { %v4707_v47 = vadd.f32 %v1606_v46, %v4517_v1  ;;  %v1642_v1 = vld [vmem:[%s5012_s7 + $0x98] sm:$0xff]  ;;  %v1736_v46 = vld [vmem:[#allocation6 + $0x40] sm:$0xff]  ;;  %3972 = vmatprep.subr.bf16.mxu0 %v3971_v45  ;;  %v1865_v45 = vld [vmem:[#allocation2 + $0x208] sm:$0xff] }
 0xb05   : > { %v3939_v52 = vpack.c.bf16 %v1642_v1, %v1640_v24  ;;  %v3973_v50 = vpack.c.bf16 %v1737_v21, %v1736_v46  ;;  %v1738_v24 = vld [vmem:[#allocation6 + $0x50] sm:$0xff]  ;;  %v1739_v1 = vld [vmem:[#allocation6 + $0x58] sm:$0xff] }
 0xb06   : > { %v1609_v48 = vmul.f32 %v4707_v47, %v4707_v47  ;;  %v3977_v54 = vpack.c.bf16 %v1739_v1, %v1738_v24  ;;  %v1867_v46 = vld [vmem:[#allocation2 + $0x218] sm:$0xff]  ;;  %v1870_v21 = vld [vmem:[#allocation2 + $0x230] sm:$0xff] }
 0xb07   : > { %3940 = vmatprep.subr.bf16.mxu1 %v3939_v52  ;;  %v1756_v52 = vld [vmem:[#allocation6 + $0xe0] sm:$0xff]  ;;  %3974 = vmatpush3.bf16.msra.mxu0 %v3973_v50  ;;  %v3999_v50 = vpack.c.bf16 %v1870_v21, %v1867_v46 }
 0xb08   : > { %1610 = vadd.xlane.f32.xlu0 %v1609_v48  ;;  %3942 = vmatpush1.bf16.msra.mxu1 %v3941_v57  ;;  %v1754_v48 = vld [vmem:[#allocation6 + $0xd0] sm:$0xff]  ;;  %v3979_v57 = vpack.c.bf16 %v1757_v53, %v1756_v52 }
 0xb09   : > { %3944 = vmatprep.subr.bf16.mxu1 %v3943_v61  ;;  %v3975_v51 = vpack.c.bf16 %v1755_v49, %v1754_v48  ;;  %v3997_v48 = vpack.c.bf16 %v1863_v43, %v1860_v40  ;;  %v4026_v49 = vpack.c.bf16 %v1865_v45, %v1862_v44  ;;  %v3375_v44 = vld [vmem:[%s5008_s3 + $0x1] ss:$0 sm:$0xff] }
 0xb0b   : > { %3976 = vmatprep.subr.bf16.mxu0 %v3975_v51 }
 0xb0c   : > { %3946 = vmatpush1.bf16.msra.mxu1 %v3945_v33  ;;  %3978 = vmatpush3.bf16.msra.mxu0 %v3977_v54  ;;  %v3373_v33 = vld [vmem:[%s5011_s6] ss:$0 sm:$0xff]  ;;  %v1866_v54 = vld [vmem:[#allocation2 + $0x210] sm:$0xff] }
 0xb0d   : > { %3948 = vmatprep.subr.bf16.mxu1 %v3947_v3  ;;  %3980 = vmatprep.subr.bf16.mxu0 %v3979_v57  ;;  %v1869_v57 = vld [vmem:[#allocation2 + $0x228] sm:$0xff] }
 0xb0e   : > { %v4001_v59 = vpack.c.bf16 %v1869_v57, %v1866_v54 }
 0xb10   : > { %3950 = vmatpush1.bf16.msra.mxu1 %v3949_v8  ;;  %3982 = vmatpush3.bf16.msra.mxu0 %v3981_v60  ;;  %v1742_v8 = vld [vmem:[#allocation6 + $0x70] sm:$0xff]  ;;  %v1871_v60 = vld [vmem:[#allocation2 + $0x238] sm:$0xff] }
 0xb11   : > { %3952 = vmatprep.subr.bf16.mxu1 %v3951_v9  ;;  %v1743_v9 = vld [vmem:[#allocation6 + $0x78] sm:$0xff]  ;;  %3984 = vmatprep.subr.bf16.mxu0 %v3983_v7 }
 0xb12   : > { %v3985_v22 = vpack.c.bf16 %v1743_v9, %v1742_v8  ;;  %v1879_v7 = vld [vmem:[#allocation2 + $0x278] sm:$0xff]  ;;  %v1882_v8 = vld [vmem:[#allocation2 + $0x290] sm:$0xff] }
 0xb13   : > { %v1878_v9 = vld [vmem:[#allocation2 + $0x270] sm:$0xff] }
 0xb14   : > { %3954 = vmatpush1.bf16.msra.mxu1 %v3953_v11  ;;  %3986 = vmatpush3.bf16.msra.mxu0 %v3985_v22  ;;  %v4007_v22 = vpack.c.bf16 %v1882_v8, %v1879_v7 }
 0xb15   : > { %4019 = vmatprep.subr.bf16.mxu0 %v4329_v0  ;;  %3988 = vmatprep.subr.bf16.mxu1 %v3987_v17  ;;  %v1884_v17 = vld [vmem:[#allocation2 + $0x2a0] sm:$0xff] }
 0xb16   : > { %v4013_v27 = vpack.c.bf16 %v1887_v19, %v1884_v17  ;;  %v2039_v17 = vld [vmem:[#allocation4 + $0x88] sm:$0xff] }
 0xb17   : > { %v4050_v19 = vpack.c.bf16 %v2039_v17, %v2038_v16 }
 0xb95   : > { %v1611_v61 = vpop.xlane.xlu0 %1610 }
 0xb96   : > { %v1612_v62 = vmul.f32 0.0078125, %v1611_v61  ;;  %v4029_v61 = vpack.c.bf16 %v1871_v60, %v1868_v58 }
 0xb98   : > { %v1613_v63 = vadd.f32 1e-06, %v1612_v62  ;;  %v1873_v62 = vld [vmem:[#allocation2 + $0x248] sm:$0xff] }
 0xb9a   : > { %4198 = vrsqrt.f32 %v1613_v63  ;;  %v1876_v63 = vld [vmem:[#allocation2 + $0x260] sm:$0xff] }
 0xba4   : > { %v4199_v2 = vpop.eup %4198 }
 0xba5   : > { %v1615_v3 = vmul.f32 %v4199_v2, %v4707_v47  ;;  %v4003_v2 = vpack.c.bf16 %v1876_v63, %v1873_v62 }
 0xba7   : > { %v1622_v4 = vmul.f32 %v3373_v33, %v1615_v3  ;;  %v1872_v33 = vld [vmem:[#allocation2 + $0x240] sm:$0xff]  ;;  %v1875_v3 = vld [vmem:[#allocation2 + $0x258] sm:$0xff] }
 0xba9   : > { %1720 = vmatmul.mubr.f32.vlgmr.msra.gmra.mrb[16].mxu1 %v1622_v4  ;;  %v1874_v4 = vld [vmem:[#allocation2 + $0x250] sm:$0xff] }
 0xbaa   : > { %1960 = vmatprep.mubr.f32.mxu1 %v4330_v55  ;;  %3990 = vmatpush1.bf16.msra.mxu1 %v3989_v23  ;;  %v4032_v6 = vpack.c.bf16 %v1877_v5, %v1874_v4  ;;  %v1889_v23 = vld [vmem:[#allocation2 + $0x2c8] sm:$0xff] }
 0xbab   : > { %3992 = vmatprep.subr.bf16.mxu1 %v3991_v30  ;;  %v4038_v28 = vpack.c.bf16 %v1889_v23, %v1886_v20  ;;  %v2040_v23 = vld [vmem:[#allocation4 + $0x90] sm:$0xff] }
 0xbae   : > { %3994 = vmatpush1.bf16.msra.mxu1 %v3993_v36  ;;  %v1895_v36 = vld [vmem:[#allocation2 + $0x2f8] sm:$0xff] }
 0xbaf   : > { %3996 = vmatprep.subr.bf16.mxu1 %v3995_v42  ;;  %v4041_v38 = vpack.c.bf16 %v1895_v36, %v1892_v34 }
 0xbb2   : > { %3998 = vmatpush1.bf16.msra.mxu1 %v3997_v48 }
 0xbb3   : > { %4000 = vmatprep.subr.bf16.mxu1 %v3999_v50 }
 0xbb6   : > { %4002 = vmatpush1.bf16.msra.mxu1 %v4001_v59 }
 0xbb7   : > { %4004 = vmatprep.subr.bf16.mxu1 %v4003_v2 }
 0xc7c   : > { %v1721_v10 = vpop.f32.mrb[16].mxu1 }
 0xc7d   : > { %v1723_v11 = vpop.f32.mrb[17].mxu1  ;;  %v1726_v13 = vmax.f32 %v1721_v10, 0.0  ;;  %v1881_v10 = vld [vmem:[#allocation2 + $0x288] sm:$0xff] }
 0xc7e   : > { %v1727_v12 = vmax.f32 %v1723_v11, 0.0  ;;  %v1880_v11 = vld [vmem:[#allocation2 + $0x280] sm:$0xff] }
 0xc80   : > { %1824 = vmatprep.mubr.f32.mxu0 %v1727_v12  ;;  %v1883_v12 = vld [vmem:[#allocation2 + $0x298] sm:$0xff] }
 0xc81   : > { %1825 = vmatmul.mubr.f32.vlgmr.msra.gmra.mrb[12].mxu0 %v1726_v13  ;;  %v4009_v13 = vpack.c.bf16 %v1881_v10, %v1878_v9  ;;  %v4035_v14 = vpack.c.bf16 %v1883_v12, %v1880_v11  ;;  %v2043_v10 = vld [vmem:[#allocation4 + $0xa8] sm:$0xff]  ;;  %v2044_v11 = vld [vmem:[#allocation4 + $0xb0] sm:$0xff] }
 0xc82   : > { %3756 = vmatprep.mubr.msk.f32.mxu0 %vm4331_vm0, %v4330_v55  ;;  %4021 = vmatpush3.bf16.msra.mxu0 %v4020_v25  ;;  %v1891_v25 = vld [vmem:[#allocation2 + $0x2d8] sm:$0xff] }
 0xc83   : > { %4022 = vmatprep.subr.bf16.mxu0 %v4329_v0  ;;  %v4015_v30 = vpack.c.bf16 %v1894_v26, %v1891_v25  ;;  %v2041_v25 = vld [vmem:[#allocation4 + $0x98] sm:$0xff] }
 0xc84   : > { %v4053_v26 = vpack.c.bf16 %v2041_v25, %v2040_v23  ;;  %v3397_v23 = vld [vmem:[%s5012_s7 + $0x118] sm:$0xff]  ;;  %v3394_v25 = vld [vmem:[%s5012_s7 + $0x100] sm:$0xff] }
 0xc86   : > { %4024 = vmatpush3.bf16.msra.mxu0 %v4023_v37  ;;  %v4017_v37 = vpack.c.bf16 %v1893_v32, %v1890_v31 }
 0xc87   : > { %4025 = vmatprep.subr.bf16.mxu0 %v4329_v0 }
 0xc8a   : > { %4027 = vmatpush3.bf16.msra.mxu0 %v4026_v49 }
 0xc8b   : > { %4028 = vmatprep.subr.bf16.mxu0 %v4329_v0 }
 0xc8e   : > { %4030 = vmatpush3.bf16.msra.mxu0 %v4029_v61 }
 0xc8f   : > { %4031 = vmatprep.subr.bf16.mxu0 %v4329_v0 }
 0xc92   : > { %4033 = vmatpush3.bf16.msra.mxu0 %v4032_v6 }
 0xc93   : > { %4034 = vmatprep.subr.bf16.mxu0 %v4329_v0 }
 0xc96   : > { %4036 = vmatpush3.bf16.msra.mxu0 %v4035_v14 }
 0xc97   : > { %4037 = vmatprep.subr.bf16.mxu0 %v4329_v0 }
 0xc9a   : > { %4039 = vmatpush3.bf16.msra.mxu0 %v4038_v28 }
 0xc9b   : > { %4040 = vmatprep.subr.bf16.mxu0 %v4329_v0 }
 0xc9e   : > { %4042 = vmatpush3.bf16.msra.mxu0 %v4041_v38 }
 0xc9f   : > { %3769 = vmatprep.subr.mxu0 %v4330_v55 }
 0xd54   : > { %v3514_v51 = vpop.f32.mrb[12].mxu0 }
 0xd55   : > { %v3515_v24 = vpop.f32.mrb[13].mxu0 }
 0xd56   : > { %v3516_v1 = vadd.f32 %v3515_v24, %v3514_v51 }
 0xd58   : > { %v4777_v52 = vadd.f32 %v3516_v1, %v4707_v47  ;;  %v4005_v47 = vpack.c.bf16 %v1875_v3, %v1872_v33 }
 0xd5a   : > { %v1833_v53 = vmul.f32 %v4777_v52, %v4777_v52  ;;  %4006 = vmatpush1.bf16.msra.mxu1 %v4005_v47 }
 0xd5b   : > { %4008 = vmatprep.subr.bf16.mxu1 %v4007_v22  ;;  %v2042_v22 = vld [vmem:[#allocation4 + $0xa0] sm:$0xff] }
 0xd5c   : > { %1834 = vadd.xlane.f32.xlu0 %v1833_v53  ;;  %v4044_v12 = vpack.c.bf16 %v2043_v10, %v2042_v22  ;;  %v2051_v22 = vld [vmem:[#allocation4 + $0xe8] sm:$0xff]  ;;  %v2052_v10 = vld [vmem:[#allocation4 + $0xf0] sm:$0xff] }
 0xd5e   : > { %4010 = vmatpush1.bf16.msra.mxu1 %v4009_v13  ;;  %v2045_v13 = vld [vmem:[#allocation4 + $0xb8] sm:$0xff] }
 0xd5f   : > { %4012 = vmatprep.subr.bf16.mxu1 %v4011_v18  ;;  %v4047_v14 = vpack.c.bf16 %v2045_v13, %v2044_v11 }
 0xd62   : > { %4014 = vmatpush1.bf16.msra.mxu1 %v4013_v27 }
 0xd63   : > { %4016 = vmatprep.subr.bf16.mxu1 %v4015_v30 }
 0xd66   : > { %4018 = vmatpush1.bf16.msra.mxu1 %v4017_v37 }
 0xd67   : > { %3759 = vmatprep.subr.mxu1 %v4330_v55 }
 0xde9   : > { %v1835_v39 = vpop.xlane.xlu0 %1834 }
 0xdea   : > { %v1836_v40 = vmul.f32 0.0078125, %v1835_v39 }
 0xdec   : > { %v1837_v42 = vadd.f32 1e-06, %v1836_v40 }
 0xdee   : > { %4200 = vrsqrt.f32 %v1837_v42 }
 0xdf8   : > { %v4201_v43 = vpop.eup %4200 }
 0xdf9   : > { %v1839_v45 = vmul.f32 %v4201_v43, %v4777_v52 }
 0xdfb   : > { %v1846_v46 = vmul.f32 %v3375_v44, %v1839_v45 }
 0xdfd   : > { %1961 = vmatmul.mubr.f32.vlgmr.msra.gmra.mrb[18].mxu1 %v1846_v46  ;;  %3757 = vmatmul.mubr.f32.vlgmr.msra.gmra.mrb[14].mxu0 %v1846_v46 }
 0xdfe   : > { %3761 = vmatprep.mubr.msk.f32.mxu1 %vm4331_vm0, %v4330_v55  ;;  %3771 = vmatprep.mubr.msk.f32.mxu0 %vm4331_vm0, %v4330_v55 }
 0xed0   : > { %v4795_v21 = vpop.f32.mrb[18].mxu1  ;;  %v4797_v48 = vpop.f32.mrb[14].mxu0 }
 0xed1   : > { %v3758_v49 = vpop.f32.mrb[15].mxu0  ;;  %2214 = vrot.lane.b32.xlu1 %v4795_v21, %s4332_s18  ;;  %v4801_v50 = vpop.f32.mrb[19].mxu1 }
 0xed2   : > { %2216 = vrot.lane.b32.xlu0 %v4801_v50, %s4332_s18  ;;  %3760 = vmatpush3.xpose.msk.msra.mxu1 %vm646_vm1, %v4801_v50 }
 0xed3   : > { %3764 = vmatprep.subr.mxu1 %v4330_v55 }
 0xed5   : > { %3762 = vmatmul.mubr.msk.f32.vlgmr.msra.gmra.mrb[20].mxu1 %vm646_vm1, %v4795_v21 }
 0xed6   : > { %3765 = vmatpush3.msra.mxu1 %v4797_v48  ;;  %3766 = vmatprep.mubr.msk.f32.mxu1 %vm4331_vm0, %v4330_v55 }
 0xed7   : > { %3774 = vmatprep.subr.mxu1 %v4330_v55 }
 0xf43   : > { %v2215_v24 = vpop.permute.xlu1 %2214 }
 0xf44   : > { %v2217_v51 = vpop.permute.xlu0 %2216 }
 0xf45   : > { %3770 = vmatpush3.xpose.msk.msra.mxu0 %vm646_vm1, %v2217_v51 }
 0xf46   : > { %4043 = vmatprep.subr.bf16.mxu0 %v4329_v0 }
 0xf48   : > { %3772 = vmatmul.mubr.msk.f32.vlgmr.msra.gmra.mrb[16].mxu0 %vm646_vm1, %v2215_v24 }
 0xf49   : > { %3787 = vmatprep.mubr.msk.f32.mxu0 %vm4331_vm0, %v4330_v55  ;;  %4045 = vmatpush3.bf16.msra.mxu0 %v4044_v12 }
 0xf4a   : > { %4046 = vmatprep.subr.bf16.mxu0 %v4329_v0 }
 0xf4d   : > { %4048 = vmatpush3.bf16.msra.mxu0 %v4047_v14 }
 0xf4e   : > { %3801 = vmatprep.subr.mxu0 %v4330_v55 }
 0xfa8   : > { %v2126_v1 = vpop.f32.mrb[20].mxu1 }
 0xfa9   : > { %v2127_v53 = vadd.f32 %v2126_v1, %v4575_v35  ;;  %v3763_v54 = vpop.f32.mrb[21].mxu1 }
 0xfaa   : > { %v2047_v54 = vld [vmem:[#allocation4 + $0xc8] sm:$0xff] }
 0xfab   : > { %v2130_v57 = vsel %vm723_vm2, %v2127_v53, -inf }
 0xfac   : > { %2131 = vmax.xlane.f32.xlu1 %v2130_v57  ;;  %v2048_v57 = vld [vmem:[#allocation4 + $0xd0] sm:$0xff] }
0x101b   : > { %v2288_v58 = vpop.f32.mrb[16].mxu0 }
0x101c   : > { %v2289_v59 = vadd.f32 %v2288_v58, %v4583_v41  ;;  %v3773_v60 = vpop.f32.mrb[17].mxu0 }
0x101e   : > { %v2292_v61 = vsel %vm723_vm2, %v2289_v59, -inf }
0x101f   : > { %2293 = vmax.xlane.f32.xlu0 %v2292_v61 }
0x1035   : > { %2304 = vrot.lane.b32.xlu0 %v4797_v48, %s4332_s18 }
0x1039   : > { %v2132_v62 = vpop.xlane.xlu1 %2131 }
0x103a   : > { %v2133_v63 = vsub.f32 %v2127_v53, %v2132_v62  ;;  %v2046_v53 = vld [vmem:[#allocation4 + $0xc0] sm:$0xff] }
0x103b   : > { %v4056_v58 = vpack.c.bf16 %v2047_v54, %v2046_v53  ;;  %v3406_v53 = vld [vmem:[%s5012_s7 + $0x160] sm:$0xff]  ;;  %v3408_v54 = vld [vmem:[%s5012_s7 + $0x170] sm:$0xff] }
0x103c   : > { %v2134_v2 = vmul.f32 1.442695, %v2133_v63 }
0x103e   : > { %4202 = vpow2.f32 %v2134_v2 }
0x1048   : > { %v4203_v33 = vpop.eup %4202 }
0x1049   : > { %v2136_v35 = vsel %vm723_vm2, %v4203_v33, 0.0 }
0x104a   : > { %2137 = vadd.xlane.f32.xlu1 %v2136_v35 }
0x10ac   : > { %v2294_v3 = vpop.xlane.xlu0 %2293 }
0x10ad   : > { %v2295_v4 = vsub.f32 %v2289_v59, %v2294_v3 }
0x10af   : > { %v2296_v47 = vmul.f32 1.442695, %v2295_v4 }
0x10b0   : > { %v2305_v9 = vpop.permute.xlu0 %2304 }
0x10b1   : > { %4204 = vpow2.f32 %v2296_v47 }
0x10bb   : > { %v4205_v41 = vpop.eup %4204 }
0x10bc   : > { %v2298_v5 = vsel %vm723_vm2, %v4205_v41, 0.0 }
0x10bd   : > { %2299 = vadd.xlane.f32.xlu1 %v2298_v5 }
0x10ce   : > { %2528 = vrot.lane.b32.xlu1 %v4801_v50, %s4333_s15 }
0x10d2   : > { %2526 = vrot.lane.b32.xlu1 %v4795_v21, %s4333_s15 }
0x10d7   : > { %v2138_v6 = vpop.xlane.xlu1 %2137 }
0x10d8   : > { %4206 = vrcp.f32 %v2138_v6 }
0x10e2   : > { %v4207_v7 = vpop.eup %4206 }
0x10e3   : > { %v2140_v8 = vmul.f32 %v4207_v7, %v4203_v33 }
0x10e5   : > { %3767 = vmatmul.mubr.msk.f32.vlgmr.msra.gmra.mrb[22].mxu1 %vm723_vm2, %v2140_v8 }
0x10e6   : > { %3775 = vmatpush3.msra.mxu1 %v2305_v9  ;;  %3776 = vmatprep.mubr.msk.f32.mxu1 %vm4331_vm0, %v4330_v55  ;;  %v2050_v9 = vld [vmem:[#allocation4 + $0xe0] sm:$0xff] }
0x10e7   : > { %4049 = vmatprep.subr.bf16.mxu1 %v4329_v0  ;;  %v4062_v11 = vpack.c.bf16 %v2051_v22, %v2050_v9  ;;  %v3422_v22 = vld [vmem:[%s5012_s7 + $0x1e0] sm:$0xff] }
0x114a   : > { %v2300_v15 = vpop.xlane.xlu1 %2299 }
0x114b   : > { %4208 = vrcp.f32 %v2300_v15 }
0x114e   : > { %v2529_v30 = vpop.permute.xlu1 %2528 }
0x1152   : > { %v2527_v34 = vpop.permute.xlu1 %2526 }
0x1155   : > { %v4209_v18 = vpop.eup %4208 }
0x1156   : > { %v2302_v20 = vmul.f32 %v4209_v18, %v4205_v41 }
0x1158   : > { %3777 = vmatmul.mubr.msk.f32.vlgmr.msra.gmra.mrb[24].mxu1 %vm723_vm2, %v2302_v20 }
0x1159   : > { %4051 = vmatpush3.bf16.msra.mxu1 %v4050_v19  ;;  %3798 = vmatprep.mubr.msk.f32.mxu1 %vm4331_vm0, %v4330_v55 }
0x115a   : > { %4052 = vmatprep.subr.bf16.mxu1 %v4329_v0 }
0x115d   : > { %4054 = vmatpush3.bf16.msra.mxu1 %v4053_v26 }
0x115e   : > { %3806 = vmatprep.subr.mxu1 %v4330_v55 }
0x11b8   : > { %v2210_v27 = vpop.f32.mrb[22].mxu1 }
0x11b9   : > { %v3768_v28 = vpop.f32.mrb[23].mxu1  ;;  %3799 = vmatmul.mubr.msk.f32.vlgmr.msra.gmra.mrb[26].mxu1 %vm646_vm1, %v2210_v27  ;;  %v3399_v27 = vld [vmem:[%s5012_s7 + $0x128] sm:$0xff] }
0x11ba   : > { %3808 = vmatprep.mubr.msk.f32.mxu1 %vm4331_vm0, %v4330_v55  ;;  %v3401_v28 = vld [vmem:[%s5012_s7 + $0x138] sm:$0xff] }
0x122b   : > { %v2376_v31 = vpop.f32.mrb[24].mxu1 }
0x122c   : > { %v3778_v32 = vpop.f32.mrb[25].mxu1  ;;  %3788 = vmatmul.mubr.msk.f32.vlgmr.msra.gmra.mrb[18].mxu0 %vm646_vm1, %v2376_v31  ;;  %v4071_v31 = vpack.c.bf16 %v3401_v28, %v3399_v27  ;;  %v3133_v27 = vld [vmem:[#allocation6 + $0x128] sm:$0xff]  ;;  %v3150_v28 = vld [vmem:[#allocation6 + $0x1b0] sm:$0xff] }
0x122d   : > { %3802 = vmatpush3.xpose.msk.msra.mxu0 %vm646_vm1, %v2529_v30  ;;  %3803 = vmatprep.mubr.msk.f32.mxu0 %vm4331_vm0, %v4330_v55  ;;  %v3398_v32 = vld [vmem:[%s5012_s7 + $0x120] sm:$0xff] }
0x122e   : > { %4055 = vmatprep.subr.bf16.mxu0 %v4329_v0 }
0x1230   : > { %3804 = vmatmul.mubr.msk.f32.vlgmr.msra.gmra.mrb[20].mxu0 %vm646_vm1, %v2527_v34  ;;  %v3400_v34 = vld [vmem:[%s5012_s7 + $0x130] sm:$0xff] }
0x1231   : > { %3819 = vmatprep.mubr.msk.f32.mxu0 %vm4331_vm0, %v4330_v55  ;;  %4057 = vmatpush3.bf16.msra.mxu0 %v4056_v58  ;;  %v3411_v58 = vld [vmem:[%s5012_s7 + $0x188] sm:$0xff] }
0x1232   : > { %4058 = vmatprep.subr.bf16.mxu0 %v4329_v0 }
0x128c   : > { %v2522_v36 = vpop.f32.mrb[26].mxu1 }
0x128d   : > { %v3800_v37 = vpop.f32.mrb[27].mxu1 }
0x128e   : > { %v3405_v37 = vld [vmem:[%s5012_s7 + $0x158] sm:$0xff] }
0x12ff   : > { %v2449_v38 = vpop.f32.mrb[18].mxu0 }
0x1300   : > { %v4853_v39 = vadd.f32 %v2522_v36, %v2449_v38  ;;  %v3789_v40 = vpop.f32.mrb[19].mxu0  ;;  %v3403_v36 = vld [vmem:[%s5012_s7 + $0x148] sm:$0xff]  ;;  %v4073_v38 = vpack.c.bf16 %v3400_v34, %v3398_v32  ;;  %v3134_v34 = vld [vmem:[#allocation6 + $0x130] sm:$0xff] }
0x1301   : > { %v3402_v40 = vld [vmem:[%s5012_s7 + $0x140] sm:$0xff] }
0x1303   : > { %v2600_v42 = vpop.f32.mrb[20].mxu0 }
0x1304   : > { %v2601_v43 = vadd.f32 %v2600_v42, %v4623_v29  ;;  %v3805_v44 = vpop.f32.mrb[21].mxu0  ;;  %v3404_v42 = vld [vmem:[%s5012_s7 + $0x150] sm:$0xff] }
0x1305   : > { %v3409_v44 = vld [vmem:[%s5012_s7 + $0x178] sm:$0xff] }
0x1306   : > { %v2604_v45 = vsel %vm723_vm2, %v2601_v43, -inf }
0x1307   : > { %2605 = vmax.xlane.f32.xlu0 %v2604_v45  ;;  %v4077_v45 = vpack.c.bf16 %v3404_v42, %v3402_v40  ;;  %v3136_v42 = vld [vmem:[#allocation6 + $0x140] sm:$0xff] }
0x131d   : > { %2615 = vrot.lane.b32.xlu0 %v4797_v48, %s4333_s15 }
0x1321   : > { %2765 = vrot.lane.b32.xlu0 %v4795_v21, %s4334_s11  ;;  %v2049_v21 = vld [vmem:[#allocation4 + $0xd8] sm:$0xff] }
0x1322   : > { %v4059_v59 = vpack.c.bf16 %v2049_v21, %v2048_v57  ;;  %v4081_v57 = vpack.c.bf16 %v3408_v54, %v3406_v53  ;;  %v3157_v53 = vld [vmem:[#allocation6 + $0x1e8] sm:$0xff] }
0x1324   : > { %4060 = vmatpush3.bf16.msra.mxu0 %v4059_v59  ;;  %v3410_v59 = vld [vmem:[%s5012_s7 + $0x180] sm:$0xff] }
0x1325   : > { %4061 = vmatprep.subr.bf16.mxu0 %v4329_v0 }
0x1394   : > { %v2606_v46 = vpop.xlane.xlu0 %2605 }
0x1395   : > { %v2607_v49 = vsub.f32 %v2601_v43, %v2606_v46  ;;  %v3407_v43 = vld [vmem:[%s5012_s7 + $0x168] sm:$0xff] }
0x1396   : > { %v4079_v46 = vpack.c.bf16 %v3409_v44, %v3407_v43  ;;  %v3137_v43 = vld [vmem:[#allocation6 + $0x148] sm:$0xff]  ;;  %v3154_v44 = vld [vmem:[#allocation6 + $0x1d0] sm:$0xff] }
0x1397   : > { %v2608_v51 = vmul.f32 1.442695, %v2607_v49 }
0x1398   : > { %v2616_v24 = vpop.permute.xlu0 %2615 }
0x1399   : > { %4210 = vpow2.f32 %v2608_v51  ;;  %3807 = vmatpush3.msra.mxu1 %v2616_v24 }
0x139a   : > { %3822 = vmatprep.subr.mxu1 %v4330_v55 }
0x13a3   : > { %v4211_v1 = vpop.eup %4210 }
0x13a4   : > { %v2610_v29 = vsel %vm723_vm2, %v4211_v1, 0.0 }
0x13a5   : > { %2611 = vadd.xlane.f32.xlu1 %v2610_v29 }
0x13b6   : > { %2767 = vrot.lane.b32.xlu1 %v4801_v50, %s4334_s11  ;;  %v2766_v50 = vpop.permute.xlu0 %2765 }
0x1432   : > { %v2612_v60 = vpop.xlane.xlu1 %2611 }
0x1433   : > { %4212 = vrcp.f32 %v2612_v60  ;;  %v3412_v60 = vld [vmem:[%s5012_s7 + $0x190] sm:$0xff] }
0x1436   : > { %v2768_v63 = vpop.permute.xlu1 %2767 }
0x143d   : > { %v4213_v61 = vpop.eup %4212 }
0x143e   : > { %v2614_v62 = vmul.f32 %v4213_v61, %v4211_v1  ;;  %v4085_v61 = vpack.c.bf16 %v3412_v60, %v3410_v59 }
0x1440   : > { %3809 = vmatmul.mubr.msk.f32.vlgmr.msra.gmra.mrb[28].mxu1 %vm723_vm2, %v2614_v62  ;;  %v3415_v62 = vld [vmem:[%s5012_s7 + $0x1a8] sm:$0xff] }
0x1441   : > { %3823 = vmatpush3.xpose.msk.msra.mxu1 %vm646_vm1, %v2768_v63  ;;  %3824 = vmatprep.mubr.msk.f32.mxu1 %vm4331_vm0, %v4330_v55  ;;  %v3417_v63 = vld [vmem:[%s5012_s7 + $0x1b8] sm:$0xff] }
0x1442   : > { %3827 = vmatprep.subr.mxu1 %v4330_v55 }
0x1444   : > { %3825 = vmatmul.mubr.msk.f32.vlgmr.msra.gmra.mrb[30].mxu1 %vm646_vm1, %v2766_v50  ;;  %v3414_v50 = vld [vmem:[%s5012_s7 + $0x1a0] sm:$0xff] }
0x1445   : > { %3829 = vmatprep.mubr.msk.f32.mxu1 %vm4331_vm0, %v4330_v55 }
0x1513   : > { %v2687_v2 = vpop.f32.mrb[28].mxu1 }
0x1514   : > { %v3810_v33 = vpop.f32.mrb[29].mxu1  ;;  %3820 = vmatmul.mubr.msk.f32.vlgmr.msra.gmra.mrb[22].mxu0 %vm646_vm1, %v2687_v2  ;;  %v4087_v2 = vpack.c.bf16 %v3417_v63, %v3415_v62  ;;  %v3393_v63 = vld [vmem:[%s5011_s6 + $0x1] ss:$0 sm:$0xff] }
0x1515   : > { %3840 = vmatprep.mubr.msk.f32.mxu0 %vm4331_vm0, %v4330_v55  ;;  %4063 = vmatpush3.bf16.msra.mxu0 %v4062_v11  ;;  %v3416_v33 = vld [vmem:[%s5012_s7 + $0x1b0] sm:$0xff] }
0x1516   : > { %4064 = vmatprep.subr.bf16.mxu0 %v4329_v0  ;;  %v3395_v0 = vld [vmem:[%s5012_s7 + $0x108] sm:$0xff] }
0x1517   : > { %v2839_v35 = vpop.f32.mrb[30].mxu1  ;;  %v4067_v26 = vpack.c.bf16 %v3397_v23, %v3395_v0  ;;  %v3148_v0 = vld [vmem:[#allocation6 + $0x1a0] sm:$0xff]  ;;  %v3149_v23 = vld [vmem:[#allocation6 + $0x1a8] sm:$0xff] }
0x1518   : > { %v2840_v3 = vadd.f32 %v2839_v35, %v4650_v56  ;;  %v3826_v4 = vpop.f32.mrb[31].mxu1  ;;  %v2053_v56 = vld [vmem:[#allocation4 + $0xf8] sm:$0xff]  ;;  %v3419_v35 = vld [vmem:[%s5012_s7 + $0x1c8] sm:$0xff] }
0x1519   : > { %v4065_v12 = vpack.c.bf16 %v2053_v56, %v2052_v10  ;;  %v4089_v4 = vpack.c.bf16 %v3416_v33, %v3414_v50  ;;  %v3424_v10 = vld [vmem:[%s5012_s7 + $0x1f0] sm:$0xff]  ;;  %v3144_v56 = vld [vmem:[#allocation6 + $0x180] sm:$0xff] }
0x151a   : > { %v2843_v47 = vsel %vm723_vm2, %v2840_v3, -inf  ;;  %v4097_v11 = vpack.c.bf16 %v3424_v10, %v3422_v22  ;;  %v3158_v33 = vld [vmem:[#allocation6 + $0x1f0] sm:$0xff] }
0x151b   : > { %2844 = vmax.xlane.f32.xlu1 %v2843_v47  ;;  %4066 = vmatpush3.bf16.msra.mxu0 %v4065_v12  ;;  %v3145_v12 = vld [vmem:[#allocation6 + $0x188] sm:$0xff] }
0x15a8   : > { %v2845_v41 = vpop.xlane.xlu1 %2844 }
0x15a9   : > { %v2846_v5 = vsub.f32 %v2840_v3, %v2845_v41  ;;  %v3421_v3 = vld [vmem:[%s5012_s7 + $0x1d8] sm:$0xff]  ;;  %v3418_v41 = vld [vmem:[%s5012_s7 + $0x1c0] sm:$0xff] }
0x15aa   : > { %v4091_v47 = vpack.c.bf16 %v3421_v3, %v3419_v35  ;;  %v3159_v35 = vld [vmem:[#allocation6 + $0x1f8] sm:$0xff] }
0x15ab   : > { %v2847_v6 = vmul.f32 1.442695, %v2846_v5  ;;  %v3420_v5 = vld [vmem:[%s5012_s7 + $0x1d0] sm:$0xff]  ;;  %v4127_v3 = vpack.c.bf16 %v3159_v35, %v3158_v33 }
0x15ad   : > { %4214 = vpow2.f32 %v2847_v6  ;;  %v3423_v6 = vld [vmem:[%s5012_s7 + $0x1e8] sm:$0xff] }
0x15b7   : > { %v4215_v7 = vpop.eup %4214 }
0x15b8   : > { %v2849_v8 = vsel %vm723_vm2, %v4215_v7, 0.0 }
0x15b9   : > { %2850 = vadd.xlane.f32.xlu0 %v2849_v8  ;;  %v4093_v8 = vpack.c.bf16 %v3420_v5, %v3418_v41 }
0x15cf   : > { %2854 = vrot.lane.b32.xlu0 %v4797_v48, %s4334_s11  ;;  %s412_s11 = scalar_lea.vmem %s5015_s10, %s3351_s17 }
0x15e7   : > { %v2760_v13 = vpop.f32.mrb[22].mxu0 }
0x15e8   : > { %v2764_v14 = vadd.f32 %v2760_v13, %v4853_v39  ;;  %v3821_v15 = vpop.f32.mrb[23].mxu0  ;;  %v4075_v39 = vpack.c.bf16 %v3405_v37, %v3403_v36  ;;  %v3128_v13 = vld [vmem:[#allocation6 + $0x100] sm:$0xff]  ;;  %v3135_v36 = vld [vmem:[#allocation6 + $0x138] sm:$0xff] }
0x15e9   : > { %v3129_v15 = vld [vmem:[#allocation6 + $0x108] sm:$0xff]  ;;  %v3152_v37 = vld [vmem:[#allocation6 + $0x1c0] sm:$0xff] }
0x1646   : > { %v2851_v16 = vpop.xlane.xlu0 %2850 }
0x1647   : > { %4216 = vrcp.f32 %v2851_v16  ;;  %v3146_v16 = vld [vmem:[#allocation6 + $0x190] sm:$0xff] }
0x164a   : > { %v2855_v17 = vpop.permute.xlu0 %2854 }
0x164b   : > { %3828 = vmatpush3.msra.mxu1 %v2855_v17  ;;  %v3147_v17 = vld [vmem:[#allocation6 + $0x198] sm:$0xff] }
0x164c   : > { %4068 = vmatprep.subr.bf16.mxu1 %v4067_v26  ;;  %v4107_v26 = vpack.c.bf16 %v3149_v23, %v3148_v0 }
0x1651   : > { %v4217_v18 = vpop.eup %4216 }
0x1652   : > { %v2853_v48 = vmul.f32 %v4217_v18, %v4215_v7  ;;  %v3425_v7 = vld [vmem:[%s5012_s7 + $0x1f8] sm:$0xff]  ;;  %v4101_v18 = vpack.c.bf16 %v3129_v15, %v3128_v13 }
0x1653   : > { %v4095_v9 = vpack.c.bf16 %v3425_v7, %v3423_v6 }
0x1654   : > { %3830 = vmatmul.mubr.msk.f32.vlgmr.msra.gmra.mrb[32].mxu1 %vm723_vm2, %v2853_v48  ;;  %v4103_v48 = vpack.c.bf16 %v3147_v17, %v3146_v16  ;;  %v3426_v16 = vld [vmem:[%s5014_s9] ss:$0 sm:$0xff] }
0x1655   : > { %3118 = vmatprep.mubr.f32.mxu1 %v4330_v55  ;;  %v3396_v55 = vld [vmem:[%s5012_s7 + $0x110] sm:$0xff] }
0x1656   : > { %v4069_v30 = vpack.c.bf16 %v3396_v55, %v3394_v25  ;;  %v3132_v55 = vld [vmem:[#allocation6 + $0x120] sm:$0xff] }
0x1658   : > { %4070 = vmatpush1.bf16.msra.mxu1 %v4069_v30  ;;  %v3151_v30 = vld [vmem:[#allocation6 + $0x1b8] sm:$0xff] }
0x1659   : > { %4072 = vmatprep.subr.bf16.mxu1 %v4071_v31  ;;  %v4109_v31 = vpack.c.bf16 %v3133_v27, %v3132_v55  ;;  %v4111_v32 = vpack.c.bf16 %v3151_v30, %v3150_v28 }
0x165c   : > { %4074 = vmatpush1.bf16.msra.mxu1 %v4073_v38  ;;  %v3153_v38 = vld [vmem:[#allocation6 + $0x1c8] sm:$0xff] }
0x165d   : > { %4076 = vmatprep.subr.bf16.mxu1 %v4075_v39  ;;  %v4113_v39 = vpack.c.bf16 %v3135_v36, %v3134_v34  ;;  %v4115_v40 = vpack.c.bf16 %v3153_v38, %v3152_v37 }
0x1660   : > { %4078 = vmatpush1.bf16.msra.mxu1 %v4077_v45  ;;  %v3155_v45 = vld [vmem:[#allocation6 + $0x1d8] sm:$0xff] }
0x1661   : > { %4080 = vmatprep.subr.bf16.mxu1 %v4079_v46  ;;  %v4117_v46 = vpack.c.bf16 %v3137_v43, %v3136_v42 }
0x1664   : > { %4082 = vmatpush1.bf16.msra.mxu1 %v4081_v57 }
0x1727   : > { %v2926_v19 = vpop.f32.mrb[32].mxu1 }
0x1728   : > { %v3831_v20 = vpop.f32.mrb[33].mxu1  ;;  %3841 = vmatmul.mubr.msk.f32.vlgmr.msra.gmra.mrb[24].mxu0 %vm646_vm1, %v2926_v19  ;;  %v3130_v19 = vld [vmem:[#allocation6 + $0x110] sm:$0xff] }
0x1729   : > { %v3131_v20 = vld [vmem:[#allocation6 + $0x118] sm:$0xff] }
0x172a   : > { %v4105_v25 = vpack.c.bf16 %v3131_v20, %v3130_v19 }
0x17fb   : > { %v2999_v49 = vpop.f32.mrb[24].mxu0 }
0x17fc   : > { %v3003_v51 = vadd.f32 %v2999_v49, %v2764_v14  ;;  %v3842_v24 = vpop.f32.mrb[25].mxu0  ;;  %v4099_v14 = vpack.c.bf16 %v3145_v12, %v3144_v56  ;;  %v4119_v49 = vpack.c.bf16 %v3155_v45, %v3154_v44 }
0x17fd   : > { %v3139_v24 = vld [vmem:[#allocation6 + $0x158] sm:$0xff] }
0x17fe   : > { %v4931_v1 = vadd.f32 %v3003_v51, %v4777_v52  ;;  %v3413_v52 = vld [vmem:[%s5012_s7 + $0x198] sm:$0xff]  ;;  %4100 = vmatprep.subr.bf16.mxu0 %v4099_v14  ;;  %v3138_v51 = vld [vmem:[#allocation6 + $0x150] sm:$0xff] }
0x17ff   : > { %v4083_v21 = vpack.c.bf16 %v3413_v52, %v3411_v58  ;;  %4102 = vmatpush3.bf16.msra.mxu0 %v4101_v18  ;;  %v4121_v54 = vpack.c.bf16 %v3139_v24, %v3138_v51  ;;  %v3140_v58 = vld [vmem:[#allocation6 + $0x160] sm:$0xff]  ;;  %v3141_v52 = vld [vmem:[#allocation6 + $0x168] sm:$0xff] }
0x1800   : > { %v3007_v29 = vmul.f32 %v4931_v1, %v4931_v1  ;;  %4104 = vmatprep.subr.bf16.mxu0 %v4103_v48 }
0x1801   : > { %4084 = vmatprep.subr.bf16.mxu1 %v4083_v21  ;;  %v4125_v21 = vpack.c.bf16 %v3141_v52, %v3140_v58 }
0x1802   : > { %3008 = vadd.xlane.f32.xlu1 %v3007_v29  ;;  %4086 = vmatpush1.bf16.msra.mxu1 %v4085_v61  ;;  %v3156_v29 = vld [vmem:[#allocation6 + $0x1e0] sm:$0xff] }
0x1803   : > { %4088 = vmatprep.subr.bf16.mxu1 %v4087_v2  ;;  %4106 = vmatpush3.bf16.msra.mxu0 %v4105_v25  ;;  %v4123_v57 = vpack.c.bf16 %v3157_v53, %v3156_v29 }
0x1804   : > { %4108 = vmatprep.subr.bf16.mxu0 %v4107_v26 }
0x1806   : > { %4090 = vmatpush1.bf16.msra.mxu1 %v4089_v4  ;;  %v3142_v4 = vld [vmem:[#allocation6 + $0x170] sm:$0xff] }
0x1807   : > { %4092 = vmatprep.subr.bf16.mxu1 %v4091_v47  ;;  %4110 = vmatpush3.bf16.msra.mxu0 %v4109_v31  ;;  %v3143_v47 = vld [vmem:[#allocation6 + $0x178] sm:$0xff] }
0x1808   : > { %4112 = vmatprep.subr.bf16.mxu0 %v4111_v32  ;;  %v4129_v41 = vpack.c.bf16 %v3143_v47, %v3142_v4 }
0x180a   : > { %4094 = vmatpush1.bf16.msra.mxu1 %v4093_v8 }
0x180b   : > { %4096 = vmatprep.subr.bf16.mxu1 %v4095_v9  ;;  %4114 = vmatpush3.bf16.msra.mxu0 %v4113_v39 }
0x180c   : > { %4116 = vmatprep.subr.bf16.mxu0 %v4115_v40 }
0x180e   : > { %4098 = vmatpush1.bf16.msra.mxu1 %v4097_v11 }
0x180f   : > { %4118 = vmatpush3.bf16.msra.mxu0 %v4117_v46 }
0x1810   : > { %4120 = vmatprep.subr.bf16.mxu0 %v4119_v49 }
0x1813   : > { %4122 = vmatpush3.bf16.msra.mxu0 %v4121_v54 }
0x1814   : > { %4124 = vmatprep.subr.bf16.mxu0 %v4123_v57 }
0x1817   : > { %4126 = vmatpush3.bf16.msra.mxu0 %v4125_v21 }
0x1818   : > { %4128 = vmatprep.subr.bf16.mxu0 %v4127_v3 }
0x181b   : > { %4130 = vmatpush3.bf16.msra.mxu0 %v4129_v41 }
0x188f   : > { %v3009_v59 = vpop.xlane.xlu1 %3008 }
0x1890   : > { %v3010_v60 = vmul.f32 0.0078125, %v3009_v59 }
0x1892   : > { %v3011_v61 = vadd.f32 1e-06, %v3010_v60 }
0x1894   : > { %4218 = vrsqrt.f32 %v3011_v61 }
0x189e   : > { %v4219_v62 = vpop.eup %4218 }
0x189f   : > { %v3013_v50 = vmul.f32 %v4219_v62, %v4931_v1 }
0x18a1   : > { %v3020_v2 = vmul.f32 %v3393_v63, %v3013_v50 }
0x18a3   : > { %3119 = vmatmul.mubr.f32.vlgmr.msra.gmra.mrb[34].mxu1 %v3020_v2 }
0x1976   : > { %v3120_v5 = vpop.f32.mrb[34].mxu1 }
0x1977   : > { %v3122_v6 = vpop.f32.mrb[35].mxu1  ;;  %v3125_v8 = vmax.f32 %v3120_v5, 0.0 }
0x1978   : > { %v3126_v7 = vmax.f32 %v3122_v6, 0.0 }
0x197a   : > { %3224 = vmatprep.mubr.f32.mxu0 %v3126_v7 }
0x197b   : > { %3225 = vmatmul.mubr.f32.vlgmr.msra.gmra.mrb[26].mxu0 %v3125_v8 }
0x1a4e   : > { %v3602_v9 = vpop.f32.mrb[26].mxu0 }
0x1a4f   : > { %v3603_v22 = vpop.f32.mrb[27].mxu0 }
0x1a50   : > { %v3604_v10 = vadd.f32 %v3603_v22, %v3602_v9 }
0x1a52   : > { %v3230_v11 = vadd.f32 %v3604_v10, %v4931_v1 }
0x1a54   : > { %v3232_v56 = vmul.f32 %v3230_v11, %v3230_v11 }
0x1a56   : > { %3233 = vadd.xlane.f32.xlu1 %v3232_v56 }
0x1ae3   : > { %v3234_v12 = vpop.xlane.xlu1 %3233 }
0x1ae4   : > { %v3235_v13 = vmul.f32 0.0078125, %v3234_v12 }
0x1ae6   : > { %v3236_v14 = vadd.f32 1e-06, %v3235_v13 }
0x1ae8   : > { %4220 = vrsqrt.f32 %v3236_v14 }
0x1af2   : > { %v4221_v15 = vpop.eup %4220 }
0x1af3   : > { %v3238_v17 = vmul.f32 %v4221_v15, %v3230_v11 }
0x1af5   : > { %v3245_v18 = vmul.f32 %v3426_v16, %v3238_v17 }
0x1af7   : > { %3246 = vst [vmem:[%s412_s11] sm:$0xff] %v3245_v18 }
0x1af8 PF: > { %s22_s13 = sadd.s32 1, %s4320_s13  }
0x1af9   : > { %p19_p5 = scmp.ge.s32.totalorder %s22_s13, 4  }
0x1afb   :  { %21 = sbr.rel (!%p19_p5) target bundleno = 2 (0x2), region = 115 }
0x1b02   :  { %3266 = vsyncpa [#allocation3], 1 }
0x1b03   :  { %3268 = vsyncpa [#allocation3 + $0x1], 1 }
0x1b04   :  { %3269 = vsyncpa [#allocation5], 1 }

// kernel: seq2seq_forward.3
= control target key start
LH: loop header
LB: loop body
LE: loop exit
PB: predicated region body
PF: predicated region fallthrough
CT: control target
= control target key end

     0   :  { %s9930_s0 = inlined_call_operand.vmem [shape: f32[2,8,128], index: 0, kind: input, shape index: {}]   ;;  %s9931_s1 = inlined_call_operand.vmem [shape: f32[2,8,128], index: 1, kind: input, shape index: {}]   ;;  %s9932_s2 = inlined_call_operand.vmem [shape: f32[2,1,8], index: 2, kind: input, shape index: {}]   ;;  %s9933_s3 = inlined_call_operand.vmem [shape: f32[4,8,8], index: 3, kind: input, shape index: {}]   ;;  %s9934_s4 = inlined_call_operand.vmem [shape: s32[2,8,1], index: 4, kind: input, shape index: {}]   ;;  %s9935_s5 = inlined_call_operand.vmem [shape: f32[2,1,128], index: 5, kind: input, shape index: {}]   ;;  %s9936_s6 = inlined_call_operand.vmem [shape: f32[2,128,384], index: 6, kind: input, shape index: {}]   ;;  %s9937_s7 = inlined_call_operand.vmem [shape: f32[2,128,128], index: 7, kind: input, shape index: {}]   ;;  %s9938_s8 = inlined_call_operand.vmem [shape: f32[2,1,128], index: 8, kind: input, shape index: {}]   ;;  %s9939_s9 = inlined_call_operand.vmem [shape: f32[2,128,128], index: 9, kind: input, shape index: {}]   ;;  %s9940_s10 = inlined_call_operand.vmem [shape: f32[2,128,256], index: 10, kind: input, shape index: {}]   ;;  %s9941_s11 = inlined_call_operand.vmem [shape: f32[2,128,128], index: 11, kind: input, shape index: {}]   ;;  %s9942_s12 = inlined_call_operand.vmem [shape: f32[2,1,128], index: 12, kind: input, shape index: {}]   ;;  %s9943_s13 = inlined_call_operand.vmem [shape: f32[2,128,256], index: 13, kind: input, shape index: {}]   ;;  %s9944_s14 = inlined_call_operand.vmem [shape: f32[2,256,128], index: 14, kind: input, shape index: {}]   ;;  %s9945_s15 = inlined_call_operand.vmem [shape: f32[1,128], index: 15, kind: input, shape index: {}]   ;;  %s9946_s16 = inlined_call_operand.vmem [shape: f32[256,128], index: 16, kind: input, shape index: {}]   ;;  %s9947_s17 = inlined_call_operand.hbm [shape: f32[2,8,256], index: 17, kind: output, shape index: {0}]   ;;  %s9948_s18 = inlined_call_operand.vmem [shape: f32[2,1,1], index: 18, kind: output, shape index: {1}]   ;;  %s9949_s19 = inlined_call_operand.vmem [shape: f32[2,1,1], index: 19, kind: output, shape index: {2}]  }
   0x1   :  { %9969 = sst [smem:[#allocation14_spill]] %s9930_s0 }
   0x2   :  { %9970 = sst [smem:[#allocation15_spill]] %s9931_s1 }
   0x3   :  { %9971 = sst [smem:[#allocation16_spill]] %s9932_s2 }
   0x4   :  { %9972 = sst [smem:[#allocation17_spill]] %s9933_s3 }
   0x5   :  { %9973 = sst [smem:[#allocation18_spill]] %s9947_s17 }
   0x6   :  { %9974 = sst [smem:[#allocation19_spill]] %s9948_s18 }
   0x7   :  { %9975 = sst [smem:[#allocation20_spill]] %s9949_s19 }
   0x8   :  { %25 = vsyncpa [#allocation3], 0 }
   0x9   :  { %27 = vsyncpa [#allocation3 + $0x1], 0  ;;  %s8019_s0 = smov 0   ;;  %s8021_s30 = smov 0  }
   0xa   :  { %s8023_s20 = smov 0   ;;  %s8025_s21 = smov 0  }
   0xb LB: > { %9976 = sst [smem:[#allocation5_spill]] %s7897_s0  ;;  %s8040_s1 = sadd.s32 4294967295, %s7909_s21   ;;  %s7909_s21 = sphi %s8025_s21, %s10003_s21   ;;  %s7905_s20 = sphi %s8023_s20, %s10006_s20   ;;  %s7901_s30 = sphi %s8021_s30, %s10005_s30   ;;  %s7897_s0 = sphi %s8019_s0, %s10004_s0  }
   0xc   : > { %9977 = sst [smem:[#allocation6_spill]] %s7901_s30  ;;  %s6154_s22 = sadd.s32 4294967294, %s7909_s21  }
   0xd   : > { %9978 = sst [smem:[#allocation7_spill]] %s7905_s20  ;;  %s8044_s2 = sadd.s32 1, %s7909_s21  }
   0xe   : > { %9979 = sst [smem:[#allocation8_spill]] %s7909_s21  ;;  %s417_s23 = sadd.s32 1, %s7905_s20 }
   0xf   : > { %9980 = sst [smem:[#allocation9_spill]] %s8040_s1  ;;  %s414_s24 = ssub.s32 %s7909_s21, %s8044_s2 }
  0x10   : > { %9981 = sst [smem:[#allocation10_spill]] %s8044_s2  ;;  %p427_p0 = scmp.ne.s32.totalorder %s7905_s20, %s7901_s30 }
  0x11   : > { %p415_p1 = scmp.eq.s32.totalorder %s414_s24, 0  ;;  %p428_p2 = scmp.eq.s32.totalorder %s8040_s1, 1 }
  0x12   : > { %p433_p3 = scmp.ne.s32.totalorder %s7901_s30, %s7897_s0  ;;  %p434_p4 = scmp.eq.s32.totalorder %s6154_s22, 1 }
  0x13   : > { %s8055_s25 = scalar_select %p415_p1, %s7905_s20, %s417_s23  }
  0x14   : > { %p8057_p5 = por %p428_p2, %p427_p0  ;;  %p8061_p6 = por %p434_p4, %p433_p3 }
  0x15   : > { %9982 = sst [smem:[#allocation11_spill]] %s8055_s25  ;;  %p6157_p7 = scmp.ge.s32.totalorder %s7909_s21, 1 }
  0x16   : > { %s9983_s3 = scalar_select %p8057_p5, 1, 0 }
  0x17   : > { %s9985_s26 = scalar_select %p8061_p6, 1, 0 }
  0x18   : > { %9984 = sst [smem:[#allocation12_spill]] %s9983_s3  ;;  %p570_p8 = scmp.lt.s32.totalorder %s7909_s21, 3 }
  0x19   : > { %9986 = sst [smem:[#allocation13_spill]] %s9985_s26 }
  0x1a   : > { %p571_p9 = pnand %p6157_p7, %p570_p8 }
  0x1b   : > { %p642_p10 = scmp.lt.s32.totalorder (!%p571_p9), %s8040_s1, 1  ;;  %v685_v0 = vld [vmem:[%s9936_s6 + $0x8] sm:$0xff] (!%p571_p9)  ;;  %v688_v1 = vld [vmem:[%s9936_s6 + $0x20] sm:$0xff] (!%p571_p9)  ;;  %v687_v4 = vld [vmem:[%s9936_s6 + $0x18] sm:$0xff] (!%p571_p9)  ;;  %s9987_s22 = sld [smem:[#allocation14_spill]] (!%p571_p9)  ;;  %v7911_v42 = vmov (!%p571_p9), 0.0  }
  0x1c   : > { %574 = sbr.rel (%p571_p9) target bundleno = 12844 (0x322c), region = 88  ;;  %v684_v2 = vld [vmem:[%s9936_s6] sm:$0xff] (!%p571_p9)  ;;  %v7230_v3 = vpack.c.bf16 (!%p571_p9), %v688_v1, %v685_v0  ;;  %v691_v5 = vld [vmem:[%s9936_s6 + $0x38] sm:$0xff] (!%p571_p9)  ;;  %v694_v6 = vld [vmem:[%s9936_s6 + $0x50] sm:$0xff] (!%p571_p9)  ;;  %796 = vmatprep.mubr.f32.mxu0 (!%p571_p9), %v7911_v42  ;;  %6789 = vmatprep.subr.mxu1 (!%p571_p9), %v7911_v42  ;;  %v7912_v51 = vmov (!%p571_p9), 0.0|0.0   ;;  %vm7913_vm0 = vmmov (!%p571_p9), 0  }
  0x1d   : > { %v7232_v7 = vpack.c.bf16 (!%p571_p9), %v687_v4, %v684_v2  ;;  %v7234_v8 = vpack.c.bf16 (!%p571_p9), %v694_v6, %v691_v5  ;;  %v690_v9 = vld [vmem:[%s9936_s6 + $0x30] sm:$0xff] (!%p571_p9)  ;;  %v693_v10 = vld [vmem:[%s9936_s6 + $0x48] sm:$0xff] (!%p571_p9)  ;;  %v700_v12 = vld [vmem:[%s9936_s6 + $0x80] sm:$0xff] (!%p571_p9)  ;;  %6791 = vmatprep.mubr.msk.f32.mxu1 (!%p571_p9), %vm7913_vm0, %v7911_v42  ;;  %vm890_vm1 = vcmask (!%p571_p9), 261120   ;;  %s9962_s0 = smov (!%p571_p9), 96   ;;  %s9988_s29 = sld [smem:[#allocation17_spill]] (!%p571_p9) }
  0x1e   : > { %v697_v11 = vld [vmem:[%s9936_s6 + $0x68] sm:$0xff] (!%p571_p9)  ;;  %7231 = vmatprep.subr.bf16.mxu0 (!%p571_p9), %v7230_v3  ;;  %v7236_v13 = vpack.c.bf16 (!%p571_p9), %v693_v10, %v690_v9  ;;  %v696_v15 = vld [vmem:[%s9936_s6 + $0x60] sm:$0xff] (!%p571_p9)  ;;  %v699_v16 = vld [vmem:[%s9936_s6 + $0x78] sm:$0xff] (!%p571_p9)  ;;  %vm967_vm2 = vcmask (!%p571_p9), 64512   ;;  %s9960_s17 = smov (!%p571_p9), 64   ;;  %s9958_s18 = smov (!%p571_p9), 32  }
  0x1f   : > { %7233 = vmatpush1.bf16.msra.mxu0 (!%p571_p9), %v7232_v7  ;;  %v7238_v14 = vpack.c.bf16 (!%p571_p9), %v700_v12, %v697_v11  ;;  %v703_v18 = vld [vmem:[%s9936_s6 + $0x98] sm:$0xff] (!%p571_p9)  ;;  %v706_v19 = vld [vmem:[%s9936_s6 + $0xb0] sm:$0xff] (!%p571_p9)  ;;  %v7240_v21 = vpack.c.bf16 (!%p571_p9), %v699_v16, %v696_v15  ;;  %v705_v24 = vld [vmem:[%s9936_s6 + $0xa8] sm:$0xff] (!%p571_p9)  ;;  %s9989_s20 = sld [smem:[#allocation15_spill]] (!%p571_p9)  ;;  %s9990_s27 = smov (!%p571_p9), 96   ;;  %vm5979_vm3 = vcmask (!%p571_p9), 7168  }
  0x20   : > { %7235 = vmatprep.subr.bf16.mxu0 (!%p571_p9), %v7234_v8  ;;  %v7242_v22 = vpack.c.bf16 (!%p571_p9), %v706_v19, %v703_v18  ;;  %v702_v23 = vld [vmem:[%s9936_s6 + $0x90] sm:$0xff] (!%p571_p9)  ;;  %v709_v26 = vld [vmem:[%s9936_s6 + $0xc8] sm:$0xff] (!%p571_p9)  ;;  %v712_v27 = vld [vmem:[%s9936_s6 + $0xe0] sm:$0xff] (!%p571_p9)  ;;  %s9991_s23 = sld [smem:[#allocation16_spill]] (!%p571_p9)  ;;  %vm5987_vm5 = vcmask (!%p571_p9), 0  }
  0x21   : > { %v7244_v25 = vpack.c.bf16 (!%p571_p9), %v705_v24, %v702_v23  ;;  %v7246_v28 = vpack.c.bf16 (!%p571_p9), %v712_v27, %v709_v26  ;;  %v708_v29 = vld [vmem:[%s9936_s6 + $0xc0] sm:$0xff] (!%p571_p9)  ;;  %v711_v30 = vld [vmem:[%s9936_s6 + $0xd8] sm:$0xff] (!%p571_p9)  ;;  %v718_v33 = vld [vmem:[%s9936_s6 + $0x110] sm:$0xff] (!%p571_p9) }
  0x22   : > { %v7248_v31 = vpack.c.bf16 (!%p571_p9), %v711_v30, %v708_v29  ;;  %v715_v32 = vld [vmem:[%s9936_s6 + $0xf8] sm:$0xff] (!%p571_p9)  ;;  %v714_v35 = vld [vmem:[%s9936_s6 + $0xf0] sm:$0xff] (!%p571_p9)  ;;  %v717_v36 = vld [vmem:[%s9936_s6 + $0x108] sm:$0xff] (!%p571_p9) }
  0x23   : > { %s8087_s28 = scalar_select %p642_p10, %s8040_s1, 1  ;;  %7237 = vmatpush1.bf16.msra.mxu0 %v7236_v13  ;;  %v7250_v34 = vpack.c.bf16 %v718_v33, %v715_v32  ;;  %v721_v37 = vld [vmem:[%s9936_s6 + $0x128] sm:$0xff]  ;;  %v7252_v38 = vpack.c.bf16 %v717_v36, %v714_v35  ;;  %v724_v39 = vld [vmem:[%s9936_s6 + $0x140] sm:$0xff]  ;;  %v723_v41 = vld [vmem:[%s9936_s6 + $0x138] sm:$0xff] }
  0x24   : > { %7239 = vmatprep.subr.bf16.mxu0 %v7238_v14  ;;  %v720_v40 = vld [vmem:[%s9936_s6 + $0x120] sm:$0xff]  ;;  %v7254_v43 = vpack.c.bf16 %v724_v39, %v721_v37  ;;  %v727_v44 = vld [vmem:[%s9936_s6 + $0x158] sm:$0xff]  ;;  %v730_v45 = vld [vmem:[%s9936_s6 + $0x170] sm:$0xff]  ;;  %s9994_s1 = sld [smem:[#allocation6_spill]] }
  0x25   : > { %s8102_s24 = sshll.u32 %s8087_s28, 3  ;;  %v7256_v46 = vpack.c.bf16 %v723_v41, %v720_v40  ;;  %v7258_v47 = vpack.c.bf16 %v730_v45, %v727_v44  ;;  %v726_v48 = vld [vmem:[%s9936_s6 + $0x150] sm:$0xff]  ;;  %v729_v49 = vld [vmem:[%s9936_s6 + $0x168] sm:$0xff]  ;;  %v6162_v58 = vld [vmem:[%s9935_s5] ss:$0 sm:$0xff] }
  0x26   : > { %s645_s21 = scalar_lea.vmem %s9987_s22, %s8102_s24  ;;  %v7260_v50 = vpack.c.bf16 %v729_v49, %v726_v48  ;;  %v686_v55 = vld [vmem:[%s9936_s6 + $0x10] sm:$0xff]  ;;  %v689_v56 = vld [vmem:[%s9936_s6 + $0x28] sm:$0xff]  ;;  %v692_v62 = vld [vmem:[%s9936_s6 + $0x40] sm:$0xff]  ;;  %s8561_s25 = scalar_lea.vmem %s9989_s20, %s8102_s24 }
  0x27   : > { %v8114_v17 = vld [vmem:[%s645_s21] sm:$0xff]  ;;  %7241 = vmatpush1.bf16.msra.mxu0 %v7240_v21  ;;  %v7263_v60 = vpack.c.bf16 %v689_v56, %v686_v55  ;;  %v695_v63 = vld [vmem:[%s9936_s6 + $0x58] sm:$0xff]  ;;  %v698_v1 = vld [vmem:[%s9936_s6 + $0x70] sm:$0xff]  ;;  %s656_s19 = scalar_lea.vmem %s9934_s4, %s8102_s24 }
  0x28   : > { %v669_v20 = vmul.f32 %v8114_v17, %v8114_v17  ;;  %7243 = vmatprep.subr.bf16.mxu0 %v7242_v22  ;;  %v7266_v0 = vpack.c.bf16 %v695_v63, %v692_v62  ;;  %v701_v2 = vld [vmem:[%s9936_s6 + $0x88] sm:$0xff]  ;;  %v704_v4 = vld [vmem:[%s9936_s6 + $0xa0] sm:$0xff]  ;;  %v707_v5 = vld [vmem:[%s9936_s6 + $0xb8] sm:$0xff] }
  0x29   : > { %v7269_v3 = vpack.c.bf16 %v701_v2, %v698_v1  ;;  %v7272_v6 = vpack.c.bf16 %v707_v5, %v704_v4  ;;  %v710_v7 = vld [vmem:[%s9936_s6 + $0xd0] sm:$0xff]  ;;  %v713_v8 = vld [vmem:[%s9936_s6 + $0xe8] sm:$0xff]  ;;  %v716_v10 = vld [vmem:[%s9936_s6 + $0x100] sm:$0xff] }
  0x2a   : > { %670 = vadd.xlane.f32.xlu0 %v669_v20  ;;  %v7275_v9 = vpack.c.bf16 %v713_v8, %v710_v7  ;;  %v719_v11 = vld [vmem:[%s9936_s6 + $0x118] sm:$0xff]  ;;  %v722_v13 = vld [vmem:[%s9936_s6 + $0x130] sm:$0xff]  ;;  %v725_v14 = vld [vmem:[%s9936_s6 + $0x148] sm:$0xff]  ;;  %s629_s20 = sand.u32 1, %s9994_s1  }
  0x2b   : > { %7245 = vmatpush1.bf16.msra.mxu0 %v7244_v25  ;;  %v7278_v12 = vpack.c.bf16 %v719_v11, %v716_v10  ;;  %v7281_v15 = vpack.c.bf16 %v725_v14, %v722_v13  ;;  %v728_v16 = vld [vmem:[%s9936_s6 + $0x160] sm:$0xff]  ;;  %v731_v18 = vld [vmem:[%s9936_s6 + $0x178] sm:$0xff]  ;;  %v6172_v14 = vld [vmem:[%s9988_s29 + $0x10] sm:$0xff]  ;;  %s6158_s2 = sshll.u32 %s629_s20, 4  ;;  %s5998_s24 = scalar_lea.sflag [#allocation3], %s629_s20 }
  0x2c   : > { %7247 = vmatprep.subr.bf16.mxu0 %v7246_v28  ;;  %v7284_v19 = vpack.c.bf16 %v731_v18, %v728_v16  ;;  %v889_v26 = vld [vmem:[%s9988_s29] sm:$0xff]  ;;  %v880_v55 = vld [vmem:[%s9937_s7 + $0x38] sm:$0xff] }
  0x2d   : > { %v876_v1 = vld [vmem:[%s9937_s7 + $0x18] sm:$0xff] }
  0x2f   : > { %7249 = vmatpush1.bf16.msra.mxu0 %v7248_v31  ;;  %v6166_v31 = vld [vmem:[%s9988_s29 + $0x8] sm:$0xff] }
  0x30   : > { %7251 = vmatprep.subr.bf16.mxu0 %v7250_v34 }
  0x33   : > { %7253 = vmatpush1.bf16.msra.mxu0 %v7252_v38 }
  0x34   : > { %7255 = vmatprep.subr.bf16.mxu0 %v7254_v43 }
  0x37   : > { %7257 = vmatpush1.bf16.msra.mxu0 %v7256_v46 }
  0x38   : > { %7259 = vmatprep.subr.bf16.mxu0 %v7258_v47 }
  0x3b   : > { %7261 = vmatpush1.bf16.msra.mxu0 %v7260_v50  ;;  %v877_v50 = vld [vmem:[%s9937_s7 + $0x20] sm:$0xff] }
  0x3c   : > { %7262 = vmatprep.subr.bf16.mxu0 %v7912_v51 }
  0xb7   : > { %v671_v52 = vpop.xlane.xlu0 %670 }
  0xb8   : > { %v673_v53 = vmul.f32 0.0078125, %v671_v52  ;;  %v878_v52 = vld [vmem:[%s9937_s7 + $0x28] sm:$0xff] }
  0xba   : > { %v674_v54 = vadd.f32 1e-06, %v673_v53  ;;  %v879_v53 = vld [vmem:[%s9937_s7 + $0x30] sm:$0xff] }
  0xbb   : > { %v7290_v56 = vpack.c.bf16 %v880_v55, %v879_v53  ;;  %v885_v53 = vld [vmem:[%s9937_s7 + $0x60] sm:$0xff] }
  0xbc   : > { %7758 = vrsqrt.f32 %v674_v54  ;;  %v7287_v54 = vpack.c.bf16 %v878_v52, %v877_v50 }
  0xc6   : > { %v7759_v57 = vpop.eup %7758 }
  0xc7   : > { %v676_v59 = vmul.f32 %v7759_v57, %v8114_v17 }
  0xc9   : > { %v683_v61 = vmul.f32 %v6162_v58, %v676_v59  ;;  %v873_v59 = vld [vmem:[%s9937_s7] sm:$0xff] }
  0xcb   : > { %797 = vmatmul.mubr.f32.vlgmr.msra.gmra.mrb[0].mxu0 %v683_v61 }
  0xcc   : > { %7264 = vmatpush3.bf16.msra.mxu0 %v7263_v60  ;;  %6786 = vmatprep.mubr.msk.f32.mxu0 %vm7913_vm0, %v7911_v42  ;;  %v874_v60 = vld [vmem:[%s9937_s7 + $0x8] sm:$0xff] }
  0xcd   : > { %7265 = vmatprep.subr.bf16.mxu0 %v7912_v51  ;;  %v7293_v62 = vpack.c.bf16 %v874_v60, %v873_v59 }
  0xd0   : > { %7267 = vmatpush3.bf16.msra.mxu0 %v7266_v0  ;;  %v875_v0 = vld [vmem:[%s9937_s7 + $0x10] sm:$0xff] }
  0xd1   : > { %7268 = vmatprep.subr.bf16.mxu0 %v7912_v51  ;;  %v7296_v2 = vpack.c.bf16 %v876_v1, %v875_v0 }
  0xd4   : > { %7270 = vmatpush3.bf16.msra.mxu0 %v7269_v3 }
  0xd5   : > { %7271 = vmatprep.subr.bf16.mxu0 %v7912_v51 }
  0xd8   : > { %7273 = vmatpush3.bf16.msra.mxu0 %v7272_v6 }
  0xd9   : > { %7274 = vmatprep.subr.bf16.mxu0 %v7912_v51 }
  0xdc   : > { %7276 = vmatpush3.bf16.msra.mxu0 %v7275_v9 }
  0xdd   : > { %7277 = vmatprep.subr.bf16.mxu0 %v7912_v51 }
  0xe0   : > { %7279 = vmatpush3.bf16.msra.mxu0 %v7278_v12 }
  0xe1   : > { %7280 = vmatprep.subr.bf16.mxu0 %v7912_v51 }
  0xe4   : > { %7282 = vmatpush3.bf16.msra.mxu0 %v7281_v15 }
  0xe5   : > { %7283 = vmatprep.subr.bf16.mxu0 %v7912_v51 }
  0xe8   : > { %7285 = vmatpush3.bf16.msra.mxu0 %v7284_v19 }
  0xe9   : > { %6799 = vmatprep.subr.mxu0 %v7911_v42 }
  0xeb   : > { %6787 = vmatmul.mubr.f32.vlgmr.msra.gmra.mrb[2].mxu0 %v683_v61 }
  0xec   : > { %6801 = vmatprep.mubr.msk.f32.mxu0 %vm7913_vm0, %v7911_v42 }
 0x19e   : > { %v8247_v20 = vpop.f32.mrb[0].mxu0 }
 0x19f   : > { %1054 = vrot.lane.b32.xlu1 %v8247_v20, %s9962_s0  ;;  %v8251_v21 = vpop.f32.mrb[1].mxu0 }
 0x1a0   : > { %1056 = vrot.lane.b32.xlu0 %v8251_v21, %s9962_s0  ;;  %6790 = vmatpush3.xpose.msk.msra.mxu1 %vm890_vm1, %v8251_v21 }
 0x1a1   : > { %6794 = vmatprep.subr.mxu1 %v7911_v42 }
 0x1a3   : > { %6792 = vmatmul.mubr.msk.f32.vlgmr.msra.gmra.mrb[0].mxu1 %vm890_vm1, %v8247_v20 }
 0x1a4   : > { %6796 = vmatprep.mubr.msk.f32.mxu1 %vm7913_vm0, %v7911_v42 }
 0x1be   : > { %v8262_v22 = vpop.f32.mrb[2].mxu0 }
 0x1bf   : > { %v6788_v23 = vpop.f32.mrb[3].mxu0  ;;  %6795 = vmatpush3.msra.mxu1 %v8262_v22 }
 0x1c0   : > { %6804 = vmatprep.subr.mxu1 %v7911_v42 }
 0x211   : > { %v1055_v25 = vpop.permute.xlu1 %1054 }
 0x212   : > { %v1057_v24 = vpop.permute.xlu0 %1056 }
 0x213   : > { %6800 = vmatpush3.xpose.msk.msra.mxu0 %vm890_vm1, %v1057_v24 }
 0x214   : > { %7286 = vmatprep.subr.bf16.mxu0 %v7912_v51 }
 0x216   : > { %6802 = vmatmul.mubr.msk.f32.vlgmr.msra.gmra.mrb[4].mxu0 %vm890_vm1, %v1055_v25 }
 0x217   : > { %6817 = vmatprep.mubr.msk.f32.mxu0 %vm7913_vm0, %v7911_v42  ;;  %7288 = vmatpush3.bf16.msra.mxu0 %v7287_v54  ;;  %v887_v54 = vld [vmem:[%s9937_s7 + $0x70] sm:$0xff] }
 0x218   : > { %7289 = vmatprep.subr.bf16.mxu0 %v7912_v51 }
 0x21b   : > { %7291 = vmatpush3.bf16.msra.mxu0 %v7290_v56  ;;  %v888_v56 = vld [vmem:[%s9937_s7 + $0x78] sm:$0xff] }
 0x21c   : > { %6831 = vmatprep.subr.mxu0 %v7911_v42 }
 0x276   : > { %v963_v27 = vpop.f32.mrb[0].mxu1 }
 0x277   : > { %v964_v28 = vadd.f32 %v963_v27, %v889_v26  ;;  %v6793_v29 = vpop.f32.mrb[1].mxu1 }
 0x278   : > { %v881_v29 = vld [vmem:[%s9937_s7 + $0x40] sm:$0xff] }
 0x279   : > { %v968_v30 = vsel %vm967_vm2, %v964_v28, -inf }
 0x27a   : > { %969 = vmax.xlane.f32.xlu1 %v968_v30  ;;  %v883_v30 = vld [vmem:[%s9937_s7 + $0x50] sm:$0xff] }
 0x2e9   : > { %v1128_v32 = vpop.f32.mrb[4].mxu0 }
 0x2ea   : > { %v1129_v33 = vadd.f32 %v6166_v31, %v1128_v32  ;;  %v6803_v34 = vpop.f32.mrb[5].mxu0  ;;  %v884_v32 = vld [vmem:[%s9937_s7 + $0x58] sm:$0xff] }
 0x2ec   : > { %v1132_v35 = vsel %vm967_vm2, %v1129_v33, -inf }
 0x2ed   : > { %1133 = vmax.xlane.f32.xlu0 %v1132_v35 }
 0x303   : > { %1370 = vrot.lane.b32.xlu0 %v8251_v21, %s9960_s17 }
 0x307   : > { %v970_v36 = vpop.xlane.xlu1 %969 }
 0x308   : > { %v971_v37 = vsub.f32 %v964_v28, %v970_v36 }
 0x30a   : > { %v972_v38 = vmul.f32 1.442695, %v971_v37 }
 0x30c   : > { %7760 = vpow2.f32 %v972_v38 }
 0x316   : > { %v7761_v39 = vpop.eup %7760 }
 0x317   : > { %v974_v40 = vsel %vm967_vm2, %v7761_v39, 0.0 }
 0x318   : > { %975 = vadd.xlane.f32.xlu1 %v974_v40  ;;  %v6177_v40 = vld [vmem:[%s9988_s29 + $0x18] sm:$0xff] }
 0x37a   : > { %v1134_v41 = vpop.xlane.xlu0 %1133 }
 0x37b   : > { %v1135_v43 = vsub.f32 %v1129_v33, %v1134_v41  ;;  %v7302_v33 = vpack.c.bf16 %v884_v32, %v883_v30  ;;  %v1868_v30 = vld [vmem:[%s9939_s9 + $0x20] sm:$0xff] }
 0x37d   : > { %v1136_v44 = vmul.f32 1.442695, %v1135_v43 }
 0x37e   : > { %v1371_v6 = vpop.permute.xlu0 %1370 }
 0x37f   : > { %7762 = vpow2.f32 %v1136_v44 }
 0x389   : > { %v7763_v45 = vpop.eup %7762 }
 0x38a   : > { %v1138_v46 = vsel %vm967_vm2, %v7763_v45, 0.0 }
 0x38b   : > { %1139 = vadd.xlane.f32.xlu1 %v1138_v46 }
 0x39c   : > { %1144 = vrot.lane.b32.xlu1 %v8262_v22, %s9962_s0  ;;  %s9993_s0 = smov 32  }
 0x3a0   : > { %1368 = vrot.lane.b32.xlu1 %v8247_v20, %s9960_s17 }
 0x3a5   : > { %v976_v47 = vpop.xlane.xlu1 %975 }
 0x3a6   : > { %7764 = vrcp.f32 %v976_v47 }
 0x3b0   : > { %v7765_v48 = vpop.eup %7764 }
 0x3b1   : > { %v978_v49 = vmul.f32 %v7765_v48, %v7761_v39 }
 0x3b3   : > { %6797 = vmatmul.mubr.msk.f32.vlgmr.msra.gmra.mrb[2].mxu1 %vm967_vm2, %v978_v49 }
 0x3b4   : > { %6806 = vmatprep.mubr.msk.f32.mxu1 %vm7913_vm0, %v7911_v42 }
 0x418   : > { %v1140_v57 = vpop.xlane.xlu1 %1139 }
 0x419   : > { %7766 = vrcp.f32 %v1140_v57  ;;  %v7308_v57 = vpack.c.bf16 %v888_v56, %v887_v54  ;;  %v1872_v54 = vld [vmem:[%s9939_s9 + $0x40] sm:$0xff] }
 0x41a   : > { %v1970_v56 = vld [vmem:[%s9940_s10 + $0xa0] sm:$0xff] }
 0x41c   : > { %v1145_v58 = vpop.permute.xlu1 %1144 }
 0x41d   : > { %6805 = vmatpush3.msra.mxu1 %v1145_v58 }
 0x41e   : > { %7292 = vmatprep.subr.bf16.mxu1 %v7912_v51 }
 0x420   : > { %v1369_v8 = vpop.permute.xlu1 %1368 }
 0x423   : > { %v7767_v61 = vpop.eup %7766 }
 0x424   : > { %v1142_v63 = vmul.f32 %v7767_v61, %v7763_v45 }
 0x426   : > { %6807 = vmatmul.mubr.msk.f32.vlgmr.msra.gmra.mrb[4].mxu1 %vm967_vm2, %v1142_v63 }
 0x427   : > { %7294 = vmatpush3.bf16.msra.mxu1 %v7293_v62  ;;  %6828 = vmatprep.mubr.msk.f32.mxu1 %vm7913_vm0, %v7911_v42 }
 0x428   : > { %7295 = vmatprep.subr.bf16.mxu1 %v7912_v51 }
 0x42b   : > { %7297 = vmatpush3.bf16.msra.mxu1 %v7296_v2  ;;  %v1951_v2 = vld [vmem:[%s9940_s10 + $0x8] sm:$0xff] }
 0x42c   : > { %6836 = vmatprep.subr.mxu1 %v7911_v42 }
 0x486   : > { %v1048_v3 = vpop.f32.mrb[2].mxu1 }
 0x487   : > { %v6798_v4 = vpop.f32.mrb[3].mxu1  ;;  %6829 = vmatmul.mubr.msk.f32.vlgmr.msra.gmra.mrb[6].mxu1 %vm890_vm1, %v1048_v3  ;;  %v1953_v3 = vld [vmem:[%s9940_s10 + $0x18] sm:$0xff] }
 0x488   : > { %6838 = vmatprep.mubr.msk.f32.mxu1 %vm7913_vm0, %v7911_v42  ;;  %v1950_v4 = vld [vmem:[%s9940_s10] sm:$0xff] }
 0x4f9   : > { %v1216_v5 = vpop.f32.mrb[4].mxu1 }
 0x4fa   : > { %v6808_v7 = vpop.f32.mrb[5].mxu1  ;;  %6818 = vmatmul.mubr.msk.f32.vlgmr.msra.gmra.mrb[6].mxu0 %vm890_vm1, %v1216_v5  ;;  %v7334_v5 = vpack.c.bf16 %v1953_v3, %v1951_v2  ;;  %v1976_v2 = vld [vmem:[%s9940_s10 + $0xd0] sm:$0xff] }
 0x4fb   : > { %6832 = vmatpush3.xpose.msk.msra.mxu0 %vm890_vm1, %v1371_v6  ;;  %6833 = vmatprep.mubr.msk.f32.mxu0 %vm7913_vm0, %v7911_v42  ;;  %v1952_v6 = vld [vmem:[%s9940_s10 + $0x10] sm:$0xff]  ;;  %v1955_v7 = vld [vmem:[%s9940_s10 + $0x28] sm:$0xff] }
 0x4fc   : > { %7298 = vmatprep.subr.bf16.mxu0 %v7912_v51 }
 0x4fe   : > { %6834 = vmatmul.mubr.msk.f32.vlgmr.msra.gmra.mrb[8].mxu0 %vm890_vm1, %v1369_v8  ;;  %v1957_v8 = vld [vmem:[%s9940_s10 + $0x38] sm:$0xff] }
 0x4ff   : > { %6849 = vmatprep.mubr.msk.f32.mxu0 %vm7913_vm0, %v7911_v42 }
 0x55a   : > { %v1362_v9 = vpop.f32.mrb[6].mxu1 }
 0x55b   : > { %v6830_v10 = vpop.f32.mrb[7].mxu1 }
 0x55c   : > { %v7338_v10 = vpack.c.bf16 %v1957_v8, %v1955_v7  ;;  %v1876_v7 = vld [vmem:[%s9939_s9 + $0x60] sm:$0xff] }
 0x5cd   : > { %v1289_v11 = vpop.f32.mrb[6].mxu0 }
 0x5ce   : > { %v8333_v12 = vadd.f32 %v1362_v9, %v1289_v11  ;;  %v6819_v13 = vpop.f32.mrb[7].mxu0  ;;  %v7336_v9 = vpack.c.bf16 %v1952_v6, %v1950_v4  ;;  %v1864_v11 = vld [vmem:[%s9939_s9] sm:$0xff]  ;;  %v1981_v6 = vld [vmem:[%s9940_s10 + $0xf8] sm:$0xff] }
 0x5cf   : > { %v1954_v13 = vld [vmem:[%s9940_s10 + $0x20] sm:$0xff] }
 0x5d1   : > { %v1442_v15 = vpop.f32.mrb[8].mxu0 }
 0x5d2   : > { %v1443_v16 = vadd.f32 %v6172_v14, %v1442_v15  ;;  %v6835_v18 = vpop.f32.mrb[9].mxu0  ;;  %v1956_v15 = vld [vmem:[%s9940_s10 + $0x30] sm:$0xff] }
 0x5d3   : > { %v1961_v18 = vld [vmem:[%s9940_s10 + $0x58] sm:$0xff] }
 0x5d4   : > { %v1446_v19 = vsel %vm967_vm2, %v1443_v16, -inf }
 0x5d5   : > { %1447 = vmax.xlane.f32.xlu1 %v1446_v19  ;;  %v7340_v19 = vpack.c.bf16 %v1956_v15, %v1954_v13  ;;  %v1879_v15 = vld [vmem:[%s9939_s9 + $0x78] sm:$0xff] }
 0x5e6   : > { %1457 = vrot.lane.b32.xlu1 %v8262_v22, %s9960_s17  ;;  %s652_s17 = scalar_lea.vmem %s9991_s23, %s8087_s28  ;;  %s9998_s23 = sld [smem:[#allocation18_spill]] }
 0x5ea   : > { %1609 = vrot.lane.b32.xlu1 %v8247_v20, %s9958_s18  ;;  %v882_v20 = vld [vmem:[%s9937_s7 + $0x48] sm:$0xff] }
 0x5eb   : > { %v7299_v31 = vpack.c.bf16 %v882_v20, %v881_v29  ;;  %v1963_v29 = vld [vmem:[%s9940_s10 + $0x68] sm:$0xff]  ;;  %v1965_v20 = vld [vmem:[%s9940_s10 + $0x78] sm:$0xff] }
 0x5ed   : > { %7300 = vmatpush3.bf16.msra.mxu0 %v7299_v31  ;;  %v1869_v31 = vld [vmem:[%s9939_s9 + $0x28] sm:$0xff] }
 0x5ee   : > { %7301 = vmatprep.subr.bf16.mxu0 %v7912_v51 }
 0x5f1   : > { %7303 = vmatpush3.bf16.msra.mxu0 %v7302_v33  ;;  %v7346_v33 = vpack.c.bf16 %v1965_v20, %v1963_v29 }
 0x5f2   : > { %7304 = vmatprep.subr.bf16.mxu0 %v7912_v51 }
 0x662   : > { %v1448_v23 = vpop.xlane.xlu1 %1447 }
 0x663   : > { %v1449_v24 = vsub.f32 %v1443_v16, %v1448_v23  ;;  %v1959_v16 = vld [vmem:[%s9940_s10 + $0x48] sm:$0xff]  ;;  %v1866_v23 = vld [vmem:[%s9939_s9 + $0x10] sm:$0xff] }
 0x665   : > { %v1450_v25 = vmul.f32 1.442695, %v1449_v24  ;;  %v1867_v24 = vld [vmem:[%s9939_s9 + $0x18] sm:$0xff] }
 0x666   : > { %v1458_v26 = vpop.permute.xlu1 %1457 }
 0x667   : > { %7768 = vpow2.f32 %v1450_v25  ;;  %6837 = vmatpush3.msra.mxu1 %v1458_v26  ;;  %v7342_v25 = vpack.c.bf16 %v1961_v18, %v1959_v16  ;;  %v7314_v26 = vpack.c.bf16 %v1867_v24, %v1866_v23  ;;  %v664_v18 = vld [vmem:[%s8561_s25] sm:$0xff] }
 0x668   : > { %6852 = vmatprep.subr.mxu1 %v7911_v42 }
 0x66a   : > { %v1610_v37 = vpop.permute.xlu1 %1609 }
 0x671   : > { %v7769_v27 = vpop.eup %7768 }
 0x672   : > { %v1452_v28 = vsel %vm967_vm2, %v7769_v27, 0.0 }
 0x673   : > { %1453 = vadd.xlane.f32.xlu0 %v1452_v28  ;;  %v1960_v28 = vld [vmem:[%s9940_s10 + $0x50] sm:$0xff] }
 0x689   : > { %1611 = vrot.lane.b32.xlu0 %v8251_v21, %s9958_s18 }
 0x700   : > { %v1454_v21 = vpop.xlane.xlu0 %1453 }
 0x701   : > { %7770 = vrcp.f32 %v1454_v21  ;;  %v7317_v21 = vpack.c.bf16 %v1869_v31, %v1868_v30 }
 0x704   : > { %v1612_v36 = vpop.permute.xlu0 %1611 }
 0x70b   : > { %v7771_v34 = vpop.eup %7770 }
 0x70c   : > { %v1456_v35 = vmul.f32 %v7771_v34, %v7769_v27  ;;  %v1958_v27 = vld [vmem:[%s9940_s10 + $0x40] sm:$0xff] }
 0x70d   : > { %v7344_v32 = vpack.c.bf16 %v1960_v28, %v1958_v27  ;;  %v1962_v34 = vld [vmem:[%s9940_s10 + $0x60] sm:$0xff] }
 0x70e   : > { %6839 = vmatmul.mubr.msk.f32.vlgmr.msra.gmra.mrb[8].mxu1 %vm967_vm2, %v1456_v35  ;;  %v1964_v35 = vld [vmem:[%s9940_s10 + $0x70] sm:$0xff] }
 0x70f   : > { %6853 = vmatpush3.xpose.msk.msra.mxu1 %vm890_vm1, %v1612_v36  ;;  %6854 = vmatprep.mubr.msk.f32.mxu1 %vm7913_vm0, %v7911_v42  ;;  %v1967_v36 = vld [vmem:[%s9940_s10 + $0x88] sm:$0xff] }
 0x710   : > { %6857 = vmatprep.subr.mxu1 %v7911_v42 }
 0x712   : > { %6855 = vmatmul.mubr.msk.f32.vlgmr.msra.gmra.mrb[10].mxu1 %vm890_vm1, %v1610_v37  ;;  %v1969_v37 = vld [vmem:[%s9940_s10 + $0x98] sm:$0xff] }
 0x713   : > { %6859 = vmatprep.mubr.msk.f32.mxu1 %vm7913_vm0, %v7911_v42 }
 0x7e1   : > { %v1529_v38 = vpop.f32.mrb[8].mxu1 }
 0x7e2   : > { %v6840_v39 = vpop.f32.mrb[9].mxu1  ;;  %6850 = vmatmul.mubr.msk.f32.vlgmr.msra.gmra.mrb[10].mxu0 %vm890_vm1, %v1529_v38  ;;  %v7348_v38 = vpack.c.bf16 %v1964_v35, %v1962_v34  ;;  %v665_v34 = vld [vmem:[%s652_s17] sm:$0x1]  ;;  %s9995_s17 = sld [smem:[#allocation20_spill]] }
 0x7e3   : > { %6870 = vmatprep.mubr.msk.f32.mxu0 %vm7913_vm0, %v7911_v42  ;;  %v7350_v39 = vpack.c.bf16 %v1969_v37, %v1967_v36  ;;  %v666_v35 = vsub.f32 1.0, %v665_v34 }
 0x7e5   : > { %v1683_v41 = vpop.f32.mrb[10].mxu1  ;;  %v667_v37 = vmul.f32 -1e+09, %v666_v35 }
 0x7e6   : > { %v1684_v43 = vadd.f32 %v6177_v40, %v1683_v41  ;;  %v6856_v44 = vpop.f32.mrb[11].mxu1 }
 0x7e8   : > { %v1687_v45 = vsel %vm967_vm2, %v1684_v43, -inf  ;;  %s662_s3 = scalar_lea.vmem %s9995_s17, %s8087_s28  ;;  %s7918_s17 = smov [#allocation2]  }
 0x7e9   : > { %1688 = vmax.xlane.f32.xlu1 %v1687_v45 }
 0x7fa   : > { %1698 = vrot.lane.b32.xlu1 %v8262_v22, %s9958_s18  ;;  %v886_v22 = vld [vmem:[%s9937_s7 + $0x68] sm:$0xff]  ;;  %s9992_s18 = smov 64  }
 0x7fb   : > { %v7305_v55 = vpack.c.bf16 %v886_v22, %v885_v53  ;;  %v1973_v53 = vld [vmem:[%s9940_s10 + $0xb8] sm:$0xff] }
 0x7fd   : > { %7306 = vmatpush3.bf16.msra.mxu0 %v7305_v55  ;;  %v1873_v55 = vld [vmem:[%s9939_s9 + $0x48] sm:$0xff] }
 0x7fe   : > { %7307 = vmatprep.subr.bf16.mxu0 %v7912_v51 }
 0x801   : > { %7309 = vmatpush3.bf16.msra.mxu0 %v7308_v57  ;;  %v7323_v57 = vpack.c.bf16 %v1873_v55, %v1872_v54 }
 0x802   : > { %7335 = vmatprep.subr.bf16.mxu0 %v7334_v5  ;;  %v1979_v5 = vld [vmem:[%s9940_s10 + $0xe8] sm:$0xff] }
 0x803   : > { %v7362_v8 = vpack.c.bf16 %v1981_v6, %v1979_v5  ;;  %v2053_v6 = vld [vmem:[%s9941_s11] sm:$0xff] }
 0x876   : > { %v1689_v46 = vpop.xlane.xlu1 %1688 }
 0x877   : > { %v1690_v47 = vsub.f32 %v1684_v43, %v1689_v46  ;;  %v1870_v46 = vld [vmem:[%s9939_s9 + $0x30] sm:$0xff] }
 0x879   : > { %v1691_v48 = vmul.f32 1.442695, %v1690_v47  ;;  %v1871_v47 = vld [vmem:[%s9939_s9 + $0x38] sm:$0xff] }
 0x87a   : > { %v1699_v49 = vpop.permute.xlu1 %1698 }
 0x87b   : > { %7772 = vpow2.f32 %v1691_v48  ;;  %6858 = vmatpush3.msra.mxu1 %v1699_v49  ;;  %v1966_v48 = vld [vmem:[%s9940_s10 + $0x80] sm:$0xff]  ;;  %v7320_v49 = vpack.c.bf16 %v1871_v47, %v1870_v46 }
 0x87c   : > { %7310 = vmatprep.subr.bf16.mxu1 %v7912_v51 }
 0x885   : > { %v7773_v50 = vpop.eup %7772 }
 0x886   : > { %v1693_v52 = vsel %vm967_vm2, %v7773_v50, 0.0 }
 0x887   : > { %1694 = vadd.xlane.f32.xlu0 %v1693_v52  ;;  %v1971_v52 = vld [vmem:[%s9940_s10 + $0xa8] sm:$0xff] }
 0x888   : > { %v7354_v22 = vpack.c.bf16 %v1973_v53, %v1971_v52 }
 0x8b5   : > { %v1602_v58 = vpop.f32.mrb[10].mxu0 }
 0x8b6   : > { %v8394_v59 = vadd.f32 %v1602_v58, %v8333_v12  ;;  %v6851_v60 = vpop.f32.mrb[11].mxu0  ;;  %v1865_v12 = vld [vmem:[%s9939_s9 + $0x8] sm:$0xff]  ;;  %v1972_v58 = vld [vmem:[%s9940_s10 + $0xb0] sm:$0xff] }
 0x8b7   : > { %v7311_v14 = vpack.c.bf16 %v1865_v12, %v1864_v11  ;;  %v1975_v60 = vld [vmem:[%s9940_s10 + $0xc8] sm:$0xff]  ;;  %v1980_v11 = vld [vmem:[%s9940_s10 + $0xf0] sm:$0xff] }
 0x914   : > { %v1695_v61 = vpop.xlane.xlu0 %1694 }
 0x915   : > { %7774 = vrcp.f32 %v1695_v61  ;;  %v1977_v61 = vld [vmem:[%s9940_s10 + $0xd8] sm:$0xff] }
 0x91f   : > { %v7775_v62 = vpop.eup %7774 }
 0x920   : > { %v1697_v63 = vmul.f32 %v7775_v62, %v7773_v50  ;;  %v1874_v62 = vld [vmem:[%s9939_s9 + $0x50] sm:$0xff] }
 0x922   : > { %6860 = vmatmul.mubr.msk.f32.vlgmr.msra.gmra.mrb[12].mxu1 %vm967_vm2, %v1697_v63  ;;  %v7358_v63 = vpack.c.bf16 %v1977_v61, %v1975_v60 }
 0x923   : > { %6905 = vmatprep.mubr.msk.f32.mxu1 %vm7913_vm0, %v7911_v42  ;;  %7312 = vmatpush3.bf16.msra.mxu1 %v7311_v14  ;;  %v1878_v14 = vld [vmem:[%s9939_s9 + $0x70] sm:$0xff] }
 0x924   : > { %7313 = vmatprep.subr.bf16.mxu1 %v7912_v51  ;;  %v7332_v16 = vpack.c.bf16 %v1879_v15, %v1878_v14 }
 0x927   : > { %7315 = vmatpush3.bf16.msra.mxu1 %v7314_v26  ;;  %v6182_v26 = vld [vmem:[%s9938_s8] ss:$0 sm:$0xff] }
 0x928   : > { %7316 = vmatprep.subr.bf16.mxu1 %v7912_v51 }
 0x92b   : > { %7318 = vmatpush3.bf16.msra.mxu1 %v7317_v21  ;;  %v2070_v21 = vlaneseq }
 0x92c   : > { %7319 = vmatprep.subr.bf16.mxu1 %v7912_v51 }
 0x92d   : > { %v2071_v36 = vshrl.u32 %v2070_v21, 7 }
 0x92f   : > { %7321 = vmatpush3.bf16.msra.mxu1 %v7320_v49 }
 0x930   : > { %7322 = vmatprep.subr.bf16.mxu1 %v7912_v51 }
 0x933   : > { %7324 = vmatpush3.bf16.msra.mxu1 %v7323_v57 }
 0x934   : > { %7325 = vmatprep.subr.bf16.mxu1 %v7912_v51 }
 0x9f5   : > { %v1770_v0 = vpop.f32.mrb[12].mxu1 }
 0x9f6   : > { %v6861_v1 = vpop.f32.mrb[13].mxu1  ;;  %6871 = vmatmul.mubr.msk.f32.vlgmr.msra.gmra.mrb[12].mxu0 %vm890_vm1, %v1770_v0  ;;  %v1875_v0 = vld [vmem:[%s9939_s9 + $0x58] sm:$0xff] }
 0x9f7   : > { %2046 = vmatprep.mubr.f32.mxu0 %v7911_v42  ;;  %7337 = vmatpush1.bf16.msra.mxu0 %v7336_v9  ;;  %v1974_v1 = vld [vmem:[%s9940_s10 + $0xc0] sm:$0xff]  ;;  %v7326_v3 = vpack.c.bf16 %v1875_v0, %v1874_v62  ;;  %v1877_v9 = vld [vmem:[%s9939_s9 + $0x68] sm:$0xff] }
 0x9f8   : > { %7339 = vmatprep.subr.bf16.mxu0 %v7338_v10  ;;  %v7360_v4 = vpack.c.bf16 %v1976_v2, %v1974_v1  ;;  %v1978_v10 = vld [vmem:[%s9940_s10 + $0xe0] sm:$0xff]  ;;  %v7329_v12 = vpack.c.bf16 %v1877_v9, %v1876_v7  ;;  %v2058_v0 = vld [vmem:[%s9941_s11 + $0x28] sm:$0xff]  ;;  %v2059_v1 = vld [vmem:[%s9941_s11 + $0x30] sm:$0xff] }
 0x9f9   : > { %7327 = vmatpush3.bf16.msra.mxu1 %v7326_v3  ;;  %v7364_v13 = vpack.c.bf16 %v1980_v11, %v1978_v10  ;;  %v2060_v3 = vld [vmem:[%s9941_s11 + $0x38] sm:$0xff]  ;;  %v2054_v7 = vld [vmem:[%s9941_s11 + $0x8] sm:$0xff]  ;;  %v2055_v11 = vld [vmem:[%s9941_s11 + $0x10] sm:$0xff] }
 0x9fa   : > { %7328 = vmatprep.subr.bf16.mxu1 %v7912_v51  ;;  %v7373_v9 = vpack.c.bf16 %v2054_v7, %v2053_v6 }
 0x9fb   : > { %7341 = vmatpush1.bf16.msra.mxu0 %v7340_v19 }
 0x9fc   : > { %7343 = vmatprep.subr.bf16.mxu0 %v7342_v25 }
 0x9fd   : > { %7330 = vmatpush3.bf16.msra.mxu1 %v7329_v12  ;;  %v2056_v12 = vld [vmem:[%s9941_s11 + $0x18] sm:$0xff] }
 0x9fe   : > { %7331 = vmatprep.subr.bf16.mxu1 %v7912_v51 }
 0x9ff   : > { %7345 = vmatpush1.bf16.msra.mxu0 %v7344_v32 }
 0xa00   : > { %7347 = vmatprep.subr.bf16.mxu0 %v7346_v33 }
 0xa01   : > { %7333 = vmatpush3.bf16.msra.mxu1 %v7332_v16 }
 0xa02   : > { %6908 = vmatprep.subr.mxu1 %v7911_v42 }
 0xa03   : > { %7349 = vmatpush1.bf16.msra.mxu0 %v7348_v38  ;;  %v2072_v38 = vsub.s32 0, %v2071_v36 }
 0xa04   : > { %7351 = vmatprep.subr.bf16.mxu0 %v7350_v39 }
 0xa05   : > { %v8604_v39 = vrot.slane %v667_v37, %v2072_v38 }
 0xac9   : > { %v1843_v40 = vpop.f32.mrb[12].mxu0 }
 0xaca   : > { %v1847_v41 = vadd.f32 %v1843_v40, %v8394_v59  ;;  %v6872_v43 = vpop.f32.mrb[13].mxu0  ;;  %v7356_v59 = vpack.c.bf16 %v1972_v58, %v1970_v56 }
 0xacc   : > { %v8478_v44 = vadd.f32 %v1847_v41, %v8114_v17  ;;  %v1968_v17 = vld [vmem:[%s9940_s10 + $0x90] sm:$0xff] }
 0xacd   : > { %v7352_v50 = vpack.c.bf16 %v1968_v17, %v1966_v48 }
 0xace   : > { %v1850_v45 = vmul.f32 %v8478_v44, %v8478_v44 }
 0xacf   : > { %7353 = vmatpush1.bf16.msra.mxu0 %v7352_v50 }
 0xad0   : > { %1851 = vadd.xlane.f32.xlu0 %v1850_v45  ;;  %7355 = vmatprep.subr.bf16.mxu0 %v7354_v22 }
 0xad3   : > { %7357 = vmatpush1.bf16.msra.mxu0 %v7356_v59 }
 0xad4   : > { %7359 = vmatprep.subr.bf16.mxu0 %v7358_v63  ;;  %v2057_v63 = vld [vmem:[%s9941_s11 + $0x20] sm:$0xff] }
 0xad5   : > { %v7367_v2 = vpack.c.bf16 %v2058_v0, %v2057_v63  ;;  %v2065_v0 = vld [vmem:[%s9941_s11 + $0x60] sm:$0xff] }
 0xad7   : > { %7361 = vmatpush1.bf16.msra.mxu0 %v7360_v4  ;;  %v7370_v4 = vpack.c.bf16 %v2060_v3, %v2059_v1  ;;  %v2066_v1 = vld [vmem:[%s9941_s11 + $0x68] sm:$0xff]  ;;  %v2068_v3 = vld [vmem:[%s9941_s11 + $0x78] sm:$0xff] }
 0xad8   : > { %7363 = vmatprep.subr.bf16.mxu0 %v7362_v8 }
 0xadb   : > { %7365 = vmatpush1.bf16.msra.mxu0 %v7364_v13  ;;  %v7376_v13 = vpack.c.bf16 %v2056_v12, %v2055_v11 }
 0xadc   : > { %6918 = vmatprep.subr.mxu0 %v7911_v42 }
 0xade   : > { %2047 = vmatmul.mubr.f32.vlgmr.msra.gmra.mrb[14].mxu0 %v664_v18 }
 0xadf   : > { %6920 = vmatprep.mubr.msk.f32.mxu0 %vm7913_vm0, %v7911_v42 }
 0xb5d   : > { %v1852_v19 = vpop.xlane.xlu0 %1851 }
 0xb5e   : > { %v1853_v23 = vmul.f32 0.0078125, %v1852_v19 }
 0xb60   : > { %v1854_v24 = vadd.f32 1e-06, %v1853_v23 }
 0xb62   : > { %7776 = vrsqrt.f32 %v1854_v24 }
 0xb6c   : > { %v7777_v25 = vpop.eup %7776 }
 0xb6d   : > { %v1856_v27 = vmul.f32 %v7777_v25, %v8478_v44 }
 0xb6f   : > { %v1863_v28 = vmul.f32 %v6182_v26, %v1856_v27 }
 0xb71   : > { %6906 = vmatmul.mubr.f32.vlgmr.msra.gmra.mrb[14].mxu1 %v1863_v28 }
 0xb72   : > { %6910 = vmatprep.mubr.msk.f32.mxu1 %vm7913_vm0, %v7911_v42 }
 0xbb1   : > { %v8575_v29 = vpop.f32.mrb[14].mxu0 }
 0xbb2   : > { %v8577_v20 = vpop.f32.mrb[15].mxu0  ;;  %6909 = vmatpush3.xpose.msk.msra.mxu1 %vm890_vm1, %v8575_v29  ;;  %2237 = vrot.lane.b32.xlu0 %v8575_v29, %s9990_s27 }
 0xbb3   : > { %6913 = vmatprep.subr.mxu1 %v7911_v42 }
 0xc24   : > { %v2238_v30 = vpop.permute.xlu0 %2237 }
 0xc25   : > { %6919 = vmatpush3.xpose.msk.msra.mxu0 %vm890_vm1, %v2238_v30 }
 0xc26   : > { %7366 = vmatprep.subr.bf16.mxu0 %v7912_v51 }
 0xc44   : > { %v8586_v31 = vpop.f32.mrb[14].mxu1 }
 0xc45   : > { %2235 = vrot.lane.b32.xlu1 %v8586_v31, %s9990_s27  ;;  %v6907_v32 = vpop.f32.mrb[15].mxu1  ;;  %6911 = vmatmul.mubr.msk.f32.vlgmr.msra.gmra.mrb[16].mxu1 %vm890_vm1, %v8586_v31 }
 0xc46   : > { %6914 = vmatpush3.msra.mxu1 %v8577_v20  ;;  %6915 = vmatprep.mubr.msk.f32.mxu1 %vm7913_vm0, %v7911_v42 }
 0xc47   : > { %6923 = vmatprep.subr.mxu1 %v7911_v42 }
 0xcb7   : > { %v2236_v33 = vpop.permute.xlu1 %2235 }
 0xcb8   : > { %6921 = vmatmul.mubr.msk.f32.vlgmr.msra.gmra.mrb[16].mxu0 %vm890_vm1, %v2236_v33 }
 0xcb9   : > { %6936 = vmatprep.mubr.msk.f32.mxu0 %vm7913_vm0, %v7911_v42  ;;  %7368 = vmatpush3.bf16.msra.mxu0 %v7367_v2  ;;  %v7385_v2 = vpack.c.bf16 %v2066_v1, %v2065_v0  ;;  %v3070_v0 = vld [vmem:[%s9943_s13 + $0xe8] sm:$0xff]  ;;  %v3072_v1 = vld [vmem:[%s9943_s13 + $0xf8] sm:$0xff] }
 0xcba   : > { %7369 = vmatprep.subr.bf16.mxu0 %v7912_v51 }
 0xcbd   : > { %7371 = vmatpush3.bf16.msra.mxu0 %v7370_v4 }
 0xcbe   : > { %6950 = vmatprep.subr.mxu0 %v7911_v42 }
 0xd18   : > { %v2147_v40 = vpop.f32.mrb[16].mxu1 }
 0xd19   : > { %v2148_v41 = vadd.f32 %v2147_v40, %v8604_v39  ;;  %v6912_v43 = vpop.f32.mrb[17].mxu1 }
 0xd1b   : > { %v2151_v45 = vsel %vm967_vm2, %v2148_v41, -inf }
 0xd1c   : > { %2152 = vmax.xlane.f32.xlu1 %v2151_v45  ;;  %v2064_v45 = vld [vmem:[%s9941_s11 + $0x58] sm:$0xff] }
 0xd8b   : > { %v2309_v46 = vpop.f32.mrb[16].mxu0 }
 0xd8c   : > { %v2310_v47 = vadd.f32 %v2309_v46, %v8604_v39  ;;  %v6922_v48 = vpop.f32.mrb[17].mxu0 }
 0xd8e   : > { %v2313_v49 = vsel %vm967_vm2, %v2310_v47, -inf }
 0xd8f   : > { %2314 = vmax.xlane.f32.xlu0 %v2313_v49 }
 0xda9   : > { %v2153_v17 = vpop.xlane.xlu1 %2152 }
 0xdaa   : > { %v2154_v50 = vsub.f32 %v2148_v41, %v2153_v17  ;;  %v2061_v41 = vld [vmem:[%s9941_s11 + $0x40] sm:$0xff] }
 0xdac   : > { %v2155_v52 = vmul.f32 1.442695, %v2154_v50 }
 0xdae   : > { %7778 = vpow2.f32 %v2155_v52 }
 0xdb8   : > { %v7779_v53 = vpop.eup %7778 }
 0xdb9   : > { %v2157_v22 = vsel %vm967_vm2, %v7779_v53, 0.0 }
 0xdba   : > { %2158 = vadd.xlane.f32.xlu1 %v2157_v22 }
 0xdcb   : > { %2325 = vrot.lane.b32.xlu1 %v8577_v20, %s9990_s27 }
 0xdcf   : > { %2547 = vrot.lane.b32.xlu1 %v8586_v31, %s9992_s18 }
 0xe1c   : > { %v2315_v54 = vpop.xlane.xlu0 %2314 }
 0xe1d   : > { %v2316_v55 = vsub.f32 %v2310_v47, %v2315_v54 }
 0xe1f   : > { %v2317_v56 = vmul.f32 1.442695, %v2316_v55 }
 0xe21   : > { %7780 = vpow2.f32 %v2317_v56 }
 0xe2b   : > { %v7781_v57 = vpop.eup %7780 }
 0xe2c   : > { %v2319_v58 = vsel %vm967_vm2, %v7781_v57, 0.0 }
 0xe2d   : > { %2320 = vadd.xlane.f32.xlu0 %v2319_v58 }
 0xe43   : > { %2549 = vrot.lane.b32.xlu0 %v8575_v29, %s9992_s18 }
 0xe47   : > { %v2159_v59 = vpop.xlane.xlu1 %2158 }
 0xe48   : > { %7782 = vrcp.f32 %v2159_v59 }
 0xe4b   : > { %v2326_v62 = vpop.permute.xlu1 %2325 }
 0xe4f   : > { %v2548_v23 = vpop.permute.xlu1 %2547 }
 0xe52   : > { %v7783_v60 = vpop.eup %7782 }
 0xe53   : > { %v2161_v61 = vmul.f32 %v7783_v60, %v7779_v53 }
 0xe55   : > { %6916 = vmatmul.mubr.msk.f32.vlgmr.msra.gmra.mrb[18].mxu1 %vm967_vm2, %v2161_v61 }
 0xe56   : > { %6924 = vmatpush3.msra.mxu1 %v2326_v62  ;;  %6925 = vmatprep.mubr.msk.f32.mxu1 %vm7913_vm0, %v7911_v42 }
 0xe57   : > { %7372 = vmatprep.subr.bf16.mxu1 %v7912_v51 }
 0xeba   : > { %v2321_v5 = vpop.xlane.xlu0 %2320 }
 0xebb   : > { %7784 = vrcp.f32 %v2321_v5 }
 0xebe   : > { %v2550_v18 = vpop.permute.xlu0 %2549 }
 0xec5   : > { %v7785_v8 = vpop.eup %7784 }
 0xec6   : > { %v2323_v10 = vmul.f32 %v7785_v8, %v7781_v57 }
 0xec8   : > { %6926 = vmatmul.mubr.msk.f32.vlgmr.msra.gmra.mrb[20].mxu1 %vm967_vm2, %v2323_v10 }
 0xec9   : > { %7374 = vmatpush3.bf16.msra.mxu1 %v7373_v9  ;;  %6947 = vmatprep.mubr.msk.f32.mxu1 %vm7913_vm0, %v7911_v42 }
 0xeca   : > { %7375 = vmatprep.subr.bf16.mxu1 %v7912_v51 }
 0xecd   : > { %7377 = vmatpush3.bf16.msra.mxu1 %v7376_v13  ;;  %v3042_v13 = vld [vmem:[%s9943_s13 + $0x8] sm:$0xff] }
 0xece   : > { %6955 = vmatprep.subr.mxu1 %v7911_v42 }
 0xf28   : > { %v2231_v14 = vpop.f32.mrb[18].mxu1 }
 0xf29   : > { %v6917_v15 = vpop.f32.mrb[19].mxu1  ;;  %6948 = vmatmul.mubr.msk.f32.vlgmr.msra.gmra.mrb[22].mxu1 %vm890_vm1, %v2231_v14  ;;  %v3044_v14 = vld [vmem:[%s9943_s13 + $0x18] sm:$0xff] }
 0xf2a   : > { %6957 = vmatprep.mubr.msk.f32.mxu1 %vm7913_vm0, %v7911_v42  ;;  %v3041_v15 = vld [vmem:[%s9943_s13] sm:$0xff] }
 0xf9b   : > { %v2397_v16 = vpop.f32.mrb[20].mxu1 }
 0xf9c   : > { %v6927_v19 = vpop.f32.mrb[21].mxu1  ;;  %6937 = vmatmul.mubr.msk.f32.vlgmr.msra.gmra.mrb[18].mxu0 %vm890_vm1, %v2397_v16  ;;  %v7390_v16 = vpack.c.bf16 %v3044_v14, %v3042_v13 }
 0xf9d   : > { %6951 = vmatpush3.xpose.msk.msra.mxu0 %vm890_vm1, %v2550_v18  ;;  %6952 = vmatprep.mubr.msk.f32.mxu0 %vm7913_vm0, %v7911_v42  ;;  %v3043_v18 = vld [vmem:[%s9943_s13 + $0x10] sm:$0xff]  ;;  %v3046_v19 = vld [vmem:[%s9943_s13 + $0x28] sm:$0xff] }
 0xf9e   : > { %7378 = vmatprep.subr.bf16.mxu0 %v7912_v51 }
 0xfa0   : > { %6953 = vmatmul.mubr.msk.f32.vlgmr.msra.gmra.mrb[20].mxu0 %vm890_vm1, %v2548_v23  ;;  %v3048_v23 = vld [vmem:[%s9943_s13 + $0x38] sm:$0xff] }
 0xfa1   : > { %6968 = vmatprep.mubr.msk.f32.mxu0 %vm7913_vm0, %v7911_v42 }
 0xffc   : > { %v2543_v24 = vpop.f32.mrb[22].mxu1 }
 0xffd   : > { %v6949_v25 = vpop.f32.mrb[23].mxu1 }
 0xffe   : > { %v7394_v25 = vpack.c.bf16 %v3048_v23, %v3046_v19  ;;  %v3167_v19 = vld [vmem:[%s9944_s14 + $0xa8] sm:$0xff] }
0x106f   : > { %v2470_v26 = vpop.f32.mrb[18].mxu0 }
0x1070   : > { %v8664_v27 = vadd.f32 %v2543_v24, %v2470_v26  ;;  %v6938_v28 = vpop.f32.mrb[19].mxu0  ;;  %v7392_v24 = vpack.c.bf16 %v3043_v18, %v3041_v15  ;;  %v3045_v26 = vld [vmem:[%s9943_s13 + $0x20] sm:$0xff]  ;;  %v3148_v15 = vld [vmem:[%s9944_s14 + $0x10] sm:$0xff] }
0x1071   : > { %v3050_v28 = vld [vmem:[%s9943_s13 + $0x48] sm:$0xff]  ;;  %v3166_v18 = vld [vmem:[%s9944_s14 + $0xa0] sm:$0xff] }
0x1073   : > { %v2621_v30 = vpop.f32.mrb[20].mxu0 }
0x1074   : > { %v2622_v32 = vadd.f32 %v2621_v30, %v8604_v39  ;;  %v6954_v33 = vpop.f32.mrb[21].mxu0  ;;  %v3052_v30 = vld [vmem:[%s9943_s13 + $0x58] sm:$0xff] }
0x1075   : > { %v7398_v33 = vpack.c.bf16 %v3052_v30, %v3050_v28  ;;  %v3169_v28 = vld [vmem:[%s9944_s14 + $0xb8] sm:$0xff] }
0x1076   : > { %v2625_v34 = vsel %vm967_vm2, %v2622_v32, -inf }
0x1077   : > { %2626 = vmax.xlane.f32.xlu1 %v2625_v34  ;;  %v3049_v34 = vld [vmem:[%s9943_s13 + $0x40] sm:$0xff] }
0x1088   : > { %2788 = vrot.lane.b32.xlu1 %v8575_v29, %s9993_s0  ;;  %v2062_v29 = vld [vmem:[%s9941_s11 + $0x48] sm:$0xff] }
0x1089   : > { %v7379_v43 = vpack.c.bf16 %v2062_v29, %v2061_v41 }
0x108b   : > { %7380 = vmatpush3.bf16.msra.mxu0 %v7379_v43 }
0x108c   : > { %2786 = vrot.lane.b32.xlu1 %v8586_v31, %s9993_s0  ;;  %v2063_v31 = vld [vmem:[%s9941_s11 + $0x50] sm:$0xff]  ;;  %7381 = vmatprep.subr.bf16.mxu0 %v7912_v51 }
0x108d   : > { %v7382_v46 = vpack.c.bf16 %v2064_v45, %v2063_v31 }
0x108f   : > { %7383 = vmatpush3.bf16.msra.mxu0 %v7382_v46  ;;  %v3053_v46 = vld [vmem:[%s9943_s13 + $0x60] sm:$0xff] }
0x1090   : > { %7384 = vmatprep.subr.bf16.mxu0 %v7912_v51 }
0x1104   : > { %v2627_v35 = vpop.xlane.xlu1 %2626 }
0x1105   : > { %v2628_v36 = vsub.f32 %v2622_v32, %v2627_v35  ;;  %v3051_v35 = vld [vmem:[%s9943_s13 + $0x50] sm:$0xff] }
0x1107   : > { %v2629_v37 = vmul.f32 1.442695, %v2628_v36  ;;  %v3054_v36 = vld [vmem:[%s9943_s13 + $0x68] sm:$0xff] }
0x1108   : > { %v2789_v17 = vpop.permute.xlu1 %2788 }
0x1109   : > { %7786 = vpow2.f32 %v2629_v37  ;;  %v3056_v37 = vld [vmem:[%s9943_s13 + $0x78] sm:$0xff] }
0x110c   : > { %v2787_v52 = vpop.permute.xlu1 %2786 }
0x1113   : > { %v7787_v38 = vpop.eup %7786 }
0x1114   : > { %v2631_v40 = vsel %vm967_vm2, %v7787_v38, 0.0 }
0x1115   : > { %2632 = vadd.xlane.f32.xlu0 %v2631_v40  ;;  %v7402_v40 = vpack.c.bf16 %v3056_v37, %v3054_v36  ;;  %v3171_v36 = vld [vmem:[%s9944_s14 + $0xc8] sm:$0xff] }
0x112b   : > { %2636 = vrot.lane.b32.xlu0 %v8577_v20, %s9992_s18 }
0x11a2   : > { %v2633_v47 = vpop.xlane.xlu0 %2632 }
0x11a3   : > { %7788 = vrcp.f32 %v2633_v47  ;;  %v3055_v47 = vld [vmem:[%s9943_s13 + $0x70] sm:$0xff] }
0x11a6   : > { %v2637_v48 = vpop.permute.xlu0 %2636 }
0x11a7   : > { %6956 = vmatpush3.msra.mxu1 %v2637_v48  ;;  %v7404_v48 = vpack.c.bf16 %v3055_v47, %v3053_v46  ;;  %v3156_v47 = vld [vmem:[%s9944_s14 + $0x50] sm:$0xff] }
0x11a8   : > { %6971 = vmatprep.subr.mxu1 %v7911_v42 }
0x11ad   : > { %v7789_v49 = vpop.eup %7788 }
0x11ae   : > { %v2635_v50 = vmul.f32 %v7789_v49, %v7787_v38  ;;  %v7400_v38 = vpack.c.bf16 %v3051_v35, %v3049_v34  ;;  %v3058_v49 = vld [vmem:[%s9943_s13 + $0x88] sm:$0xff]  ;;  %v3153_v34 = vld [vmem:[%s9944_s14 + $0x38] sm:$0xff]  ;;  %v3170_v35 = vld [vmem:[%s9944_s14 + $0xc0] sm:$0xff] }
0x11b0   : > { %6958 = vmatmul.mubr.msk.f32.vlgmr.msra.gmra.mrb[24].mxu1 %vm967_vm2, %v2635_v50  ;;  %v3057_v50 = vld [vmem:[%s9943_s13 + $0x80] sm:$0xff] }
0x11b1   : > { %6972 = vmatpush3.xpose.msk.msra.mxu1 %vm890_vm1, %v2789_v17  ;;  %6973 = vmatprep.mubr.msk.f32.mxu1 %vm7913_vm0, %v7911_v42 }
0x11b2   : > { %6976 = vmatprep.subr.mxu1 %v7911_v42 }
0x11b4   : > { %6974 = vmatmul.mubr.msk.f32.vlgmr.msra.gmra.mrb[26].mxu1 %vm890_vm1, %v2787_v52  ;;  %v3059_v52 = vld [vmem:[%s9943_s13 + $0x90] sm:$0xff] }
0x11b5   : > { %6978 = vmatprep.mubr.msk.f32.mxu1 %vm7913_vm0, %v7911_v42 }
0x1283   : > { %v2708_v53 = vpop.f32.mrb[24].mxu1 }
0x1284   : > { %v6959_v22 = vpop.f32.mrb[25].mxu1  ;;  %6969 = vmatmul.mubr.msk.f32.vlgmr.msra.gmra.mrb[22].mxu0 %vm890_vm1, %v2708_v53  ;;  %v7408_v53 = vpack.c.bf16 %v3059_v52, %v3057_v50  ;;  %v3158_v52 = vld [vmem:[%s9944_s14 + $0x60] sm:$0xff] }
0x1285   : > { %6989 = vmatprep.mubr.msk.f32.mxu0 %vm7913_vm0, %v7911_v42  ;;  %7386 = vmatpush3.bf16.msra.mxu0 %v7385_v2  ;;  %v3062_v22 = vld [vmem:[%s9943_s13 + $0xa8] sm:$0xff]  ;;  %v7418_v2 = vpack.c.bf16 %v3072_v1, %v3070_v0  ;;  %v3160_v0 = vld [vmem:[%s9944_s14 + $0x70] sm:$0xff]  ;;  %v3161_v1 = vld [vmem:[%s9944_s14 + $0x78] sm:$0xff] }
0x1286   : > { %7387 = vmatprep.subr.bf16.mxu0 %v7912_v51 }
0x1287   : > { %v2860_v54 = vpop.f32.mrb[26].mxu1 }
0x1288   : > { %v2861_v55 = vadd.f32 %v2860_v54, %v8604_v39  ;;  %v6975_v56 = vpop.f32.mrb[27].mxu1  ;;  %v3064_v54 = vld [vmem:[%s9943_s13 + $0xb8] sm:$0xff] }
0x1289   : > { %v7410_v56 = vpack.c.bf16 %v3064_v54, %v3062_v22 }
0x128a   : > { %v2864_v57 = vsel %vm967_vm2, %v2861_v55, -inf }
0x128b   : > { %2865 = vmax.xlane.f32.xlu0 %v2864_v57  ;;  %v3063_v57 = vld [vmem:[%s9943_s13 + $0xb0] sm:$0xff] }
0x12a1   : > { %2875 = vrot.lane.b32.xlu0 %v8577_v20, %s9993_s0  ;;  %v2067_v20 = vld [vmem:[%s9941_s11 + $0x70] sm:$0xff] }
0x12a2   : > { %v7388_v4 = vpack.c.bf16 %v2068_v3, %v2067_v20  ;;  %v3069_v3 = vld [vmem:[%s9943_s13 + $0xe0] sm:$0xff] }
0x12a4   : > { %7389 = vmatpush3.bf16.msra.mxu0 %v7388_v4  ;;  %v3071_v4 = vld [vmem:[%s9943_s13 + $0xf0] sm:$0xff] }
0x1318   : > { %v2866_v58 = vpop.xlane.xlu0 %2865 }
0x1319   : > { %v2867_v59 = vsub.f32 %v2861_v55, %v2866_v58  ;;  %v3061_v55 = vld [vmem:[%s9943_s13 + $0xa0] sm:$0xff]  ;;  %v3066_v58 = vld [vmem:[%s9943_s13 + $0xc8] sm:$0xff] }
0x131b   : > { %v2868_v60 = vmul.f32 1.442695, %v2867_v59  ;;  %v3068_v59 = vld [vmem:[%s9943_s13 + $0xd8] sm:$0xff] }
0x131c   : > { %v2876_v61 = vpop.permute.xlu0 %2875 }
0x131d   : > { %7790 = vpow2.f32 %v2868_v60  ;;  %6977 = vmatpush3.msra.mxu1 %v2876_v61  ;;  %v7412_v60 = vpack.c.bf16 %v3063_v57, %v3061_v55  ;;  %v7414_v61 = vpack.c.bf16 %v3068_v59, %v3066_v58  ;;  %v6199_v58 = vld [vmem:[%s9942_s12] ss:$0 sm:$0xff] }
0x131e   : > { %7391 = vmatprep.subr.bf16.mxu1 %v7390_v16  ;;  %v3149_v16 = vld [vmem:[%s9944_s14 + $0x18] sm:$0xff] }
0x131f   : > { %v7428_v23 = vpack.c.bf16 %v3149_v16, %v3148_v15  ;;  %v6209_v15 = vld [vmem:[%s9936_s6 + $0x1b8] sm:$0xff]  ;;  %v6212_v16 = vld [vmem:[%s9936_s6 + $0x1d0] sm:$0xff] }
0x1327   : > { %v7791_v62 = vpop.eup %7790 }
0x1328   : > { %v2870_v63 = vsel %vm967_vm2, %v7791_v62, 0.0 }
0x1329   : > { %2871 = vadd.xlane.f32.xlu1 %v2870_v63  ;;  %v3067_v63 = vld [vmem:[%s9943_s13 + $0xd0] sm:$0xff] }
0x1357   : > { %v2781_v5 = vpop.f32.mrb[22].mxu0 }
0x1358   : > { %v2785_v6 = vadd.f32 %v2781_v5, %v8664_v27  ;;  %v6970_v7 = vpop.f32.mrb[23].mxu0  ;;  %v3047_v27 = vld [vmem:[%s9943_s13 + $0x30] sm:$0xff]  ;;  %v7420_v5 = vpack.c.bf16 %v3071_v4, %v3069_v3 }
0x1359   : > { %v7396_v32 = vpack.c.bf16 %v3047_v27, %v3045_v26  ;;  %v3163_v7 = vld [vmem:[%s9944_s14 + $0x88] sm:$0xff]  ;;  %v3168_v27 = vld [vmem:[%s9944_s14 + $0xb0] sm:$0xff] }
0x135a   : > { %v3151_v26 = vld [vmem:[%s9944_s14 + $0x28] sm:$0xff] }
0x13b6   : > { %v2872_v8 = vpop.xlane.xlu1 %2871 }
0x13b7   : > { %7792 = vrcp.f32 %v2872_v8  ;;  %v3146_v8 = vld [vmem:[%s9944_s14] sm:$0xff] }
0x13c1   : > { %v7793_v9 = vpop.eup %7792 }
0x13c2   : > { %v2874_v10 = vmul.f32 %v7793_v9, %v7791_v62  ;;  %v3065_v62 = vld [vmem:[%s9943_s13 + $0xc0] sm:$0xff] }
0x13c3   : > { %v7416_v20 = vpack.c.bf16 %v3067_v63, %v3065_v62  ;;  %v3177_v62 = vld [vmem:[%s9944_s14 + $0xf8] sm:$0xff] }
0x13c4   : > { %6979 = vmatmul.mubr.msk.f32.vlgmr.msra.gmra.mrb[28].mxu1 %vm967_vm2, %v2874_v10  ;;  %v3147_v10 = vld [vmem:[%s9944_s14 + $0x8] sm:$0xff] }
0x13c5   : > { %3137 = vmatprep.mubr.f32.mxu1 %v7911_v42  ;;  %7393 = vmatpush1.bf16.msra.mxu1 %v7392_v24  ;;  %v7424_v13 = vpack.c.bf16 %v3147_v10, %v3146_v8  ;;  %v7430_v24 = vpack.c.bf16 %v3167_v19, %v3166_v18  ;;  %v6202_v8 = vld [vmem:[%s9936_s6 + $0x180] sm:$0xff]  ;;  %v6205_v10 = vld [vmem:[%s9936_s6 + $0x198] sm:$0xff]  ;;  %v6208_v18 = vld [vmem:[%s9936_s6 + $0x1b0] sm:$0xff]  ;;  %v7458_v19 = vpack.c.bf16 %v6212_v16, %v6209_v15 }
0x13c6   : > { %7395 = vmatprep.subr.bf16.mxu1 %v7394_v25  ;;  %v3150_v25 = vld [vmem:[%s9944_s14 + $0x20] sm:$0xff] }
0x13c7   : > { %v7432_v30 = vpack.c.bf16 %v3151_v26, %v3150_v25  ;;  %v6213_v25 = vld [vmem:[%s9936_s6 + $0x1d8] sm:$0xff] }
0x13c9   : > { %7397 = vmatpush1.bf16.msra.mxu1 %v7396_v32  ;;  %v7434_v32 = vpack.c.bf16 %v3169_v28, %v3168_v27  ;;  %v6215_v28 = vld [vmem:[%s9936_s6 + $0x1e8] sm:$0xff] }
0x13ca   : > { %7399 = vmatprep.subr.bf16.mxu1 %v7398_v33  ;;  %v3152_v33 = vld [vmem:[%s9944_s14 + $0x30] sm:$0xff] }
0x13cb   : > { %v7436_v37 = vpack.c.bf16 %v3153_v34, %v3152_v33  ;;  %v6217_v34 = vld [vmem:[%s9936_s6 + $0x1f8] sm:$0xff] }
0x13cd   : > { %7401 = vmatpush1.bf16.msra.mxu1 %v7400_v38  ;;  %v7438_v38 = vpack.c.bf16 %v3171_v36, %v3170_v35  ;;  %v6216_v35 = vld [vmem:[%s9936_s6 + $0x1f0] sm:$0xff]  ;;  %v6219_v36 = vld [vmem:[%s9936_s6 + $0x208] sm:$0xff] }
0x13ce   : > { %7403 = vmatprep.subr.bf16.mxu1 %v7402_v40  ;;  %v3154_v40 = vld [vmem:[%s9944_s14 + $0x40] sm:$0xff] }
0x13d1   : > { %7405 = vmatpush1.bf16.msra.mxu1 %v7404_v48  ;;  %v3157_v48 = vld [vmem:[%s9944_s14 + $0x58] sm:$0xff] }
0x1497   : > { %v2947_v11 = vpop.f32.mrb[28].mxu1 }
0x1498   : > { %v6980_v12 = vpop.f32.mrb[29].mxu1  ;;  %6990 = vmatmul.mubr.msk.f32.vlgmr.msra.gmra.mrb[24].mxu0 %vm890_vm1, %v2947_v11  ;;  %v3164_v11 = vld [vmem:[%s9944_s14 + $0x90] sm:$0xff] }
0x1499   : > { %v3165_v12 = vld [vmem:[%s9944_s14 + $0x98] sm:$0xff] }
0x149a   : > { %v7426_v14 = vpack.c.bf16 %v3165_v12, %v3164_v11  ;;  %v6204_v11 = vld [vmem:[%s9936_s6 + $0x190] sm:$0xff]  ;;  %v6207_v12 = vld [vmem:[%s9936_s6 + $0x1a8] sm:$0xff] }
0x156b   : > { %v3020_v41 = vpop.f32.mrb[24].mxu0 }
0x156c   : > { %v3024_v29 = vadd.f32 %v3020_v41, %v2785_v6  ;;  %v6991_v31 = vpop.f32.mrb[25].mxu0  ;;  %v3162_v6 = vld [vmem:[%s9944_s14 + $0x80] sm:$0xff]  ;;  %v3155_v41 = vld [vmem:[%s9944_s14 + $0x48] sm:$0xff] }
0x156d   : > { %v7422_v9 = vpack.c.bf16 %v3163_v7, %v3162_v6  ;;  %v3173_v31 = vld [vmem:[%s9944_s14 + $0xd8] sm:$0xff]  ;;  %v6203_v6 = vld [vmem:[%s9936_s6 + $0x188] sm:$0xff]  ;;  %v6206_v7 = vld [vmem:[%s9936_s6 + $0x1a0] sm:$0xff] }
0x156e   : > { %v8766_v43 = vadd.f32 %v3024_v29, %v8478_v44  ;;  %v3060_v44 = vld [vmem:[%s9943_s13 + $0x98] sm:$0xff]  ;;  %v3172_v29 = vld [vmem:[%s9944_s14 + $0xd0] sm:$0xff] }
0x156f   : > { %v7406_v17 = vpack.c.bf16 %v3060_v44, %v3058_v49  ;;  %7423 = vmatprep.subr.bf16.mxu0 %v7422_v9  ;;  %v7442_v46 = vpack.c.bf16 %v3173_v31, %v3172_v29  ;;  %v3174_v49 = vld [vmem:[%s9944_s14 + $0xe0] sm:$0xff]  ;;  %v3175_v44 = vld [vmem:[%s9944_s14 + $0xe8] sm:$0xff]  ;;  %v7454_v9 = vpack.c.bf16 %v6206_v7, %v6203_v6 }
0x1570   : > { %v3027_v45 = vmul.f32 %v8766_v43, %v8766_v43  ;;  %7425 = vmatpush3.bf16.msra.mxu0 %v7424_v13  ;;  %v7446_v50 = vpack.c.bf16 %v3175_v44, %v3174_v49  ;;  %v7456_v13 = vpack.c.bf16 %v6205_v10, %v6202_v8  ;;  %v6220_v49 = vld [vmem:[%s9936_s6 + $0x210] sm:$0xff]  ;;  %v6223_v44 = vld [vmem:[%s9936_s6 + $0x228] sm:$0xff]  ;;  %v6242_v6 = vld [vmem:[%s9936_s6 + $0x2c0] sm:$0xff] }
0x1571   : > { %7407 = vmatprep.subr.bf16.mxu1 %v7406_v17  ;;  %7427 = vmatprep.subr.bf16.mxu0 %v7426_v14  ;;  %v7444_v17 = vpack.c.bf16 %v3157_v48, %v3156_v47  ;;  %v7487_v14 = vpack.c.bf16 %v6207_v12, %v6204_v11  ;;  %v6238_v7 = vld [vmem:[%s9936_s6 + $0x2a0] sm:$0xff]  ;;  %v6240_v10 = vld [vmem:[%s9936_s6 + $0x2b0] sm:$0xff]  ;;  %v6243_v11 = vld [vmem:[%s9936_s6 + $0x2c8] sm:$0xff] }
0x1572   : > { %3028 = vadd.xlane.f32.xlu1 %v3027_v45  ;;  %7409 = vmatpush1.bf16.msra.mxu1 %v7408_v53  ;;  %v7440_v45 = vpack.c.bf16 %v3155_v41, %v3154_v40  ;;  %v3159_v53 = vld [vmem:[%s9944_s14 + $0x68] sm:$0xff]  ;;  %v7493_v41 = vpack.c.bf16 %v6219_v36, %v6216_v35  ;;  %v6245_v12 = vld [vmem:[%s9936_s6 + $0x2d8] sm:$0xff]  ;;  %v7505_v15 = vpack.c.bf16 %v6243_v11, %v6240_v10 }
0x1573   : > { %7411 = vmatprep.subr.bf16.mxu1 %v7410_v56  ;;  %v7448_v22 = vpack.c.bf16 %v3159_v53, %v3158_v52  ;;  %v6227_v53 = vld [vmem:[%s9936_s6 + $0x248] sm:$0xff] }
0x1574   : > { %7429 = vmatpush3.bf16.msra.mxu0 %v7428_v23  ;;  %v6211_v23 = vld [vmem:[%s9936_s6 + $0x1c8] sm:$0xff] }
0x1575   : > { %7431 = vmatprep.subr.bf16.mxu0 %v7430_v24  ;;  %v6210_v24 = vld [vmem:[%s9936_s6 + $0x1c0] sm:$0xff]  ;;  %v7460_v26 = vpack.c.bf16 %v6211_v23, %v6208_v18  ;;  %v6244_v18 = vld [vmem:[%s9936_s6 + $0x2d0] sm:$0xff] }
0x1576   : > { %7413 = vmatpush1.bf16.msra.mxu1 %v7412_v60  ;;  %v7490_v27 = vpack.c.bf16 %v6213_v25, %v6210_v24  ;;  %v6246_v23 = vld [vmem:[%s9936_s6 + $0x2e0] sm:$0xff]  ;;  %v6249_v24 = vld [vmem:[%s9936_s6 + $0x2f8] sm:$0xff] }
0x1577   : > { %7415 = vmatprep.subr.bf16.mxu1 %v7414_v61  ;;  %v3176_v61 = vld [vmem:[%s9944_s14 + $0xf0] sm:$0xff] }
0x1578   : > { %7433 = vmatpush3.bf16.msra.mxu0 %v7432_v30  ;;  %v7450_v63 = vpack.c.bf16 %v3177_v62, %v3176_v61  ;;  %v6218_v30 = vld [vmem:[%s9936_s6 + $0x200] sm:$0xff]  ;;  %v6233_v61 = vld [vmem:[%s9936_s6 + $0x278] sm:$0xff]  ;;  %v6236_v62 = vld [vmem:[%s9936_s6 + $0x290] sm:$0xff] }
0x1579   : > { %7435 = vmatprep.subr.bf16.mxu0 %v7434_v32  ;;  %v6214_v32 = vld [vmem:[%s9936_s6 + $0x1e0] sm:$0xff]  ;;  %v7462_v33 = vpack.c.bf16 %v6218_v30, %v6215_v28 }
0x157a   : > { %7417 = vmatpush1.bf16.msra.mxu1 %v7416_v20  ;;  %v7452_v20 = vpack.c.bf16 %v3161_v1, %v3160_v0  ;;  %v7464_v40 = vpack.c.bf16 %v6217_v34, %v6214_v32  ;;  %v7474_v0 = vpack.c.bf16 %v6236_v62, %v6233_v61  ;;  %v6235_v1 = vld [vmem:[%s9936_s6 + $0x288] sm:$0xff] }
0x157b   : > { %7419 = vmatprep.subr.bf16.mxu1 %v7418_v2 }
0x157c   : > { %7437 = vmatpush3.bf16.msra.mxu0 %v7436_v37  ;;  %v6221_v37 = vld [vmem:[%s9936_s6 + $0x218] sm:$0xff] }
0x157d   : > { %7439 = vmatprep.subr.bf16.mxu0 %v7438_v38  ;;  %v6224_v38 = vld [vmem:[%s9936_s6 + $0x230] sm:$0xff] }
0x157e   : > { %7421 = vmatpush1.bf16.msra.mxu1 %v7420_v5  ;;  %v7466_v29 = vpack.c.bf16 %v6224_v38, %v6221_v37 }
0x157f   : > { %7455 = vmatprep.subr.bf16.mxu1 %v7454_v9  ;;  %v6241_v9 = vld [vmem:[%s9936_s6 + $0x2b8] sm:$0xff] }
0x1580   : > { %7441 = vmatpush3.bf16.msra.mxu0 %v7440_v45 }
0x1581   : > { %7443 = vmatprep.subr.bf16.mxu0 %v7442_v46 }
0x1584   : > { %7445 = vmatpush3.bf16.msra.mxu0 %v7444_v17  ;;  %v6222_v17 = vld [vmem:[%s9936_s6 + $0x220] sm:$0xff] }
0x1585   : > { %7447 = vmatprep.subr.bf16.mxu0 %v7446_v50  ;;  %v7468_v50 = vpack.c.bf16 %v6223_v44, %v6220_v49 }
0x1588   : > { %7449 = vmatpush3.bf16.msra.mxu0 %v7448_v22  ;;  %v6230_v22 = vld [vmem:[%s9936_s6 + $0x260] sm:$0xff] }
0x1589   : > { %7451 = vmatprep.subr.bf16.mxu0 %v7450_v63  ;;  %v6232_v63 = vld [vmem:[%s9936_s6 + $0x270] sm:$0xff] }
0x158c   : > { %7453 = vmatpush3.bf16.msra.mxu0 %v7452_v20  ;;  %v6234_v20 = vld [vmem:[%s9936_s6 + $0x280] sm:$0xff] }
0x158d   : > { %7486 = vmatprep.subr.bf16.mxu0 %v7912_v51 }
0x15ff   : > { %v3029_v54 = vpop.xlane.xlu1 %3028 }
0x1600   : > { %v3030_v55 = vmul.f32 0.0078125, %v3029_v54  ;;  %v7470_v54 = vpack.c.bf16 %v6230_v22, %v6227_v53 }
0x1602   : > { %v3031_v56 = vadd.f32 1e-06, %v3030_v55  ;;  %v6226_v55 = vld [vmem:[%s9936_s6 + $0x240] sm:$0xff] }
0x1604   : > { %7794 = vrsqrt.f32 %v3031_v56  ;;  %v6229_v56 = vld [vmem:[%s9936_s6 + $0x258] sm:$0xff] }
0x160e   : > { %v7795_v57 = vpop.eup %7794 }
0x160f   : > { %v3033_v59 = vmul.f32 %v7795_v57, %v8766_v43  ;;  %v6228_v57 = vld [vmem:[%s9936_s6 + $0x250] sm:$0xff] }
0x1611   : > { %v3040_v60 = vmul.f32 %v6199_v58, %v3033_v59  ;;  %v7472_v58 = vpack.c.bf16 %v6229_v56, %v6226_v55  ;;  %v6231_v59 = vld [vmem:[%s9936_s6 + $0x268] sm:$0xff] }
0x1613   : > { %3138 = vmatmul.mubr.f32.vlgmr.msra.gmra.mrb[30].mxu1 %v3040_v60  ;;  %v7499_v60 = vpack.c.bf16 %v6231_v59, %v6228_v57 }
0x1614   : > { %3378 = vmatprep.mubr.f32.mxu1 %v7911_v42  ;;  %7457 = vmatpush1.bf16.msra.mxu1 %v7456_v13  ;;  %v6248_v13 = vld [vmem:[%s9936_s6 + $0x2f0] sm:$0xff] }
0x1615   : > { %7459 = vmatprep.subr.bf16.mxu1 %v7458_v19  ;;  %v7482_v16 = vpack.c.bf16 %v6248_v13, %v6245_v12  ;;  %v6247_v19 = vld [vmem:[%s9936_s6 + $0x2e8] sm:$0xff]  ;;  %v6252_v13 = vld [vmem:[%s9937_s7 + $0x90] sm:$0xff] }
0x1616   : > { %v7484_v25 = vpack.c.bf16 %v6247_v19, %v6244_v18 }
0x1618   : > { %7461 = vmatpush1.bf16.msra.mxu1 %v7460_v26  ;;  %v7508_v26 = vpack.c.bf16 %v6249_v24, %v6246_v23 }
0x1619   : > { %7463 = vmatprep.subr.bf16.mxu1 %v7462_v33  ;;  %v6201_v33 = vld [vmem:[%s9935_s5 + $0x1] ss:$0 sm:$0xff] }
0x161c   : > { %7465 = vmatpush1.bf16.msra.mxu1 %v7464_v40 }
0x161d   : > { %7467 = vmatprep.subr.bf16.mxu1 %v7466_v29 }
0x1620   : > { %7469 = vmatpush1.bf16.msra.mxu1 %v7468_v50 }
0x1621   : > { %7471 = vmatprep.subr.bf16.mxu1 %v7470_v54 }
0x1624   : > { %7473 = vmatpush1.bf16.msra.mxu1 %v7472_v58 }
0x1625   : > { %7475 = vmatprep.subr.bf16.mxu1 %v7474_v0 }
0x16e6   : > { %v3139_v2 = vpop.f32.mrb[30].mxu1 }
0x16e7   : > { %v3141_v3 = vpop.f32.mrb[31].mxu1  ;;  %v3144_v5 = vmax.f32 %v3139_v2, 0.0  ;;  %v6237_v2 = vld [vmem:[%s9936_s6 + $0x298] sm:$0xff] }
0x16e8   : > { %v3145_v4 = vmax.f32 %v3141_v3, 0.0  ;;  %v7476_v3 = vpack.c.bf16 %v6235_v1, %v6232_v63  ;;  %v6254_v1 = vld [vmem:[%s9937_s7 + $0xa0] sm:$0xff] }
0x16ea   : > { %3242 = vmatprep.mubr.f32.mxu0 %v3145_v4  ;;  %v7502_v4 = vpack.c.bf16 %v6237_v2, %v6234_v20  ;;  %7477 = vmatpush1.bf16.msra.mxu1 %v7476_v3  ;;  %v6255_v20 = vld [vmem:[%s9937_s7 + $0xa8] sm:$0xff]  ;;  %v6256_v2 = vld [vmem:[%s9937_s7 + $0xb0] sm:$0xff] }
0x16eb   : > { %3243 = vmatmul.mubr.f32.vlgmr.msra.gmra.mrb[26].mxu0 %v3144_v5  ;;  %v6239_v5 = vld [vmem:[%s9936_s6 + $0x2a8] sm:$0xff]  ;;  %v7511_v3 = vpack.c.bf16 %v6255_v20, %v6254_v1 }
0x16ec   : > { %7024 = vmatprep.mubr.msk.f32.mxu0 %vm7913_vm0, %v7911_v42  ;;  %7488 = vmatpush3.bf16.msra.mxu0 %v7487_v14  ;;  %v7478_v8 = vpack.c.bf16 %v6242_v6, %v6239_v5  ;;  %v7480_v14 = vpack.c.bf16 %v6241_v9, %v6238_v7  ;;  %v6251_v9 = vld [vmem:[%s9937_s7 + $0x88] sm:$0xff] }
0x16ed   : > { %7489 = vmatprep.subr.bf16.mxu0 %v7912_v51 }
0x16ee   : > { %7479 = vmatprep.subr.bf16.mxu1 %v7478_v8  ;;  %v6250_v8 = vld [vmem:[%s9937_s7 + $0x80] sm:$0xff] }
0x16ef   : > { %7481 = vmatpush1.bf16.msra.mxu1 %v7480_v14  ;;  %v7517_v11 = vpack.c.bf16 %v6251_v9, %v6250_v8  ;;  %v6253_v14 = vld [vmem:[%s9937_s7 + $0x98] sm:$0xff] }
0x16f0   : > { %7491 = vmatpush3.bf16.msra.mxu0 %v7490_v27  ;;  %7483 = vmatprep.subr.bf16.mxu1 %v7482_v16 }
0x16f1   : > { %7492 = vmatprep.subr.bf16.mxu0 %v7912_v51 }
0x16f3   : > { %7485 = vmatpush1.bf16.msra.mxu1 %v7484_v25 }
0x16f4   : > { %7494 = vmatpush3.bf16.msra.mxu0 %v7493_v41  ;;  %7027 = vmatprep.subr.mxu1 %v7911_v42 }
0x16f5   : > { %7495 = vmatprep.subr.bf16.mxu0 %v7912_v51 }
0x17be   : > { %v6576_v31 = vpop.f32.mrb[26].mxu0 }
0x17bf   : > { %v6577_v45 = vpop.f32.mrb[27].mxu0 }
0x17c0   : > { %v6578_v46 = vadd.f32 %v6577_v45, %v6576_v31  ;;  %v7842_v45 = vld [vmem:[%s9988_s29] sm:$0xff] }
0x17c2   : > { %v8992_v47 = vadd.f32 %v6578_v46, %v8766_v43  ;;  %v6225_v43 = vld [vmem:[%s9936_s6 + $0x238] sm:$0xff] }
0x17c3   : > { %v7496_v52 = vpack.c.bf16 %v6225_v43, %v6222_v17  ;;  %v7843_v17 = vld [vmem:[%s9988_s29 + $0x8] sm:$0xff] }
0x17c4   : > { %v3251_v48 = vmul.f32 %v8992_v47, %v8992_v47 }
0x17c5   : > { %7497 = vmatpush3.bf16.msra.mxu0 %v7496_v52 }
0x17c6   : > { %3252 = vadd.xlane.f32.xlu1 %v3251_v48  ;;  %7498 = vmatprep.subr.bf16.mxu0 %v7912_v51 }
0x17c9   : > { %7500 = vmatpush3.bf16.msra.mxu0 %v7499_v60 }
0x17ca   : > { %7501 = vmatprep.subr.bf16.mxu0 %v7912_v51 }
0x17cd   : > { %7503 = vmatpush3.bf16.msra.mxu0 %v7502_v4  ;;  %v6257_v4 = vld [vmem:[%s9937_s7 + $0xb8] sm:$0xff] }
0x17ce   : > { %7504 = vmatprep.subr.bf16.mxu0 %v7912_v51  ;;  %v7514_v5 = vpack.c.bf16 %v6257_v4, %v6256_v2  ;;  %v6263_v4 = vld [vmem:[%s9937_s7 + $0xe8] sm:$0xff] }
0x17d1   : > { %7506 = vmatpush3.bf16.msra.mxu0 %v7505_v15  ;;  %v7520_v15 = vpack.c.bf16 %v6253_v14, %v6252_v13 }
0x17d2   : > { %7507 = vmatprep.subr.bf16.mxu0 %v7912_v51 }
0x17d5   : > { %7509 = vmatpush3.bf16.msra.mxu0 %v7508_v26 }
0x17d6   : > { %7037 = vmatprep.subr.mxu0 %v7911_v42 }
0x1853   : > { %v3253_v27 = vpop.xlane.xlu1 %3252 }
0x1854   : > { %v3254_v28 = vmul.f32 0.0078125, %v3253_v27 }
0x1856   : > { %v3255_v30 = vadd.f32 1e-06, %v3254_v28 }
0x1858   : > { %7796 = vrsqrt.f32 %v3255_v30 }
0x1862   : > { %v7797_v32 = vpop.eup %7796 }
0x1863   : > { %v3257_v34 = vmul.f32 %v7797_v32, %v8992_v47 }
0x1865   : > { %v3264_v35 = vmul.f32 %v6201_v33, %v3257_v34  ;;  %v7844_v34 = vld [vmem:[%s9988_s29 + $0x10] sm:$0xff] }
0x1867   : > { %3379 = vmatmul.mubr.f32.vlgmr.msra.gmra.mrb[32].mxu1 %v3264_v35  ;;  %7025 = vmatmul.mubr.f32.vlgmr.msra.gmra.mrb[28].mxu0 %v3264_v35 }
0x1868   : > { %7029 = vmatprep.mubr.msk.f32.mxu1 %vm7913_vm0, %v7911_v42  ;;  %7039 = vmatprep.mubr.msk.f32.mxu0 %vm7913_vm0, %v7911_v42 }
0x193a   : > { %v9094_v36 = vpop.f32.mrb[32].mxu1  ;;  %v9096_v37 = vpop.f32.mrb[28].mxu0 }
0x193b   : > { %v7026_v38 = vpop.f32.mrb[29].mxu0  ;;  %3632 = vrot.lane.b32.xlu0 %v9094_v36, %s9990_s27  ;;  %v9100_v40 = vpop.f32.mrb[33].mxu1 }
0x193c   : > { %3634 = vrot.lane.b32.xlu1 %v9100_v40, %s9990_s27  ;;  %7028 = vmatpush3.xpose.msk.msra.mxu1 %vm890_vm1, %v9100_v40 }
0x193d   : > { %7032 = vmatprep.subr.mxu1 %v7911_v42 }
0x193f   : > { %7030 = vmatmul.mubr.msk.f32.vlgmr.msra.gmra.mrb[34].mxu1 %vm890_vm1, %v9094_v36 }
0x1940   : > { %7033 = vmatpush3.msra.mxu1 %v9096_v37  ;;  %7034 = vmatprep.mubr.msk.f32.mxu1 %vm7913_vm0, %v7911_v42 }
0x1941   : > { %7042 = vmatprep.subr.mxu1 %v7911_v42 }
0x19ad   : > { %v3633_v29 = vpop.permute.xlu0 %3632 }
0x19ae   : > { %v3635_v41 = vpop.permute.xlu1 %3634 }
0x19af   : > { %7038 = vmatpush3.xpose.msk.msra.mxu0 %vm890_vm1, %v3635_v41 }
0x19b0   : > { %7510 = vmatprep.subr.bf16.mxu0 %v7912_v51 }
0x19b2   : > { %7040 = vmatmul.mubr.msk.f32.vlgmr.msra.gmra.mrb[30].mxu0 %vm890_vm1, %v3633_v29 }
0x19b3   : > { %7055 = vmatprep.mubr.msk.f32.mxu0 %vm7913_vm0, %v7911_v42  ;;  %7512 = vmatpush3.bf16.msra.mxu0 %v7511_v3  ;;  %v6262_v3 = vld [vmem:[%s9937_s7 + $0xe0] sm:$0xff] }
0x19b4   : > { %7513 = vmatprep.subr.bf16.mxu0 %v7912_v51 }
0x19b7   : > { %7515 = vmatpush3.bf16.msra.mxu0 %v7514_v5  ;;  %v6264_v5 = vld [vmem:[%s9937_s7 + $0xf0] sm:$0xff] }
0x19b8   : > { %7069 = vmatprep.subr.mxu0 %v7911_v42 }
0x1a12   : > { %v3544_v31 = vpop.f32.mrb[34].mxu1 }
0x1a13   : > { %v3545_v46 = vadd.f32 %v7842_v45, %v3544_v31  ;;  %v7031_v48 = vpop.f32.mrb[35].mxu1 }
0x1a15   : > { %v3548_v49 = vsel %vm967_vm2, %v3545_v46, -inf }
0x1a16   : > { %3549 = vmax.xlane.f32.xlu0 %v3548_v49 }
0x1a85   : > { %v3706_v44 = vpop.f32.mrb[30].mxu0 }
0x1a86   : > { %v3707_v50 = vadd.f32 %v7843_v17, %v3706_v44  ;;  %v7041_v43 = vpop.f32.mrb[31].mxu0  ;;  %v6258_v44 = vld [vmem:[%s9937_s7 + $0xc0] sm:$0xff]  ;;  %v6260_v17 = vld [vmem:[%s9937_s7 + $0xd0] sm:$0xff] }
0x1a87   : > { %v6261_v43 = vld [vmem:[%s9937_s7 + $0xd8] sm:$0xff] }
0x1a88   : > { %v3710_v52 = vsel %vm967_vm2, %v3707_v50, -inf }
0x1a89   : > { %3711 = vmax.xlane.f32.xlu1 %v3710_v52  ;;  %v7526_v52 = vpack.c.bf16 %v6261_v43, %v6260_v17  ;;  %v6313_v17 = vld [vmem:[%s9940_s10 + $0x168] sm:$0xff]  ;;  %v6288_v43 = vld [vmem:[%s9939_s9 + $0xa0] sm:$0xff] }
0x1a9a   : > { %3946 = vrot.lane.b32.xlu1 %v9100_v40, %s9992_s18 }
0x1a9e   : > { %3944 = vrot.lane.b32.xlu1 %v9094_v36, %s9992_s18 }
0x1aa3   : > { %v3550_v53 = vpop.xlane.xlu0 %3549 }
0x1aa4   : > { %v3551_v22 = vsub.f32 %v3545_v46, %v3550_v53 }
0x1aa6   : > { %v3552_v54 = vmul.f32 1.442695, %v3551_v22 }
0x1aa8   : > { %7798 = vpow2.f32 %v3552_v54 }
0x1ab2   : > { %v7799_v55 = vpop.eup %7798 }
0x1ab3   : > { %v3554_v56 = vsel %vm967_vm2, %v7799_v55, 0.0 }
0x1ab4   : > { %3555 = vadd.xlane.f32.xlu0 %v3554_v56 }
0x1b16   : > { %v3712_v57 = vpop.xlane.xlu1 %3711 }
0x1b17   : > { %v3713_v58 = vsub.f32 %v3707_v50, %v3712_v57 }
0x1b19   : > { %v3714_v59 = vmul.f32 1.442695, %v3713_v58 }
0x1b1a   : > { %v3947_v19 = vpop.permute.xlu1 %3946 }
0x1b1b   : > { %7800 = vpow2.f32 %v3714_v59  ;;  %v7845_v59 = vld [vmem:[%s9988_s29 + $0x18] sm:$0xff] }
0x1b1e   : > { %v3945_v25 = vpop.permute.xlu1 %3944 }
0x1b25   : > { %v7801_v60 = vpop.eup %7800 }
0x1b26   : > { %v3716_v61 = vsel %vm967_vm2, %v7801_v60, 0.0 }
0x1b27   : > { %3717 = vadd.xlane.f32.xlu0 %v3716_v61 }
0x1b3d   : > { %3722 = vrot.lane.b32.xlu0 %v9096_v37, %s9990_s27 }
0x1b41   : > { %v3556_v62 = vpop.xlane.xlu0 %3555 }
0x1b42   : > { %7802 = vrcp.f32 %v3556_v62 }
0x1b4c   : > { %v7803_v63 = vpop.eup %7802 }
0x1b4d   : > { %v3558_v0 = vmul.f32 %v7803_v63, %v7799_v55 }
0x1b4f   : > { %7035 = vmatmul.mubr.msk.f32.vlgmr.msra.gmra.mrb[36].mxu1 %vm967_vm2, %v3558_v0 }
0x1b50   : > { %7044 = vmatprep.mubr.msk.f32.mxu1 %vm7913_vm0, %v7911_v42 }
0x1bb4   : > { %v3718_v6 = vpop.xlane.xlu0 %3717 }
0x1bb5   : > { %7804 = vrcp.f32 %v3718_v6  ;;  %v7529_v6 = vpack.c.bf16 %v6263_v4, %v6262_v3 }
0x1bb8   : > { %v3723_v7 = vpop.permute.xlu0 %3722 }
0x1bb9   : > { %7043 = vmatpush3.msra.mxu1 %v3723_v7  ;;  %v6265_v7 = vld [vmem:[%s9937_s7 + $0xf8] sm:$0xff] }
0x1bba   : > { %7516 = vmatprep.subr.bf16.mxu1 %v7912_v51  ;;  %v7532_v8 = vpack.c.bf16 %v6265_v7, %v6264_v5  ;;  %v6321_v5 = vld [vmem:[%s9940_s10 + $0x1a8] sm:$0xff] }
0x1bbf   : > { %v7805_v10 = vpop.eup %7804 }
0x1bc0   : > { %v3720_v12 = vmul.f32 %v7805_v10, %v7801_v60 }
0x1bc2   : > { %7045 = vmatmul.mubr.msk.f32.vlgmr.msra.gmra.mrb[38].mxu1 %vm967_vm2, %v3720_v12 }
0x1bc3   : > { %7518 = vmatpush3.bf16.msra.mxu1 %v7517_v11  ;;  %7066 = vmatprep.mubr.msk.f32.mxu1 %vm7913_vm0, %v7911_v42 }
0x1bc4   : > { %7519 = vmatprep.subr.bf16.mxu1 %v7912_v51 }
0x1bc7   : > { %7521 = vmatpush3.bf16.msra.mxu1 %v7520_v15 }
0x1bc8   : > { %7074 = vmatprep.subr.mxu1 %v7911_v42 }
0x1c22   : > { %v3628_v16 = vpop.f32.mrb[36].mxu1 }
0x1c23   : > { %v7036_v18 = vpop.f32.mrb[37].mxu1  ;;  %7067 = vmatmul.mubr.msk.f32.vlgmr.msra.gmra.mrb[40].mxu1 %vm890_vm1, %v3628_v16 }
0x1c24   : > { %7076 = vmatprep.mubr.msk.f32.mxu1 %vm7913_vm0, %v7911_v42  ;;  %v6301_v18 = vld [vmem:[%s9940_s10 + $0x108] sm:$0xff] }
0x1c95   : > { %v3794_v23 = vpop.f32.mrb[38].mxu1 }
0x1c96   : > { %v7046_v24 = vpop.f32.mrb[39].mxu1  ;;  %7056 = vmatmul.mubr.msk.f32.vlgmr.msra.gmra.mrb[32].mxu0 %vm890_vm1, %v3794_v23  ;;  %v6300_v23 = vld [vmem:[%s9940_s10 + $0x100] sm:$0xff] }
0x1c97   : > { %7070 = vmatpush3.xpose.msk.msra.mxu0 %vm890_vm1, %v3947_v19  ;;  %7071 = vmatprep.mubr.msk.f32.mxu0 %vm7913_vm0, %v7911_v42  ;;  %v6303_v19 = vld [vmem:[%s9940_s10 + $0x118] sm:$0xff] }
0x1c98   : > { %7522 = vmatprep.subr.bf16.mxu0 %v7912_v51  ;;  %v7558_v24 = vpack.c.bf16 %v6303_v19, %v6301_v18  ;;  %v6295_v18 = vld [vmem:[%s9939_s9 + $0xd8] sm:$0xff]  ;;  %v6324_v19 = vld [vmem:[%s9940_s10 + $0x1c0] sm:$0xff] }
0x1c9a   : > { %7072 = vmatmul.mubr.msk.f32.vlgmr.msra.gmra.mrb[34].mxu0 %vm890_vm1, %v3945_v25  ;;  %v6302_v25 = vld [vmem:[%s9940_s10 + $0x110] sm:$0xff] }
0x1c9b   : > { %7087 = vmatprep.mubr.msk.f32.mxu0 %vm7913_vm0, %v7911_v42 }
0x1cf6   : > { %v3940_v26 = vpop.f32.mrb[40].mxu1 }
0x1cf7   : > { %v7068_v27 = vpop.f32.mrb[41].mxu1 }
0x1cf8   : > { %v6307_v27 = vld [vmem:[%s9940_s10 + $0x138] sm:$0xff] }
0x1d69   : > { %v3867_v28 = vpop.f32.mrb[32].mxu0 }
0x1d6a   : > { %v9180_v30 = vadd.f32 %v3940_v26, %v3867_v28  ;;  %v7057_v32 = vpop.f32.mrb[33].mxu0  ;;  %v6305_v26 = vld [vmem:[%s9940_s10 + $0x128] sm:$0xff]  ;;  %v7560_v28 = vpack.c.bf16 %v6302_v25, %v6300_v23  ;;  %v6326_v23 = vld [vmem:[%s9940_s10 + $0x1d0] sm:$0xff] }
0x1d6b   : > { %v6284_v32 = vld [vmem:[%s9939_s9 + $0x80] sm:$0xff]  ;;  %v7584_v25 = vpack.c.bf16 %v6326_v23, %v6324_v19  ;;  %v6333_v23 = vld [vmem:[%s9941_s11 + $0x88] sm:$0xff] }
0x1d6c   : > { %v6332_v19 = vld [vmem:[%s9941_s11 + $0x80] sm:$0xff] }
0x1d6d   : > { %v4018_v33 = vpop.f32.mrb[34].mxu0 }
0x1d6e   : > { %v4019_v35 = vadd.f32 %v7844_v34, %v4018_v33  ;;  %v7073_v38 = vpop.f32.mrb[35].mxu0  ;;  %v6285_v33 = vld [vmem:[%s9939_s9 + $0x88] sm:$0xff]  ;;  %v6304_v34 = vld [vmem:[%s9940_s10 + $0x120] sm:$0xff] }
0x1d6f   : > { %v6306_v38 = vld [vmem:[%s9940_s10 + $0x130] sm:$0xff] }
0x1d70   : > { %v4022_v41 = vsel %vm967_vm2, %v4019_v35, -inf }
0x1d71   : > { %4023 = vmax.xlane.f32.xlu0 %v4022_v41  ;;  %v6309_v41 = vld [vmem:[%s9940_s10 + $0x148] sm:$0xff] }
0x1d87   : > { %4033 = vrot.lane.b32.xlu0 %v9096_v37, %s9992_s18 }
0x1d8b   : > { %4183 = vrot.lane.b32.xlu0 %v9094_v36, %s9993_s0  ;;  %v6259_v36 = vld [vmem:[%s9937_s7 + $0xc8] sm:$0xff] }
0x1d8c   : > { %v7523_v50 = vpack.c.bf16 %v6259_v36, %v6258_v44  ;;  %v6308_v44 = vld [vmem:[%s9940_s10 + $0x140] sm:$0xff]  ;;  %v6310_v36 = vld [vmem:[%s9940_s10 + $0x150] sm:$0xff] }
0x1d8e   : > { %7524 = vmatpush3.bf16.msra.mxu0 %v7523_v50  ;;  %v6315_v50 = vld [vmem:[%s9940_s10 + $0x178] sm:$0xff] }
0x1d8f   : > { %7525 = vmatprep.subr.bf16.mxu0 %v7912_v51 }
0x1d92   : > { %7527 = vmatpush3.bf16.msra.mxu0 %v7526_v52  ;;  %v6289_v52 = vld [vmem:[%s9939_s9 + $0xa8] sm:$0xff] }
0x1d93   : > { %7528 = vmatprep.subr.bf16.mxu0 %v7912_v51 }
0x1dfe   : > { %v4024_v29 = vpop.xlane.xlu0 %4023 }
0x1dff   : > { %v4025_v31 = vsub.f32 %v4019_v35, %v4024_v29  ;;  %v7535_v35 = vpack.c.bf16 %v6285_v33, %v6284_v32  ;;  %v6311_v29 = vld [vmem:[%s9940_s10 + $0x158] sm:$0xff]  ;;  %v6297_v32 = vld [vmem:[%s9939_s9 + $0xe8] sm:$0xff]  ;;  %v6328_v33 = vld [vmem:[%s9940_s10 + $0x1e0] sm:$0xff] }
0x1e01   : > { %v4026_v45 = vmul.f32 1.442695, %v4025_v31  ;;  %v7564_v31 = vpack.c.bf16 %v6306_v38, %v6304_v34  ;;  %v6330_v34 = vld [vmem:[%s9940_s10 + $0x1f0] sm:$0xff] }
0x1e02   : > { %v4034_v46 = vpop.permute.xlu0 %4033  ;;  %v7588_v38 = vpack.c.bf16 %v6330_v34, %v6328_v33 }
0x1e03   : > { %7806 = vpow2.f32 %v4026_v45  ;;  %7075 = vmatpush3.msra.mxu1 %v4034_v46  ;;  %v6286_v45 = vld [vmem:[%s9939_s9 + $0x90] sm:$0xff]  ;;  %v6287_v46 = vld [vmem:[%s9939_s9 + $0x98] sm:$0xff] }
0x1e04   : > { %7090 = vmatprep.subr.mxu1 %v7911_v42 }
0x1e06   : > { %v4184_v55 = vpop.permute.xlu0 %4183 }
0x1e0d   : > { %v7807_v48 = vpop.eup %7806 }
0x1e0e   : > { %v4028_v49 = vsel %vm967_vm2, %v7807_v48, 0.0 }
0x1e0f   : > { %4029 = vadd.xlane.f32.xlu1 %v4028_v49  ;;  %v7538_v49 = vpack.c.bf16 %v6287_v46, %v6286_v45  ;;  %v7846_v45 = vld [vmem:[%s8561_s25] sm:$0xff]  ;;  %s9875_s25 = scalar_lea.vmem [#allocation2], %s6158_s2 }
0x1e20   : > { %4185 = vrot.lane.b32.xlu1 %v9100_v40, %s9993_s0 }
0x1e9c   : > { %v4030_v40 = vpop.xlane.xlu1 %4029 }
0x1e9d   : > { %7808 = vrcp.f32 %v4030_v40  ;;  %v7568_v40 = vpack.c.bf16 %v6310_v36, %v6308_v44  ;;  %v6283_v36 = vld [vmem:[%s9938_s8 + $0x1] ss:$0 sm:$0xff] }
0x1ea0   : > { %v4186_v54 = vpop.permute.xlu1 %4185 }
0x1ea7   : > { %v7809_v53 = vpop.eup %7808 }
0x1ea8   : > { %v4032_v22 = vmul.f32 %v7809_v53, %v7807_v48  ;;  %v7566_v48 = vpack.c.bf16 %v6311_v29, %v6309_v41  ;;  %v7570_v53 = vpack.c.bf16 %v6315_v50, %v6313_v17  ;;  %v6298_v41 = vld [vmem:[%s9939_s9 + $0xf0] sm:$0xff]  ;;  %v6299_v29 = vld [vmem:[%s9939_s9 + $0xf8] sm:$0xff] }
0x1eaa   : > { %7077 = vmatmul.mubr.msk.f32.vlgmr.msra.gmra.mrb[42].mxu1 %vm967_vm2, %v4032_v22  ;;  %v7541_v22 = vpack.c.bf16 %v6289_v52, %v6288_v43 }
0x1eab   : > { %7091 = vmatpush3.xpose.msk.msra.mxu1 %vm890_vm1, %v4186_v54  ;;  %7092 = vmatprep.mubr.msk.f32.mxu1 %vm7913_vm0, %v7911_v42  ;;  %v6312_v54 = vld [vmem:[%s9940_s10 + $0x160] sm:$0xff] }
0x1eac   : > { %7095 = vmatprep.subr.mxu1 %v7911_v42 }
0x1eae   : > { %7093 = vmatmul.mubr.msk.f32.vlgmr.msra.gmra.mrb[44].mxu1 %vm890_vm1, %v4184_v55  ;;  %v6314_v55 = vld [vmem:[%s9940_s10 + $0x170] sm:$0xff] }
0x1eaf   : > { %7097 = vmatprep.mubr.msk.f32.mxu1 %vm7913_vm0, %v7911_v42 }
0x1f7d   : > { %v4105_v56 = vpop.f32.mrb[42].mxu1 }
0x1f7e   : > { %v7078_v57 = vpop.f32.mrb[43].mxu1  ;;  %7088 = vmatmul.mubr.msk.f32.vlgmr.msra.gmra.mrb[36].mxu0 %vm890_vm1, %v4105_v56  ;;  %v6317_v56 = vld [vmem:[%s9940_s10 + $0x188] sm:$0xff] }
0x1f7f   : > { %7108 = vmatprep.mubr.msk.f32.mxu0 %vm7913_vm0, %v7911_v42  ;;  %7530 = vmatpush3.bf16.msra.mxu0 %v7529_v6  ;;  %v6319_v57 = vld [vmem:[%s9940_s10 + $0x198] sm:$0xff] }
0x1f80   : > { %7531 = vmatprep.subr.bf16.mxu0 %v7912_v51  ;;  %v6323_v6 = vld [vmem:[%s9940_s10 + $0x1b8] sm:$0xff] }
0x1f81   : > { %v4257_v58 = vpop.f32.mrb[44].mxu1  ;;  %v7578_v7 = vpack.c.bf16 %v6323_v6, %v6321_v5 }
0x1f82   : > { %v4258_v60 = vadd.f32 %v7845_v59, %v4257_v58  ;;  %v7094_v61 = vpop.f32.mrb[45].mxu1  ;;  %v7572_v58 = vpack.c.bf16 %v6314_v55, %v6312_v54  ;;  %v7574_v59 = vpack.c.bf16 %v6319_v57, %v6317_v56 }
0x1f83   : > { %7533 = vmatpush3.bf16.msra.mxu0 %v7532_v8  ;;  %v6292_v8 = vld [vmem:[%s9939_s9 + $0xc0] sm:$0xff] }
0x1f84   : > { %v4261_v62 = vsel %vm967_vm2, %v4258_v60, -inf  ;;  %7559 = vmatprep.subr.bf16.mxu0 %v7558_v24 }
0x1f85   : > { %4262 = vmax.xlane.f32.xlu1 %v4261_v62 }
0x2012   : > { %v4263_v63 = vpop.xlane.xlu1 %4262 }
0x2013   : > { %v4264_v0 = vsub.f32 %v4258_v60, %v4263_v63 }
0x2015   : > { %v4265_v1 = vmul.f32 1.442695, %v4264_v0 }
0x2017   : > { %7810 = vpow2.f32 %v4265_v1  ;;  %v6290_v1 = vld [vmem:[%s9939_s9 + $0xb0] sm:$0xff] }
0x2021   : > { %v7811_v20 = vpop.eup %7810 }
0x2022   : > { %v4267_v2 = vsel %vm967_vm2, %v7811_v20, 0.0 }
0x2023   : > { %4268 = vadd.xlane.f32.xlu0 %v4267_v2  ;;  %v6316_v2 = vld [vmem:[%s9940_s10 + $0x180] sm:$0xff] }
0x2039   : > { %4272 = vrot.lane.b32.xlu0 %v9096_v37, %s9993_s0 }
0x2051   : > { %v4178_v37 = vpop.f32.mrb[36].mxu0 }
0x2052   : > { %v9240_v9 = vadd.f32 %v4178_v37, %v9180_v30  ;;  %v7089_v10 = vpop.f32.mrb[37].mxu0  ;;  %v7562_v30 = vpack.c.bf16 %v6307_v27, %v6305_v26  ;;  %v6293_v37 = vld [vmem:[%s9939_s9 + $0xc8] sm:$0xff]  ;;  %v6331_v27 = vld [vmem:[%s9940_s10 + $0x1f8] sm:$0xff] }
0x2053   : > { %v7547_v10 = vpack.c.bf16 %v6293_v37, %v6292_v8  ;;  %v6329_v26 = vld [vmem:[%s9940_s10 + $0x1e8] sm:$0xff] }
0x20b0   : > { %v4269_v11 = vpop.xlane.xlu0 %4268 }
0x20b1   : > { %7812 = vrcp.f32 %v4269_v11  ;;  %v6322_v11 = vld [vmem:[%s9940_s10 + $0x1b0] sm:$0xff] }
0x20b4   : > { %v4273_v12 = vpop.permute.xlu0 %4272 }
0x20b5   : > { %7096 = vmatpush3.msra.mxu1 %v4273_v12 }
0x20b6   : > { %7534 = vmatprep.subr.bf16.mxu1 %v7912_v51 }
0x20bb   : > { %v7813_v13 = vpop.eup %7812 }
0x20bc   : > { %v4271_v14 = vmul.f32 %v7813_v13, %v7811_v20  ;;  %v6291_v20 = vld [vmem:[%s9939_s9 + $0xb8] sm:$0xff]  ;;  %v6325_v13 = vld [vmem:[%s9940_s10 + $0x1c8] sm:$0xff] }
0x20bd   : > { %v7544_v3 = vpack.c.bf16 %v6291_v20, %v6290_v1 }
0x20be   : > { %7098 = vmatmul.mubr.msk.f32.vlgmr.msra.gmra.mrb[46].mxu1 %vm967_vm2, %v4271_v14  ;;  %v6327_v14 = vld [vmem:[%s9940_s10 + $0x1d8] sm:$0xff] }
0x20bf   : > { %7143 = vmatprep.mubr.msk.f32.mxu1 %vm7913_vm0, %v7911_v42  ;;  %7536 = vmatpush3.bf16.msra.mxu1 %v7535_v35 }
0x20c0   : > { %7537 = vmatprep.subr.bf16.mxu1 %v7912_v51 }
0x20c3   : > { %7539 = vmatpush3.bf16.msra.mxu1 %v7538_v49 }
0x20c4   : > { %7540 = vmatprep.subr.bf16.mxu1 %v7912_v51 }
0x20c7   : > { %7542 = vmatpush3.bf16.msra.mxu1 %v7541_v22 }
0x20c8   : > { %7543 = vmatprep.subr.bf16.mxu1 %v7912_v51 }
0x20cb   : > { %7545 = vmatpush3.bf16.msra.mxu1 %v7544_v3 }
0x20cc   : > { %7546 = vmatprep.subr.bf16.mxu1 %v7912_v51 }
0x20cf   : > { %7548 = vmatpush3.bf16.msra.mxu1 %v7547_v10 }
0x20d0   : > { %7549 = vmatprep.subr.bf16.mxu1 %v7912_v51 }
0x2191   : > { %v4344_v15 = vpop.f32.mrb[46].mxu1 }
0x2192   : > { %v7099_v16 = vpop.f32.mrb[47].mxu1  ;;  %7109 = vmatmul.mubr.msk.f32.vlgmr.msra.gmra.mrb[38].mxu0 %vm890_vm1, %v4344_v15  ;;  %v6294_v15 = vld [vmem:[%s9939_s9 + $0xd0] sm:$0xff] }
0x2193   : > { %4623 = vmatprep.mubr.f32.mxu0 %v7911_v42  ;;  %7561 = vmatpush1.bf16.msra.mxu0 %v7560_v28  ;;  %v7582_v16 = vpack.c.bf16 %v6327_v14, %v6325_v13  ;;  %v7550_v24 = vpack.c.bf16 %v6295_v18, %v6294_v15  ;;  %v6296_v28 = vld [vmem:[%s9939_s9 + $0xe0] sm:$0xff]  ;;  %v6338_v13 = vld [vmem:[%s9941_s11 + $0xb0] sm:$0xff]  ;;  %v6339_v15 = vld [vmem:[%s9941_s11 + $0xb8] sm:$0xff] }
0x2194   : > { %7563 = vmatprep.subr.bf16.mxu0 %v7562_v30  ;;  %v7586_v30 = vpack.c.bf16 %v6331_v27, %v6329_v26  ;;  %v7553_v35 = vpack.c.bf16 %v6297_v32, %v6296_v28  ;;  %v6334_v27 = vld [vmem:[%s9941_s11 + $0x90] sm:$0xff]  ;;  %v6335_v28 = vld [vmem:[%s9941_s11 + $0x98] sm:$0xff] }
0x2195   : > { %7551 = vmatpush3.bf16.msra.mxu1 %v7550_v24 }
0x2196   : > { %7552 = vmatprep.subr.bf16.mxu1 %v7912_v51 }
0x2197   : > { %7565 = vmatpush1.bf16.msra.mxu0 %v7564_v31  ;;  %v7556_v31 = vpack.c.bf16 %v6299_v29, %v6298_v41 }
0x2198   : > { %7567 = vmatprep.subr.bf16.mxu0 %v7566_v48 }
0x2199   : > { %7554 = vmatpush3.bf16.msra.mxu1 %v7553_v35 }
0x219a   : > { %7555 = vmatprep.subr.bf16.mxu1 %v7912_v51 }
0x219b   : > { %7569 = vmatpush1.bf16.msra.mxu0 %v7568_v40 }
0x219c   : > { %7571 = vmatprep.subr.bf16.mxu0 %v7570_v53 }
0x219d   : > { %7557 = vmatpush3.bf16.msra.mxu1 %v7556_v31 }
0x219e   : > { %7146 = vmatprep.subr.mxu1 %v7911_v42 }
0x219f   : > { %7573 = vmatpush1.bf16.msra.mxu0 %v7572_v58 }
0x21a0   : > { %7575 = vmatprep.subr.bf16.mxu0 %v7574_v59 }
0x2265   : > { %v4417_v60 = vpop.f32.mrb[38].mxu0 }
0x2266   : > { %v4421_v61 = vadd.f32 %v4417_v60, %v9240_v9  ;;  %v7110_v62 = vpop.f32.mrb[39].mxu0  ;;  %v6320_v9 = vld [vmem:[%s9940_s10 + $0x1a0] sm:$0xff] }
0x2267   : > { %v7580_v12 = vpack.c.bf16 %v6322_v11, %v6320_v9  ;;  %v6336_v11 = vld [vmem:[%s9941_s11 + $0xa0] sm:$0xff] }
0x2268   : > { %v9325_v63 = vadd.f32 %v4421_v61, %v8992_v47  ;;  %v6318_v47 = vld [vmem:[%s9940_s10 + $0x190] sm:$0xff] }
0x2269   : > { %v7576_v4 = vpack.c.bf16 %v6318_v47, %v6316_v2 }
0x226a   : > { %v4425_v0 = vmul.f32 %v9325_v63, %v9325_v63 }
0x226b   : > { %7577 = vmatpush1.bf16.msra.mxu0 %v7576_v4 }
0x226c   : > { %4426 = vadd.xlane.f32.xlu1 %v4425_v0  ;;  %7579 = vmatprep.subr.bf16.mxu0 %v7578_v7 }
0x226f   : > { %7581 = vmatpush1.bf16.msra.mxu0 %v7580_v12  ;;  %v6337_v12 = vld [vmem:[%s9941_s11 + $0xa8] sm:$0xff] }
0x2270   : > { %7583 = vmatprep.subr.bf16.mxu0 %v7582_v16  ;;  %v7591_v14 = vpack.c.bf16 %v6337_v12, %v6336_v11  ;;  %v7594_v16 = vpack.c.bf16 %v6339_v15, %v6338_v13  ;;  %v6344_v11 = vld [vmem:[%s9941_s11 + $0xe0] sm:$0xff]  ;;  %v6346_v12 = vld [vmem:[%s9941_s11 + $0xf0] sm:$0xff] }
0x2273   : > { %7585 = vmatpush1.bf16.msra.mxu0 %v7584_v25  ;;  %v7597_v25 = vpack.c.bf16 %v6333_v23, %v6332_v19 }
0x2274   : > { %7587 = vmatprep.subr.bf16.mxu0 %v7586_v30  ;;  %v7600_v30 = vpack.c.bf16 %v6335_v28, %v6334_v27  ;;  %v6369_v28 = vld [vmem:[%s9943_s13 + $0x118] sm:$0xff] }
0x2277   : > { %7589 = vmatpush1.bf16.msra.mxu0 %v7588_v38 }
0x2278   : > { %7156 = vmatprep.subr.mxu0 %v7911_v42 }
0x227a   : > { %4624 = vmatmul.mubr.f32.vlgmr.msra.gmra.mrb[40].mxu0 %v7846_v45 }
0x227b   : > { %7158 = vmatprep.mubr.msk.f32.mxu0 %vm7913_vm0, %v7911_v42 }
0x22f9   : > { %v4427_v46 = vpop.xlane.xlu1 %4426 }
0x22fa   : > { %v4428_v48 = vmul.f32 0.0078125, %v4427_v46 }
0x22fc   : > { %v4429_v49 = vadd.f32 1e-06, %v4428_v48 }
0x22fe   : > { %7814 = vrsqrt.f32 %v4429_v49 }
0x2308   : > { %v7815_v44 = vpop.eup %7814 }
0x2309   : > { %v4431_v17 = vmul.f32 %v7815_v44, %v9325_v63 }
0x230b   : > { %v4438_v50 = vmul.f32 %v6283_v36, %v4431_v17 }
0x230d   : > { %7144 = vmatmul.mubr.f32.vlgmr.msra.gmra.mrb[48].mxu1 %v4438_v50 }
0x230e   : > { %7148 = vmatprep.mubr.msk.f32.mxu1 %vm7913_vm0, %v7911_v42 }
0x234d   : > { %v9416_v43 = vpop.f32.mrb[40].mxu0 }
0x234e   : > { %v9418_v52 = vpop.f32.mrb[41].mxu0  ;;  %7147 = vmatpush3.xpose.msk.msra.mxu1 %vm890_vm1, %v9416_v43  ;;  %4809 = vrot.lane.b32.xlu1 %v9416_v43, %s9990_s27 }
0x234f   : > { %7151 = vmatprep.subr.mxu1 %v7911_v42 }
0x23c0   : > { %v4810_v40 = vpop.permute.xlu1 %4809 }
0x23c1   : > { %7157 = vmatpush3.xpose.msk.msra.mxu0 %vm890_vm1, %v4810_v40 }
0x23c2   : > { %7590 = vmatprep.subr.bf16.mxu0 %v7912_v51 }
0x23e0   : > { %v9427_v53 = vpop.f32.mrb[48].mxu1 }
0x23e1   : > { %4807 = vrot.lane.b32.xlu0 %v9427_v53, %s9990_s27  ;;  %v7145_v22 = vpop.f32.mrb[49].mxu1  ;;  %7149 = vmatmul.mubr.msk.f32.vlgmr.msra.gmra.mrb[50].mxu1 %vm890_vm1, %v9427_v53 }
0x23e2   : > { %7152 = vmatpush3.msra.mxu1 %v9418_v52  ;;  %7153 = vmatprep.mubr.msk.f32.mxu1 %vm7913_vm0, %v7911_v42 }
0x23e3   : > { %7161 = vmatprep.subr.mxu1 %v7911_v42 }
0x2453   : > { %v4808_v54 = vpop.permute.xlu0 %4807 }
0x2454   : > { %7159 = vmatmul.mubr.msk.f32.vlgmr.msra.gmra.mrb[42].mxu0 %vm890_vm1, %v4808_v54 }
0x2455   : > { %7174 = vmatprep.mubr.msk.f32.mxu0 %vm7913_vm0, %v7911_v42  ;;  %7592 = vmatpush3.bf16.msra.mxu0 %v7591_v14  ;;  %v6347_v14 = vld [vmem:[%s9941_s11 + $0xf8] sm:$0xff] }
0x2456   : > { %7593 = vmatprep.subr.bf16.mxu0 %v7912_v51  ;;  %v7612_v15 = vpack.c.bf16 %v6347_v14, %v6346_v12  ;;  %v6396_v14 = vld [vmem:[%s9943_s13 + $0x1f0] sm:$0xff] }
0x2459   : > { %7595 = vmatpush3.bf16.msra.mxu0 %v7594_v16 }
0x245a   : > { %7188 = vmatprep.subr.mxu0 %v7911_v42 }
0x24b4   : > { %v4719_v55 = vpop.f32.mrb[50].mxu1 }
0x24b5   : > { %v4720_v56 = vadd.f32 %v4719_v55, %v8604_v39  ;;  %v7150_v57 = vpop.f32.mrb[51].mxu1 }
0x24b6   : > { %v6340_v57 = vld [vmem:[%s9941_s11 + $0xc0] sm:$0xff] }
0x24b7   : > { %v4723_v58 = vsel %vm967_vm2, %v4720_v56, -inf }
0x24b8   : > { %4724 = vmax.xlane.f32.xlu1 %v4723_v58  ;;  %v6342_v58 = vld [vmem:[%s9941_s11 + $0xd0] sm:$0xff] }
0x2527   : > { %v4881_v59 = vpop.f32.mrb[42].mxu0 }
0x2528   : > { %v4882_v60 = vadd.f32 %v4881_v59, %v8604_v39  ;;  %v7160_v61 = vpop.f32.mrb[43].mxu0 }
0x252a   : > { %v4885_v62 = vsel %vm967_vm2, %v4882_v60, -inf }
0x252b   : > { %4886 = vmax.xlane.f32.xlu0 %v4885_v62 }
0x2545   : > { %v4725_v0 = vpop.xlane.xlu1 %4724 }
0x2546   : > { %v4726_v1 = vsub.f32 %v4720_v56, %v4725_v0 }
0x2548   : > { %v4727_v20 = vmul.f32 1.442695, %v4726_v1 }
0x254a   : > { %7816 = vpow2.f32 %v4727_v20 }
0x2554   : > { %v7817_v2 = vpop.eup %7816 }
0x2555   : > { %v4729_v3 = vsel %vm967_vm2, %v7817_v2, 0.0 }
0x2556   : > { %4730 = vadd.xlane.f32.xlu0 %v4729_v3 }
0x256c   : > { %4897 = vrot.lane.b32.xlu0 %v9418_v52, %s9990_s27  ;;  %s9996_s27 = sld [smem:[#allocation9_spill]] }
0x2572   : > { %s6437_s21 = sshll.u32 %s9996_s27, 8 }
0x25b8   : > { %v4887_v47 = vpop.xlane.xlu0 %4886 }
0x25b9   : > { %v4888_v4 = vsub.f32 %v4882_v60, %v4887_v47  ;;  %v6343_v60 = vld [vmem:[%s9941_s11 + $0xd8] sm:$0xff] }
0x25ba   : > { %v7606_v61 = vpack.c.bf16 %v6343_v60, %v6342_v58  ;;  %v6378_v58 = vld [vmem:[%s9943_s13 + $0x160] sm:$0xff] }
0x25bb   : > { %v4889_v5 = vmul.f32 1.442695, %v4888_v4 }
0x25bd   : > { %7818 = vpow2.f32 %v4889_v5 }
0x25c7   : > { %v7819_v6 = vpop.eup %7818 }
0x25c8   : > { %v4891_v7 = vsel %vm967_vm2, %v7819_v6, 0.0 }
0x25c9   : > { %4892 = vadd.xlane.f32.xlu1 %v4891_v7 }
0x25da   : > { %5121 = vrot.lane.b32.xlu1 %v9416_v43, %s9992_s18 }
0x25de   : > { %5119 = vrot.lane.b32.xlu1 %v9427_v53, %s9992_s18 }
0x25e3   : > { %v4731_v8 = vpop.xlane.xlu0 %4730 }
0x25e4   : > { %7820 = vrcp.f32 %v4731_v8 }
0x25e7   : > { %v4898_v10 = vpop.permute.xlu0 %4897 }
0x25ee   : > { %v7821_v37 = vpop.eup %7820 }
0x25ef   : > { %v4733_v9 = vmul.f32 %v7821_v37, %v7817_v2 }
0x25f1   : > { %7154 = vmatmul.mubr.msk.f32.vlgmr.msra.gmra.mrb[52].mxu1 %vm967_vm2, %v4733_v9 }
0x25f2   : > { %7162 = vmatpush3.msra.mxu1 %v4898_v10  ;;  %7163 = vmatprep.mubr.msk.f32.mxu1 %vm7913_vm0, %v7911_v42 }
0x25f3   : > { %7596 = vmatprep.subr.bf16.mxu1 %v7912_v51 }
0x2656   : > { %v4893_v18 = vpop.xlane.xlu1 %4892 }
0x2657   : > { %7822 = vrcp.f32 %v4893_v18 }
0x265a   : > { %v5122_v34 = vpop.permute.xlu1 %5121 }
0x265e   : > { %v5120_v41 = vpop.permute.xlu1 %5119 }
0x2661   : > { %v7823_v24 = vpop.eup %7822 }
0x2662   : > { %v4895_v26 = vmul.f32 %v7823_v24, %v7819_v6 }
0x2664   : > { %7164 = vmatmul.mubr.msk.f32.vlgmr.msra.gmra.mrb[54].mxu1 %vm967_vm2, %v4895_v26 }
0x2665   : > { %7598 = vmatpush3.bf16.msra.mxu1 %v7597_v25  ;;  %7185 = vmatprep.mubr.msk.f32.mxu1 %vm7913_vm0, %v7911_v42 }
0x2666   : > { %7599 = vmatprep.subr.bf16.mxu1 %v7912_v51 }
0x2669   : > { %7601 = vmatpush3.bf16.msra.mxu1 %v7600_v30  ;;  %v6366_v30 = vld [vmem:[%s9943_s13 + $0x100] sm:$0xff] }
0x266a   : > { %7193 = vmatprep.subr.mxu1 %v7911_v42 }
0x26c4   : > { %v4803_v32 = vpop.f32.mrb[52].mxu1 }
0x26c5   : > { %v7155_v33 = vpop.f32.mrb[53].mxu1  ;;  %7186 = vmatmul.mubr.msk.f32.vlgmr.msra.gmra.mrb[56].mxu1 %vm890_vm1, %v4803_v32 }
0x26c6   : > { %7195 = vmatprep.mubr.msk.f32.mxu1 %vm7913_vm0, %v7911_v42  ;;  %v6368_v33 = vld [vmem:[%s9943_s13 + $0x110] sm:$0xff] }
0x2737   : > { %v4969_v35 = vpop.f32.mrb[54].mxu1 }
0x2738   : > { %v7165_v38 = vpop.f32.mrb[55].mxu1  ;;  %7175 = vmatmul.mubr.msk.f32.vlgmr.msra.gmra.mrb[44].mxu0 %vm890_vm1, %v4969_v35  ;;  %v6373_v35 = vld [vmem:[%s9943_s13 + $0x138] sm:$0xff] }
0x2739   : > { %7189 = vmatpush3.xpose.msk.msra.mxu0 %vm890_vm1, %v5122_v34  ;;  %7190 = vmatprep.mubr.msk.f32.mxu0 %vm7913_vm0, %v7911_v42  ;;  %v6371_v34 = vld [vmem:[%s9943_s13 + $0x128] sm:$0xff]  ;;  %v7616_v38 = vpack.c.bf16 %v6368_v33, %v6366_v30  ;;  %v6418_v30 = vld [vmem:[%s9944_s14 + $0x1a0] sm:$0xff] }
0x273a   : > { %7602 = vmatprep.subr.bf16.mxu0 %v7912_v51 }
0x273c   : > { %7191 = vmatmul.mubr.msk.f32.vlgmr.msra.gmra.mrb[46].mxu0 %vm890_vm1, %v5120_v41  ;;  %v7618_v41 = vpack.c.bf16 %v6373_v35, %v6371_v34  ;;  %v6402_v35 = vld [vmem:[%s9944_s14 + $0x120] sm:$0xff] }
0x273d   : > { %7206 = vmatprep.mubr.msk.f32.mxu0 %vm7913_vm0, %v7911_v42 }
0x2798   : > { %v5115_v29 = vpop.f32.mrb[56].mxu1 }
0x2799   : > { %v7187_v31 = vpop.f32.mrb[57].mxu1 }
0x279a   : > { %v6372_v31 = vld [vmem:[%s9943_s13 + $0x130] sm:$0xff] }
0x280b   : > { %v5042_v45 = vpop.f32.mrb[44].mxu0 }
0x280c   : > { %v9498_v46 = vadd.f32 %v5115_v29, %v5042_v45  ;;  %v7176_v48 = vpop.f32.mrb[45].mxu0  ;;  %v6370_v29 = vld [vmem:[%s9943_s13 + $0x120] sm:$0xff]  ;;  %v6375_v45 = vld [vmem:[%s9943_s13 + $0x148] sm:$0xff] }
0x280d   : > { %v7620_v48 = vpack.c.bf16 %v6372_v31, %v6370_v29  ;;  %v6421_v29 = vld [vmem:[%s9944_s14 + $0x1b8] sm:$0xff] }
0x280f   : > { %v5193_v49 = vpop.f32.mrb[46].mxu0 }
0x2810   : > { %v5194_v44 = vadd.f32 %v5193_v49, %v8604_v39  ;;  %v7192_v36 = vpop.f32.mrb[47].mxu0 }
0x2811   : > { %v6376_v36 = vld [vmem:[%s9943_s13 + $0x150] sm:$0xff] }
0x2812   : > { %v5197_v17 = vsel %vm967_vm2, %v5194_v44, -inf }
0x2813   : > { %5198 = vmax.xlane.f32.xlu0 %v5197_v17  ;;  %v6379_v17 = vld [vmem:[%s9943_s13 + $0x168] sm:$0xff] }
0x2829   : > { %5208 = vrot.lane.b32.xlu0 %v9418_v52, %s9992_s18  ;;  %s6018_s18 = sshll.u32 %s9875_s25, 4  ;;  %s6019_s18 = int_to_ptr.vmem [resolvable:$true] %s6018_s18 }
0x282a   : > { %s7847_s30 = scalar_lea.vmem %s6019_s18, 256 }
0x282b   : > { %p7848_p11 = scmp.ne.s32.totalorder %s6019_s18, %s7847_s30 }
0x282d   : > { %5358 = vrot.lane.b32.xlu0 %v9427_v53, %s9993_s0  ;;  %v6341_v53 = vld [vmem:[%s9941_s11 + $0xc8] sm:$0xff]  ;;  %p7849_p12 = pnand %p7848_p11, %p8057_p5 }
0x282e   : > { %v7603_v59 = vpack.c.bf16 %v6341_v53, %v6340_v57 }
0x282f   : > { %p7850_p13 = pneg %p7849_p12 }
0x2830   : > { %7604 = vmatpush3.bf16.msra.mxu0 %v7603_v59  ;;  %v6380_v59 = vld [vmem:[%s9943_s13 + $0x170] sm:$0xff] }
0x2831   : > { %7605 = vmatprep.subr.bf16.mxu0 %v7912_v51  ;;  %v7628_v60 = vpack.c.bf16 %v6380_v59, %v6378_v58  ;;  %v6409_v58 = vld [vmem:[%s9944_s14 + $0x158] sm:$0xff]  ;;  %v6426_v59 = vld [vmem:[%s9944_s14 + $0x1e0] sm:$0xff] }
0x2834   : > { %7607 = vmatpush3.bf16.msra.mxu0 %v7606_v61  ;;  %v6383_v61 = vld [vmem:[%s9943_s13 + $0x188] sm:$0xff] }
0x2835   : > { %7608 = vmatprep.subr.bf16.mxu0 %v7912_v51 }
0x28a0   : > { %v5199_v50 = vpop.xlane.xlu0 %5198 }
0x28a1   : > { %v5200_v40 = vsub.f32 %v5194_v44, %v5199_v50  ;;  %v6374_v44 = vld [vmem:[%s9943_s13 + $0x140] sm:$0xff]  ;;  %v6381_v50 = vld [vmem:[%s9943_s13 + $0x178] sm:$0xff] }
0x28a3   : > { %v5201_v22 = vmul.f32 1.442695, %v5200_v40  ;;  %v7624_v40 = vpack.c.bf16 %v6376_v36, %v6374_v44  ;;  %v6423_v44 = vld [vmem:[%s9944_s14 + $0x1c8] sm:$0xff] }
0x28a4   : > { %v5209_v54 = vpop.permute.xlu0 %5208 }
0x28a5   : > { %7824 = vpow2.f32 %v5201_v22  ;;  %7194 = vmatpush3.msra.mxu1 %v5209_v54  ;;  %v7626_v22 = vpack.c.bf16 %v6381_v50, %v6379_v17  ;;  %v6406_v50 = vld [vmem:[%s9944_s14 + $0x140] sm:$0xff] }
0x28a6   : > { %7209 = vmatprep.subr.mxu1 %v7911_v42 }
0x28a8   : > { %v5359_v20 = vpop.permute.xlu0 %5358 }
0x28af   : > { %v7825_v55 = vpop.eup %7824 }
0x28b0   : > { %v5203_v56 = vsel %vm967_vm2, %v7825_v55, 0.0 }
0x28b1   : > { %5204 = vadd.xlane.f32.xlu1 %v5203_v56 }
0x28c2   : > { %5360 = vrot.lane.b32.xlu1 %v9416_v43, %s9993_s0 }
0x293e   : > { %v5205_v43 = vpop.xlane.xlu1 %5204 }
0x293f   : > { %7826 = vrcp.f32 %v5205_v43 }
0x2942   : > { %v5361_v1 = vpop.permute.xlu1 %5360 }
0x2949   : > { %v7827_v62 = vpop.eup %7826 }
0x294a   : > { %v5207_v0 = vmul.f32 %v7827_v62, %v7825_v55  ;;  %v6382_v62 = vld [vmem:[%s9943_s13 + $0x180] sm:$0xff] }
0x294c   : > { %7196 = vmatmul.mubr.msk.f32.vlgmr.msra.gmra.mrb[58].mxu1 %vm967_vm2, %v5207_v0  ;;  %v6384_v0 = vld [vmem:[%s9943_s13 + $0x190] sm:$0xff] }
0x294d   : > { %7210 = vmatpush3.xpose.msk.msra.mxu1 %vm890_vm1, %v5361_v1  ;;  %7211 = vmatprep.mubr.msk.f32.mxu1 %vm7913_vm0, %v7911_v42  ;;  %v7632_v1 = vpack.c.bf16 %v6384_v0, %v6382_v62  ;;  %v6411_v62 = vld [vmem:[%s9944_s14 + $0x168] sm:$0xff] }
0x294e   : > { %7214 = vmatprep.subr.mxu1 %v7911_v42 }
0x2950   : > { %7212 = vmatmul.mubr.msk.f32.vlgmr.msra.gmra.mrb[60].mxu1 %vm890_vm1, %v5359_v20  ;;  %v6387_v20 = vld [vmem:[%s9943_s13 + $0x1a8] sm:$0xff] }
0x2951   : > { %7216 = vmatprep.mubr.msk.f32.mxu1 %vm7913_vm0, %v7911_v42 }
0x2a1f   : > { %v5280_v2 = vpop.f32.mrb[58].mxu1 }
0x2a20   : > { %v7197_v3 = vpop.f32.mrb[59].mxu1  ;;  %7207 = vmatmul.mubr.msk.f32.vlgmr.msra.gmra.mrb[48].mxu0 %vm890_vm1, %v5280_v2  ;;  %v6389_v2 = vld [vmem:[%s9943_s13 + $0x1b8] sm:$0xff] }
0x2a21   : > { %7227 = vmatprep.mubr.msk.f32.mxu0 %vm7913_vm0, %v7911_v42  ;;  %v6386_v3 = vld [vmem:[%s9943_s13 + $0x1a0] sm:$0xff] }
0x2a23   : > { %v5432_v47 = vpop.f32.mrb[60].mxu1 }
0x2a24   : > { %v5433_v4 = vadd.f32 %v5432_v47, %v8604_v39  ;;  %v7213_v5 = vpop.f32.mrb[61].mxu1  ;;  %v6345_v39 = vld [vmem:[%s9941_s11 + $0xe8] sm:$0xff]  ;;  %v7634_v47 = vpack.c.bf16 %v6389_v2, %v6387_v20 }
0x2a25   : > { %v7609_v13 = vpack.c.bf16 %v6345_v39, %v6344_v11  ;;  %v6391_v5 = vld [vmem:[%s9943_s13 + $0x1c8] sm:$0xff]  ;;  %v6397_v11 = vld [vmem:[%s9943_s13 + $0x1f8] sm:$0xff] }
0x2a26   : > { %v5436_v6 = vsel %vm967_vm2, %v5433_v4, -inf }
0x2a27   : > { %5437 = vmax.xlane.f32.xlu1 %v5436_v6  ;;  %7610 = vmatpush3.bf16.msra.mxu0 %v7609_v13  ;;  %v6393_v6 = vld [vmem:[%s9943_s13 + $0x1d8] sm:$0xff]  ;;  %v6394_v13 = vld [vmem:[%s9943_s13 + $0x1e0] sm:$0xff] }
0x2a28   : > { %7611 = vmatprep.subr.bf16.mxu0 %v7912_v51  ;;  %v6367_v51 = vld [vmem:[%s9943_s13 + $0x108] sm:$0xff] }
0x2a29   : > { %v7614_v32 = vpack.c.bf16 %v6369_v28, %v6367_v51  ;;  %v6400_v51 = vld [vmem:[%s9944_s14 + $0x110] sm:$0xff]  ;;  %v6401_v28 = vld [vmem:[%s9944_s14 + $0x118] sm:$0xff] }
0x2a2a   : > { %v7652_v33 = vpack.c.bf16 %v6401_v28, %v6400_v51  ;;  %v5860_v51 = vld [vmem:[%s9946_s16 + $0xa0] sm:$0xff]  ;;  %v5861_v28 = vld [vmem:[%s9946_s16 + $0xa8] sm:$0xff] }
0x2a2b   : > { %7613 = vmatpush3.bf16.msra.mxu0 %v7612_v15  ;;  %v7644_v15 = vpack.c.bf16 %v6396_v14, %v6394_v13  ;;  %v5856_v14 = vld [vmem:[%s9946_s16 + $0x80] sm:$0xff] }
0x2ab4   : > { %v5438_v7 = vpop.xlane.xlu1 %5437 }
0x2ab5   : > { %v5439_v8 = vsub.f32 %v5433_v4, %v5438_v7  ;;  %v6388_v4 = vld [vmem:[%s9943_s13 + $0x1b0] sm:$0xff] }
0x2ab6   : > { %v7636_v7 = vpack.c.bf16 %v6388_v4, %v6386_v3 }
0x2ab7   : > { %v5440_v37 = vmul.f32 1.442695, %v5439_v8  ;;  %v7638_v8 = vpack.c.bf16 %v6393_v6, %v6391_v5  ;;  %v6428_v6 = vld [vmem:[%s9944_s14 + $0x1f0] sm:$0xff] }
0x2ab9   : > { %7828 = vpow2.f32 %v5440_v37  ;;  %v6390_v37 = vld [vmem:[%s9943_s13 + $0x1c0] sm:$0xff] }
0x2ac3   : > { %v7829_v9 = vpop.eup %7828 }
0x2ac4   : > { %v5442_v10 = vsel %vm967_vm2, %v7829_v9, 0.0 }
0x2ac5   : > { %5443 = vadd.xlane.f32.xlu0 %v5442_v10  ;;  %v6395_v10 = vld [vmem:[%s9943_s13 + $0x1e8] sm:$0xff] }
0x2ac6   : > { %v7642_v12 = vpack.c.bf16 %v6397_v11, %v6395_v10 }
0x2adb   : > { %5447 = vrot.lane.b32.xlu0 %v9418_v52, %s9993_s0 }
0x2af3   : > { %v5353_v52 = vpop.f32.mrb[48].mxu0 }
0x2af4   : > { %v5357_v16 = vadd.f32 %v5353_v52, %v9498_v46  ;;  %v7208_v18 = vpop.f32.mrb[49].mxu0  ;;  %v6377_v46 = vld [vmem:[%s9943_s13 + $0x158] sm:$0xff]  ;;  %v6414_v52 = vld [vmem:[%s9944_s14 + $0x180] sm:$0xff] }
0x2af5   : > { %v7622_v49 = vpack.c.bf16 %v6377_v46, %v6375_v45  ;;  %v6398_v18 = vld [vmem:[%s9944_s14 + $0x100] sm:$0xff]  ;;  %v6404_v46 = vld [vmem:[%s9944_s14 + $0x130] sm:$0xff] }
0x2b52   : > { %v5444_v19 = vpop.xlane.xlu0 %5443 }
0x2b53   : > { %7830 = vrcp.f32 %v5444_v19 }
0x2b56   : > { %v5448_v23 = vpop.permute.xlu0 %5447 }
0x2b57   : > { %7215 = vmatpush3.msra.mxu1 %v5448_v23  ;;  %v6399_v23 = vld [vmem:[%s9944_s14 + $0x108] sm:$0xff] }
0x2b58   : > { %7615 = vmatprep.subr.bf16.mxu1 %v7614_v32  ;;  %v6419_v32 = vld [vmem:[%s9944_s14 + $0x1a8] sm:$0xff] }
0x2b59   : > { %v7654_v34 = vpack.c.bf16 %v6419_v32, %v6418_v30  ;;  %v7686_v32 = vpack.c.bf16 %v5861_v28, %v5860_v51  ;;  %v5962_v51 = vand.u32 127, %v2070_v21 }
0x2b5d   : > { %v7831_v24 = vpop.eup %7830 }
0x2b5e   : > { %v5446_v25 = vmul.f32 %v7831_v24, %v7829_v9  ;;  %v6392_v9 = vld [vmem:[%s9943_s13 + $0x1d0] sm:$0xff] }
0x2b5f   : > { %v7640_v39 = vpack.c.bf16 %v6392_v9, %v6390_v37  ;;  %v6416_v24 = vld [vmem:[%s9944_s14 + $0x190] sm:$0xff]  ;;  %v6413_v9 = vld [vmem:[%s9944_s14 + $0x178] sm:$0xff] }
0x2b60   : > { %7217 = vmatmul.mubr.msk.f32.vlgmr.msra.gmra.mrb[62].mxu1 %vm967_vm2, %v5446_v25  ;;  %v6417_v25 = vld [vmem:[%s9944_s14 + $0x198] sm:$0xff]  ;;  %v6412_v37 = vld [vmem:[%s9944_s14 + $0x170] sm:$0xff] }
0x2b61   : > { %5711 = vmatprep.mubr.f32.mxu1 %v7911_v42  ;;  %7617 = vmatpush1.bf16.msra.mxu1 %v7616_v38  ;;  %v6403_v38 = vld [vmem:[%s9944_s14 + $0x128] sm:$0xff]  ;;  %v7676_v10 = vpack.c.bf16 %v6413_v9, %v6412_v37 }
0x2b62   : > { %7619 = vmatprep.subr.bf16.mxu1 %v7618_v41  ;;  %v6420_v41 = vld [vmem:[%s9944_s14 + $0x1b0] sm:$0xff]  ;;  %v7656_v31 = vpack.c.bf16 %v6403_v38, %v6402_v35  ;;  %v5863_v38 = vld [vmem:[%s9946_s16 + $0xb8] sm:$0xff] }
0x2b63   : > { %v7658_v45 = vpack.c.bf16 %v6421_v29, %v6420_v41  ;;  %v5862_v35 = vld [vmem:[%s9946_s16 + $0xb0] sm:$0xff] }
0x2b64   : > { %v7690_v29 = vpack.c.bf16 %v5863_v38, %v5862_v35 }
0x2b65   : > { %7621 = vmatpush1.bf16.msra.mxu1 %v7620_v48  ;;  %v6405_v48 = vld [vmem:[%s9944_s14 + $0x138] sm:$0xff] }
0x2b66   : > { %7623 = vmatprep.subr.bf16.mxu1 %v7622_v49  ;;  %v6422_v49 = vld [vmem:[%s9944_s14 + $0x1c0] sm:$0xff]  ;;  %v7660_v36 = vpack.c.bf16 %v6405_v48, %v6404_v46  ;;  %v5865_v48 = vld [vmem:[%s9946_s16 + $0xc8] sm:$0xff] }
0x2b67   : > { %v7662_v17 = vpack.c.bf16 %v6423_v44, %v6422_v49  ;;  %v5864_v46 = vld [vmem:[%s9946_s16 + $0xc0] sm:$0xff] }
0x2b68   : > { %v7694_v44 = vpack.c.bf16 %v5865_v48, %v5864_v46 }
0x2b69   : > { %7625 = vmatpush1.bf16.msra.mxu1 %v7624_v40  ;;  %v6407_v40 = vld [vmem:[%s9944_s14 + $0x148] sm:$0xff] }
0x2b6a   : > { %7627 = vmatprep.subr.bf16.mxu1 %v7626_v22  ;;  %v6424_v22 = vld [vmem:[%s9944_s14 + $0x1d0] sm:$0xff] }
0x2b6d   : > { %7629 = vmatpush1.bf16.msra.mxu1 %v7628_v60  ;;  %v6427_v60 = vld [vmem:[%s9944_s14 + $0x1e8] sm:$0xff] }
0x2c33   : > { %v5519_v26 = vpop.f32.mrb[62].mxu1 }
0x2c34   : > { %v7218_v27 = vpop.f32.mrb[63].mxu1  ;;  %7228 = vmatmul.mubr.msk.f32.vlgmr.msra.gmra.mrb[50].mxu0 %vm890_vm1, %v5519_v26  ;;  %v7648_v26 = vpack.c.bf16 %v6399_v23, %v6398_v18  ;;  %v5841_v18 = vld [vmem:[%s9946_s16 + $0x8] sm:$0xff]  ;;  %v5859_v23 = vld [vmem:[%s9946_s16 + $0x98] sm:$0xff] }
0x2c35   : > { %v7650_v27 = vpack.c.bf16 %v6417_v25, %v6416_v24 }
0x2d07   : > { %v5592_v54 = vpop.f32.mrb[50].mxu0 }
0x2d08   : > { %v5596_v55 = vadd.f32 %v5592_v54, %v5357_v16  ;;  %v7229_v56 = vpop.f32.mrb[51].mxu0  ;;  %v6415_v16 = vld [vmem:[%s9944_s14 + $0x188] sm:$0xff]  ;;  %v6425_v54 = vld [vmem:[%s9944_s14 + $0x1d8] sm:$0xff] }
0x2d09   : > { %v7646_v19 = vpack.c.bf16 %v6415_v16, %v6414_v52  ;;  %v7666_v56 = vpack.c.bf16 %v6425_v54, %v6424_v22  ;;  %v5840_v52 = vld [vmem:[%s9946_s16] sm:$0xff] }
0x2d0a   : > { %v9600_v57 = vadd.f32 %v5596_v55, %v9325_v63  ;;  %v6385_v63 = vld [vmem:[%s9943_s13 + $0x198] sm:$0xff]  ;;  %v7664_v55 = vpack.c.bf16 %v6407_v40, %v6406_v50  ;;  %v7680_v24 = vpack.c.bf16 %v5841_v18, %v5840_v52  ;;  %v5866_v50 = vld [vmem:[%s9946_s16 + $0xd0] sm:$0xff] }
0x2d0b   : > { %v7630_v43 = vpack.c.bf16 %v6385_v63, %v6383_v61  ;;  %7647 = vmatprep.subr.bf16.mxu0 %v7646_v19  ;;  %v7670_v63 = vpack.c.bf16 %v6427_v60, %v6426_v59  ;;  %v5858_v19 = vld [vmem:[%s9946_s16 + $0x90] sm:$0xff]  ;;  %v5867_v40 = vld [vmem:[%s9946_s16 + $0xd8] sm:$0xff] }
0x2d0c   : > { %v5600_v53 = vmul.f32 %v9600_v57, %v9600_v57  ;;  %7649 = vmatpush3.bf16.msra.mxu0 %v7648_v26  ;;  %v7682_v25 = vpack.c.bf16 %v5859_v23, %v5858_v19  ;;  %v5842_v26 = vld [vmem:[%s9946_s16 + $0x10] sm:$0xff]  ;;  %v7698_v54 = vpack.c.bf16 %v5867_v40, %v5866_v50 }
0x2d0d   : > { %7631 = vmatprep.subr.bf16.mxu1 %v7630_v43  ;;  %7651 = vmatprep.subr.bf16.mxu0 %v7650_v27  ;;  %v6410_v43 = vld [vmem:[%s9944_s14 + $0x160] sm:$0xff]  ;;  %v5843_v27 = vld [vmem:[%s9946_s16 + $0x18] sm:$0xff] }
0x2d0e   : > { %5601 = vadd.xlane.f32.xlu1 %v5600_v53  ;;  %7633 = vmatpush1.bf16.msra.mxu1 %v7632_v1  ;;  %v6408_v53 = vld [vmem:[%s9944_s14 + $0x150] sm:$0xff]  ;;  %v7672_v0 = vpack.c.bf16 %v6411_v62, %v6410_v43  ;;  %v7684_v30 = vpack.c.bf16 %v5843_v27, %v5842_v26  ;;  %v5868_v43 = vld [vmem:[%s9946_s16 + $0xe0] sm:$0xff]  ;;  %v5869_v62 = vld [vmem:[%s9946_s16 + $0xe8] sm:$0xff] }
0x2d0f   : > { %7635 = vmatprep.subr.bf16.mxu1 %v7634_v47  ;;  %v7668_v61 = vpack.c.bf16 %v6409_v58, %v6408_v53  ;;  %v6365_v47 = vld [vmem:[%s9942_s12 + $0x1] ss:$0 sm:$0xff] }
0x2d10   : > { %7653 = vmatpush3.bf16.msra.mxu0 %v7652_v33  ;;  %v5844_v33 = vld [vmem:[%s9946_s16 + $0x20] sm:$0xff] }
0x2d11   : > { %7655 = vmatprep.subr.bf16.mxu0 %v7654_v34  ;;  %v5845_v34 = vld [vmem:[%s9946_s16 + $0x28] sm:$0xff] }
0x2d12   : > { %7637 = vmatpush1.bf16.msra.mxu1 %v7636_v7  ;;  %v6429_v7 = vld [vmem:[%s9944_s14 + $0x1f8] sm:$0xff]  ;;  %v7688_v41 = vpack.c.bf16 %v5845_v34, %v5844_v33  ;;  %v5963_v33 = vadd.s32 128, %v5962_v51 }
0x2d13   : > { %7639 = vmatprep.subr.bf16.mxu1 %v7638_v8  ;;  %v7674_v8 = vpack.c.bf16 %v6429_v7, %v6428_v6 }
0x2d14   : > { %7657 = vmatpush3.bf16.msra.mxu0 %v7656_v31  ;;  %v5846_v31 = vld [vmem:[%s9946_s16 + $0x30] sm:$0xff] }
0x2d15   : > { %7659 = vmatprep.subr.bf16.mxu0 %v7658_v45  ;;  %v5847_v45 = vld [vmem:[%s9946_s16 + $0x38] sm:$0xff] }
0x2d16   : > { %7641 = vmatpush1.bf16.msra.mxu1 %v7640_v39  ;;  %v7692_v49 = vpack.c.bf16 %v5847_v45, %v5846_v31 }
0x2d17   : > { %7643 = vmatprep.subr.bf16.mxu1 %v7642_v12 }
0x2d18   : > { %7661 = vmatpush3.bf16.msra.mxu0 %v7660_v36  ;;  %v5848_v36 = vld [vmem:[%s9946_s16 + $0x40] sm:$0xff] }
0x2d19   : > { %7663 = vmatprep.subr.bf16.mxu0 %v7662_v17  ;;  %v5849_v17 = vld [vmem:[%s9946_s16 + $0x48] sm:$0xff] }
0x2d1a   : > { %7645 = vmatpush1.bf16.msra.mxu1 %v7644_v15  ;;  %v5857_v15 = vld [vmem:[%s9946_s16 + $0x88] sm:$0xff]  ;;  %v7696_v22 = vpack.c.bf16 %v5849_v17, %v5848_v36 }
0x2d1b   : > { %v7678_v16 = vpack.c.bf16 %v5857_v15, %v5856_v14  ;;  %v5945_v14 = vld [vmem:[%s656_s19] sm:$0xff]  ;;  %s9885_s19 = scalar_lea.hbm %s9998_s23, %s6437_s21 }
0x2d1c   : > { %7665 = vmatpush3.bf16.msra.mxu0 %v7664_v55  ;;  %v5850_v55 = vld [vmem:[%s9946_s16 + $0x50] sm:$0xff]  ;;  %vm5974_vm4 = vcmp.ne.s32.totalorder %v5945_v14, 4294967196 }
0x2d1d   : > { %7667 = vmatprep.subr.bf16.mxu0 %v7666_v56  ;;  %7679 = vmatprep.subr.bf16.mxu1 %v7678_v16  ;;  %v5851_v56 = vld [vmem:[%s9946_s16 + $0x58] sm:$0xff]  ;;  %v9863_v15 = vsel %vm5974_vm4, 1.0, %v7911_v42 }
0x2d1e   : > { %v7700_v53 = vpack.c.bf16 %v5851_v56, %v5850_v55  ;;  %v5989_v52 = vsel %vm5979_vm3, %v9863_v15, 0.0 }
0x2d1f   : > { %v5990_v16 = vrot.slane %v5989_v52, 4 }
0x2d20   : > { %7669 = vmatpush3.bf16.msra.mxu0 %v7668_v61 }
0x2d21   : > { %7671 = vmatprep.subr.bf16.mxu0 %v7670_v63  ;;  %v5991_v18 = vadd.f32 %v5990_v16, %v5989_v52 }
0x2d23   : > { %v5992_v19 = vrot.slane %v5991_v18, 2 }
0x2d24   : > { %7673 = vmatpush3.bf16.msra.mxu0 %v7672_v0  ;;  %v5852_v0 = vld [vmem:[%s9946_s16 + $0x60] sm:$0xff] }
0x2d25   : > { %7675 = vmatprep.subr.bf16.mxu0 %v7674_v8  ;;  %v5993_v23 = vadd.f32 %v5992_v19, %v5991_v18 }
0x2d28   : > { %7677 = vmatpush3.bf16.msra.mxu0 %v7676_v10  ;;  %v6430_v10 = vld [vmem:[%s9945_s15] ss:$0 sm:$0xff] }
0x2d9b   : > { %v5602_v1 = vpop.xlane.xlu1 %5601 }
0x2d9c   : > { %v5603_v20 = vmul.f32 0.0078125, %v5602_v1  ;;  %v7702_v1 = vpack.c.bf16 %v5869_v62, %v5868_v43 }
0x2d9e   : > { %v5604_v2 = vadd.f32 1e-06, %v5603_v20  ;;  %v5853_v20 = vld [vmem:[%s9946_s16 + $0x68] sm:$0xff] }
0x2da0   : > { %7832 = vrsqrt.f32 %v5604_v2  ;;  %v5871_v2 = vld [vmem:[%s9946_s16 + $0xf8] sm:$0xff] }
0x2daa   : > { %v7833_v3 = vpop.eup %7832 }
0x2dab   : > { %v5606_v4 = vmul.f32 %v7833_v3, %v9600_v57  ;;  %v7704_v3 = vpack.c.bf16 %v5853_v20, %v5852_v0 }
0x2dad   : > { %v5613_v5 = vmul.f32 %v6365_v47, %v5606_v4  ;;  %v5854_v4 = vld [vmem:[%s9946_s16 + $0x70] sm:$0xff] }
0x2daf   : > { %5712 = vmatmul.mubr.f32.vlgmr.msra.gmra.mrb[64].mxu1 %v5613_v5  ;;  %v5855_v5 = vld [vmem:[%s9946_s16 + $0x78] sm:$0xff] }
0x2db0   : > { %7681 = vmatpush3.bf16.xpose.msra.mxu1 %v7680_v24  ;;  %v7708_v6 = vpack.c.bf16 %v5855_v5, %v5854_v4  ;;  %v5994_v24 = vrot.slane %v5993_v23, 1 }
0x2db1   : > { %7683 = vmatprep.subr.bf16.mxu1 %v7682_v25 }
0x2db2   : > { %v5995_v25 = vadd.f32 %v5994_v24, %v5993_v23 }
0x2db4   : > { %5996 = vst.msk [vmem:[%s662_s3] sm:$0x1] %vm5987_vm5, %v5995_v25  ;;  %s7851_s3 = sshll.u32 %s7918_s17, 4  ;;  %s7852_s3 = int_to_ptr.vmem [resolvable:$false] %s7851_s3 }
0x2db5   : > { %s7853_s2 = scalar_lea.vmem %s7852_s3, 512  ;;  %p7854_p0 = scmp.lt.s32.totalorder %s6019_s18, %s7852_s3 }
0x2db6   : > { %p7855_p1 = scmp.lt.s32.totalorder %s7853_s2, %s7847_s30 }
0x2db8   : > { %7685 = vmatpush3.bf16.xpose.msra.mxu1 %v7684_v30  ;;  %p7856_p2 = por %p7855_p1, %p7854_p0 }
0x2db9   : > { %7687 = vmatprep.subr.bf16.mxu1 %v7686_v32 }
0x2dba   : > { %p7857_p3 = pnand %p7856_p2, %p7850_p13 }
0x2dc0   : > { %7689 = vmatpush3.bf16.xpose.msra.mxu1 %v7688_v41 }
0x2dc1   : > { %7691 = vmatprep.subr.bf16.mxu1 %v7690_v29 }
0x2dc8   : > { %7693 = vmatpush3.bf16.xpose.msra.mxu1 %v7692_v49 }
0x2dc9   : > { %7695 = vmatprep.subr.bf16.mxu1 %v7694_v44 }
0x2dd0   : > { %7697 = vmatpush3.bf16.xpose.msra.mxu1 %v7696_v22 }
0x2dd1   : > { %7699 = vmatprep.subr.bf16.mxu1 %v7698_v54 }
0x2dd8   : > { %7701 = vmatpush3.bf16.xpose.msra.mxu1 %v7700_v53 }
0x2dd9   : > { %7703 = vmatprep.subr.bf16.mxu1 %v7702_v1 }
0x2de0   : > { %7705 = vmatpush3.bf16.xpose.msra.mxu1 %v7704_v3 }
0x2e82   : > { %v5713_v11 = vpop.f32.mrb[64].mxu1 }
0x2e83   : > { %v5715_v39 = vpop.f32.mrb[65].mxu1  ;;  %v5718_v13 = vmax.f32 %v5713_v11, 0.0 }
0x2e84   : > { %v5719_v12 = vmax.f32 %v5715_v39, 0.0 }
0x2e86   : > { %5817 = vmatprep.mubr.f32.mxu0 %v5719_v12 }
0x2e87   : > { %5818 = vmatmul.mubr.f32.vlgmr.msra.gmra.mrb[52].mxu0 %v5718_v13  ;;  %v7917_v13 = vmov 0  }
0x2e88   : > { %7756 = vset.pattern.permute.xlu1 %v7917_v13  ;;  %7757 = vset.pattern.permute.xlu0 %v7917_v13 }
0x2f5a   : > { %v6717_v58 = vpop.f32.mrb[52].mxu0 }
0x2f5b   : > { %v6718_v59 = vpop.f32.mrb[53].mxu0 }
0x2f5c   : > { %v6719_v60 = vadd.f32 %v6718_v59, %v6717_v58 }
0x2f5e   : > { %v5823_v61 = vadd.f32 %v6719_v60, %v9600_v57  ;;  %v5870_v57 = vld [vmem:[%s9946_s16 + $0xf0] sm:$0xff] }
0x2f5f   : > { %v7706_v47 = vpack.c.bf16 %v5871_v2, %v5870_v57 }
0x2f60   : > { %v5825_v63 = vmul.f32 %v5823_v61, %v5823_v61 }
0x2f61   : > { %7707 = vmatprep.subr.bf16.mxu1 %v7706_v47 }
0x2f62   : > { %5826 = vadd.xlane.f32.xlu1 %v5825_v63  ;;  %7709 = vmatpush3.bf16.xpose.msra.mxu1 %v7708_v6 }
0x2fef   : > { %v5827_v7 = vpop.xlane.xlu1 %5826 }
0x2ff0   : > { %v5828_v8 = vmul.f32 0.0078125, %v5827_v7 }
0x2ff2   : > { %v5829_v37 = vadd.f32 1e-06, %v5828_v8 }
0x2ff4   : > { %7834 = vrsqrt.f32 %v5829_v37 }
0x2ffe   : > { %v7835_v9 = vpop.eup %7834 }
0x2fff   : > { %v5831_v11 = vmul.f32 %v7835_v9, %v5823_v61 }
0x3001   : > { %v5838_v39 = vmul.f32 %v6430_v10, %v5831_v11 }
0x3003   : > { %v5839_v12 = vmul.f32 0.088388346, %v5838_v39 }
0x3005   : > { %6752 = vmatprep.mubr.f32.mxu1 %v5839_v12 }
0x3006   : > { %6753 = vmatmul.mubr.f32.vlgmr.msra.gmra.mrb[66].mxu1 %v5839_v12 }
0x30d9   : > { %v5938_v42 = vpop.f32.mrb[66].mxu1 }
0x30da   : > { %v5940_v26 = vpop.f32.mrb[67].mxu1  ;;  %5943 = vst [vmem:[%s9875_s25] sm:$0xff] %v5938_v42 }
0x30db   : > { %5944 = vst [vmem:[%s9875_s25 + $0x8] sm:$0xff] %v5940_v26  ;;  %v5946_v27 = vmax.f32 %v5938_v42, %v5940_v26 }
0x30dd   : > { %5947 = vmax.xlane.f32.xlu1 %v5946_v27 }
0x30ee   : > { %5965 = vperm.xlu1 %7756, %v5945_v14  }
0x316a   : > { %v5948_v28 = vpop.xlane.xlu1 %5947 }
0x316b   : > { %v5949_v30 = vsub.f32 %v5938_v42, %v5948_v28  ;;  %v5950_v32 = vsub.f32 %v5940_v26, %v5948_v28 }
0x316d   : > { %v5951_v34 = vmul.f32 1.442695, %v5949_v30  ;;  %v5953_v35 = vmul.f32 1.442695, %v5950_v32 }
0x316e   : > { %v5966_v38 = vpop.permute.xlu1 %5965 }
0x316f   : > { %7836 = vpow2.f32 %v5951_v34  ;;  %vm5967_vm6 = vcmp.eq.s32.totalorder %v5962_v51, %v5966_v38  ;;  %vm5968_vm7 = vcmp.eq.s32.totalorder %v5963_v33, %v5966_v38 }
0x3170   : > { %7838 = vpow2.f32 %v5953_v35  ;;  %v5969_v41 = vsel %vm5967_vm6, %v5938_v42, 0.0  ;;  %v5970_v29 = vsel %vm5968_vm7, %v5940_v26, 0.0 }
0x3171   : > { %v5971_v31 = vadd.f32 %v5970_v29, %v5969_v41 }
0x3173   : > { %5972 = vadd.xlane.f32.xlu1 %v5971_v31 }
0x3179   : > { %v7837_v21 = vpop.eup %7836 }
0x317a   : > { %v7839_v45 = vpop.eup %7838 }
0x317b   : > { %v5955_v46 = vadd.f32 %v7839_v45, %v7837_v21 }
0x317d   : > { %5956 = vadd.xlane.f32.xlu0 %v5955_v46 }
0x317e   : > { %7860 = shalt.err (!%p7857_p3)
}
0x317f   : > { %s7861_s1 = scalar_lea.hbm %s9885_s19, 256  ;;  %s7865_s27 = scalar_lea.hbm %s9998_s23, 512 }
0x3180   : > { %p7862_p4 = scmp.ne.s32.totalorder %s9885_s19, %s7861_s1  ;;  %p7866_p9 = scmp.lt.u32.totalorder %s9885_s19, %s9998_s23 }
0x3181   : > { %p7867_p10 = scmp.lt.u32.totalorder %s7865_s27, %s7861_s1  ;;  %p7869_p12 = scmp.lt.u32.totalorder %s7861_s1, %s9885_s19 }
0x3182   : > { %p7863_p7 = pnand %p7862_p4, %p8057_p5 }
0x3183   : > { %p7868_p11 = por %p7867_p10, %p7866_p9 }
0x3184   : > { %p7864_p8 = pneg %p7863_p7 }
0x3185   : > { %p7870_p13 = por %p7869_p12, %p7868_p11 }
0x3187   : > { %p7871_p0 = pnand %p7870_p13, %p7864_p8 }
0x3189   : > { %7874 = shalt.err (!%p7871_p0)
}
0x318a   : > { %7710 = dma.vmem_to_hbm [thread:$0]  (%p8057_p5), %s6019_s18, 256, %s9885_s19, %s5998_s24  }
0x318b   : > { %s9999_s30 = sld [smem:[#allocation19_spill]] }
0x3191   : > { %s659_s18 = scalar_lea.vmem %s9999_s30, %s8087_s28 }
0x3200   : > { %v5973_v17 = vpop.xlane.xlu1 %5972 }
0x320a   : > { %v5957_v48 = vpop.xlane.xlu0 %5956 }
0x320b   : > { %7840 = vlog2.f32 %v5957_v48 }
0x3215   : > { %v7841_v49 = vpop.eup %7840 }
0x3216   : > { %v5959_v44 = vmul.f32 0.6931472, %v7841_v49 }
0x3218   : > { %v5960_v36 = vadd.f32 %v5959_v44, %v5948_v28 }
0x321a   : > { %v5977_v50 = vsub.f32 %v5960_v36, %v5973_v17 }
0x321c   : > { %v5978_v40 = vmul.f32 %v9863_v15, %v5977_v50 }
0x321e   : > { %v5980_v22 = vsel %vm5979_vm3, %v5978_v40, 0.0 }
0x321f   : > { %v5981_v54 = vrot.slane %v5980_v22, 4 }
0x3221   : > { %v5982_v55 = vadd.f32 %v5981_v54, %v5980_v22 }
0x3223   : > { %v5983_v56 = vrot.slane %v5982_v55, 2 }
0x3225   : > { %v5984_v53 = vadd.f32 %v5983_v56, %v5982_v55 }
0x3227   : > { %v5985_v58 = vrot.slane %v5984_v53, 1 }
0x3229   : > { %v5986_v59 = vadd.f32 %v5985_v58, %v5984_v53 }
0x322b   : > { %5988 = vst.msk [vmem:[%s659_s18] sm:$0x1] %vm5987_vm5, %v5986_v59 }
0x322c PF: > { %s10000_s19 = sld [smem:[#allocation8_spill]]  ;;  %s10001_s24 = sld [smem:[#allocation5_spill]] }
0x3232   : > { %p7716_p5 = scmp.ge.s32.totalorder %s10000_s19, 2  ;;  %s6036_s3 = sand.u32 1, %s10001_s24  }
0x3233   : > { %s6037_s2 = scalar_lea.sflag [#allocation3], %s6036_s3 }
0x3234   : > { %p7713_p1 = pnand %p7716_p5, %p8061_p6 }
0x3236   : > { %7892 = dma.done.wait (!%p7713_p1), %s6037_s2, 256  }
0x3237   : > { %7894 = vsyncadd (!%p7713_p1), %s6037_s2, 4294967040  ;;  %s10003_s21 = sld [smem:[#allocation10_spill]]  ;;  %s10004_s0 = sld [smem:[#allocation6_spill]] }
0x3238   : > { %s10005_s30 = sld [smem:[#allocation7_spill]]  ;;  %s10006_s20 = sld [smem:[#allocation11_spill]] }
0x323d   : > { %p30_p2 = scmp.ge.s32.totalorder %s10003_s21, 4  }
0x323f   :  { %32 = sbr.rel (!%p30_p2) target bundleno = 11 (0xb), region = 169 }
0x3246   :  { %6054 = vsyncpa [#allocation3], 1 }
0x3247   :  { %6056 = vsyncpa [#allocation3 + $0x1], 1 }

</bundles_post_ra>
